<compile_context>
chip_gen: v5e
topology: v5e:2x2
jax: 0.10.0
libtpu: 0.0.40
codegen_flags: <defaults>
</compile_context>

<pallas_src>
import functools
import math

import jax
import jax.numpy as jnp
from jax import lax
from jax.experimental import pallas as pl
from jax.experimental.pallas import tpu as pltpu

NEG_INF = -1e30  # finite stand-in for -inf (exp underflows to exactly 0 in f32)


def _layernorm(x, gamma, beta, eps=1e-5):
    mu = jnp.mean(x, axis=-1, keepdims=True)
    var = jnp.mean((x - mu) ** 2, axis=-1, keepdims=True)
    return (x - mu) * lax.rsqrt(var + eps) * gamma + beta


# ----------------------------------------------------------------------------
# Fused kernel: LSTM -> L x MemTransformerLayer -> decoder + log_softmax
# (one batch tile of `bt` rows per grid step)
# ----------------------------------------------------------------------------
def fused_forward_kernel(nhead, has_mask,
                         # ---- inputs (24) ----
                         x_ref, wih_t_ref, whh_t_ref, lstm_b_ref,
                         h0_ref, c0_ref,
                         wq_ref, wk_ref, wv_ref, bq_ref, bk_ref, bv_ref,
                         wo_ref, bo_ref, w1_ref, b1_ref, w2_ref, b2_ref,
                         g1_ref, be1_ref, g2_ref, be2_ref,
                         decw_ref, decb_ref,
                         # ---- outputs (4) ----
                         logp_ref, hn_ref, cn_ref, mems_ref,
                         # ---- scratch (2) ----
                         gx_ref, ctx_ref):
    S, bt, D = x_ref.shape
    L = wq_ref.shape[0]
    hd = D // nhead
    SBt = S * bt
    scale = 1.0 / math.sqrt(hd)
    bf16 = jnp.bfloat16

    # --------------------------- LSTM encoder ---------------------------
    # Hoisted input projection: one (S*bt, D) @ (D, 4D) matmul for all steps.
    x2 = x_ref[...].reshape(SBt, D).astype(bf16)
    gx = jnp.dot(x2, wih_t_ref[...], preferred_element_type=jnp.float32)
    gx_ref[...] = (gx + lstm_b_ref[...]).reshape(S, bt, 4 * D)

    whh = whh_t_ref[...]                       # (D, 4D) bf16, fused gates

    h = h0_ref[...]                            # (bt, D) f32
    c = c0_ref[...]
    # S is static -> fully unrolled recurrence; one fused recurrent matmul per
    # step, gates are lane slices of the lane-dense (bt, 4D) result.
    for t in range(S):
        gh = jnp.dot(h.astype(bf16), whh, preferred_element_type=jnp.float32)
        g = gx_ref[t] + gh                     # (bt, 4D) f32
        i_g = jax.nn.sigmoid(g[:, 0 * D:1 * D])
        f_g = jax.nn.sigmoid(g[:, 1 * D:2 * D])
        g_g = jnp.tanh(g[:, 2 * D:3 * D])
        o_g = jax.nn.sigmoid(g[:, 3 * D:4 * D])
        c = f_g * c + i_g * g_g
        h = o_g * jnp.tanh(c)
        mems_ref[0, t] = h                     # layer-0 memory, no extra scratch
    hn_ref[...] = h
    cn_ref[...] = c

    # ------------------------ transformer layers ------------------------
    if has_mask:
        # Causal mask generated in-kernel (no HBM-resident SBxSB mask).
        row = lax.broadcasted_iota(jnp.int32, (S, S), 0)
        col = lax.broadcasted_iota(jnp.int32, (S, S), 1)
        causal = jnp.where(col <= row, 0.0, NEG_INF).astype(jnp.float32)
        causal = causal[None, :, :]            # (1, S, S)

    # Batch-major residual stream: rows ordered (b, s) so attention is a plain
    # leading-batch-dim einsum per head (no cross-batch score columns).
    x_bm = jnp.transpose(mems_ref[0], (1, 0, 2))          # (bt, S, D) f32
    x = x_bm.reshape(SBt, D)

    for l in range(L):                                     # static, small L
        xb = x.astype(bf16)
        q = jnp.dot(xb, wq_ref[l], preferred_element_type=jnp.float32) + bq_ref[l]
        k = jnp.dot(xb, wk_ref[l], preferred_element_type=jnp.float32) + bk_ref[l]
        v = jnp.dot(xb, wv_ref[l], preferred_element_type=jnp.float32) + bv_ref[l]
        q3 = q.reshape(bt, S, D)
        k3 = k.reshape(bt, S, D)
        v3 = v.reshape(bt, S, D)

        for hh in range(nhead):                            # static head loop
            sl = slice(hh * hd, (hh + 1) * hd)
            qh = q3[:, :, sl].astype(bf16)                 # (bt, S, hd)
            kh = k3[:, :, sl].astype(bf16)
            vh = v3[:, :, sl].astype(bf16)
            scores = jnp.einsum('bqd,bkd->bqk', qh, kh,
                                preferred_element_type=jnp.float32) * scale
            if has_mask:
                scores = scores + causal                   # f32 mask add
            m = jnp.max(scores, axis=-1, keepdims=True)
            e = jnp.exp(scores - m)
            p = e * pl.reciprocal(jnp.sum(e, axis=-1, keepdims=True),
                                  approx=True)
            ctx_h = jnp.einsum('bqk,bkd->bqd', p.astype(bf16), vh,
                               preferred_element_type=jnp.float32)
            # Per-head write at a static lane offset (no concatenate).
            ctx_ref[:, sl] = ctx_h.reshape(SBt, hd)

        attn = jnp.dot(ctx_ref[...].astype(bf16), wo_ref[l],
                       preferred_element_type=jnp.float32) + bo_ref[l]
        y1 = _layernorm(x + attn, g1_ref[l], be1_ref[l])   # dropout1 = identity
        ff = jnp.dot(y1.astype(bf16), w1_ref[l],
                     preferred_element_type=jnp.float32) + b1_ref[l]
        ff = jnp.maximum(ff, 0.0)
        ff = jnp.dot(ff.astype(bf16), w2_ref[l],
                     preferred_element_type=jnp.float32) + b2_ref[l]
        x = _layernorm(y1 + ff, g2_ref[l], be2_ref[l])     # dropout2 = identity

        if l + 1 < L:
            # mems[l] = input of layer l (time-major, PyTorch layout).
            mems_ref[l + 1] = jnp.transpose(x.reshape(bt, S, D), (1, 0, 2))

    # ----------------------- decoder + log_softmax ----------------------
    logits = jnp.dot(x.astype(bf16), decw_ref[...],
                     preferred_element_type=jnp.float32) + decb_ref[...]
    m = jnp.max(logits, axis=-1, keepdims=True)
    z = logits - m
    lse = jnp.log(jnp.sum(jnp.exp(z), axis=-1, keepdims=True))
    logp_ref[...] = (z - lse).reshape(bt, S, logits.shape[-1])


# ----------------------------------------------------------------------------
# Wrapper: weight prep (pre-transpose / stack / pad / bf16 cast) + pallas_call
# ----------------------------------------------------------------------------
def lstm_transformer_forward(src, params, nhead, hidden=None, mems=None,
                             has_mask=True, batch_tile=8,
                             vmem_limit_bytes=48 * 1024 * 1024):
    if mems is not None:
        raise NotImplementedError("mems != None path not implemented")

    S, B = src.shape
    D = params['embedding'].shape[1]
    V = params['decoder_w'].shape[0]
    H = params['layers'][0]['lin1_w'].shape[0]
    L = len(params['layers'])
    assert D % nhead == 0

    bt = max(8, int(batch_tile))               # batch tile (>= 8 sublanes)
    Bp = ((B + bt - 1) // bt) * bt
    nb = Bp // bt
    Vp = ((V + 127) // 128) * 128              # lane-dense decoder output

    bf = jnp.bfloat16

    # Embedding lookup (data-dependent gather stays in plain JAX) + scale.
    x = params['embedding'][src].astype(jnp.float32) * math.sqrt(D)  # (S, B, D)
    if Bp != B:
        x = jnp.concatenate(
            [x, jnp.zeros((S, Bp - B, D), jnp.float32)], axis=1)     # (S, Bp, D)

    if hidden is None:                         # init_hidden -> zeros
        h0 = jnp.zeros((Bp, D), jnp.float32)
        c0 = jnp.zeros((Bp, D), jnp.float32)
    else:
        h0 = jnp.zeros((Bp, D), jnp.float32).at[:B].set(hidden[0][0])
        c0 = jnp.zeros((Bp, D), jnp.float32).at[:B].set(hidden[1][0])

    # LSTM weights: both projections pre-transposed to (D, 4D); biases fused.
    wih_t = params['lstm_wih'].T.astype(bf)
    whh_t = params['lstm_whh'].T.astype(bf)
    lstm_b = (params['lstm_bih'] + params['lstm_bhh']).reshape(1, 4 * D)
    lstm_b = lstm_b.astype(jnp.float32)

    def stack(fn, dtype):
        return jnp.stack([fn(lp) for lp in params['layers']]).astype(dtype)

    wq_s = stack(lambda lp: lp['in_proj_w'][0 * D:1 * D].T, bf)
    wk_s = stack(lambda lp: lp['in_proj_w'][1 * D:2 * D].T, bf)
    wv_s = stack(lambda lp: lp['in_proj_w'][2 * D:3 * D].T, bf)
    bq_s = stack(lambda lp: lp['in_proj_b'][0 * D:1 * D].reshape(1, D), jnp.float32)
    bk_s = stack(lambda lp: lp['in_proj_b'][1 * D:2 * D].reshape(1, D), jnp.float32)
    bv_s = stack(lambda lp: lp['in_proj_b'][2 * D:3 * D].reshape(1, D), jnp.float32)
    wo_s = stack(lambda lp: lp['out_proj_w'].T, bf)
    bo_s = stack(lambda lp: lp['out_proj_b'].reshape(1, D), jnp.float32)
    w1_s = stack(lambda lp: lp['lin1_w'].T, bf)
    b1_s = stack(lambda lp: lp['lin1_b'].reshape(1, H), jnp.float32)
    w2_s = stack(lambda lp: lp['lin2_w'].T, bf)
    b2_s = stack(lambda lp: lp['lin2_b'].reshape(1, D), jnp.float32)
    g1_s = stack(lambda lp: lp['norm1_g'].reshape(1, D), jnp.float32)
    be1_s = stack(lambda lp: lp['norm1_b'].reshape(1, D), jnp.float32)
    g2_s = stack(lambda lp: lp['norm2_g'].reshape(1, D), jnp.float32)
    be2_s = stack(lambda lp: lp['norm2_b'].reshape(1, D), jnp.float32)

    # Decoder: bf16 weight, lane-dense padded vocab; pad bias = -1e30 so pad
    # columns carry zero softmax mass.
    dec_w = jnp.zeros((D, Vp), bf).at[:, :V].set(params['decoder_w'].T.astype(bf))
    dec_b = jnp.full((1, Vp), NEG_INF, jnp.float32).at[:, :V].set(
        params['decoder_b'].astype(jnp.float32))

    args = (x, wih_t, whh_t, lstm_b, h0, c0,
            wq_s, wk_s, wv_s, bq_s, bk_s, bv_s,
            wo_s, bo_s, w1_s, b1_s, w2_s, b2_s,
            g1_s, be1_s, g2_s, be2_s,
            dec_w, dec_b)

    def full_spec(a):
        # Whole array resident each grid step (weights / biases).
        return pl.BlockSpec(a.shape, lambda b, _nd=a.ndim: (0,) * _nd)

    in_specs = [
        pl.BlockSpec((S, bt, D), lambda b: (0, b, 0)),     # x (batch-tiled)
        full_spec(wih_t), full_spec(whh_t), full_spec(lstm_b),
        pl.BlockSpec((bt, D), lambda b: (b, 0)),           # h0
        pl.BlockSpec((bt, D), lambda b: (b, 0)),           # c0
    ] + [full_spec(a) for a in args[6:]]

    out_shape = (
        jax.ShapeDtypeStruct((Bp, S, Vp), jnp.float32),    # log-probs (b-major)
        jax.ShapeDtypeStruct((Bp, D), jnp.float32),        # h_n
        jax.ShapeDtypeStruct((Bp, D), jnp.float32),        # c_n
        jax.ShapeDtypeStruct((L, S, Bp, D), jnp.float32),  # mems (time-major)
    )
    out_specs = (
        pl.BlockSpec((bt, S, Vp), lambda b: (b, 0, 0)),
        pl.BlockSpec((bt, D), lambda b: (b, 0)),
        pl.BlockSpec((bt, D), lambda b: (b, 0)),
        pl.BlockSpec((L, S, bt, D), lambda b: (0, 0, b, 0)),
    )

    logp_p, hn_p, cn_p, mems_p = pl.pallas_call(
        functools.partial(fused_forward_kernel, nhead, bool(has_mask)),
        grid=(nb,),
        out_shape=out_shape,
        in_specs=in_specs,
        out_specs=out_specs,
        scratch_shapes=[
            pltpu.VMEM((S, bt, 4 * D), jnp.float32),   # LSTM gate preactivations
            pltpu.VMEM((S * bt, D), jnp.float32),      # attention ctx (all heads)
        ],
        compiler_params=pltpu.CompilerParams(
            dimension_semantics=("parallel",),         # v7x: shard across TCs
            vmem_limit_bytes=vmem_limit_bytes),        # < 64 MiB for v7x headroom
    )(*args)

    # Strip batch / vocab padding; restore PyTorch layouts.
    logp = logp_p[:B, :, :V].transpose(1, 0, 2)                   # (S, B, V)
    hidden_out = (hn_p[:B][None, :, :], cn_p[:B][None, :, :])     # (1, B, D)
    new_mems = [mems_p[l, :, :B, :] for l in range(L)]            # (S, B, D)
    return logp, hidden_out, new_mems


# ----------------------------------------------------------------------------
# Pure-JAX f32 reference (mirrors the PyTorch forward, eval mode)
# ----------------------------------------------------------------------------
def _layernorm_ref(x, g, b, eps=1e-5):
    mu = x.mean(-1, keepdims=True)
    var = ((x - mu) ** 2).mean(-1, keepdims=True)
    return (x - mu) / jnp.sqrt(var + eps) * g + b


def reference_forward(src, params, nhead, has_mask=True):
    S, B = src.shape
    D = params['embedding'].shape[1]
    hd = D // nhead
    x = params['embedding'][src].astype(jnp.float32) * math.sqrt(D)

    wih, whh = params['lstm_wih'], params['lstm_whh']
    bias = params['lstm_bih'] + params['lstm_bhh']
    h = jnp.zeros((B, D), jnp.float32)
    c = jnp.zeros((B, D), jnp.float32)
    ys = []
    for t in range(S):
        g = x[t] @ wih.T + h @ whh.T + bias
        i = jax.nn.sigmoid(g[:, :D])
        f = jax.nn.sigmoid(g[:, D:2 * D])
        gg = jnp.tanh(g[:, 2 * D:3 * D])
        o = jax.nn.sigmoid(g[:, 3 * D:])
        c = f * c + i * gg
        h = o * jnp.tanh(c)
        ys.append(h)
    out = jnp.stack(ys, axis=0)
    hidden = (h[None], c[None])

    if has_mask:
        idx = jnp.arange(S)
        causal = jnp.where(idx[None, :] <= idx[:, None], 0.0, -jnp.inf)

    mems = []
    for lp in params['layers']:
        mems.append(out)
        q = out @ lp['in_proj_w'][:D].T + lp['in_proj_b'][:D]
        k = out @ lp['in_proj_w'][D:2 * D].T + lp['in_proj_b'][D:2 * D]
        v = out @ lp['in_proj_w'][2 * D:].T + lp['in_proj_b'][2 * D:]
        qh = q.reshape(S, B, nhead, hd).transpose(1, 2, 0, 3)
        kh = k.reshape(S, B, nhead, hd).transpose(1, 2, 0, 3)
        vh = v.reshape(S, B, nhead, hd).transpose(1, 2, 0, 3)
        scores = jnp.einsum('bhqd,bhkd->bhqk', qh, kh) / math.sqrt(hd)
        if has_mask:
            scores = scores + causal[None, None]
        p = jax.nn.softmax(scores, axis=-1)
        ctx = jnp.einsum('bhqk,bhkd->bhqd', p, vh)
        ctx = ctx.transpose(2, 0, 1, 3).reshape(S, B, D)
        attn = ctx @ lp['out_proj_w'].T + lp['out_proj_b']
        y1 = _layernorm_ref(out + attn, lp['norm1_g'], lp['norm1_b'])
        ff = jnp.maximum(y1 @ lp['lin1_w'].T + lp['lin1_b'], 0.0)
        ff = ff @ lp['lin2_w'].T + lp['lin2_b']
        out = _layernorm_ref(y1 + ff, lp['norm2_g'], lp['norm2_b'])

    logits = out @ params['decoder_w'].T + params['decoder_b']
    return jax.nn.log_softmax(logits, axis=-1), hidden, mems


# ----------------------------------------------------------------------------
# Deterministic parameter initialization (same shapes as the PyTorch module).
# ----------------------------------------------------------------------------
def init_params(key, ntoken, ninp, nhead, nhid, nlayers):
    keys = jax.random.split(key, 6 + nlayers)
    stdv = 1.0 / math.sqrt(ninp)
    stdv_h = 1.0 / math.sqrt(nhid)
    p = {
        'embedding': jax.random.uniform(keys[0], (ntoken, ninp), jnp.float32,
                                        -0.1, 0.1),
        'lstm_wih': jax.random.uniform(keys[1], (4 * ninp, ninp), jnp.float32,
                                       -stdv, stdv),
        'lstm_whh': jax.random.uniform(keys[2], (4 * ninp, ninp), jnp.float32,
                                       -stdv, stdv),
        'lstm_bih': jax.random.uniform(keys[3], (4 * ninp,), jnp.float32,
                                       -stdv, stdv),
        'lstm_bhh': jax.random.uniform(keys[4], (4 * ninp,), jnp.float32,
                                       -stdv, stdv),
        'decoder_w': jax.random.uniform(keys[5], (ntoken, ninp), jnp.float32,
                                        -0.1, 0.1),
        'decoder_b': jnp.zeros((ntoken,), jnp.float32),
    }
    layers = []
    for l in range(nlayers):
        lk = jax.random.split(keys[6 + l], 6)
        layers.append({
            'in_proj_w': jax.random.uniform(lk[0], (3 * ninp, ninp),
                                            jnp.float32, -stdv, stdv),
            'in_proj_b': jnp.zeros((3 * ninp,), jnp.float32),
            'out_proj_w': jax.random.uniform(lk[1], (ninp, ninp),
                                             jnp.float32, -stdv, stdv),
            'out_proj_b': jnp.zeros((ninp,), jnp.float32),
            'lin1_w': jax.random.uniform(lk[2], (nhid, ninp), jnp.float32,
                                         -stdv, stdv),
            'lin1_b': jax.random.uniform(lk[3], (nhid,), jnp.float32,
                                         -stdv, stdv),
            'lin2_w': jax.random.uniform(lk[4], (ninp, nhid), jnp.float32,
                                         -stdv_h, stdv_h),
            'lin2_b': jax.random.uniform(lk[5], (ninp,), jnp.float32,
                                         -stdv_h, stdv_h),
            'norm1_g': jnp.ones((ninp,), jnp.float32),
            'norm1_b': jnp.zeros((ninp,), jnp.float32),
            'norm2_g': jnp.ones((ninp,), jnp.float32),
            'norm2_b': jnp.zeros((ninp,), jnp.float32),
        })
    p['layers'] = layers
    return p


if __name__ == "__main__":
    ntoken, ninp, nhead, nhid, nlayers = 50, 32, 4, 64, 2
    S, B = 8, 2

    key = jax.random.PRNGKey(0)
    pkey, dkey = jax.random.split(key)
    params = init_params(pkey, ntoken, ninp, nhead, nhid, nlayers)
    src = jax.random.randint(dkey, (S, B), 0, ntoken, dtype=jnp.int32)

    logp, hidden, mems = lstm_transformer_forward(src, params, nhead)
    jax.block_until_ready((logp, hidden, mems))

    # Structural checks.
    assert logp.shape == (S, B, ntoken)
    assert hidden[0].shape == (1, B, ninp) and hidden[1].shape == (1, B, ninp)
    assert len(mems) == nlayers and mems[0].shape == (S, B, ninp)
    assert bool(jnp.allclose(jnp.exp(logp).sum(-1), 1.0, atol=1e-4))
    assert bool(jnp.all(jnp.isfinite(logp)))

    # Numerics vs. a pure-JAX f32 reference (kernel uses bf16 MXU operands,
    # so allow a loose tolerance well below any real-bug magnitude).
    ref_logp, ref_hidden, ref_mems = reference_forward(src, params, nhead)
    assert float(jnp.max(jnp.abs(logp - ref_logp))) < 0.2
    assert float(jnp.max(jnp.abs(hidden[0] - ref_hidden[0]))) < 0.1
    assert float(jnp.max(jnp.abs(hidden[1] - ref_hidden[1]))) < 0.1
    assert float(jnp.max(jnp.abs(jnp.stack(mems) - jnp.stack(ref_mems)))) < 0.1

    print("KERNEL_OK")
</pallas_src>

<mosaic_0001>
module attributes {stable_mosaic.version = 11 : i64} {
  func.func @fused_forward_kernel(%arg0: i32, %arg1: memref<8x8x32xf32, #tpu.memory_space<vmem>>, %arg2: memref<32x128xbf16, #tpu.memory_space<vmem>>, %arg3: memref<32x128xbf16, #tpu.memory_space<vmem>>, %arg4: memref<1x128xf32, #tpu.memory_space<vmem>>, %arg5: memref<8x32xf32, #tpu.memory_space<vmem>>, %arg6: memref<8x32xf32, #tpu.memory_space<vmem>>, %arg7: memref<2x32x32xbf16, #tpu.memory_space<vmem>>, %arg8: memref<2x32x32xbf16, #tpu.memory_space<vmem>>, %arg9: memref<2x32x32xbf16, #tpu.memory_space<vmem>>, %arg10: memref<2x1x32xf32, #tpu.memory_space<vmem>>, %arg11: memref<2x1x32xf32, #tpu.memory_space<vmem>>, %arg12: memref<2x1x32xf32, #tpu.memory_space<vmem>>, %arg13: memref<2x32x32xbf16, #tpu.memory_space<vmem>>, %arg14: memref<2x1x32xf32, #tpu.memory_space<vmem>>, %arg15: memref<2x32x64xbf16, #tpu.memory_space<vmem>>, %arg16: memref<2x1x64xf32, #tpu.memory_space<vmem>>, %arg17: memref<2x64x32xbf16, #tpu.memory_space<vmem>>, %arg18: memref<2x1x32xf32, #tpu.memory_space<vmem>>, %arg19: memref<2x1x32xf32, #tpu.memory_space<vmem>>, %arg20: memref<2x1x32xf32, #tpu.memory_space<vmem>>, %arg21: memref<2x1x32xf32, #tpu.memory_space<vmem>>, %arg22: memref<2x1x32xf32, #tpu.memory_space<vmem>>, %arg23: memref<32x128xbf16, #tpu.memory_space<vmem>>, %arg24: memref<1x128xf32, #tpu.memory_space<vmem>>, %arg25: memref<8x8x128xf32, #tpu.memory_space<vmem>>, %arg26: memref<8x32xf32, #tpu.memory_space<vmem>>, %arg27: memref<8x32xf32, #tpu.memory_space<vmem>>, %arg28: memref<2x8x8x32xf32, #tpu.memory_space<vmem>>, %arg29: memref<8x8x128xf32, #tpu.memory_space<vmem>>, %arg30: memref<64x32xf32, #tpu.memory_space<vmem>>) attributes {dimension_semantics = [#tpu.dimension_semantics<parallel>], iteration_bounds = array<i64: 1>, scalar_prefetch = 0 : i64, scratch_operands = 2 : i64, tpu.core_type = #tpu.core_type<tc>, window_params = [{transform_indices = @transform_0, window_bounds = array<i64: 8, 8, 32>}, {pipeline_mode = #tpu.pipeline_mode<synchronous>, transform_indices = @transform_1, window_bounds = array<i64: 32, 128>}, {pipeline_mode = #tpu.pipeline_mode<synchronous>, transform_indices = @transform_2, window_bounds = array<i64: 32, 128>}, {pipeline_mode = #tpu.pipeline_mode<synchronous>, transform_indices = @transform_3, window_bounds = array<i64: 1, 128>}, {transform_indices = @transform_4, window_bounds = array<i64: 8, 32>}, {transform_indices = @transform_5, window_bounds = array<i64: 8, 32>}, {pipeline_mode = #tpu.pipeline_mode<synchronous>, transform_indices = @transform_6, window_bounds = array<i64: 2, 32, 32>}, {pipeline_mode = #tpu.pipeline_mode<synchronous>, transform_indices = @transform_7, window_bounds = array<i64: 2, 32, 32>}, {pipeline_mode = #tpu.pipeline_mode<synchronous>, transform_indices = @transform_8, window_bounds = array<i64: 2, 32, 32>}, {pipeline_mode = #tpu.pipeline_mode<synchronous>, transform_indices = @transform_9, window_bounds = array<i64: 2, 1, 32>}, {pipeline_mode = #tpu.pipeline_mode<synchronous>, transform_indices = @transform_10, window_bounds = array<i64: 2, 1, 32>}, {pipeline_mode = #tpu.pipeline_mode<synchronous>, transform_indices = @transform_11, window_bounds = array<i64: 2, 1, 32>}, {pipeline_mode = #tpu.pipeline_mode<synchronous>, transform_indices = @transform_12, window_bounds = array<i64: 2, 32, 32>}, {pipeline_mode = #tpu.pipeline_mode<synchronous>, transform_indices = @transform_13, window_bounds = array<i64: 2, 1, 32>}, {pipeline_mode = #tpu.pipeline_mode<synchronous>, transform_indices = @transform_14, window_bounds = array<i64: 2, 32, 64>}, {pipeline_mode = #tpu.pipeline_mode<synchronous>, transform_indices = @transform_15, window_bounds = array<i64: 2, 1, 64>}, {pipeline_mode = #tpu.pipeline_mode<synchronous>, transform_indices = @transform_16, window_bounds = array<i64: 2, 64, 32>}, {pipeline_mode = #tpu.pipeline_mode<synchronous>, transform_indices = @transform_17, window_bounds = array<i64: 2, 1, 32>}, {pipeline_mode = #tpu.pipeline_mode<synchronous>, transform_indices = @transform_18, window_bounds = array<i64: 2, 1, 32>}, {pipeline_mode = #tpu.pipeline_mode<synchronous>, transform_indices = @transform_19, window_bounds = array<i64: 2, 1, 32>}, {pipeline_mode = #tpu.pipeline_mode<synchronous>, transform_indices = @transform_20, window_bounds = array<i64: 2, 1, 32>}, {pipeline_mode = #tpu.pipeline_mode<synchronous>, transform_indices = @transform_21, window_bounds = array<i64: 2, 1, 32>}, {pipeline_mode = #tpu.pipeline_mode<synchronous>, transform_indices = @transform_22, window_bounds = array<i64: 32, 128>}, {pipeline_mode = #tpu.pipeline_mode<synchronous>, transform_indices = @transform_23, window_bounds = array<i64: 1, 128>}, {transform_indices = @transform_24, window_bounds = array<i64: 8, 8, 128>}, {transform_indices = @transform_25, window_bounds = array<i64: 8, 32>}, {transform_indices = @transform_26, window_bounds = array<i64: 8, 32>}, {transform_indices = @transform_27, window_bounds = array<i64: 2, 8, 8, 32>}]} {
    %c0 = arith.constant 0 : index
    %c0_0 = arith.constant 0 : index
    %c0_1 = arith.constant 0 : index
    %0 = vector.load %arg1[%c0, %c0_0, %c0_1] : memref<8x8x32xf32, #tpu.memory_space<vmem>>, vector<8x8x32xf32>
    %1 = vector.shape_cast %0 : vector<8x8x32xf32> to vector<64x32xf32>
    %2 = arith.truncf %1 : vector<64x32xf32> to vector<64x32xbf16>
    %c0_2 = arith.constant 0 : index
    %c0_3 = arith.constant 0 : index
    %3 = vector.load %arg2[%c0_2, %c0_3] : memref<32x128xbf16, #tpu.memory_space<vmem>>, vector<32x128xbf16>
    %cst = arith.constant dense<0.000000e+00> : vector<64x128xf32>
    %4 = tpu.matmul %2, %3, %cst {dimension_numbers = #tpu.dot_dimension_numbers<[1], [0], [0], [1], [0, 0, 1, 1], [], []>} : vector<64x32xbf16>, vector<32x128xbf16>, vector<64x128xf32> -> vector<64x128xf32>
    %c0_4 = arith.constant 0 : index
    %c0_5 = arith.constant 0 : index
    %5 = vector.load %arg4[%c0_4, %c0_5] : memref<1x128xf32, #tpu.memory_space<vmem>>, vector<1x128xf32>
    %6 = vector.broadcast %5 : vector<1x128xf32> to vector<64x128xf32>
    %7 = arith.addf %4, %6 : vector<64x128xf32>
    %8 = vector.shape_cast %7 : vector<64x128xf32> to vector<8x8x128xf32>
    %c0_6 = arith.constant 0 : index
    %c0_7 = arith.constant 0 : index
    %c0_8 = arith.constant 0 : index
    %9 = vector.load %arg29[%c0_6, %c0_7, %c0_8] : memref<8x8x128xf32, #tpu.memory_space<vmem>>, vector<8x8x128xf32>
    tpu.vector_store %arg29[%c0_6, %c0_7, %c0_8], %8 {strides = array<i32>} : memref<8x8x128xf32, #tpu.memory_space<vmem>>, vector<8x8x128xf32>,
    %c0_9 = arith.constant 0 : index
    %c0_10 = arith.constant 0 : index
    %10 = vector.load %arg3[%c0_9, %c0_10] : memref<32x128xbf16, #tpu.memory_space<vmem>>, vector<32x128xbf16>
    %c0_11 = arith.constant 0 : index
    %c0_12 = arith.constant 0 : index
    %11 = vector.load %arg5[%c0_11, %c0_12] : memref<8x32xf32, #tpu.memory_space<vmem>>, vector<8x32xf32>
    %c0_13 = arith.constant 0 : index
    %c0_14 = arith.constant 0 : index
    %12 = vector.load %arg6[%c0_13, %c0_14] : memref<8x32xf32, #tpu.memory_space<vmem>>, vector<8x32xf32>
    %13 = arith.truncf %11 : vector<8x32xf32> to vector<8x32xbf16>
    %cst_15 = arith.constant dense<0.000000e+00> : vector<8x128xf32>
    %14 = tpu.matmul %13, %10, %cst_15 {dimension_numbers = #tpu.dot_dimension_numbers<[1], [0], [0], [1], [0, 0, 1, 1], [], []>} : vector<8x32xbf16>, vector<32x128xbf16>, vector<8x128xf32> -> vector<8x128xf32>
    %c0_16 = arith.constant 0 : index
    %c0_17 = arith.constant 0 : index
    %c0_18 = arith.constant 0 : index
    %15 = vector.load %arg29[%c0_16, %c0_17, %c0_18] : memref<8x8x128xf32, #tpu.memory_space<vmem>>, vector<1x8x128xf32>
    %16 = vector.shape_cast %15 : vector<1x8x128xf32> to vector<8x128xf32>
    %17 = arith.addf %16, %14 : vector<8x128xf32>
    %18 = vector.extract_strided_slice %17 {offsets = [0, 0], sizes = [8, 32], strides = [1, 1]} : vector<8x128xf32> to vector<8x32xf32>
    %19 = arith.negf %18 : vector<8x32xf32>
    %20 = math.exp %19 : vector<8x32xf32>
    %cst_19 = arith.constant 1.000000e+00 : f32
    %21 = vector.broadcast %cst_19 : f32 to vector<8x32xf32>
    %22 = arith.addf %21, %20 : vector<8x32xf32>
    %23 = arith.divf %21, %22 : vector<8x32xf32>
    %24 = vector.extract_strided_slice %17 {offsets = [0, 32], sizes = [8, 32], strides = [1, 1]} : vector<8x128xf32> to vector<8x32xf32>
    %25 = arith.negf %24 : vector<8x32xf32>
    %26 = math.exp %25 : vector<8x32xf32>
    %cst_20 = arith.constant 1.000000e+00 : f32
    %27 = vector.broadcast %cst_20 : f32 to vector<8x32xf32>
    %28 = arith.addf %27, %26 : vector<8x32xf32>
    %29 = arith.divf %27, %28 : vector<8x32xf32>
    %30 = vector.extract_strided_slice %17 {offsets = [0, 64], sizes = [8, 32], strides = [1, 1]} : vector<8x128xf32> to vector<8x32xf32>
    %31 = math.tanh %30 : vector<8x32xf32>
    %32 = vector.extract_strided_slice %17 {offsets = [0, 96], sizes = [8, 32], strides = [1, 1]} : vector<8x128xf32> to vector<8x32xf32>
    %33 = arith.negf %32 : vector<8x32xf32>
    %34 = math.exp %33 : vector<8x32xf32>
    %cst_21 = arith.constant 1.000000e+00 : f32
    %35 = vector.broadcast %cst_21 : f32 to vector<8x32xf32>
    %36 = arith.addf %35, %34 : vector<8x32xf32>
    %37 = arith.divf %35, %36 : vector<8x32xf32>
    %38 = arith.mulf %29, %12 : vector<8x32xf32>
    %39 = arith.mulf %23, %31 : vector<8x32xf32>
    %40 = arith.addf %38, %39 : vector<8x32xf32>
    %41 = math.tanh %40 : vector<8x32xf32>
    %42 = arith.mulf %37, %41 : vector<8x32xf32>
    %c0_22 = arith.constant 0 : index
    %c0_23 = arith.constant 0 : index
    %c0_24 = arith.constant 0 : index
    %c0_25 = arith.constant 0 : index
    %43 = vector.load %arg28[%c0_22, %c0_23, %c0_24, %c0_25] : memref<2x8x8x32xf32, #tpu.memory_space<vmem>>, vector<1x1x8x32xf32>
    %44 = vector.shape_cast %43 : vector<1x1x8x32xf32> to vector<8x32xf32>
    %45 = vector.shape_cast %42 : vector<8x32xf32> to vector<1x1x8x32xf32>
    tpu.vector_store %arg28[%c0_22, %c0_23, %c0_24, %c0_25], %45 {strides = array<i32>} : memref<2x8x8x32xf32, #tpu.memory_space<vmem>>, vector<1x1x8x32xf32>,
    %46 = arith.truncf %42 : vector<8x32xf32> to vector<8x32xbf16>
    %cst_26 = arith.constant dense<0.000000e+00> : vector<8x128xf32>
    %47 = tpu.matmul %46, %10, %cst_26 {dimension_numbers = #tpu.dot_dimension_numbers<[1], [0], [0], [1], [0, 0, 1, 1], [], []>} : vector<8x32xbf16>, vector<32x128xbf16>, vector<8x128xf32> -> vector<8x128xf32>
    %c1 = arith.constant 1 : index
    %c0_27 = arith.constant 0 : index
    %c0_28 = arith.constant 0 : index
    %48 = vector.load %arg29[%c1, %c0_27, %c0_28] : memref<8x8x128xf32, #tpu.memory_space<vmem>>, vector<1x8x128xf32>
    %49 = vector.shape_cast %48 : vector<1x8x128xf32> to vector<8x128xf32>
    %50 = arith.addf %49, %47 : vector<8x128xf32>
    %51 = vector.extract_strided_slice %50 {offsets = [0, 0], sizes = [8, 32], strides = [1, 1]} : vector<8x128xf32> to vector<8x32xf32>
    %52 = arith.negf %51 : vector<8x32xf32>
    %53 = math.exp %52 : vector<8x32xf32>
    %cst_29 = arith.constant 1.000000e+00 : f32
    %54 = vector.broadcast %cst_29 : f32 to vector<8x32xf32>
    %55 = arith.addf %54, %53 : vector<8x32xf32>
    %56 = arith.divf %54, %55 : vector<8x32xf32>
    %57 = vector.extract_strided_slice %50 {offsets = [0, 32], sizes = [8, 32], strides = [1, 1]} : vector<8x128xf32> to vector<8x32xf32>
    %58 = arith.negf %57 : vector<8x32xf32>
    %59 = math.exp %58 : vector<8x32xf32>
    %cst_30 = arith.constant 1.000000e+00 : f32
    %60 = vector.broadcast %cst_30 : f32 to vector<8x32xf32>
    %61 = arith.addf %60, %59 : vector<8x32xf32>
    %62 = arith.divf %60, %61 : vector<8x32xf32>
    %63 = vector.extract_strided_slice %50 {offsets = [0, 64], sizes = [8, 32], strides = [1, 1]} : vector<8x128xf32> to vector<8x32xf32>
    %64 = math.tanh %63 : vector<8x32xf32>
    %65 = vector.extract_strided_slice %50 {offsets = [0, 96], sizes = [8, 32], strides = [1, 1]} : vector<8x128xf32> to vector<8x32xf32>
    %66 = arith.negf %65 : vector<8x32xf32>
    %67 = math.exp %66 : vector<8x32xf32>
    %cst_31 = arith.constant 1.000000e+00 : f32
    %68 = vector.broadcast %cst_31 : f32 to vector<8x32xf32>
    %69 = arith.addf %68, %67 : vector<8x32xf32>
    %70 = arith.divf %68, %69 : vector<8x32xf32>
    %71 = arith.mulf %62, %40 : vector<8x32xf32>
    %72 = arith.mulf %56, %64 : vector<8x32xf32>
    %73 = arith.addf %71, %72 : vector<8x32xf32>
    %74 = math.tanh %73 : vector<8x32xf32>
    %75 = arith.mulf %70, %74 : vector<8x32xf32>
    %c0_32 = arith.constant 0 : index
    %c1_33 = arith.constant 1 : index
    %c0_34 = arith.constant 0 : index
    %c0_35 = arith.constant 0 : index
    %76 = vector.load %arg28[%c0_32, %c1_33, %c0_34, %c0_35] : memref<2x8x8x32xf32, #tpu.memory_space<vmem>>, vector<1x1x8x32xf32>
    %77 = vector.shape_cast %76 : vector<1x1x8x32xf32> to vector<8x32xf32>
    %78 = vector.shape_cast %75 : vector<8x32xf32> to vector<1x1x8x32xf32>
    tpu.vector_store %arg28[%c0_32, %c1_33, %c0_34, %c0_35], %78 {strides = array<i32>} : memref<2x8x8x32xf32, #tpu.memory_space<vmem>>, vector<1x1x8x32xf32>,
    %79 = arith.truncf %75 : vector<8x32xf32> to vector<8x32xbf16>
    %cst_36 = arith.constant dense<0.000000e+00> : vector<8x128xf32>
    %80 = tpu.matmul %79, %10, %cst_36 {dimension_numbers = #tpu.dot_dimension_numbers<[1], [0], [0], [1], [0, 0, 1, 1], [], []>} : vector<8x32xbf16>, vector<32x128xbf16>, vector<8x128xf32> -> vector<8x128xf32>
    %c2 = arith.constant 2 : index
    %c0_37 = arith.constant 0 : index
    %c0_38 = arith.constant 0 : index
    %81 = vector.load %arg29[%c2, %c0_37, %c0_38] : memref<8x8x128xf32, #tpu.memory_space<vmem>>, vector<1x8x128xf32>
    %82 = vector.shape_cast %81 : vector<1x8x128xf32> to vector<8x128xf32>
    %83 = arith.addf %82, %80 : vector<8x128xf32>
    %84 = vector.extract_strided_slice %83 {offsets = [0, 0], sizes = [8, 32], strides = [1, 1]} : vector<8x128xf32> to vector<8x32xf32>
    %85 = arith.negf %84 : vector<8x32xf32>
    %86 = math.exp %85 : vector<8x32xf32>
    %cst_39 = arith.constant 1.000000e+00 : f32
    %87 = vector.broadcast %cst_39 : f32 to vector<8x32xf32>
    %88 = arith.addf %87, %86 : vector<8x32xf32>
    %89 = arith.divf %87, %88 : vector<8x32xf32>
    %90 = vector.extract_strided_slice %83 {offsets = [0, 32], sizes = [8, 32], strides = [1, 1]} : vector<8x128xf32> to vector<8x32xf32>
    %91 = arith.negf %90 : vector<8x32xf32>
    %92 = math.exp %91 : vector<8x32xf32>
    %cst_40 = arith.constant 1.000000e+00 : f32
    %93 = vector.broadcast %cst_40 : f32 to vector<8x32xf32>
    %94 = arith.addf %93, %92 : vector<8x32xf32>
    %95 = arith.divf %93, %94 : vector<8x32xf32>
    %96 = vector.extract_strided_slice %83 {offsets = [0, 64], sizes = [8, 32], strides = [1, 1]} : vector<8x128xf32> to vector<8x32xf32>
    %97 = math.tanh %96 : vector<8x32xf32>
    %98 = vector.extract_strided_slice %83 {offsets = [0, 96], sizes = [8, 32], strides = [1, 1]} : vector<8x128xf32> to vector<8x32xf32>
    %99 = arith.negf %98 : vector<8x32xf32>
    %100 = math.exp %99 : vector<8x32xf32>
    %cst_41 = arith.constant 1.000000e+00 : f32
    %101 = vector.broadcast %cst_41 : f32 to vector<8x32xf32>
    %102 = arith.addf %101, %100 : vector<8x32xf32>
    %103 = arith.divf %101, %102 : vector<8x32xf32>
    %104 = arith.mulf %95, %73 : vector<8x32xf32>
    %105 = arith.mulf %89, %97 : vector<8x32xf32>
    %106 = arith.addf %104, %105 : vector<8x32xf32>
    %107 = math.tanh %106 : vector<8x32xf32>
    %108 = arith.mulf %103, %107 : vector<8x32xf32>
    %c0_42 = arith.constant 0 : index
    %c2_43 = arith.constant 2 : index
    %c0_44 = arith.constant 0 : index
    %c0_45 = arith.constant 0 : index
    %109 = vector.load %arg28[%c0_42, %c2_43, %c0_44, %c0_45] : memref<2x8x8x32xf32, #tpu.memory_space<vmem>>, vector<1x1x8x32xf32>
    %110 = vector.shape_cast %109 : vector<1x1x8x32xf32> to vector<8x32xf32>
    %111 = vector.shape_cast %108 : vector<8x32xf32> to vector<1x1x8x32xf32>
    tpu.vector_store %arg28[%c0_42, %c2_43, %c0_44, %c0_45], %111 {strides = array<i32>} : memref<2x8x8x32xf32, #tpu.memory_space<vmem>>, vector<1x1x8x32xf32>,
    %112 = arith.truncf %108 : vector<8x32xf32> to vector<8x32xbf16>
    %cst_46 = arith.constant dense<0.000000e+00> : vector<8x128xf32>
    %113 = tpu.matmul %112, %10, %cst_46 {dimension_numbers = #tpu.dot_dimension_numbers<[1], [0], [0], [1], [0, 0, 1, 1], [], []>} : vector<8x32xbf16>, vector<32x128xbf16>, vector<8x128xf32> -> vector<8x128xf32>
    %c3 = arith.constant 3 : index
    %c0_47 = arith.constant 0 : index
    %c0_48 = arith.constant 0 : index
    %114 = vector.load %arg29[%c3, %c0_47, %c0_48] : memref<8x8x128xf32, #tpu.memory_space<vmem>>, vector<1x8x128xf32>
    %115 = vector.shape_cast %114 : vector<1x8x128xf32> to vector<8x128xf32>
    %116 = arith.addf %115, %113 : vector<8x128xf32>
    %117 = vector.extract_strided_slice %116 {offsets = [0, 0], sizes = [8, 32], strides = [1, 1]} : vector<8x128xf32> to vector<8x32xf32>
    %118 = arith.negf %117 : vector<8x32xf32>
    %119 = math.exp %118 : vector<8x32xf32>
    %cst_49 = arith.constant 1.000000e+00 : f32
    %120 = vector.broadcast %cst_49 : f32 to vector<8x32xf32>
    %121 = arith.addf %120, %119 : vector<8x32xf32>
    %122 = arith.divf %120, %121 : vector<8x32xf32>
    %123 = vector.extract_strided_slice %116 {offsets = [0, 32], sizes = [8, 32], strides = [1, 1]} : vector<8x128xf32> to vector<8x32xf32>
    %124 = arith.negf %123 : vector<8x32xf32>
    %125 = math.exp %124 : vector<8x32xf32>
    %cst_50 = arith.constant 1.000000e+00 : f32
    %126 = vector.broadcast %cst_50 : f32 to vector<8x32xf32>
    %127 = arith.addf %126, %125 : vector<8x32xf32>
    %128 = arith.divf %126, %127 : vector<8x32xf32>
    %129 = vector.extract_strided_slice %116 {offsets = [0, 64], sizes = [8, 32], strides = [1, 1]} : vector<8x128xf32> to vector<8x32xf32>
    %130 = math.tanh %129 : vector<8x32xf32>
    %131 = vector.extract_strided_slice %116 {offsets = [0, 96], sizes = [8, 32], strides = [1, 1]} : vector<8x128xf32> to vector<8x32xf32>
    %132 = arith.negf %131 : vector<8x32xf32>
    %133 = math.exp %132 : vector<8x32xf32>
    %cst_51 = arith.constant 1.000000e+00 : f32
    %134 = vector.broadcast %cst_51 : f32 to vector<8x32xf32>
    %135 = arith.addf %134, %133 : vector<8x32xf32>
    %136 = arith.divf %134, %135 : vector<8x32xf32>
    %137 = arith.mulf %128, %106 : vector<8x32xf32>
    %138 = arith.mulf %122, %130 : vector<8x32xf32>
    %139 = arith.addf %137, %138 : vector<8x32xf32>
    %140 = math.tanh %139 : vector<8x32xf32>
    %141 = arith.mulf %136, %140 : vector<8x32xf32>
    %c0_52 = arith.constant 0 : index
    %c3_53 = arith.constant 3 : index
    %c0_54 = arith.constant 0 : index
    %c0_55 = arith.constant 0 : index
    %142 = vector.load %arg28[%c0_52, %c3_53, %c0_54, %c0_55] : memref<2x8x8x32xf32, #tpu.memory_space<vmem>>, vector<1x1x8x32xf32>
    %143 = vector.shape_cast %142 : vector<1x1x8x32xf32> to vector<8x32xf32>
    %144 = vector.shape_cast %141 : vector<8x32xf32> to vector<1x1x8x32xf32>
    tpu.vector_store %arg28[%c0_52, %c3_53, %c0_54, %c0_55], %144 {strides = array<i32>} : memref<2x8x8x32xf32, #tpu.memory_space<vmem>>, vector<1x1x8x32xf32>,
    %145 = arith.truncf %141 : vector<8x32xf32> to vector<8x32xbf16>
    %cst_56 = arith.constant dense<0.000000e+00> : vector<8x128xf32>
    %146 = tpu.matmul %145, %10, %cst_56 {dimension_numbers = #tpu.dot_dimension_numbers<[1], [0], [0], [1], [0, 0, 1, 1], [], []>} : vector<8x32xbf16>, vector<32x128xbf16>, vector<8x128xf32> -> vector<8x128xf32>
    %c4 = arith.constant 4 : index
    %c0_57 = arith.constant 0 : index
    %c0_58 = arith.constant 0 : index
    %147 = vector.load %arg29[%c4, %c0_57, %c0_58] : memref<8x8x128xf32, #tpu.memory_space<vmem>>, vector<1x8x128xf32>
    %148 = vector.shape_cast %147 : vector<1x8x128xf32> to vector<8x128xf32>
    %149 = arith.addf %148, %146 : vector<8x128xf32>
    %150 = vector.extract_strided_slice %149 {offsets = [0, 0], sizes = [8, 32], strides = [1, 1]} : vector<8x128xf32> to vector<8x32xf32>
    %151 = arith.negf %150 : vector<8x32xf32>
    %152 = math.exp %151 : vector<8x32xf32>
    %cst_59 = arith.constant 1.000000e+00 : f32
    %153 = vector.broadcast %cst_59 : f32 to vector<8x32xf32>
    %154 = arith.addf %153, %152 : vector<8x32xf32>
    %155 = arith.divf %153, %154 : vector<8x32xf32>
    %156 = vector.extract_strided_slice %149 {offsets = [0, 32], sizes = [8, 32], strides = [1, 1]} : vector<8x128xf32> to vector<8x32xf32>
    %157 = arith.negf %156 : vector<8x32xf32>
    %158 = math.exp %157 : vector<8x32xf32>
    %cst_60 = arith.constant 1.000000e+00 : f32
    %159 = vector.broadcast %cst_60 : f32 to vector<8x32xf32>
    %160 = arith.addf %159, %158 : vector<8x32xf32>
    %161 = arith.divf %159, %160 : vector<8x32xf32>
    %162 = vector.extract_strided_slice %149 {offsets = [0, 64], sizes = [8, 32], strides = [1, 1]} : vector<8x128xf32> to vector<8x32xf32>
    %163 = math.tanh %162 : vector<8x32xf32>
    %164 = vector.extract_strided_slice %149 {offsets = [0, 96], sizes = [8, 32], strides = [1, 1]} : vector<8x128xf32> to vector<8x32xf32>
    %165 = arith.negf %164 : vector<8x32xf32>
    %166 = math.exp %165 : vector<8x32xf32>
    %cst_61 = arith.constant 1.000000e+00 : f32
    %167 = vector.broadcast %cst_61 : f32 to vector<8x32xf32>
    %168 = arith.addf %167, %166 : vector<8x32xf32>
    %169 = arith.divf %167, %168 : vector<8x32xf32>
    %170 = arith.mulf %161, %139 : vector<8x32xf32>
    %171 = arith.mulf %155, %163 : vector<8x32xf32>
    %172 = arith.addf %170, %171 : vector<8x32xf32>
    %173 = math.tanh %172 : vector<8x32xf32>
    %174 = arith.mulf %169, %173 : vector<8x32xf32>
    %c0_62 = arith.constant 0 : index
    %c4_63 = arith.constant 4 : index
    %c0_64 = arith.constant 0 : index
    %c0_65 = arith.constant 0 : index
    %175 = vector.load %arg28[%c0_62, %c4_63, %c0_64, %c0_65] : memref<2x8x8x32xf32, #tpu.memory_space<vmem>>, vector<1x1x8x32xf32>
    %176 = vector.shape_cast %175 : vector<1x1x8x32xf32> to vector<8x32xf32>
    %177 = vector.shape_cast %174 : vector<8x32xf32> to vector<1x1x8x32xf32>
    tpu.vector_store %arg28[%c0_62, %c4_63, %c0_64, %c0_65], %177 {strides = array<i32>} : memref<2x8x8x32xf32, #tpu.memory_space<vmem>>, vector<1x1x8x32xf32>,
    %178 = arith.truncf %174 : vector<8x32xf32> to vector<8x32xbf16>
    %cst_66 = arith.constant dense<0.000000e+00> : vector<8x128xf32>
    %179 = tpu.matmul %178, %10, %cst_66 {dimension_numbers = #tpu.dot_dimension_numbers<[1], [0], [0], [1], [0, 0, 1, 1], [], []>} : vector<8x32xbf16>, vector<32x128xbf16>, vector<8x128xf32> -> vector<8x128xf32>
    %c5 = arith.constant 5 : index
    %c0_67 = arith.constant 0 : index
    %c0_68 = arith.constant 0 : index
    %180 = vector.load %arg29[%c5, %c0_67, %c0_68] : memref<8x8x128xf32, #tpu.memory_space<vmem>>, vector<1x8x128xf32>
    %181 = vector.shape_cast %180 : vector<1x8x128xf32> to vector<8x128xf32>
    %182 = arith.addf %181, %179 : vector<8x128xf32>
    %183 = vector.extract_strided_slice %182 {offsets = [0, 0], sizes = [8, 32], strides = [1, 1]} : vector<8x128xf32> to vector<8x32xf32>
    %184 = arith.negf %183 : vector<8x32xf32>
    %185 = math.exp %184 : vector<8x32xf32>
    %cst_69 = arith.constant 1.000000e+00 : f32
    %186 = vector.broadcast %cst_69 : f32 to vector<8x32xf32>
    %187 = arith.addf %186, %185 : vector<8x32xf32>
    %188 = arith.divf %186, %187 : vector<8x32xf32>
    %189 = vector.extract_strided_slice %182 {offsets = [0, 32], sizes = [8, 32], strides = [1, 1]} : vector<8x128xf32> to vector<8x32xf32>
    %190 = arith.negf %189 : vector<8x32xf32>
    %191 = math.exp %190 : vector<8x32xf32>
    %cst_70 = arith.constant 1.000000e+00 : f32
    %192 = vector.broadcast %cst_70 : f32 to vector<8x32xf32>
    %193 = arith.addf %192, %191 : vector<8x32xf32>
    %194 = arith.divf %192, %193 : vector<8x32xf32>
    %195 = vector.extract_strided_slice %182 {offsets = [0, 64], sizes = [8, 32], strides = [1, 1]} : vector<8x128xf32> to vector<8x32xf32>
    %196 = math.tanh %195 : vector<8x32xf32>
    %197 = vector.extract_strided_slice %182 {offsets = [0, 96], sizes = [8, 32], strides = [1, 1]} : vector<8x128xf32> to vector<8x32xf32>
    %198 = arith.negf %197 : vector<8x32xf32>
    %199 = math.exp %198 : vector<8x32xf32>
    %cst_71 = arith.constant 1.000000e+00 : f32
    %200 = vector.broadcast %cst_71 : f32 to vector<8x32xf32>
    %201 = arith.addf %200, %199 : vector<8x32xf32>
    %202 = arith.divf %200, %201 : vector<8x32xf32>
    %203 = arith.mulf %194, %172 : vector<8x32xf32>
    %204 = arith.mulf %188, %196 : vector<8x32xf32>
    %205 = arith.addf %203, %204 : vector<8x32xf32>
    %206 = math.tanh %205 : vector<8x32xf32>
    %207 = arith.mulf %202, %206 : vector<8x32xf32>
    %c0_72 = arith.constant 0 : index
    %c5_73 = arith.constant 5 : index
    %c0_74 = arith.constant 0 : index
    %c0_75 = arith.constant 0 : index
    %208 = vector.load %arg28[%c0_72, %c5_73, %c0_74, %c0_75] : memref<2x8x8x32xf32, #tpu.memory_space<vmem>>, vector<1x1x8x32xf32>
    %209 = vector.shape_cast %208 : vector<1x1x8x32xf32> to vector<8x32xf32>
    %210 = vector.shape_cast %207 : vector<8x32xf32> to vector<1x1x8x32xf32>
    tpu.vector_store %arg28[%c0_72, %c5_73, %c0_74, %c0_75], %210 {strides = array<i32>} : memref<2x8x8x32xf32, #tpu.memory_space<vmem>>, vector<1x1x8x32xf32>,
    %211 = arith.truncf %207 : vector<8x32xf32> to vector<8x32xbf16>
    %cst_76 = arith.constant dense<0.000000e+00> : vector<8x128xf32>
    %212 = tpu.matmul %211, %10, %cst_76 {dimension_numbers = #tpu.dot_dimension_numbers<[1], [0], [0], [1], [0, 0, 1, 1], [], []>} : vector<8x32xbf16>, vector<32x128xbf16>, vector<8x128xf32> -> vector<8x128xf32>
    %c6 = arith.constant 6 : index
    %c0_77 = arith.constant 0 : index
    %c0_78 = arith.constant 0 : index
    %213 = vector.load %arg29[%c6, %c0_77, %c0_78] : memref<8x8x128xf32, #tpu.memory_space<vmem>>, vector<1x8x128xf32>
    %214 = vector.shape_cast %213 : vector<1x8x128xf32> to vector<8x128xf32>
    %215 = arith.addf %214, %212 : vector<8x128xf32>
    %216 = vector.extract_strided_slice %215 {offsets = [0, 0], sizes = [8, 32], strides = [1, 1]} : vector<8x128xf32> to vector<8x32xf32>
    %217 = arith.negf %216 : vector<8x32xf32>
    %218 = math.exp %217 : vector<8x32xf32>
    %cst_79 = arith.constant 1.000000e+00 : f32
    %219 = vector.broadcast %cst_79 : f32 to vector<8x32xf32>
    %220 = arith.addf %219, %218 : vector<8x32xf32>
    %221 = arith.divf %219, %220 : vector<8x32xf32>
    %222 = vector.extract_strided_slice %215 {offsets = [0, 32], sizes = [8, 32], strides = [1, 1]} : vector<8x128xf32> to vector<8x32xf32>
    %223 = arith.negf %222 : vector<8x32xf32>
    %224 = math.exp %223 : vector<8x32xf32>
    %cst_80 = arith.constant 1.000000e+00 : f32
    %225 = vector.broadcast %cst_80 : f32 to vector<8x32xf32>
    %226 = arith.addf %225, %224 : vector<8x32xf32>
    %227 = arith.divf %225, %226 : vector<8x32xf32>
    %228 = vector.extract_strided_slice %215 {offsets = [0, 64], sizes = [8, 32], strides = [1, 1]} : vector<8x128xf32> to vector<8x32xf32>
    %229 = math.tanh %228 : vector<8x32xf32>
    %230 = vector.extract_strided_slice %215 {offsets = [0, 96], sizes = [8, 32], strides = [1, 1]} : vector<8x128xf32> to vector<8x32xf32>
    %231 = arith.negf %230 : vector<8x32xf32>
    %232 = math.exp %231 : vector<8x32xf32>
    %cst_81 = arith.constant 1.000000e+00 : f32
    %233 = vector.broadcast %cst_81 : f32 to vector<8x32xf32>
    %234 = arith.addf %233, %232 : vector<8x32xf32>
    %235 = arith.divf %233, %234 : vector<8x32xf32>
    %236 = arith.mulf %227, %205 : vector<8x32xf32>
    %237 = arith.mulf %221, %229 : vector<8x32xf32>
    %238 = arith.addf %236, %237 : vector<8x32xf32>
    %239 = math.tanh %238 : vector<8x32xf32>
    %240 = arith.mulf %235, %239 : vector<8x32xf32>
    %c0_82 = arith.constant 0 : index
    %c6_83 = arith.constant 6 : index
    %c0_84 = arith.constant 0 : index
    %c0_85 = arith.constant 0 : index
    %241 = vector.load %arg28[%c0_82, %c6_83, %c0_84, %c0_85] : memref<2x8x8x32xf32, #tpu.memory_space<vmem>>, vector<1x1x8x32xf32>
    %242 = vector.shape_cast %241 : vector<1x1x8x32xf32> to vector<8x32xf32>
    %243 = vector.shape_cast %240 : vector<8x32xf32> to vector<1x1x8x32xf32>
    tpu.vector_store %arg28[%c0_82, %c6_83, %c0_84, %c0_85], %243 {strides = array<i32>} : memref<2x8x8x32xf32, #tpu.memory_space<vmem>>, vector<1x1x8x32xf32>,
    %244 = arith.truncf %240 : vector<8x32xf32> to vector<8x32xbf16>
    %cst_86 = arith.constant dense<0.000000e+00> : vector<8x128xf32>
    %245 = tpu.matmul %244, %10, %cst_86 {dimension_numbers = #tpu.dot_dimension_numbers<[1], [0], [0], [1], [0, 0, 1, 1], [], []>} : vector<8x32xbf16>, vector<32x128xbf16>, vector<8x128xf32> -> vector<8x128xf32>
    %c7 = arith.constant 7 : index
    %c0_87 = arith.constant 0 : index
    %c0_88 = arith.constant 0 : index
    %246 = vector.load %arg29[%c7, %c0_87, %c0_88] : memref<8x8x128xf32, #tpu.memory_space<vmem>>, vector<1x8x128xf32>
    %247 = vector.shape_cast %246 : vector<1x8x128xf32> to vector<8x128xf32>
    %248 = arith.addf %247, %245 : vector<8x128xf32>
    %249 = vector.extract_strided_slice %248 {offsets = [0, 0], sizes = [8, 32], strides = [1, 1]} : vector<8x128xf32> to vector<8x32xf32>
    %250 = arith.negf %249 : vector<8x32xf32>
    %251 = math.exp %250 : vector<8x32xf32>
    %cst_89 = arith.constant 1.000000e+00 : f32
    %252 = vector.broadcast %cst_89 : f32 to vector<8x32xf32>
    %253 = arith.addf %252, %251 : vector<8x32xf32>
    %254 = arith.divf %252, %253 : vector<8x32xf32>
    %255 = vector.extract_strided_slice %248 {offsets = [0, 32], sizes = [8, 32], strides = [1, 1]} : vector<8x128xf32> to vector<8x32xf32>
    %256 = arith.negf %255 : vector<8x32xf32>
    %257 = math.exp %256 : vector<8x32xf32>
    %cst_90 = arith.constant 1.000000e+00 : f32
    %258 = vector.broadcast %cst_90 : f32 to vector<8x32xf32>
    %259 = arith.addf %258, %257 : vector<8x32xf32>
    %260 = arith.divf %258, %259 : vector<8x32xf32>
    %261 = vector.extract_strided_slice %248 {offsets = [0, 64], sizes = [8, 32], strides = [1, 1]} : vector<8x128xf32> to vector<8x32xf32>
    %262 = math.tanh %261 : vector<8x32xf32>
    %263 = vector.extract_strided_slice %248 {offsets = [0, 96], sizes = [8, 32], strides = [1, 1]} : vector<8x128xf32> to vector<8x32xf32>
    %264 = arith.negf %263 : vector<8x32xf32>
    %265 = math.exp %264 : vector<8x32xf32>
    %cst_91 = arith.constant 1.000000e+00 : f32
    %266 = vector.broadcast %cst_91 : f32 to vector<8x32xf32>
    %267 = arith.addf %266, %265 : vector<8x32xf32>
    %268 = arith.divf %266, %267 : vector<8x32xf32>
    %269 = arith.mulf %260, %238 : vector<8x32xf32>
    %270 = arith.mulf %254, %262 : vector<8x32xf32>
    %271 = arith.addf %269, %270 : vector<8x32xf32>
    %272 = math.tanh %271 : vector<8x32xf32>
    %273 = arith.mulf %268, %272 : vector<8x32xf32>
    %c0_92 = arith.constant 0 : index
    %c7_93 = arith.constant 7 : index
    %c0_94 = arith.constant 0 : index
    %c0_95 = arith.constant 0 : index
    %274 = vector.load %arg28[%c0_92, %c7_93, %c0_94, %c0_95] : memref<2x8x8x32xf32, #tpu.memory_space<vmem>>, vector<1x1x8x32xf32>
    %275 = vector.shape_cast %274 : vector<1x1x8x32xf32> to vector<8x32xf32>
    %276 = vector.shape_cast %273 : vector<8x32xf32> to vector<1x1x8x32xf32>
    tpu.vector_store %arg28[%c0_92, %c7_93, %c0_94, %c0_95], %276 {strides = array<i32>} : memref<2x8x8x32xf32, #tpu.memory_space<vmem>>, vector<1x1x8x32xf32>,
    %c0_96 = arith.constant 0 : index
    %c0_97 = arith.constant 0 : index
    %277 = vector.load %arg26[%c0_96, %c0_97] : memref<8x32xf32, #tpu.memory_space<vmem>>, vector<8x32xf32>
    tpu.vector_store %arg26[%c0_96, %c0_97], %273 {strides = array<i32>} : memref<8x32xf32, #tpu.memory_space<vmem>>, vector<8x32xf32>,
    %c0_98 = arith.constant 0 : index
    %c0_99 = arith.constant 0 : index
    %278 = vector.load %arg27[%c0_98, %c0_99] : memref<8x32xf32, #tpu.memory_space<vmem>>, vector<8x32xf32>
    tpu.vector_store %arg27[%c0_98, %c0_99], %271 {strides = array<i32>} : memref<8x32xf32, #tpu.memory_space<vmem>>, vector<8x32xf32>,
    %279 = tpu.iota {dimensions = array<i32: 0>} : vector<8x8xi32>
    %280 = tpu.iota {dimensions = array<i32: 1>} : vector<8x8xi32>
    %281 = arith.cmpi sle, %280, %279 : vector<8x8xi32>
    %cst_100 = arith.constant 0.000000e+00 : f32
    %cst_101 = arith.constant -1.000000e+30 : f32
    %282 = vector.broadcast %cst_100 : f32 to vector<8x8xf32>
    %283 = vector.broadcast %cst_101 : f32 to vector<8x8xf32>
    %284 = arith.select %281, %282, %283 : vector<8x8xi1>, vector<8x8xf32>
    %285 = vector.shape_cast %284 : vector<8x8xf32> to vector<1x8x8xf32>
    %c0_102 = arith.constant 0 : index
    %c0_103 = arith.constant 0 : index
    %c0_104 = arith.constant 0 : index
    %c0_105 = arith.constant 0 : index
    %286 = vector.load %arg28[%c0_102, %c0_103, %c0_104, %c0_105] : memref<2x8x8x32xf32, #tpu.memory_space<vmem>>, vector<1x8x8x32xf32>
    %287 = vector.shape_cast %286 : vector<1x8x8x32xf32> to vector<8x8x32xf32>
    %288 = tpu.transpose %287, [1, 0, 2] : vector<8x8x32xf32> -> vector<8x8x32xf32>
    %289 = vector.shape_cast %288 : vector<8x8x32xf32> to vector<64x32xf32>
    %290 = arith.truncf %289 : vector<64x32xf32> to vector<64x32xbf16>
    %c0_106 = arith.constant 0 : index
    %c0_107 = arith.constant 0 : index
    %c0_108 = arith.constant 0 : index
    %291 = vector.load %arg7[%c0_106, %c0_107, %c0_108] : memref<2x32x32xbf16, #tpu.memory_space<vmem>>, vector<1x32x32xbf16>
    %292 = vector.shape_cast %291 : vector<1x32x32xbf16> to vector<32x32xbf16>
    %cst_109 = arith.constant dense<0.000000e+00> : vector<64x32xf32>
    %293 = tpu.matmul %290, %292, %cst_109 {dimension_numbers = #tpu.dot_dimension_numbers<[1], [0], [0], [1], [0, 0, 1, 1], [], []>} : vector<64x32xbf16>, vector<32x32xbf16>, vector<64x32xf32> -> vector<64x32xf32>
    %c0_110 = arith.constant 0 : index
    %c0_111 = arith.constant 0 : index
    %c0_112 = arith.constant 0 : index
    %294 = vector.load %arg10[%c0_110, %c0_111, %c0_112] : memref<2x1x32xf32, #tpu.memory_space<vmem>>, vector<1x1x32xf32>
    %295 = vector.shape_cast %294 : vector<1x1x32xf32> to vector<1x32xf32>
    %296 = vector.broadcast %295 : vector<1x32xf32> to vector<64x32xf32>
    %297 = arith.addf %293, %296 : vector<64x32xf32>
    %c0_113 = arith.constant 0 : index
    %c0_114 = arith.constant 0 : index
    %c0_115 = arith.constant 0 : index
    %298 = vector.load %arg8[%c0_113, %c0_114, %c0_115] : memref<2x32x32xbf16, #tpu.memory_space<vmem>>, vector<1x32x32xbf16>
    %299 = vector.shape_cast %298 : vector<1x32x32xbf16> to vector<32x32xbf16>
    %cst_116 = arith.constant dense<0.000000e+00> : vector<64x32xf32>
    %300 = tpu.matmul %290, %299, %cst_116 {dimension_numbers = #tpu.dot_dimension_numbers<[1], [0], [0], [1], [0, 0, 1, 1], [], []>} : vector<64x32xbf16>, vector<32x32xbf16>, vector<64x32xf32> -> vector<64x32xf32>
    %c0_117 = arith.constant 0 : index
    %c0_118 = arith.constant 0 : index
    %c0_119 = arith.constant 0 : index
    %301 = vector.load %arg11[%c0_117, %c0_118, %c0_119] : memref<2x1x32xf32, #tpu.memory_space<vmem>>, vector<1x1x32xf32>
    %302 = vector.shape_cast %301 : vector<1x1x32xf32> to vector<1x32xf32>
    %303 = vector.broadcast %302 : vector<1x32xf32> to vector<64x32xf32>
    %304 = arith.addf %300, %303 : vector<64x32xf32>
    %c0_120 = arith.constant 0 : index
    %c0_121 = arith.constant 0 : index
    %c0_122 = arith.constant 0 : index
    %305 = vector.load %arg9[%c0_120, %c0_121, %c0_122] : memref<2x32x32xbf16, #tpu.memory_space<vmem>>, vector<1x32x32xbf16>
    %306 = vector.shape_cast %305 : vector<1x32x32xbf16> to vector<32x32xbf16>
    %cst_123 = arith.constant dense<0.000000e+00> : vector<64x32xf32>
    %307 = tpu.matmul %290, %306, %cst_123 {dimension_numbers = #tpu.dot_dimension_numbers<[1], [0], [0], [1], [0, 0, 1, 1], [], []>} : vector<64x32xbf16>, vector<32x32xbf16>, vector<64x32xf32> -> vector<64x32xf32>
    %c0_124 = arith.constant 0 : index
    %c0_125 = arith.constant 0 : index
    %c0_126 = arith.constant 0 : index
    %308 = vector.load %arg12[%c0_124, %c0_125, %c0_126] : memref<2x1x32xf32, #tpu.memory_space<vmem>>, vector<1x1x32xf32>
    %309 = vector.shape_cast %308 : vector<1x1x32xf32> to vector<1x32xf32>
    %310 = vector.broadcast %309 : vector<1x32xf32> to vector<64x32xf32>
    %311 = arith.addf %307, %310 : vector<64x32xf32>
    %312 = vector.shape_cast %297 : vector<64x32xf32> to vector<8x8x32xf32>
    %313 = vector.shape_cast %304 : vector<64x32xf32> to vector<8x8x32xf32>
    %314 = vector.shape_cast %311 : vector<64x32xf32> to vector<8x8x32xf32>
    %315 = vector.extract_strided_slice %312 {offsets = [0, 0, 0], sizes = [8, 8, 8], strides = [1, 1, 1]} : vector<8x8x32xf32> to vector<8x8x8xf32>
    %316 = arith.truncf %315 : vector<8x8x8xf32> to vector<8x8x8xbf16>
    %317 = vector.extract_strided_slice %313 {offsets = [0, 0, 0], sizes = [8, 8, 8], strides = [1, 1, 1]} : vector<8x8x32xf32> to vector<8x8x8xf32>
    %318 = arith.truncf %317 : vector<8x8x8xf32> to vector<8x8x8xbf16>
    %319 = vector.extract_strided_slice %314 {offsets = [0, 0, 0], sizes = [8, 8, 8], strides = [1, 1, 1]} : vector<8x8x32xf32> to vector<8x8x8xf32>
    %320 = arith.truncf %319 : vector<8x8x8xf32> to vector<8x8x8xbf16>
    "tpu.trace_start"() <{level = 10 : i32, message = "bqd,bkd->bqk"}> : () -> ()
    %cst_127 = arith.constant dense<0.000000e+00> : vector<8x8x8xf32>
    %321 = tpu.matmul %316, %318, %cst_127 {dimension_numbers = #tpu.dot_dimension_numbers<[2], [2], [1], [1], [0, 0, 0, 1, 1, 1], [0], [0]>} : vector<8x8x8xbf16>, vector<8x8x8xbf16>, vector<8x8x8xf32> -> vector<8x8x8xf32>
    "tpu.trace_stop"() : () -> ()
    %cst_128 = arith.constant 0.353553385 : f32
    %322 = vector.broadcast %cst_128 : f32 to vector<8x8x8xf32>
    %323 = arith.mulf %321, %322 : vector<8x8x8xf32>
    %324 = vector.broadcast %285 : vector<1x8x8xf32> to vector<8x8x8xf32>
    %325 = arith.addf %323, %324 : vector<8x8x8xf32>
    %cst_129 = arith.constant dense<0xFF800000> : vector<8x8xf32>
    %326 = vector.multi_reduction <maximumf>, %325, %cst_129 [2] : vector<8x8x8xf32> to vector<8x8xf32>
    %327 = vector.shape_cast %326 : vector<8x8xf32> to vector<8x8x1xf32>
    %328 = vector.broadcast %327 : vector<8x8x1xf32> to vector<8x8x8xf32>
    %329 = arith.subf %325, %328 : vector<8x8x8xf32>
    %330 = math.exp %329 : vector<8x8x8xf32>
    %cst_130 = arith.constant dense<0.000000e+00> : vector<8x8xf32>
    %331 = vector.multi_reduction <add>, %330, %cst_130 [2] : vector<8x8x8xf32> to vector<8x8xf32>
    %332 = vector.shape_cast %331 : vector<8x8xf32> to vector<8x8x1xf32>
    %333 = tpu.reciprocal %332 {approx = true} : vector<8x8x1xf32> -> vector<8x8x1xf32>
    %334 = vector.broadcast %333 : vector<8x8x1xf32> to vector<8x8x8xf32>
    %335 = arith.mulf %330, %334 : vector<8x8x8xf32>
    %336 = arith.truncf %335 : vector<8x8x8xf32> to vector<8x8x8xbf16>
    "tpu.trace_start"() <{level = 10 : i32, message = "bqk,bkd->bqd"}> : () -> ()
    %cst_131 = arith.constant dense<0.000000e+00> : vector<8x8x8xf32>
    %337 = tpu.matmul %336, %320, %cst_131 {dimension_numbers = #tpu.dot_dimension_numbers<[2], [1], [1], [2], [0, 0, 0, 1, 1, 2], [0], [0]>} : vector<8x8x8xbf16>, vector<8x8x8xbf16>, vector<8x8x8xf32> -> vector<8x8x8xf32>
    "tpu.trace_stop"() : () -> ()
    %338 = vector.shape_cast %337 : vector<8x8x8xf32> to vector<64x8xf32>
    %c0_132 = arith.constant 0 : index
    %c0_133 = arith.constant 0 : index
    %339 = vector.load %arg30[%c0_132, %c0_133] : memref<64x32xf32, #tpu.memory_space<vmem>>, vector<64x8xf32>
    tpu.vector_store %arg30[%c0_132, %c0_133], %338 {strides = array<i32>} : memref<64x32xf32, #tpu.memory_space<vmem>>, vector<64x8xf32>,
    %340 = vector.extract_strided_slice %312 {offsets = [0, 0, 8], sizes = [8, 8, 8], strides = [1, 1, 1]} : vector<8x8x32xf32> to vector<8x8x8xf32>
    %341 = arith.truncf %340 : vector<8x8x8xf32> to vector<8x8x8xbf16>
    %342 = vector.extract_strided_slice %313 {offsets = [0, 0, 8], sizes = [8, 8, 8], strides = [1, 1, 1]} : vector<8x8x32xf32> to vector<8x8x8xf32>
    %343 = arith.truncf %342 : vector<8x8x8xf32> to vector<8x8x8xbf16>
    %344 = vector.extract_strided_slice %314 {offsets = [0, 0, 8], sizes = [8, 8, 8], strides = [1, 1, 1]} : vector<8x8x32xf32> to vector<8x8x8xf32>
    %345 = arith.truncf %344 : vector<8x8x8xf32> to vector<8x8x8xbf16>
    "tpu.trace_start"() <{level = 10 : i32, message = "bqd,bkd->bqk"}> : () -> ()
    %cst_134 = arith.constant dense<0.000000e+00> : vector<8x8x8xf32>
    %346 = tpu.matmul %341, %343, %cst_134 {dimension_numbers = #tpu.dot_dimension_numbers<[2], [2], [1], [1], [0, 0, 0, 1, 1, 1], [0], [0]>} : vector<8x8x8xbf16>, vector<8x8x8xbf16>, vector<8x8x8xf32> -> vector<8x8x8xf32>
    "tpu.trace_stop"() : () -> ()
    %cst_135 = arith.constant 0.353553385 : f32
    %347 = vector.broadcast %cst_135 : f32 to vector<8x8x8xf32>
    %348 = arith.mulf %346, %347 : vector<8x8x8xf32>
    %349 = vector.broadcast %285 : vector<1x8x8xf32> to vector<8x8x8xf32>
    %350 = arith.addf %348, %349 : vector<8x8x8xf32>
    %cst_136 = arith.constant dense<0xFF800000> : vector<8x8xf32>
    %351 = vector.multi_reduction <maximumf>, %350, %cst_136 [2] : vector<8x8x8xf32> to vector<8x8xf32>
    %352 = vector.shape_cast %351 : vector<8x8xf32> to vector<8x8x1xf32>
    %353 = vector.broadcast %352 : vector<8x8x1xf32> to vector<8x8x8xf32>
    %354 = arith.subf %350, %353 : vector<8x8x8xf32>
    %355 = math.exp %354 : vector<8x8x8xf32>
    %cst_137 = arith.constant dense<0.000000e+00> : vector<8x8xf32>
    %356 = vector.multi_reduction <add>, %355, %cst_137 [2] : vector<8x8x8xf32> to vector<8x8xf32>
    %357 = vector.shape_cast %356 : vector<8x8xf32> to vector<8x8x1xf32>
    %358 = tpu.reciprocal %357 {approx = true} : vector<8x8x1xf32> -> vector<8x8x1xf32>
    %359 = vector.broadcast %358 : vector<8x8x1xf32> to vector<8x8x8xf32>
    %360 = arith.mulf %355, %359 : vector<8x8x8xf32>
    %361 = arith.truncf %360 : vector<8x8x8xf32> to vector<8x8x8xbf16>
    "tpu.trace_start"() <{level = 10 : i32, message = "bqk,bkd->bqd"}> : () -> ()
    %cst_138 = arith.constant dense<0.000000e+00> : vector<8x8x8xf32>
    %362 = tpu.matmul %361, %345, %cst_138 {dimension_numbers = #tpu.dot_dimension_numbers<[2], [1], [1], [2], [0, 0, 0, 1, 1, 2], [0], [0]>} : vector<8x8x8xbf16>, vector<8x8x8xbf16>, vector<8x8x8xf32> -> vector<8x8x8xf32>
    "tpu.trace_stop"() : () -> ()
    %363 = vector.shape_cast %362 : vector<8x8x8xf32> to vector<64x8xf32>
    %c0_139 = arith.constant 0 : index
    %c8 = arith.constant 8 : index
    %364 = vector.load %arg30[%c0_139, %c8] : memref<64x32xf32, #tpu.memory_space<vmem>>, vector<64x8xf32>
    tpu.vector_store %arg30[%c0_139, %c8], %363 {strides = array<i32>} : memref<64x32xf32, #tpu.memory_space<vmem>>, vector<64x8xf32>,
    %365 = vector.extract_strided_slice %312 {offsets = [0, 0, 16], sizes = [8, 8, 8], strides = [1, 1, 1]} : vector<8x8x32xf32> to vector<8x8x8xf32>
    %366 = arith.truncf %365 : vector<8x8x8xf32> to vector<8x8x8xbf16>
    %367 = vector.extract_strided_slice %313 {offsets = [0, 0, 16], sizes = [8, 8, 8], strides = [1, 1, 1]} : vector<8x8x32xf32> to vector<8x8x8xf32>
    %368 = arith.truncf %367 : vector<8x8x8xf32> to vector<8x8x8xbf16>
    %369 = vector.extract_strided_slice %314 {offsets = [0, 0, 16], sizes = [8, 8, 8], strides = [1, 1, 1]} : vector<8x8x32xf32> to vector<8x8x8xf32>
    %370 = arith.truncf %369 : vector<8x8x8xf32> to vector<8x8x8xbf16>
    "tpu.trace_start"() <{level = 10 : i32, message = "bqd,bkd->bqk"}> : () -> ()
    %cst_140 = arith.constant dense<0.000000e+00> : vector<8x8x8xf32>
    %371 = tpu.matmul %366, %368, %cst_140 {dimension_numbers = #tpu.dot_dimension_numbers<[2], [2], [1], [1], [0, 0, 0, 1, 1, 1], [0], [0]>} : vector<8x8x8xbf16>, vector<8x8x8xbf16>, vector<8x8x8xf32> -> vector<8x8x8xf32>
    "tpu.trace_stop"() : () -> ()
    %cst_141 = arith.constant 0.353553385 : f32
    %372 = vector.broadcast %cst_141 : f32 to vector<8x8x8xf32>
    %373 = arith.mulf %371, %372 : vector<8x8x8xf32>
    %374 = vector.broadcast %285 : vector<1x8x8xf32> to vector<8x8x8xf32>
    %375 = arith.addf %373, %374 : vector<8x8x8xf32>
    %cst_142 = arith.constant dense<0xFF800000> : vector<8x8xf32>
    %376 = vector.multi_reduction <maximumf>, %375, %cst_142 [2] : vector<8x8x8xf32> to vector<8x8xf32>
    %377 = vector.shape_cast %376 : vector<8x8xf32> to vector<8x8x1xf32>
    %378 = vector.broadcast %377 : vector<8x8x1xf32> to vector<8x8x8xf32>
    %379 = arith.subf %375, %378 : vector<8x8x8xf32>
    %380 = math.exp %379 : vector<8x8x8xf32>
    %cst_143 = arith.constant dense<0.000000e+00> : vector<8x8xf32>
    %381 = vector.multi_reduction <add>, %380, %cst_143 [2] : vector<8x8x8xf32> to vector<8x8xf32>
    %382 = vector.shape_cast %381 : vector<8x8xf32> to vector<8x8x1xf32>
    %383 = tpu.reciprocal %382 {approx = true} : vector<8x8x1xf32> -> vector<8x8x1xf32>
    %384 = vector.broadcast %383 : vector<8x8x1xf32> to vector<8x8x8xf32>
    %385 = arith.mulf %380, %384 : vector<8x8x8xf32>
    %386 = arith.truncf %385 : vector<8x8x8xf32> to vector<8x8x8xbf16>
    "tpu.trace_start"() <{level = 10 : i32, message = "bqk,bkd->bqd"}> : () -> ()
    %cst_144 = arith.constant dense<0.000000e+00> : vector<8x8x8xf32>
    %387 = tpu.matmul %386, %370, %cst_144 {dimension_numbers = #tpu.dot_dimension_numbers<[2], [1], [1], [2], [0, 0, 0, 1, 1, 2], [0], [0]>} : vector<8x8x8xbf16>, vector<8x8x8xbf16>, vector<8x8x8xf32> -> vector<8x8x8xf32>
    "tpu.trace_stop"() : () -> ()
    %388 = vector.shape_cast %387 : vector<8x8x8xf32> to vector<64x8xf32>
    %c0_145 = arith.constant 0 : index
    %c16 = arith.constant 16 : index
    %389 = vector.load %arg30[%c0_145, %c16] : memref<64x32xf32, #tpu.memory_space<vmem>>, vector<64x8xf32>
    tpu.vector_store %arg30[%c0_145, %c16], %388 {strides = array<i32>} : memref<64x32xf32, #tpu.memory_space<vmem>>, vector<64x8xf32>,
    %390 = vector.extract_strided_slice %312 {offsets = [0, 0, 24], sizes = [8, 8, 8], strides = [1, 1, 1]} : vector<8x8x32xf32> to vector<8x8x8xf32>
    %391 = arith.truncf %390 : vector<8x8x8xf32> to vector<8x8x8xbf16>
    %392 = vector.extract_strided_slice %313 {offsets = [0, 0, 24], sizes = [8, 8, 8], strides = [1, 1, 1]} : vector<8x8x32xf32> to vector<8x8x8xf32>
    %393 = arith.truncf %392 : vector<8x8x8xf32> to vector<8x8x8xbf16>
    %394 = vector.extract_strided_slice %314 {offsets = [0, 0, 24], sizes = [8, 8, 8], strides = [1, 1, 1]} : vector<8x8x32xf32> to vector<8x8x8xf32>
    %395 = arith.truncf %394 : vector<8x8x8xf32> to vector<8x8x8xbf16>
    "tpu.trace_start"() <{level = 10 : i32, message = "bqd,bkd->bqk"}> : () -> ()
    %cst_146 = arith.constant dense<0.000000e+00> : vector<8x8x8xf32>
    %396 = tpu.matmul %391, %393, %cst_146 {dimension_numbers = #tpu.dot_dimension_numbers<[2], [2], [1], [1], [0, 0, 0, 1, 1, 1], [0], [0]>} : vector<8x8x8xbf16>, vector<8x8x8xbf16>, vector<8x8x8xf32> -> vector<8x8x8xf32>
    "tpu.trace_stop"() : () -> ()
    %cst_147 = arith.constant 0.353553385 : f32
    %397 = vector.broadcast %cst_147 : f32 to vector<8x8x8xf32>
    %398 = arith.mulf %396, %397 : vector<8x8x8xf32>
    %399 = vector.broadcast %285 : vector<1x8x8xf32> to vector<8x8x8xf32>
    %400 = arith.addf %398, %399 : vector<8x8x8xf32>
    %cst_148 = arith.constant dense<0xFF800000> : vector<8x8xf32>
    %401 = vector.multi_reduction <maximumf>, %400, %cst_148 [2] : vector<8x8x8xf32> to vector<8x8xf32>
    %402 = vector.shape_cast %401 : vector<8x8xf32> to vector<8x8x1xf32>
    %403 = vector.broadcast %402 : vector<8x8x1xf32> to vector<8x8x8xf32>
    %404 = arith.subf %400, %403 : vector<8x8x8xf32>
    %405 = math.exp %404 : vector<8x8x8xf32>
    %cst_149 = arith.constant dense<0.000000e+00> : vector<8x8xf32>
    %406 = vector.multi_reduction <add>, %405, %cst_149 [2] : vector<8x8x8xf32> to vector<8x8xf32>
    %407 = vector.shape_cast %406 : vector<8x8xf32> to vector<8x8x1xf32>
    %408 = tpu.reciprocal %407 {approx = true} : vector<8x8x1xf32> -> vector<8x8x1xf32>
    %409 = vector.broadcast %408 : vector<8x8x1xf32> to vector<8x8x8xf32>
    %410 = arith.mulf %405, %409 : vector<8x8x8xf32>
    %411 = arith.truncf %410 : vector<8x8x8xf32> to vector<8x8x8xbf16>
    "tpu.trace_start"() <{level = 10 : i32, message = "bqk,bkd->bqd"}> : () -> ()
    %cst_150 = arith.constant dense<0.000000e+00> : vector<8x8x8xf32>
    %412 = tpu.matmul %411, %395, %cst_150 {dimension_numbers = #tpu.dot_dimension_numbers<[2], [1], [1], [2], [0, 0, 0, 1, 1, 2], [0], [0]>} : vector<8x8x8xbf16>, vector<8x8x8xbf16>, vector<8x8x8xf32> -> vector<8x8x8xf32>
    "tpu.trace_stop"() : () -> ()
    %413 = vector.shape_cast %412 : vector<8x8x8xf32> to vector<64x8xf32>
    %c0_151 = arith.constant 0 : index
    %c24 = arith.constant 24 : index
    %414 = vector.load %arg30[%c0_151, %c24] : memref<64x32xf32, #tpu.memory_space<vmem>>, vector<64x8xf32>
    tpu.vector_store %arg30[%c0_151, %c24], %413 {strides = array<i32>} : memref<64x32xf32, #tpu.memory_space<vmem>>, vector<64x8xf32>,
    %c0_152 = arith.constant 0 : index
    %c0_153 = arith.constant 0 : index
    %415 = vector.load %arg30[%c0_152, %c0_153] : memref<64x32xf32, #tpu.memory_space<vmem>>, vector<64x32xf32>
    %416 = arith.truncf %415 : vector<64x32xf32> to vector<64x32xbf16>
    %c0_154 = arith.constant 0 : index
    %c0_155 = arith.constant 0 : index
    %c0_156 = arith.constant 0 : index
    %417 = vector.load %arg13[%c0_154, %c0_155, %c0_156] : memref<2x32x32xbf16, #tpu.memory_space<vmem>>, vector<1x32x32xbf16>
    %418 = vector.shape_cast %417 : vector<1x32x32xbf16> to vector<32x32xbf16>
    %cst_157 = arith.constant dense<0.000000e+00> : vector<64x32xf32>
    %419 = tpu.matmul %416, %418, %cst_157 {dimension_numbers = #tpu.dot_dimension_numbers<[1], [0], [0], [1], [0, 0, 1, 1], [], []>} : vector<64x32xbf16>, vector<32x32xbf16>, vector<64x32xf32> -> vector<64x32xf32>
    %c0_158 = arith.constant 0 : index
    %c0_159 = arith.constant 0 : index
    %c0_160 = arith.constant 0 : index
    %420 = vector.load %arg14[%c0_158, %c0_159, %c0_160] : memref<2x1x32xf32, #tpu.memory_space<vmem>>, vector<1x1x32xf32>
    %421 = vector.shape_cast %420 : vector<1x1x32xf32> to vector<1x32xf32>
    %422 = vector.broadcast %421 : vector<1x32xf32> to vector<64x32xf32>
    %423 = arith.addf %419, %422 : vector<64x32xf32>
    %424 = arith.addf %289, %423 : vector<64x32xf32>
    %c0_161 = arith.constant 0 : index
    %c0_162 = arith.constant 0 : index
    %c0_163 = arith.constant 0 : index
    %425 = vector.load %arg19[%c0_161, %c0_162, %c0_163] : memref<2x1x32xf32, #tpu.memory_space<vmem>>, vector<1x1x32xf32>
    %426 = vector.shape_cast %425 : vector<1x1x32xf32> to vector<1x32xf32>
    %c0_164 = arith.constant 0 : index
    %c0_165 = arith.constant 0 : index
    %c0_166 = arith.constant 0 : index
    %427 = vector.load %arg20[%c0_164, %c0_165, %c0_166] : memref<2x1x32xf32, #tpu.memory_space<vmem>>, vector<1x1x32xf32>
    %428 = vector.shape_cast %427 : vector<1x1x32xf32> to vector<1x32xf32>
    %cst_167 = arith.constant dense<0.000000e+00> : vector<64xf32>
    %429 = vector.multi_reduction <add>, %424, %cst_167 [1] : vector<64x32xf32> to vector<64xf32>
    %430 = vector.shape_cast %429 : vector<64xf32> to vector<64x1xf32>
    %cst_168 = arith.constant 3.200000e+01 : f32
    %431 = vector.broadcast %cst_168 : f32 to vector<64x1xf32>
    %432 = arith.divf %430, %431 : vector<64x1xf32>
    %433 = vector.broadcast %432 : vector<64x1xf32> to vector<64x32xf32>
    %434 = arith.subf %424, %433 : vector<64x32xf32>
    %435 = arith.mulf %434, %434 : vector<64x32xf32>
    %cst_169 = arith.constant dense<0.000000e+00> : vector<64xf32>
    %436 = vector.multi_reduction <add>, %435, %cst_169 [1] : vector<64x32xf32> to vector<64xf32>
    %437 = vector.shape_cast %436 : vector<64xf32> to vector<64x1xf32>
    %cst_170 = arith.constant 3.200000e+01 : f32
    %438 = vector.broadcast %cst_170 : f32 to vector<64x1xf32>
    %439 = arith.divf %437, %438 : vector<64x1xf32>
    %440 = vector.broadcast %432 : vector<64x1xf32> to vector<64x32xf32>
    %441 = arith.subf %424, %440 : vector<64x32xf32>
    %cst_171 = arith.constant 9.99999974E-6 : f32
    %442 = vector.broadcast %cst_171 : f32 to vector<64x1xf32>
    %443 = arith.addf %439, %442 : vector<64x1xf32>
    %444 = math.rsqrt %443 : vector<64x1xf32>
    %445 = vector.broadcast %444 : vector<64x1xf32> to vector<64x32xf32>
    %446 = arith.mulf %441, %445 : vector<64x32xf32>
    %447 = vector.broadcast %426 : vector<1x32xf32> to vector<64x32xf32>
    %448 = arith.mulf %446, %447 : vector<64x32xf32>
    %449 = vector.broadcast %428 : vector<1x32xf32> to vector<64x32xf32>
    %450 = arith.addf %448, %449 : vector<64x32xf32>
    %451 = arith.truncf %450 : vector<64x32xf32> to vector<64x32xbf16>
    %c0_172 = arith.constant 0 : index
    %c0_173 = arith.constant 0 : index
    %c0_174 = arith.constant 0 : index
    %452 = vector.load %arg15[%c0_172, %c0_173, %c0_174] : memref<2x32x64xbf16, #tpu.memory_space<vmem>>, vector<1x32x64xbf16>
    %453 = vector.shape_cast %452 : vector<1x32x64xbf16> to vector<32x64xbf16>
    %cst_175 = arith.constant dense<0.000000e+00> : vector<64x64xf32>
    %454 = tpu.matmul %451, %453, %cst_175 {dimension_numbers = #tpu.dot_dimension_numbers<[1], [0], [0], [1], [0, 0, 1, 1], [], []>} : vector<64x32xbf16>, vector<32x64xbf16>, vector<64x64xf32> -> vector<64x64xf32>
    %c0_176 = arith.constant 0 : index
    %c0_177 = arith.constant 0 : index
    %c0_178 = arith.constant 0 : index
    %455 = vector.load %arg16[%c0_176, %c0_177, %c0_178] : memref<2x1x64xf32, #tpu.memory_space<vmem>>, vector<1x1x64xf32>
    %456 = vector.shape_cast %455 : vector<1x1x64xf32> to vector<1x64xf32>
    %457 = vector.broadcast %456 : vector<1x64xf32> to vector<64x64xf32>
    %458 = arith.addf %454, %457 : vector<64x64xf32>
    %cst_179 = arith.constant 0.000000e+00 : f32
    %459 = vector.broadcast %cst_179 : f32 to vector<64x64xf32>
    %460 = arith.maximumf %458, %459 : vector<64x64xf32>
    %461 = arith.truncf %460 : vector<64x64xf32> to vector<64x64xbf16>
    %c0_180 = arith.constant 0 : index
    %c0_181 = arith.constant 0 : index
    %c0_182 = arith.constant 0 : index
    %462 = vector.load %arg17[%c0_180, %c0_181, %c0_182] : memref<2x64x32xbf16, #tpu.memory_space<vmem>>, vector<1x64x32xbf16>
    %463 = vector.shape_cast %462 : vector<1x64x32xbf16> to vector<64x32xbf16>
    %cst_183 = arith.constant dense<0.000000e+00> : vector<64x32xf32>
    %464 = tpu.matmul %461, %463, %cst_183 {dimension_numbers = #tpu.dot_dimension_numbers<[1], [0], [0], [1], [0, 0, 1, 1], [], []>} : vector<64x64xbf16>, vector<64x32xbf16>, vector<64x32xf32> -> vector<64x32xf32>
    %c0_184 = arith.constant 0 : index
    %c0_185 = arith.constant 0 : index
    %c0_186 = arith.constant 0 : index
    %465 = vector.load %arg18[%c0_184, %c0_185, %c0_186] : memref<2x1x32xf32, #tpu.memory_space<vmem>>, vector<1x1x32xf32>
    %466 = vector.shape_cast %465 : vector<1x1x32xf32> to vector<1x32xf32>
    %467 = vector.broadcast %466 : vector<1x32xf32> to vector<64x32xf32>
    %468 = arith.addf %464, %467 : vector<64x32xf32>
    %469 = arith.addf %450, %468 : vector<64x32xf32>
    %c0_187 = arith.constant 0 : index
    %c0_188 = arith.constant 0 : index
    %c0_189 = arith.constant 0 : index
    %470 = vector.load %arg21[%c0_187, %c0_188, %c0_189] : memref<2x1x32xf32, #tpu.memory_space<vmem>>, vector<1x1x32xf32>
    %471 = vector.shape_cast %470 : vector<1x1x32xf32> to vector<1x32xf32>
    %c0_190 = arith.constant 0 : index
    %c0_191 = arith.constant 0 : index
    %c0_192 = arith.constant 0 : index
    %472 = vector.load %arg22[%c0_190, %c0_191, %c0_192] : memref<2x1x32xf32, #tpu.memory_space<vmem>>, vector<1x1x32xf32>
    %473 = vector.shape_cast %472 : vector<1x1x32xf32> to vector<1x32xf32>
    %cst_193 = arith.constant dense<0.000000e+00> : vector<64xf32>
    %474 = vector.multi_reduction <add>, %469, %cst_193 [1] : vector<64x32xf32> to vector<64xf32>
    %475 = vector.shape_cast %474 : vector<64xf32> to vector<64x1xf32>
    %cst_194 = arith.constant 3.200000e+01 : f32
    %476 = vector.broadcast %cst_194 : f32 to vector<64x1xf32>
    %477 = arith.divf %475, %476 : vector<64x1xf32>
    %478 = vector.broadcast %477 : vector<64x1xf32> to vector<64x32xf32>
    %479 = arith.subf %469, %478 : vector<64x32xf32>
    %480 = arith.mulf %479, %479 : vector<64x32xf32>
    %cst_195 = arith.constant dense<0.000000e+00> : vector<64xf32>
    %481 = vector.multi_reduction <add>, %480, %cst_195 [1] : vector<64x32xf32> to vector<64xf32>
    %482 = vector.shape_cast %481 : vector<64xf32> to vector<64x1xf32>
    %cst_196 = arith.constant 3.200000e+01 : f32
    %483 = vector.broadcast %cst_196 : f32 to vector<64x1xf32>
    %484 = arith.divf %482, %483 : vector<64x1xf32>
    %485 = vector.broadcast %477 : vector<64x1xf32> to vector<64x32xf32>
    %486 = arith.subf %469, %485 : vector<64x32xf32>
    %cst_197 = arith.constant 9.99999974E-6 : f32
    %487 = vector.broadcast %cst_197 : f32 to vector<64x1xf32>
    %488 = arith.addf %484, %487 : vector<64x1xf32>
    %489 = math.rsqrt %488 : vector<64x1xf32>
    %490 = vector.broadcast %489 : vector<64x1xf32> to vector<64x32xf32>
    %491 = arith.mulf %486, %490 : vector<64x32xf32>
    %492 = vector.broadcast %471 : vector<1x32xf32> to vector<64x32xf32>
    %493 = arith.mulf %491, %492 : vector<64x32xf32>
    %494 = vector.broadcast %473 : vector<1x32xf32> to vector<64x32xf32>
    %495 = arith.addf %493, %494 : vector<64x32xf32>
    %496 = vector.shape_cast %495 : vector<64x32xf32> to vector<8x8x32xf32>
    %497 = tpu.transpose %496, [1, 0, 2] : vector<8x8x32xf32> -> vector<8x8x32xf32>
    %c1_198 = arith.constant 1 : index
    %c0_199 = arith.constant 0 : index
    %c0_200 = arith.constant 0 : index
    %c0_201 = arith.constant 0 : index
    %498 = vector.load %arg28[%c1_198, %c0_199, %c0_200, %c0_201] : memref<2x8x8x32xf32, #tpu.memory_space<vmem>>, vector<1x8x8x32xf32>
    %499 = vector.shape_cast %498 : vector<1x8x8x32xf32> to vector<8x8x32xf32>
    %500 = vector.shape_cast %497 : vector<8x8x32xf32> to vector<1x8x8x32xf32>
    tpu.vector_store %arg28[%c1_198, %c0_199, %c0_200, %c0_201], %500 {strides = array<i32>} : memref<2x8x8x32xf32, #tpu.memory_space<vmem>>, vector<1x8x8x32xf32>,
    %501 = arith.truncf %495 : vector<64x32xf32> to vector<64x32xbf16>
    %c1_202 = arith.constant 1 : index
    %c0_203 = arith.constant 0 : index
    %c0_204 = arith.constant 0 : index
    %502 = vector.load %arg7[%c1_202, %c0_203, %c0_204] : memref<2x32x32xbf16, #tpu.memory_space<vmem>>, vector<1x32x32xbf16>
    %503 = vector.shape_cast %502 : vector<1x32x32xbf16> to vector<32x32xbf16>
    %cst_205 = arith.constant dense<0.000000e+00> : vector<64x32xf32>
    %504 = tpu.matmul %501, %503, %cst_205 {dimension_numbers = #tpu.dot_dimension_numbers<[1], [0], [0], [1], [0, 0, 1, 1], [], []>} : vector<64x32xbf16>, vector<32x32xbf16>, vector<64x32xf32> -> vector<64x32xf32>
    %c1_206 = arith.constant 1 : index
    %c0_207 = arith.constant 0 : index
    %c0_208 = arith.constant 0 : index
    %505 = vector.load %arg10[%c1_206, %c0_207, %c0_208] : memref<2x1x32xf32, #tpu.memory_space<vmem>>, vector<1x1x32xf32>
    %506 = vector.shape_cast %505 : vector<1x1x32xf32> to vector<1x32xf32>
    %507 = vector.broadcast %506 : vector<1x32xf32> to vector<64x32xf32>
    %508 = arith.addf %504, %507 : vector<64x32xf32>
    %c1_209 = arith.constant 1 : index
    %c0_210 = arith.constant 0 : index
    %c0_211 = arith.constant 0 : index
    %509 = vector.load %arg8[%c1_209, %c0_210, %c0_211] : memref<2x32x32xbf16, #tpu.memory_space<vmem>>, vector<1x32x32xbf16>
    %510 = vector.shape_cast %509 : vector<1x32x32xbf16> to vector<32x32xbf16>
    %cst_212 = arith.constant dense<0.000000e+00> : vector<64x32xf32>
    %511 = tpu.matmul %501, %510, %cst_212 {dimension_numbers = #tpu.dot_dimension_numbers<[1], [0], [0], [1], [0, 0, 1, 1], [], []>} : vector<64x32xbf16>, vector<32x32xbf16>, vector<64x32xf32> -> vector<64x32xf32>
    %c1_213 = arith.constant 1 : index
    %c0_214 = arith.constant 0 : index
    %c0_215 = arith.constant 0 : index
    %512 = vector.load %arg11[%c1_213, %c0_214, %c0_215] : memref<2x1x32xf32, #tpu.memory_space<vmem>>, vector<1x1x32xf32>
    %513 = vector.shape_cast %512 : vector<1x1x32xf32> to vector<1x32xf32>
    %514 = vector.broadcast %513 : vector<1x32xf32> to vector<64x32xf32>
    %515 = arith.addf %511, %514 : vector<64x32xf32>
    %c1_216 = arith.constant 1 : index
    %c0_217 = arith.constant 0 : index
    %c0_218 = arith.constant 0 : index
    %516 = vector.load %arg9[%c1_216, %c0_217, %c0_218] : memref<2x32x32xbf16, #tpu.memory_space<vmem>>, vector<1x32x32xbf16>
    %517 = vector.shape_cast %516 : vector<1x32x32xbf16> to vector<32x32xbf16>
    %cst_219 = arith.constant dense<0.000000e+00> : vector<64x32xf32>
    %518 = tpu.matmul %501, %517, %cst_219 {dimension_numbers = #tpu.dot_dimension_numbers<[1], [0], [0], [1], [0, 0, 1, 1], [], []>} : vector<64x32xbf16>, vector<32x32xbf16>, vector<64x32xf32> -> vector<64x32xf32>
    %c1_220 = arith.constant 1 : index
    %c0_221 = arith.constant 0 : index
    %c0_222 = arith.constant 0 : index
    %519 = vector.load %arg12[%c1_220, %c0_221, %c0_222] : memref<2x1x32xf32, #tpu.memory_space<vmem>>, vector<1x1x32xf32>
    %520 = vector.shape_cast %519 : vector<1x1x32xf32> to vector<1x32xf32>
    %521 = vector.broadcast %520 : vector<1x32xf32> to vector<64x32xf32>
    %522 = arith.addf %518, %521 : vector<64x32xf32>
    %523 = vector.shape_cast %508 : vector<64x32xf32> to vector<8x8x32xf32>
    %524 = vector.shape_cast %515 : vector<64x32xf32> to vector<8x8x32xf32>
    %525 = vector.shape_cast %522 : vector<64x32xf32> to vector<8x8x32xf32>
    %526 = vector.extract_strided_slice %523 {offsets = [0, 0, 0], sizes = [8, 8, 8], strides = [1, 1, 1]} : vector<8x8x32xf32> to vector<8x8x8xf32>
    %527 = arith.truncf %526 : vector<8x8x8xf32> to vector<8x8x8xbf16>
    %528 = vector.extract_strided_slice %524 {offsets = [0, 0, 0], sizes = [8, 8, 8], strides = [1, 1, 1]} : vector<8x8x32xf32> to vector<8x8x8xf32>
    %529 = arith.truncf %528 : vector<8x8x8xf32> to vector<8x8x8xbf16>
    %530 = vector.extract_strided_slice %525 {offsets = [0, 0, 0], sizes = [8, 8, 8], strides = [1, 1, 1]} : vector<8x8x32xf32> to vector<8x8x8xf32>
    %531 = arith.truncf %530 : vector<8x8x8xf32> to vector<8x8x8xbf16>
    "tpu.trace_start"() <{level = 10 : i32, message = "bqd,bkd->bqk"}> : () -> ()
    %cst_223 = arith.constant dense<0.000000e+00> : vector<8x8x8xf32>
    %532 = tpu.matmul %527, %529, %cst_223 {dimension_numbers = #tpu.dot_dimension_numbers<[2], [2], [1], [1], [0, 0, 0, 1, 1, 1], [0], [0]>} : vector<8x8x8xbf16>, vector<8x8x8xbf16>, vector<8x8x8xf32> -> vector<8x8x8xf32>
    "tpu.trace_stop"() : () -> ()
    %cst_224 = arith.constant 0.353553385 : f32
    %533 = vector.broadcast %cst_224 : f32 to vector<8x8x8xf32>
    %534 = arith.mulf %532, %533 : vector<8x8x8xf32>
    %535 = vector.broadcast %285 : vector<1x8x8xf32> to vector<8x8x8xf32>
    %536 = arith.addf %534, %535 : vector<8x8x8xf32>
    %cst_225 = arith.constant dense<0xFF800000> : vector<8x8xf32>
    %537 = vector.multi_reduction <maximumf>, %536, %cst_225 [2] : vector<8x8x8xf32> to vector<8x8xf32>
    %538 = vector.shape_cast %537 : vector<8x8xf32> to vector<8x8x1xf32>
    %539 = vector.broadcast %538 : vector<8x8x1xf32> to vector<8x8x8xf32>
    %540 = arith.subf %536, %539 : vector<8x8x8xf32>
    %541 = math.exp %540 : vector<8x8x8xf32>
    %cst_226 = arith.constant dense<0.000000e+00> : vector<8x8xf32>
    %542 = vector.multi_reduction <add>, %541, %cst_226 [2] : vector<8x8x8xf32> to vector<8x8xf32>
    %543 = vector.shape_cast %542 : vector<8x8xf32> to vector<8x8x1xf32>
    %544 = tpu.reciprocal %543 {approx = true} : vector<8x8x1xf32> -> vector<8x8x1xf32>
    %545 = vector.broadcast %544 : vector<8x8x1xf32> to vector<8x8x8xf32>
    %546 = arith.mulf %541, %545 : vector<8x8x8xf32>
    %547 = arith.truncf %546 : vector<8x8x8xf32> to vector<8x8x8xbf16>
    "tpu.trace_start"() <{level = 10 : i32, message = "bqk,bkd->bqd"}> : () -> ()
    %cst_227 = arith.constant dense<0.000000e+00> : vector<8x8x8xf32>
    %548 = tpu.matmul %547, %531, %cst_227 {dimension_numbers = #tpu.dot_dimension_numbers<[2], [1], [1], [2], [0, 0, 0, 1, 1, 2], [0], [0]>} : vector<8x8x8xbf16>, vector<8x8x8xbf16>, vector<8x8x8xf32> -> vector<8x8x8xf32>
    "tpu.trace_stop"() : () -> ()
    %549 = vector.shape_cast %548 : vector<8x8x8xf32> to vector<64x8xf32>
    %c0_228 = arith.constant 0 : index
    %c0_229 = arith.constant 0 : index
    %550 = vector.load %arg30[%c0_228, %c0_229] : memref<64x32xf32, #tpu.memory_space<vmem>>, vector<64x8xf32>
    tpu.vector_store %arg30[%c0_228, %c0_229], %549 {strides = array<i32>} : memref<64x32xf32, #tpu.memory_space<vmem>>, vector<64x8xf32>,
    %551 = vector.extract_strided_slice %523 {offsets = [0, 0, 8], sizes = [8, 8, 8], strides = [1, 1, 1]} : vector<8x8x32xf32> to vector<8x8x8xf32>
    %552 = arith.truncf %551 : vector<8x8x8xf32> to vector<8x8x8xbf16>
    %553 = vector.extract_strided_slice %524 {offsets = [0, 0, 8], sizes = [8, 8, 8], strides = [1, 1, 1]} : vector<8x8x32xf32> to vector<8x8x8xf32>
    %554 = arith.truncf %553 : vector<8x8x8xf32> to vector<8x8x8xbf16>
    %555 = vector.extract_strided_slice %525 {offsets = [0, 0, 8], sizes = [8, 8, 8], strides = [1, 1, 1]} : vector<8x8x32xf32> to vector<8x8x8xf32>
    %556 = arith.truncf %555 : vector<8x8x8xf32> to vector<8x8x8xbf16>
    "tpu.trace_start"() <{level = 10 : i32, message = "bqd,bkd->bqk"}> : () -> ()
    %cst_230 = arith.constant dense<0.000000e+00> : vector<8x8x8xf32>
    %557 = tpu.matmul %552, %554, %cst_230 {dimension_numbers = #tpu.dot_dimension_numbers<[2], [2], [1], [1], [0, 0, 0, 1, 1, 1], [0], [0]>} : vector<8x8x8xbf16>, vector<8x8x8xbf16>, vector<8x8x8xf32> -> vector<8x8x8xf32>
    "tpu.trace_stop"() : () -> ()
    %cst_231 = arith.constant 0.353553385 : f32
    %558 = vector.broadcast %cst_231 : f32 to vector<8x8x8xf32>
    %559 = arith.mulf %557, %558 : vector<8x8x8xf32>
    %560 = vector.broadcast %285 : vector<1x8x8xf32> to vector<8x8x8xf32>
    %561 = arith.addf %559, %560 : vector<8x8x8xf32>
    %cst_232 = arith.constant dense<0xFF800000> : vector<8x8xf32>
    %562 = vector.multi_reduction <maximumf>, %561, %cst_232 [2] : vector<8x8x8xf32> to vector<8x8xf32>
    %563 = vector.shape_cast %562 : vector<8x8xf32> to vector<8x8x1xf32>
    %564 = vector.broadcast %563 : vector<8x8x1xf32> to vector<8x8x8xf32>
    %565 = arith.subf %561, %564 : vector<8x8x8xf32>
    %566 = math.exp %565 : vector<8x8x8xf32>
    %cst_233 = arith.constant dense<0.000000e+00> : vector<8x8xf32>
    %567 = vector.multi_reduction <add>, %566, %cst_233 [2] : vector<8x8x8xf32> to vector<8x8xf32>
    %568 = vector.shape_cast %567 : vector<8x8xf32> to vector<8x8x1xf32>
    %569 = tpu.reciprocal %568 {approx = true} : vector<8x8x1xf32> -> vector<8x8x1xf32>
    %570 = vector.broadcast %569 : vector<8x8x1xf32> to vector<8x8x8xf32>
    %571 = arith.mulf %566, %570 : vector<8x8x8xf32>
    %572 = arith.truncf %571 : vector<8x8x8xf32> to vector<8x8x8xbf16>
    "tpu.trace_start"() <{level = 10 : i32, message = "bqk,bkd->bqd"}> : () -> ()
    %cst_234 = arith.constant dense<0.000000e+00> : vector<8x8x8xf32>
    %573 = tpu.matmul %572, %556, %cst_234 {dimension_numbers = #tpu.dot_dimension_numbers<[2], [1], [1], [2], [0, 0, 0, 1, 1, 2], [0], [0]>} : vector<8x8x8xbf16>, vector<8x8x8xbf16>, vector<8x8x8xf32> -> vector<8x8x8xf32>
    "tpu.trace_stop"() : () -> ()
    %574 = vector.shape_cast %573 : vector<8x8x8xf32> to vector<64x8xf32>
    %c0_235 = arith.constant 0 : index
    %c8_236 = arith.constant 8 : index
    %575 = vector.load %arg30[%c0_235, %c8_236] : memref<64x32xf32, #tpu.memory_space<vmem>>, vector<64x8xf32>
    tpu.vector_store %arg30[%c0_235, %c8_236], %574 {strides = array<i32>} : memref<64x32xf32, #tpu.memory_space<vmem>>, vector<64x8xf32>,
    %576 = vector.extract_strided_slice %523 {offsets = [0, 0, 16], sizes = [8, 8, 8], strides = [1, 1, 1]} : vector<8x8x32xf32> to vector<8x8x8xf32>
    %577 = arith.truncf %576 : vector<8x8x8xf32> to vector<8x8x8xbf16>
    %578 = vector.extract_strided_slice %524 {offsets = [0, 0, 16], sizes = [8, 8, 8], strides = [1, 1, 1]} : vector<8x8x32xf32> to vector<8x8x8xf32>
    %579 = arith.truncf %578 : vector<8x8x8xf32> to vector<8x8x8xbf16>
    %580 = vector.extract_strided_slice %525 {offsets = [0, 0, 16], sizes = [8, 8, 8], strides = [1, 1, 1]} : vector<8x8x32xf32> to vector<8x8x8xf32>
    %581 = arith.truncf %580 : vector<8x8x8xf32> to vector<8x8x8xbf16>
    "tpu.trace_start"() <{level = 10 : i32, message = "bqd,bkd->bqk"}> : () -> ()
    %cst_237 = arith.constant dense<0.000000e+00> : vector<8x8x8xf32>
    %582 = tpu.matmul %577, %579, %cst_237 {dimension_numbers = #tpu.dot_dimension_numbers<[2], [2], [1], [1], [0, 0, 0, 1, 1, 1], [0], [0]>} : vector<8x8x8xbf16>, vector<8x8x8xbf16>, vector<8x8x8xf32> -> vector<8x8x8xf32>
    "tpu.trace_stop"() : () -> ()
    %cst_238 = arith.constant 0.353553385 : f32
    %583 = vector.broadcast %cst_238 : f32 to vector<8x8x8xf32>
    %584 = arith.mulf %582, %583 : vector<8x8x8xf32>
    %585 = vector.broadcast %285 : vector<1x8x8xf32> to vector<8x8x8xf32>
    %586 = arith.addf %584, %585 : vector<8x8x8xf32>
    %cst_239 = arith.constant dense<0xFF800000> : vector<8x8xf32>
    %587 = vector.multi_reduction <maximumf>, %586, %cst_239 [2] : vector<8x8x8xf32> to vector<8x8xf32>
    %588 = vector.shape_cast %587 : vector<8x8xf32> to vector<8x8x1xf32>
    %589 = vector.broadcast %588 : vector<8x8x1xf32> to vector<8x8x8xf32>
    %590 = arith.subf %586, %589 : vector<8x8x8xf32>
    %591 = math.exp %590 : vector<8x8x8xf32>
    %cst_240 = arith.constant dense<0.000000e+00> : vector<8x8xf32>
    %592 = vector.multi_reduction <add>, %591, %cst_240 [2] : vector<8x8x8xf32> to vector<8x8xf32>
    %593 = vector.shape_cast %592 : vector<8x8xf32> to vector<8x8x1xf32>
    %594 = tpu.reciprocal %593 {approx = true} : vector<8x8x1xf32> -> vector<8x8x1xf32>
    %595 = vector.broadcast %594 : vector<8x8x1xf32> to vector<8x8x8xf32>
    %596 = arith.mulf %591, %595 : vector<8x8x8xf32>
    %597 = arith.truncf %596 : vector<8x8x8xf32> to vector<8x8x8xbf16>
    "tpu.trace_start"() <{level = 10 : i32, message = "bqk,bkd->bqd"}> : () -> ()
    %cst_241 = arith.constant dense<0.000000e+00> : vector<8x8x8xf32>
    %598 = tpu.matmul %597, %581, %cst_241 {dimension_numbers = #tpu.dot_dimension_numbers<[2], [1], [1], [2], [0, 0, 0, 1, 1, 2], [0], [0]>} : vector<8x8x8xbf16>, vector<8x8x8xbf16>, vector<8x8x8xf32> -> vector<8x8x8xf32>
    "tpu.trace_stop"() : () -> ()
    %599 = vector.shape_cast %598 : vector<8x8x8xf32> to vector<64x8xf32>
    %c0_242 = arith.constant 0 : index
    %c16_243 = arith.constant 16 : index
    %600 = vector.load %arg30[%c0_242, %c16_243] : memref<64x32xf32, #tpu.memory_space<vmem>>, vector<64x8xf32>
    tpu.vector_store %arg30[%c0_242, %c16_243], %599 {strides = array<i32>} : memref<64x32xf32, #tpu.memory_space<vmem>>, vector<64x8xf32>,
    %601 = vector.extract_strided_slice %523 {offsets = [0, 0, 24], sizes = [8, 8, 8], strides = [1, 1, 1]} : vector<8x8x32xf32> to vector<8x8x8xf32>
    %602 = arith.truncf %601 : vector<8x8x8xf32> to vector<8x8x8xbf16>
    %603 = vector.extract_strided_slice %524 {offsets = [0, 0, 24], sizes = [8, 8, 8], strides = [1, 1, 1]} : vector<8x8x32xf32> to vector<8x8x8xf32>
    %604 = arith.truncf %603 : vector<8x8x8xf32> to vector<8x8x8xbf16>
    %605 = vector.extract_strided_slice %525 {offsets = [0, 0, 24], sizes = [8, 8, 8], strides = [1, 1, 1]} : vector<8x8x32xf32> to vector<8x8x8xf32>
    %606 = arith.truncf %605 : vector<8x8x8xf32> to vector<8x8x8xbf16>
    "tpu.trace_start"() <{level = 10 : i32, message = "bqd,bkd->bqk"}> : () -> ()
    %cst_244 = arith.constant dense<0.000000e+00> : vector<8x8x8xf32>
    %607 = tpu.matmul %602, %604, %cst_244 {dimension_numbers = #tpu.dot_dimension_numbers<[2], [2], [1], [1], [0, 0, 0, 1, 1, 1], [0], [0]>} : vector<8x8x8xbf16>, vector<8x8x8xbf16>, vector<8x8x8xf32> -> vector<8x8x8xf32>
    "tpu.trace_stop"() : () -> ()
    %cst_245 = arith.constant 0.353553385 : f32
    %608 = vector.broadcast %cst_245 : f32 to vector<8x8x8xf32>
    %609 = arith.mulf %607, %608 : vector<8x8x8xf32>
    %610 = vector.broadcast %285 : vector<1x8x8xf32> to vector<8x8x8xf32>
    %611 = arith.addf %609, %610 : vector<8x8x8xf32>
    %cst_246 = arith.constant dense<0xFF800000> : vector<8x8xf32>
    %612 = vector.multi_reduction <maximumf>, %611, %cst_246 [2] : vector<8x8x8xf32> to vector<8x8xf32>
    %613 = vector.shape_cast %612 : vector<8x8xf32> to vector<8x8x1xf32>
    %614 = vector.broadcast %613 : vector<8x8x1xf32> to vector<8x8x8xf32>
    %615 = arith.subf %611, %614 : vector<8x8x8xf32>
    %616 = math.exp %615 : vector<8x8x8xf32>
    %cst_247 = arith.constant dense<0.000000e+00> : vector<8x8xf32>
    %617 = vector.multi_reduction <add>, %616, %cst_247 [2] : vector<8x8x8xf32> to vector<8x8xf32>
    %618 = vector.shape_cast %617 : vector<8x8xf32> to vector<8x8x1xf32>
    %619 = tpu.reciprocal %618 {approx = true} : vector<8x8x1xf32> -> vector<8x8x1xf32>
    %620 = vector.broadcast %619 : vector<8x8x1xf32> to vector<8x8x8xf32>
    %621 = arith.mulf %616, %620 : vector<8x8x8xf32>
    %622 = arith.truncf %621 : vector<8x8x8xf32> to vector<8x8x8xbf16>
    "tpu.trace_start"() <{level = 10 : i32, message = "bqk,bkd->bqd"}> : () -> ()
    %cst_248 = arith.constant dense<0.000000e+00> : vector<8x8x8xf32>
    %623 = tpu.matmul %622, %606, %cst_248 {dimension_numbers = #tpu.dot_dimension_numbers<[2], [1], [1], [2], [0, 0, 0, 1, 1, 2], [0], [0]>} : vector<8x8x8xbf16>, vector<8x8x8xbf16>, vector<8x8x8xf32> -> vector<8x8x8xf32>
    "tpu.trace_stop"() : () -> ()
    %624 = vector.shape_cast %623 : vector<8x8x8xf32> to vector<64x8xf32>
    %c0_249 = arith.constant 0 : index
    %c24_250 = arith.constant 24 : index
    %625 = vector.load %arg30[%c0_249, %c24_250] : memref<64x32xf32, #tpu.memory_space<vmem>>, vector<64x8xf32>
    tpu.vector_store %arg30[%c0_249, %c24_250], %624 {strides = array<i32>} : memref<64x32xf32, #tpu.memory_space<vmem>>, vector<64x8xf32>,
    %c0_251 = arith.constant 0 : index
    %c0_252 = arith.constant 0 : index
    %626 = vector.load %arg30[%c0_251, %c0_252] : memref<64x32xf32, #tpu.memory_space<vmem>>, vector<64x32xf32>
    %627 = arith.truncf %626 : vector<64x32xf32> to vector<64x32xbf16>
    %c1_253 = arith.constant 1 : index
    %c0_254 = arith.constant 0 : index
    %c0_255 = arith.constant 0 : index
    %628 = vector.load %arg13[%c1_253, %c0_254, %c0_255] : memref<2x32x32xbf16, #tpu.memory_space<vmem>>, vector<1x32x32xbf16>
    %629 = vector.shape_cast %628 : vector<1x32x32xbf16> to vector<32x32xbf16>
    %cst_256 = arith.constant dense<0.000000e+00> : vector<64x32xf32>
    %630 = tpu.matmul %627, %629, %cst_256 {dimension_numbers = #tpu.dot_dimension_numbers<[1], [0], [0], [1], [0, 0, 1, 1], [], []>} : vector<64x32xbf16>, vector<32x32xbf16>, vector<64x32xf32> -> vector<64x32xf32>
    %c1_257 = arith.constant 1 : index
    %c0_258 = arith.constant 0 : index
    %c0_259 = arith.constant 0 : index
    %631 = vector.load %arg14[%c1_257, %c0_258, %c0_259] : memref<2x1x32xf32, #tpu.memory_space<vmem>>, vector<1x1x32xf32>
    %632 = vector.shape_cast %631 : vector<1x1x32xf32> to vector<1x32xf32>
    %633 = vector.broadcast %632 : vector<1x32xf32> to vector<64x32xf32>
    %634 = arith.addf %630, %633 : vector<64x32xf32>
    %635 = arith.addf %495, %634 : vector<64x32xf32>
    %c1_260 = arith.constant 1 : index
    %c0_261 = arith.constant 0 : index
    %c0_262 = arith.constant 0 : index
    %636 = vector.load %arg19[%c1_260, %c0_261, %c0_262] : memref<2x1x32xf32, #tpu.memory_space<vmem>>, vector<1x1x32xf32>
    %637 = vector.shape_cast %636 : vector<1x1x32xf32> to vector<1x32xf32>
    %c1_263 = arith.constant 1 : index
    %c0_264 = arith.constant 0 : index
    %c0_265 = arith.constant 0 : index
    %638 = vector.load %arg20[%c1_263, %c0_264, %c0_265] : memref<2x1x32xf32, #tpu.memory_space<vmem>>, vector<1x1x32xf32>
    %639 = vector.shape_cast %638 : vector<1x1x32xf32> to vector<1x32xf32>
    %cst_266 = arith.constant dense<0.000000e+00> : vector<64xf32>
    %640 = vector.multi_reduction <add>, %635, %cst_266 [1] : vector<64x32xf32> to vector<64xf32>
    %641 = vector.shape_cast %640 : vector<64xf32> to vector<64x1xf32>
    %cst_267 = arith.constant 3.200000e+01 : f32
    %642 = vector.broadcast %cst_267 : f32 to vector<64x1xf32>
    %643 = arith.divf %641, %642 : vector<64x1xf32>
    %644 = vector.broadcast %643 : vector<64x1xf32> to vector<64x32xf32>
    %645 = arith.subf %635, %644 : vector<64x32xf32>
    %646 = arith.mulf %645, %645 : vector<64x32xf32>
    %cst_268 = arith.constant dense<0.000000e+00> : vector<64xf32>
    %647 = vector.multi_reduction <add>, %646, %cst_268 [1] : vector<64x32xf32> to vector<64xf32>
    %648 = vector.shape_cast %647 : vector<64xf32> to vector<64x1xf32>
    %cst_269 = arith.constant 3.200000e+01 : f32
    %649 = vector.broadcast %cst_269 : f32 to vector<64x1xf32>
    %650 = arith.divf %648, %649 : vector<64x1xf32>
    %651 = vector.broadcast %643 : vector<64x1xf32> to vector<64x32xf32>
    %652 = arith.subf %635, %651 : vector<64x32xf32>
    %cst_270 = arith.constant 9.99999974E-6 : f32
    %653 = vector.broadcast %cst_270 : f32 to vector<64x1xf32>
    %654 = arith.addf %650, %653 : vector<64x1xf32>
    %655 = math.rsqrt %654 : vector<64x1xf32>
    %656 = vector.broadcast %655 : vector<64x1xf32> to vector<64x32xf32>
    %657 = arith.mulf %652, %656 : vector<64x32xf32>
    %658 = vector.broadcast %637 : vector<1x32xf32> to vector<64x32xf32>
    %659 = arith.mulf %657, %658 : vector<64x32xf32>
    %660 = vector.broadcast %639 : vector<1x32xf32> to vector<64x32xf32>
    %661 = arith.addf %659, %660 : vector<64x32xf32>
    %662 = arith.truncf %661 : vector<64x32xf32> to vector<64x32xbf16>
    %c1_271 = arith.constant 1 : index
    %c0_272 = arith.constant 0 : index
    %c0_273 = arith.constant 0 : index
    %663 = vector.load %arg15[%c1_271, %c0_272, %c0_273] : memref<2x32x64xbf16, #tpu.memory_space<vmem>>, vector<1x32x64xbf16>
    %664 = vector.shape_cast %663 : vector<1x32x64xbf16> to vector<32x64xbf16>
    %cst_274 = arith.constant dense<0.000000e+00> : vector<64x64xf32>
    %665 = tpu.matmul %662, %664, %cst_274 {dimension_numbers = #tpu.dot_dimension_numbers<[1], [0], [0], [1], [0, 0, 1, 1], [], []>} : vector<64x32xbf16>, vector<32x64xbf16>, vector<64x64xf32> -> vector<64x64xf32>
    %c1_275 = arith.constant 1 : index
    %c0_276 = arith.constant 0 : index
    %c0_277 = arith.constant 0 : index
    %666 = vector.load %arg16[%c1_275, %c0_276, %c0_277] : memref<2x1x64xf32, #tpu.memory_space<vmem>>, vector<1x1x64xf32>
    %667 = vector.shape_cast %666 : vector<1x1x64xf32> to vector<1x64xf32>
    %668 = vector.broadcast %667 : vector<1x64xf32> to vector<64x64xf32>
    %669 = arith.addf %665, %668 : vector<64x64xf32>
    %cst_278 = arith.constant 0.000000e+00 : f32
    %670 = vector.broadcast %cst_278 : f32 to vector<64x64xf32>
    %671 = arith.maximumf %669, %670 : vector<64x64xf32>
    %672 = arith.truncf %671 : vector<64x64xf32> to vector<64x64xbf16>
    %c1_279 = arith.constant 1 : index
    %c0_280 = arith.constant 0 : index
    %c0_281 = arith.constant 0 : index
    %673 = vector.load %arg17[%c1_279, %c0_280, %c0_281] : memref<2x64x32xbf16, #tpu.memory_space<vmem>>, vector<1x64x32xbf16>
    %674 = vector.shape_cast %673 : vector<1x64x32xbf16> to vector<64x32xbf16>
    %cst_282 = arith.constant dense<0.000000e+00> : vector<64x32xf32>
    %675 = tpu.matmul %672, %674, %cst_282 {dimension_numbers = #tpu.dot_dimension_numbers<[1], [0], [0], [1], [0, 0, 1, 1], [], []>} : vector<64x64xbf16>, vector<64x32xbf16>, vector<64x32xf32> -> vector<64x32xf32>
    %c1_283 = arith.constant 1 : index
    %c0_284 = arith.constant 0 : index
    %c0_285 = arith.constant 0 : index
    %676 = vector.load %arg18[%c1_283, %c0_284, %c0_285] : memref<2x1x32xf32, #tpu.memory_space<vmem>>, vector<1x1x32xf32>
    %677 = vector.shape_cast %676 : vector<1x1x32xf32> to vector<1x32xf32>
    %678 = vector.broadcast %677 : vector<1x32xf32> to vector<64x32xf32>
    %679 = arith.addf %675, %678 : vector<64x32xf32>
    %680 = arith.addf %661, %679 : vector<64x32xf32>
    %c1_286 = arith.constant 1 : index
    %c0_287 = arith.constant 0 : index
    %c0_288 = arith.constant 0 : index
    %681 = vector.load %arg21[%c1_286, %c0_287, %c0_288] : memref<2x1x32xf32, #tpu.memory_space<vmem>>, vector<1x1x32xf32>
    %682 = vector.shape_cast %681 : vector<1x1x32xf32> to vector<1x32xf32>
    %c1_289 = arith.constant 1 : index
    %c0_290 = arith.constant 0 : index
    %c0_291 = arith.constant 0 : index
    %683 = vector.load %arg22[%c1_289, %c0_290, %c0_291] : memref<2x1x32xf32, #tpu.memory_space<vmem>>, vector<1x1x32xf32>
    %684 = vector.shape_cast %683 : vector<1x1x32xf32> to vector<1x32xf32>
    %cst_292 = arith.constant dense<0.000000e+00> : vector<64xf32>
    %685 = vector.multi_reduction <add>, %680, %cst_292 [1] : vector<64x32xf32> to vector<64xf32>
    %686 = vector.shape_cast %685 : vector<64xf32> to vector<64x1xf32>
    %cst_293 = arith.constant 3.200000e+01 : f32
    %687 = vector.broadcast %cst_293 : f32 to vector<64x1xf32>
    %688 = arith.divf %686, %687 : vector<64x1xf32>
    %689 = vector.broadcast %688 : vector<64x1xf32> to vector<64x32xf32>
    %690 = arith.subf %680, %689 : vector<64x32xf32>
    %691 = arith.mulf %690, %690 : vector<64x32xf32>
    %cst_294 = arith.constant dense<0.000000e+00> : vector<64xf32>
    %692 = vector.multi_reduction <add>, %691, %cst_294 [1] : vector<64x32xf32> to vector<64xf32>
    %693 = vector.shape_cast %692 : vector<64xf32> to vector<64x1xf32>
    %cst_295 = arith.constant 3.200000e+01 : f32
    %694 = vector.broadcast %cst_295 : f32 to vector<64x1xf32>
    %695 = arith.divf %693, %694 : vector<64x1xf32>
    %696 = vector.broadcast %688 : vector<64x1xf32> to vector<64x32xf32>
    %697 = arith.subf %680, %696 : vector<64x32xf32>
    %cst_296 = arith.constant 9.99999974E-6 : f32
    %698 = vector.broadcast %cst_296 : f32 to vector<64x1xf32>
    %699 = arith.addf %695, %698 : vector<64x1xf32>
    %700 = math.rsqrt %699 : vector<64x1xf32>
    %701 = vector.broadcast %700 : vector<64x1xf32> to vector<64x32xf32>
    %702 = arith.mulf %697, %701 : vector<64x32xf32>
    %703 = vector.broadcast %682 : vector<1x32xf32> to vector<64x32xf32>
    %704 = arith.mulf %702, %703 : vector<64x32xf32>
    %705 = vector.broadcast %684 : vector<1x32xf32> to vector<64x32xf32>
    %706 = arith.addf %704, %705 : vector<64x32xf32>
    %707 = arith.truncf %706 : vector<64x32xf32> to vector<64x32xbf16>
    %c0_297 = arith.constant 0 : index
    %c0_298 = arith.constant 0 : index
    %708 = vector.load %arg23[%c0_297, %c0_298] : memref<32x128xbf16, #tpu.memory_space<vmem>>, vector<32x128xbf16>
    %cst_299 = arith.constant dense<0.000000e+00> : vector<64x128xf32>
    %709 = tpu.matmul %707, %708, %cst_299 {dimension_numbers = #tpu.dot_dimension_numbers<[1], [0], [0], [1], [0, 0, 1, 1], [], []>} : vector<64x32xbf16>, vector<32x128xbf16>, vector<64x128xf32> -> vector<64x128xf32>
    %c0_300 = arith.constant 0 : index
    %c0_301 = arith.constant 0 : index
    %710 = vector.load %arg24[%c0_300, %c0_301] : memref<1x128xf32, #tpu.memory_space<vmem>>, vector<1x128xf32>
    %711 = vector.broadcast %710 : vector<1x128xf32> to vector<64x128xf32>
    %712 = arith.addf %709, %711 : vector<64x128xf32>
    %cst_302 = arith.constant dense<0xFF800000> : vector<64xf32>
    %713 = vector.multi_reduction <maximumf>, %712, %cst_302 [1] : vector<64x128xf32> to vector<64xf32>
    %714 = vector.shape_cast %713 : vector<64xf32> to vector<64x1xf32>
    %715 = vector.broadcast %714 : vector<64x1xf32> to vector<64x128xf32>
    %716 = arith.subf %712, %715 : vector<64x128xf32>
    %717 = math.exp %716 : vector<64x128xf32>
    %cst_303 = arith.constant dense<0.000000e+00> : vector<64xf32>
    %718 = vector.multi_reduction <add>, %717, %cst_303 [1] : vector<64x128xf32> to vector<64xf32>
    %719 = vector.shape_cast %718 : vector<64xf32> to vector<64x1xf32>
    %720 = math.log %719 : vector<64x1xf32>
    %721 = vector.broadcast %720 : vector<64x1xf32> to vector<64x128xf32>
    %722 = arith.subf %716, %721 : vector<64x128xf32>
    %723 = vector.shape_cast %722 : vector<64x128xf32> to vector<8x8x128xf32>
    %c0_304 = arith.constant 0 : index
    %c0_305 = arith.constant 0 : index
    %c0_306 = arith.constant 0 : index
    %724 = vector.load %arg25[%c0_304, %c0_305, %c0_306] : memref<8x8x128xf32, #tpu.memory_space<vmem>>, vector<8x8x128xf32>
    tpu.vector_store %arg25[%c0_304, %c0_305, %c0_306], %723 {strides = array<i32>} : memref<8x8x128xf32, #tpu.memory_space<vmem>>, vector<8x8x128xf32>,
    return
  }
  func.func @transform_0(%arg0: i32) -> (i32, i32, i32) {
    %c0_i32 = arith.constant 0 : i32
    %c0_i32_0 = arith.constant 0 : i32
    %c0_i32_1 = arith.constant 0 : i32
    return %c0_i32, %arg0, %c0_i32_0 : i32, i32, i32
  }
  func.func @transform_1(%arg0: i32) -> (i32, i32) {
    %c0_i32 = arith.constant 0 : i32
    %c0_i32_0 = arith.constant 0 : i32
    %c0_i32_1 = arith.constant 0 : i32
    return %c0_i32, %c0_i32_0 : i32, i32
  }
  func.func @transform_2(%arg0: i32) -> (i32, i32) {
    %c0_i32 = arith.constant 0 : i32
    %c0_i32_0 = arith.constant 0 : i32
    %c0_i32_1 = arith.constant 0 : i32
    return %c0_i32, %c0_i32_0 : i32, i32
  }
  func.func @transform_3(%arg0: i32) -> (i32, i32) {
    %c0_i32 = arith.constant 0 : i32
    %c0_i32_0 = arith.constant 0 : i32
    %c0_i32_1 = arith.constant 0 : i32
    return %c0_i32, %c0_i32_0 : i32, i32
  }
  func.func @transform_4(%arg0: i32) -> (i32, i32) {
    %c0_i32 = arith.constant 0 : i32
    %c0_i32_0 = arith.constant 0 : i32
    return %arg0, %c0_i32 : i32, i32
  }
  func.func @transform_5(%arg0: i32) -> (i32, i32) {
    %c0_i32 = arith.constant 0 : i32
    %c0_i32_0 = arith.constant 0 : i32
    return %arg0, %c0_i32 : i32, i32
  }
  func.func @transform_6(%arg0: i32) -> (i32, i32, i32) {
    %c0_i32 = arith.constant 0 : i32
    %c0_i32_0 = arith.constant 0 : i32
    %c0_i32_1 = arith.constant 0 : i32
    %c0_i32_2 = arith.constant 0 : i32
    return %c0_i32, %c0_i32_0, %c0_i32_1 : i32, i32, i32
  }
  func.func @transform_7(%arg0: i32) -> (i32, i32, i32) {
    %c0_i32 = arith.constant 0 : i32
    %c0_i32_0 = arith.constant 0 : i32
    %c0_i32_1 = arith.constant 0 : i32
    %c0_i32_2 = arith.constant 0 : i32
    return %c0_i32, %c0_i32_0, %c0_i32_1 : i32, i32, i32
  }
  func.func @transform_8(%arg0: i32) -> (i32, i32, i32) {
    %c0_i32 = arith.constant 0 : i32
    %c0_i32_0 = arith.constant 0 : i32
    %c0_i32_1 = arith.constant 0 : i32
    %c0_i32_2 = arith.constant 0 : i32
    return %c0_i32, %c0_i32_0, %c0_i32_1 : i32, i32, i32
  }
  func.func @transform_9(%arg0: i32) -> (i32, i32, i32) {
    %c0_i32 = arith.constant 0 : i32
    %c0_i32_0 = arith.constant 0 : i32
    %c0_i32_1 = arith.constant 0 : i32
    %c0_i32_2 = arith.constant 0 : i32
    return %c0_i32, %c0_i32_0, %c0_i32_1 : i32, i32, i32
  }
  func.func @transform_10(%arg0: i32) -> (i32, i32, i32) {
    %c0_i32 = arith.constant 0 : i32
    %c0_i32_0 = arith.constant 0 : i32
    %c0_i32_1 = arith.constant 0 : i32
    %c0_i32_2 = arith.constant 0 : i32
    return %c0_i32, %c0_i32_0, %c0_i32_1 : i32, i32, i32
  }
  func.func @transform_11(%arg0: i32) -> (i32, i32, i32) {
    %c0_i32 = arith.constant 0 : i32
    %c0_i32_0 = arith.constant 0 : i32
    %c0_i32_1 = arith.constant 0 : i32
    %c0_i32_2 = arith.constant 0 : i32
    return %c0_i32, %c0_i32_0, %c0_i32_1 : i32, i32, i32
  }
  func.func @transform_12(%arg0: i32) -> (i32, i32, i32) {
    %c0_i32 = arith.constant 0 : i32
    %c0_i32_0 = arith.constant 0 : i32
    %c0_i32_1 = arith.constant 0 : i32
    %c0_i32_2 = arith.constant 0 : i32
    return %c0_i32, %c0_i32_0, %c0_i32_1 : i32, i32, i32
  }
  func.func @transform_13(%arg0: i32) -> (i32, i32, i32) {
    %c0_i32 = arith.constant 0 : i32
    %c0_i32_0 = arith.constant 0 : i32
    %c0_i32_1 = arith.constant 0 : i32
    %c0_i32_2 = arith.constant 0 : i32
    return %c0_i32, %c0_i32_0, %c0_i32_1 : i32, i32, i32
  }
  func.func @transform_14(%arg0: i32) -> (i32, i32, i32) {
    %c0_i32 = arith.constant 0 : i32
    %c0_i32_0 = arith.constant 0 : i32
    %c0_i32_1 = arith.constant 0 : i32
    %c0_i32_2 = arith.constant 0 : i32
    return %c0_i32, %c0_i32_0, %c0_i32_1 : i32, i32, i32
  }
  func.func @transform_15(%arg0: i32) -> (i32, i32, i32) {
    %c0_i32 = arith.constant 0 : i32
    %c0_i32_0 = arith.constant 0 : i32
    %c0_i32_1 = arith.constant 0 : i32
    %c0_i32_2 = arith.constant 0 : i32
    return %c0_i32, %c0_i32_0, %c0_i32_1 : i32, i32, i32
  }
  func.func @transform_16(%arg0: i32) -> (i32, i32, i32) {
    %c0_i32 = arith.constant 0 : i32
    %c0_i32_0 = arith.constant 0 : i32
    %c0_i32_1 = arith.constant 0 : i32
    %c0_i32_2 = arith.constant 0 : i32
    return %c0_i32, %c0_i32_0, %c0_i32_1 : i32, i32, i32
  }
  func.func @transform_17(%arg0: i32) -> (i32, i32, i32) {
    %c0_i32 = arith.constant 0 : i32
    %c0_i32_0 = arith.constant 0 : i32
    %c0_i32_1 = arith.constant 0 : i32
    %c0_i32_2 = arith.constant 0 : i32
    return %c0_i32, %c0_i32_0, %c0_i32_1 : i32, i32, i32
  }
  func.func @transform_18(%arg0: i32) -> (i32, i32, i32) {
    %c0_i32 = arith.constant 0 : i32
    %c0_i32_0 = arith.constant 0 : i32
    %c0_i32_1 = arith.constant 0 : i32
    %c0_i32_2 = arith.constant 0 : i32
    return %c0_i32, %c0_i32_0, %c0_i32_1 : i32, i32, i32
  }
  func.func @transform_19(%arg0: i32) -> (i32, i32, i32) {
    %c0_i32 = arith.constant 0 : i32
    %c0_i32_0 = arith.constant 0 : i32
    %c0_i32_1 = arith.constant 0 : i32
    %c0_i32_2 = arith.constant 0 : i32
    return %c0_i32, %c0_i32_0, %c0_i32_1 : i32, i32, i32
  }
  func.func @transform_20(%arg0: i32) -> (i32, i32, i32) {
    %c0_i32 = arith.constant 0 : i32
    %c0_i32_0 = arith.constant 0 : i32
    %c0_i32_1 = arith.constant 0 : i32
    %c0_i32_2 = arith.constant 0 : i32
    return %c0_i32, %c0_i32_0, %c0_i32_1 : i32, i32, i32
  }
  func.func @transform_21(%arg0: i32) -> (i32, i32, i32) {
    %c0_i32 = arith.constant 0 : i32
    %c0_i32_0 = arith.constant 0 : i32
    %c0_i32_1 = arith.constant 0 : i32
    %c0_i32_2 = arith.constant 0 : i32
    return %c0_i32, %c0_i32_0, %c0_i32_1 : i32, i32, i32
  }
  func.func @transform_22(%arg0: i32) -> (i32, i32) {
    %c0_i32 = arith.constant 0 : i32
    %c0_i32_0 = arith.constant 0 : i32
    %c0_i32_1 = arith.constant 0 : i32
    return %c0_i32, %c0_i32_0 : i32, i32
  }
  func.func @transform_23(%arg0: i32) -> (i32, i32) {
    %c0_i32 = arith.constant 0 : i32
    %c0_i32_0 = arith.constant 0 : i32
    %c0_i32_1 = arith.constant 0 : i32
    return %c0_i32, %c0_i32_0 : i32, i32
  }
  func.func @transform_24(%arg0: i32) -> (i32, i32, i32) {
    %c0_i32 = arith.constant 0 : i32
    %c0_i32_0 = arith.constant 0 : i32
    %c0_i32_1 = arith.constant 0 : i32
    return %arg0, %c0_i32, %c0_i32_0 : i32, i32, i32
  }
  func.func @transform_25(%arg0: i32) -> (i32, i32) {
    %c0_i32 = arith.constant 0 : i32
    %c0_i32_0 = arith.constant 0 : i32
    return %arg0, %c0_i32 : i32, i32
  }
  func.func @transform_26(%arg0: i32) -> (i32, i32) {
    %c0_i32 = arith.constant 0 : i32
    %c0_i32_0 = arith.constant 0 : i32
    return %arg0, %c0_i32 : i32, i32
  }
  func.func @transform_27(%arg0: i32) -> (i32, i32, i32, i32) {
    %c0_i32 = arith.constant 0 : i32
    %c0_i32_0 = arith.constant 0 : i32
    %c0_i32_1 = arith.constant 0 : i32
    %c0_i32_2 = arith.constant 0 : i32
    return %c0_i32, %c0_i32_0, %arg0, %c0_i32_1 : i32, i32, i32, i32
  }
}

</mosaic_0001>

<bundles_post_ra>
// kernel: tpu_custom_call.1
= control target key start
LH: loop header
LB: loop body
LE: loop exit
PB: predicated region body
PF: predicated region fallthrough
CT: control target
= control target key end

     0   :  { %s11338_s0 = inlined_call_operand.vmem [shape: f32[8,8,32], index: 0, kind: input, shape index: {}]   ;;  %s11339_s1 = inlined_call_operand.hbm [shape: bf16[32,128], index: 1, kind: input, shape index: {}]   ;;  %s11340_s2 = inlined_call_operand.hbm [shape: bf16[32,128], index: 2, kind: input, shape index: {}]   ;;  %s11341_s3 = inlined_call_operand.vmem [shape: f32[1,128], index: 3, kind: input, shape index: {}]   ;;  %s11342_s4 = inlined_call_operand.hbm [shape: f32[8,32], index: 4, kind: input, shape index: {}]   ;;  %s11343_s5 = inlined_call_operand.hbm [shape: f32[8,32], index: 5, kind: input, shape index: {}]   ;;  %s11344_s6 = inlined_call_operand.vmem [shape: bf16[2,32,32], index: 6, kind: input, shape index: {}]   ;;  %s11345_s7 = inlined_call_operand.hbm [shape: bf16[2,32,32], index: 7, kind: input, shape index: {}]   ;;  %s11346_s8 = inlined_call_operand.hbm [shape: bf16[2,32,32], index: 8, kind: input, shape index: {}]   ;;  %s11347_s9 = inlined_call_operand.hbm [shape: f32[2,1,32], index: 9, kind: input, shape index: {}]   ;;  %s11348_s10 = inlined_call_operand.hbm [shape: f32[2,1,32], index: 10, kind: input, shape index: {}]   ;;  %s11349_s11 = inlined_call_operand.hbm [shape: f32[2,1,32], index: 11, kind: input, shape index: {}]   ;;  %s11350_s12 = inlined_call_operand.hbm [shape: bf16[2,32,32], index: 12, kind: input, shape index: {}]   ;;  %s11351_s13 = inlined_call_operand.hbm [shape: f32[2,1,32], index: 13, kind: input, shape index: {}]   ;;  %s11352_s14 = inlined_call_operand.hbm [shape: bf16[2,32,64], index: 14, kind: input, shape index: {}]   ;;  %s11353_s15 = inlined_call_operand.hbm [shape: f32[2,1,64], index: 15, kind: input, shape index: {}]   ;;  %s11354_s16 = inlined_call_operand.vmem [shape: bf16[2,64,32], index: 16, kind: input, shape index: {}]   ;;  %s11355_s17 = inlined_call_operand.hbm [shape: f32[2,1,32], index: 17, kind: input, shape index: {}]   ;;  %s11356_s18 = inlined_call_operand.hbm [shape: f32[2,1,32], index: 18, kind: input, shape index: {}]   ;;  %s11357_s19 = inlined_call_operand.hbm [shape: f32[2,1,32], index: 19, kind: input, shape index: {}]   ;;  %s11358_s20 = inlined_call_operand.vmem [shape: f32[2,1,32], index: 20, kind: input, shape index: {}]   ;;  %s11359_s21 = inlined_call_operand.hbm [shape: f32[2,1,32], index: 21, kind: input, shape index: {}]   ;;  %s11360_s22 = inlined_call_operand.vmem [shape: bf16[32,128], index: 22, kind: input, shape index: {}]   ;;  %s11361_s23 = inlined_call_operand.vmem [shape: f32[1,128], index: 23, kind: input, shape index: {}]   ;;  %s11362_s24 = inlined_call_operand.hbm [shape: f32[8,8,128], index: 24, kind: output, shape index: {0}]   ;;  %s11363_s25 = inlined_call_operand.hbm [shape: f32[8,32], index: 25, kind: output, shape index: {1}]   ;;  %s11364_s26 = inlined_call_operand.hbm [shape: f32[8,32], index: 26, kind: output, shape index: {2}]   ;;  %s11365_s27 = inlined_call_operand.hbm [shape: f32[2,8,8,32], index: 27, kind: output, shape index: {3}]  }
   0x1   :  { %11368 = sst [smem:[#allocation49_spill]] %s11338_s0 }
   0x2   :  { %11369 = sst [smem:[#allocation50_spill]] %s11339_s1 }
   0x3   :  { %11370 = sst [smem:[#allocation51_spill]] %s11340_s2 }
   0x4   :  { %11371 = sst [smem:[#allocation52_spill]] %s11341_s3 }
   0x5   :  { %11372 = sst [smem:[#allocation53_spill]] %s11342_s4 }
   0x6   :  { %11373 = sst [smem:[#allocation54_spill]] %s11343_s5 }
   0x7   :  { %11374 = sst [smem:[#allocation55_spill]] %s11344_s6 }
   0x8   :  { %11375 = sst [smem:[#allocation56_spill]] %s11345_s7 }
   0x9   :  { %11376 = sst [smem:[#allocation57_spill]] %s11346_s8 }
   0xa   :  { %11377 = sst [smem:[#allocation58_spill]] %s11347_s9 }
   0xb   :  { %11378 = sst [smem:[#allocation59_spill]] %s11348_s10 }
   0xc   :  { %11379 = sst [smem:[#allocation60_spill]] %s11349_s11 }
   0xd   :  { %11380 = sst [smem:[#allocation61_spill]] %s11362_s24 }
   0xe   :  { %11381 = sst [smem:[#allocation62_spill]] %s11364_s26 }
   0xf   :  { %33 = vsyncpa [#allocation5], 0 }
  0x10   :  { %34 = vsyncpa [#allocation8], 0 }
  0x11   :  { %35 = vsyncpa [#allocation11], 0 }
  0x12   :  { %36 = vsyncpa [#allocation14], 0 }
  0x13   :  { %37 = vsyncpa [#allocation17], 0 }
  0x14   :  { %38 = vsyncpa [#allocation20], 0 }
  0x15   :  { %39 = vsyncpa [#allocation23], 0 }
  0x16   :  { %40 = vsyncpa [#allocation26], 0 }
  0x17   :  { %41 = vsyncpa [#allocation29], 0 }
  0x18   :  { %42 = vsyncpa [#allocation6], 0 }
  0x19   :  { %43 = vsyncpa [#allocation33], 0 }
  0x1a   :  { %44 = vsyncpa [#allocation36], 0  ;;  %s11382_s8 = sld [smem:[#allocation51_spill]]  ;;  %s8548_s9 = smov [#allocation7]  }
  0x1b   :  { %s66_s5 = sshll.u32 %s8548_s9, 4  ;;  %s11383_s10 = sld [smem:[#allocation54_spill]]  ;;  %s67_s5 = int_to_ptr.vmem [resolvable:$true] %s66_s5 }
  0x1c   :  { %s8549_s1 = smov 64   ;;  %s8550_s6 = smov 4  }
  0x1d   :  { %s8551_s11 = smov [#allocation10]   ;;  %s11384_s4 = sld [smem:[#allocation57_spill]] }
  0x1e   :  { %s93_s2 = sshll.u32 %s8551_s11, 4  ;;  %s8552_s9 = smov [#allocation13]   ;;  %s94_s2 = int_to_ptr.vmem [resolvable:$true] %s93_s2 }
  0x1f   :  { %s118_s24 = sshll.u32 %s8552_s9, 4  ;;  %s168_s7 = sshll.u32 %s11350_s12, 4  ;;  %s119_s24 = int_to_ptr.vmem [resolvable:$true] %s118_s24  ;;  %s169_s7 = int_to_ptr.hbm [resolvable:$true] %s168_s7 }
  0x20   :  { %s64_s30 = sshll.u32 %s11382_s8, 4  ;;  %s194_s28 = sshll.u32 %s11352_s14, 4  ;;  %s65_s30 = int_to_ptr.hbm [resolvable:$true] %s64_s30  ;;  %s195_s28 = int_to_ptr.hbm [resolvable:$true] %s194_s28 }
  0x21   :  { %s91_s29 = sshll.u32 %s11383_s10, 4  ;;  %s11385_s10 = sld [smem:[#allocation59_spill]]  ;;  %s92_s29 = int_to_ptr.hbm [resolvable:$true] %s91_s29 }
  0x22   :  { %72 = dma.hbm_to_vmem [thread:$0]  %s65_s30, 256, %s67_s5, [#allocation8], %s8549_s1, %s8549_s1, %s8550_s6  }
  0x23   :  { %s116_s8 = sshll.u32 %s11384_s4, 4  ;;  %s8553_s30 = smov [#allocation16]   ;;  %s117_s8 = int_to_ptr.hbm [resolvable:$true] %s116_s8 }
  0x24   :  { %96 = dma.hbm_to_vmem [thread:$0]  %s92_s29, 128, %s94_s2, [#allocation11]  }
  0x25   :  { %124 = dma.hbm_to_vmem [thread:$0]  %s117_s8, 512, %s119_s24, [#allocation14], %s8549_s1, %s8549_s1, %s8550_s6  }
  0x26   :  { %s144_s5 = sshll.u32 %s8553_s30, 4  ;;  %s8554_s29 = smov 16   ;;  %s145_s5 = int_to_ptr.vmem [resolvable:$true] %s144_s5 }
  0x27   :  { %s142_s26 = sshll.u32 %s11385_s10, 4  ;;  %s8555_s2 = smov 1   ;;  %s143_s26 = int_to_ptr.hbm [resolvable:$true] %s142_s26 }
  0x28   :  { %150 = dma.hbm_to_vmem [thread:$0]  %s143_s26, 32, %s145_s5, [#allocation17], %s8554_s29, %s8554_s29, %s8555_s2  }
  0x29   :  { %s8556_s24 = smov [#allocation19]   ;;  %s8557_s12 = smov [#allocation22]  }
  0x2a   :  { %s170_s8 = sshll.u32 %s8556_s24, 4  ;;  %s196_s0 = sshll.u32 %s8557_s12, 4  ;;  %s171_s8 = int_to_ptr.vmem [resolvable:$true] %s170_s8  ;;  %s197_s0 = int_to_ptr.vmem [resolvable:$true] %s196_s0 }
  0x2b   :  { %176 = dma.hbm_to_vmem [thread:$0]  %s169_s7, 512, %s171_s8, [#allocation20], %s8549_s1, %s8549_s1, %s8550_s6  }
  0x2c   :  { %s222_s11 = sshll.u32 %s11355_s17, 4  ;;  %s248_s5 = sshll.u32 %s11357_s19, 4  ;;  %s223_s11 = int_to_ptr.hbm [resolvable:$true] %s222_s11  ;;  %s249_s5 = int_to_ptr.hbm [resolvable:$true] %s248_s5 }
  0x2d   :  { %202 = dma.hbm_to_vmem [thread:$0]  %s195_s28, 512, %s197_s0, [#allocation23], %s8549_s1, %s8549_s1, %s8550_s6  }
  0x2e   :  { %s8558_s3 = smov [#allocation25]   ;;  %s8559_s7 = smov [#allocation28]  }
  0x2f   :  { %s224_s4 = sshll.u32 %s8558_s3, 4  ;;  %s250_s17 = sshll.u32 %s8559_s7, 4  ;;  %s225_s4 = int_to_ptr.vmem [resolvable:$true] %s224_s4  ;;  %s251_s17 = int_to_ptr.vmem [resolvable:$true] %s250_s17 }
  0x30   :  { %230 = dma.hbm_to_vmem [thread:$0]  %s223_s11, 32, %s225_s4, [#allocation26], %s8554_s29, %s8554_s29, %s8555_s2  }
  0x31   :  { %s11386_s8 = sld [smem:[#allocation50_spill]]  ;;  %s8560_s30 = smov [#allocation4]  }
  0x32   :  { %256 = dma.hbm_to_vmem [thread:$0]  %s249_s5, 32, %s251_s17, [#allocation29], %s8554_s29, %s8554_s29, %s8555_s2  }
  0x33   :  { %s11387_s0 = sld [smem:[#allocation53_spill]]  ;;  %s53_s14 = sshll.u32 %s8560_s30, 4  ;;  %s54_s14 = int_to_ptr.vmem [resolvable:$true] %s53_s14 }
  0x34   :  { %s8561_s11 = smov [#allocation9]   ;;  %s11388_s7 = sld [smem:[#allocation56_spill]] }
  0x35   :  { %s82_s26 = sshll.u32 %s8561_s11, 4  ;;  %s11389_s24 = sld [smem:[#allocation58_spill]]  ;;  %s83_s26 = int_to_ptr.vmem [resolvable:$true] %s82_s26 }
  0x36   :  { %s8562_s19 = smov [#allocation12]   ;;  %s11390_s11 = sld [smem:[#allocation60_spill]] }
  0x37   :  { %s51_s12 = sshll.u32 %s11386_s8, 4  ;;  %s105_s28 = sshll.u32 %s8562_s19, 4  ;;  %s52_s12 = int_to_ptr.hbm [resolvable:$true] %s51_s12  ;;  %s106_s28 = int_to_ptr.vmem [resolvable:$true] %s105_s28 }
  0x38   :  { %59 = dma.hbm_to_vmem [thread:$0]  %s52_s12, 256, %s54_s14, [#allocation5], %s8549_s1, %s8549_s1, %s8550_s6  }
  0x39   :  { %s80_s10 = sshll.u32 %s11387_s0, 4  ;;  %s8563_s12 = smov [#allocation15]   ;;  %s81_s10 = int_to_ptr.hbm [resolvable:$true] %s80_s10 }
  0x3a   :  { %s103_s9 = sshll.u32 %s11388_s7, 4  ;;  %s131_s0 = sshll.u32 %s8563_s12, 4  ;;  %s104_s9 = int_to_ptr.hbm [resolvable:$true] %s103_s9  ;;  %s132_s0 = int_to_ptr.vmem [resolvable:$true] %s131_s0 }
  0x3b   :  { %85 = dma.hbm_to_vmem [thread:$0]  %s81_s10, 128, %s83_s26, [#allocation8]  }
  0x3c   :  { %s129_s8 = sshll.u32 %s11389_s24, 4  ;;  %s155_s3 = sshll.u32 %s11390_s11, 4  ;;  %s130_s8 = int_to_ptr.hbm [resolvable:$true] %s129_s8  ;;  %s156_s3 = int_to_ptr.hbm [resolvable:$true] %s155_s3 }
  0x3d   :  { %111 = dma.hbm_to_vmem [thread:$0]  %s104_s9, 512, %s106_s28, [#allocation11], %s8549_s1, %s8549_s1, %s8550_s6  }
  0x3e   :  { %137 = dma.hbm_to_vmem [thread:$0]  %s130_s8, 32, %s132_s0, [#allocation14], %s8554_s29, %s8554_s29, %s8555_s2  }
  0x3f   :  { %s181_s4 = sshll.u32 %s11351_s13, 4  ;;  %s8564_s7 = smov [#allocation18]   ;;  %s182_s4 = int_to_ptr.hbm [resolvable:$true] %s181_s4 }
  0x40   :  { %s157_s5 = sshll.u32 %s8564_s7, 4  ;;  %s8565_s6 = smov [#allocation21]   ;;  %s158_s5 = int_to_ptr.vmem [resolvable:$true] %s157_s5 }
  0x41   :  { %163 = dma.hbm_to_vmem [thread:$0]  %s156_s3, 32, %s158_s5, [#allocation17], %s8554_s29, %s8554_s29, %s8555_s2  }
  0x42   :  { %s183_s9 = sshll.u32 %s8565_s6, 4  ;;  %s207_s19 = sshll.u32 %s11353_s15, 4  ;;  %s184_s9 = int_to_ptr.vmem [resolvable:$true] %s183_s9  ;;  %s208_s19 = int_to_ptr.hbm [resolvable:$true] %s207_s19 }
  0x43   :  { %189 = dma.hbm_to_vmem [thread:$0]  %s182_s4, 32, %s184_s9, [#allocation20], %s8554_s29, %s8554_s29, %s8555_s2  }
  0x44   :  { %s235_s28 = sshll.u32 %s11356_s18, 4  ;;  %s8566_s12 = smov [#allocation24]   ;;  %s236_s28 = int_to_ptr.hbm [resolvable:$true] %s235_s28 }
  0x45   :  { %s209_s0 = sshll.u32 %s8566_s12, 4  ;;  %s8567_s30 = smov [#allocation27]   ;;  %s210_s0 = int_to_ptr.vmem [resolvable:$true] %s209_s0 }
  0x46   :  { %215 = dma.hbm_to_vmem [thread:$0]  %s208_s19, 32, %s210_s0, [#allocation23], %s8554_s29, %s8554_s29, %s8555_s2  }
  0x47   :  { %s237_s15 = sshll.u32 %s8567_s30, 4  ;;  %s263_s3 = sshll.u32 %s11359_s21, 4  ;;  %s238_s15 = int_to_ptr.vmem [resolvable:$true] %s237_s15  ;;  %s264_s3 = int_to_ptr.hbm [resolvable:$true] %s263_s3 }
  0x48   :  { %243 = dma.hbm_to_vmem [thread:$0]  %s236_s28, 32, %s238_s15, [#allocation26], %s8554_s29, %s8554_s29, %s8555_s2  }
  0x49   :  { %s8568_s18 = smov [#allocation30]  }
  0x4a   :  { %s265_s10 = sshll.u32 %s8568_s18, 4  ;;  %s266_s10 = int_to_ptr.vmem [resolvable:$true] %s265_s10 }
  0x4b   :  { %271 = dma.hbm_to_vmem [thread:$0]  %s264_s3, 32, %s266_s10, [#allocation29], %s8554_s29, %s8554_s29, %s8555_s2  }
  0x4c   :  { %8524 = dma.done.wait [#allocation5], 256  }
  0x4d   :  { %8525 = vsyncadd [#allocation5], 4294967040 }
  0x4e   :  { %8526 = dma.done.wait [#allocation8], 384  }
  0x4f   :  { %8527 = vsyncadd [#allocation8], 4294966912 }
  0x50   :  { %8528 = dma.done.wait [#allocation11], 640  }
  0x51   :  { %8529 = vsyncadd [#allocation11], 4294966656 }
  0x52   :  { %8530 = dma.done.wait [#allocation14], 544  }
  0x53   :  { %8531 = vsyncadd [#allocation14], 4294966752 }
  0x54   :  { %8532 = dma.done.wait [#allocation17], 64  }
  0x55   :  { %8533 = vsyncadd [#allocation17], 4294967232 }
  0x56   :  { %8534 = dma.done.wait [#allocation20], 544  }
  0x57   :  { %8535 = vsyncadd [#allocation20], 4294966752 }
  0x58   :  { %8536 = dma.done.wait [#allocation23], 544  }
  0x59   :  { %8537 = vsyncadd [#allocation23], 4294966752 }
  0x5a   :  { %8538 = dma.done.wait [#allocation26], 64  }
  0x5b   :  { %8539 = vsyncadd [#allocation26], 4294967232 }
  0x5c   :  { %8540 = dma.done.wait [#allocation29], 64  }
  0x5d   :  { %8541 = vsyncadd [#allocation29], 4294967232  ;;  %v7510_v0 = vld [vmem:[#allocation4 + $0x8] sm:$0xff]  ;;  %v8821_v1 = vld [vmem:[#allocation7 + $0x8] sm:$0xff]  ;;  %s11391_s26 = sld [smem:[#allocation49_spill]]  ;;  %vm377_vm0 = vcmask 261120  }
  0x5e   :  { %v7509_v2 = vld [vmem:[#allocation4] sm:$0xff]  ;;  %v8823_v3 = vld [vmem:[#allocation7] sm:$0xff]  ;;  %396 = vmatpush.bf16.msra.mxu0 %v7510_v0  ;;  %455 = vmatpush.bf16.msra.mxu1 %v8821_v1  ;;  %s11392_s9 = sld [smem:[#allocation52_spill]]  ;;  %v432_v16 = vld [vmem:[#allocation10] sm:$0xff]  ;;  %s8569_s17 = smov 32  }
  0x5f   :  { %v431_v6 = vld [vmem:[#allocation9] sm:$0xff]  ;;  %523 = vmatpush.bf16.msra.mxu2 %v8821_v1  ;;  %589 = vmatpush.bf16.msra.mxu3 %v8821_v1  ;;  %s11393_s10 = sld [smem:[#allocation55_spill]]  ;;  %s8574_s4 = smov 112  }
  0x60   :  { %v433_v8 = vpack.c.bf16 %v431_v6, %v431_v6  ;;  %s8575_s7 = smov 104   ;;  %s8576_s5 = smov 8  }
  0x61   :  { %s8577_s6 = smov 24   ;;  %s7104_s8 = sshll.u32 %s11363_s25, 4  ;;  %s7105_s8 = int_to_ptr.hbm [resolvable:$true] %s7104_s8 }
  0x62   :  { %397 = vmatpush.bf16.msra.mxu0 %v7509_v2  ;;  %456 = vmatpush.bf16.msra.mxu1 %v8823_v3  ;;  %s8580_s28 = smov [#allocation32]   ;;  %s7125_s15 = sshll.u32 %s11365_s27, 4  ;;  %s7126_s15 = int_to_ptr.hbm [resolvable:$true] %s7125_s15 }
  0x63   :  { %v345_v4 = vld [vmem:[%s11391_s26] sm:$0xff]  ;;  %v346_v5 = vld [vmem:[%s11391_s26 + $0x8] sm:$0xff]  ;;  %524 = vmatpush.bf16.msra.mxu2 %v8823_v3  ;;  %590 = vmatpush.bf16.msra.mxu3 %v8823_v3  ;;  %v347_v2 = vld [vmem:[%s11391_s26 + $0x10] sm:$0xff]  ;;  %s7102_s12 = sshll.u32 %s8580_s28, 4  ;;  %s8581_s14 = smov [#allocation35]   ;;  %s7103_s12 = int_to_ptr.vmem [resolvable:$true] %s7102_s12 }
  0x64   :  { %v353_v7 = vpack.c.bf16 %v346_v5, %v345_v4  ;;  %v8850_v9 = vld [vmem:[%s11392_s9] ss:$0 sm:$0xff]  ;;  %s7123_s11 = sshll.u32 %s8581_s14, 4  ;;  %s8582_s25 = smov 128   ;;  %s7124_s11 = int_to_ptr.vmem [resolvable:$true] %s7123_s11 }
  0x65   :  { %7180 = vmatmul.msk.bf16.vlgmr.msra.gmra.mxu1 %vm377_vm0, %v433_v8  ;;  %s8583_s27 = smov [#allocation34]   ;;  %s8584_s21 = smov [#allocation31]  }
  0x66   :  { %655 = vmatpush.bf16.msrb.mxu1 %v8821_v1  ;;  %7168 = vmatmul.msk.bf16.vlgmr.msra.gmra.mxu0 %vm377_vm0, %v353_v7  ;;  %s7113_s3 = sshll.u32 %s8583_s27, 4  ;;  %s7088_s2 = sshll.u32 %s8584_s21, 4  ;;  %s7114_s3 = int_to_ptr.vmem [resolvable:$true] %s7113_s3  ;;  %s7089_s2 = int_to_ptr.vmem [resolvable:$true] %s7088_s2 }
  0x67   :  { %721 = vmatpush.bf16.msrb.mxu2 %v8821_v1  ;;  %787 = vmatpush.bf16.msrb.mxu3 %v8821_v1 }
  0x6a   :  { %656 = vmatpush.bf16.msrb.mxu1 %v8823_v3 }
  0x6b   :  { %722 = vmatpush.bf16.msrb.mxu2 %v8823_v3  ;;  %788 = vmatpush.bf16.msrb.mxu3 %v8823_v3 }
  0x6e   :  { %853 = vmatpush.bf16.msra.mxu1 %v8821_v1 }
  0x72   :  { %854 = vmatpush.bf16.msra.mxu1 %v8823_v3 }
  0xe2   :  { %v458_v11 = vpop.f32.mrf.mxu1 }
  0xe3   :  { %v399_v10 = vpop.f32.mrf.mxu0 }
  0xe4   :  { %v400_v12 = vadd.f32 %v8850_v9, %v399_v10 }
  0xe6   :  { %v463_v13 = vadd.f32 %v458_v11, %v400_v12 }
  0xe8   :  { %7602 = vtanh.f32 %v463_v13  ;;  %v7181_v17 = vmul.f32 -1.442695, %v463_v13 }
  0xea   :  { %v460_v14 = vpop.f32.mrf.mxu1  ;;  %7604 = vpow2.f32 %v7181_v17 }
  0xeb   :  { %v401_v41 = vpop.f32.mrf.mxu0 }
  0xec   :  { %v402_v42 = vadd.f32 %v8850_v9, %v401_v41 }
  0xee   :  { %v7603_v15 = vpop.eup %7602 }
  0xef   :  { %490 = vrot.lane.b32.xlu0 %v7603_v15, %s8549_s1 }
  0xf0   :  { %v7605_v18 = vpop.eup %7604 }
  0xf1   :  { %v467_v19 = vadd.f32 1.0, %v7605_v18 }
  0xf3   :  { %7606 = vrcp.f32 %v467_v19  ;;  %v479_v25 = vand.u32 2147483648, %v467_v19  ;;  %vm473_vm2 = vweird.f32 %v467_v19  ;;  %v477_v26 = vand.u32 2147483647, %v467_v19 }
  0xf5   :  { %v480_v28 = vor.u32 1.1754944e-38, %v479_v25  ;;  %vm478_vm4 = vcmp.eq.f32.partialorder %v477_v26, 8.507059e+37 }
  0xf7   :  { %485 = vrot.lane.b32.xlu0 %v432_v16, %s8569_s17 }
  0xf9   :  { %v7607_v20 = vpop.eup %7606 }
  0xfa   :  { %v469_v21 = vmul.f32 %v7607_v20, %v467_v19  ;;  %vm474_vm1 = vweird.f32 %v7607_v20 }
  0xfb   :  { %vm475_vm3 = vmor %vm473_vm2, %vm474_vm1 }
  0xfc   :  { %v470_v22 = vsub.f32 1.0, %v469_v21 }
  0xfe   :  { %v471_v23 = vmul.f32 %v7607_v20, %v470_v22 }
 0x100   :  { %v472_v24 = vadd.f32 %v7607_v20, %v471_v23 }
 0x102   :  { %v476_v27 = vsel %vm475_vm3, %v7607_v20, %v472_v24 }
 0x103   :  { %v481_v30 = vsel %vm478_vm4, %v480_v28, %v476_v27 }
 0x161   :  { %v491_v29 = vpop.permute.xlu0 %490 }
 0x162   :  { %v493_v31 = vmul.f32 %v491_v29, %v481_v30 }
 0x164   :  { %495 = vrot.lane.b32.xlu1 %v493_v31, %s8569_s17 }
 0x169   :  { %v486_v32 = vpop.permute.xlu0 %485 }
 0x16a   :  { %v488_v33 = vmul.f32 %v486_v32, %v481_v30 }
 0x1d6   :  { %v496_v34 = vpop.permute.xlu1 %495 }
 0x1d7   :  { %v498_v35 = vadd.f32 %v496_v34, %v488_v33 }
 0x1d9   :  { %7608 = vtanh.f32 %v498_v35 }
 0x1df   :  { %v7609_v36 = vpop.eup %7608 }
 0x1e0   :  { %501 = vrot.lane.b32.xlu1 %v7609_v36, %s8549_s1 }
 0x252   :  { %v502_v37 = vpop.permute.xlu1 %501 }
 0x253   :  { %v8857_v38 = vmul.f32 %v502_v37, %v481_v30 }
 0x255   :  { %v510_v39 = vpack.c.bf16 %v8857_v38, %v8857_v38 }
 0x257   :  { %512 = vrot.lane.b32.xlu2 %v510_v39, %s8569_s17 }
 0x2b1   :  { %v513_v40 = vpop.permute.xlu2 %512 }
 0x2b2   :  { %7182 = vmatmul.msk.bf16.vlgmr.msra.gmra.mxu2 %vm377_vm0, %v513_v40 }
 0x2b3   :  { %919 = vmatpush.bf16.msra.mxu2 %v8821_v1 }
 0x2b7   :  { %920 = vmatpush.bf16.msra.mxu2 %v8823_v3  ;;  %v348_v3 = vld [vmem:[%s11391_s26 + $0x18] sm:$0xff] }
 0x2b8   :  { %v354_v4 = vpack.c.bf16 %v348_v3, %v347_v2  ;;  %v350_v2 = vld [vmem:[%s11391_s26 + $0x28] sm:$0xff] }
 0x2ba   :  { %7169 = vmatmul.msk.bf16.gmra.mxu0 %vm377_vm0, %v354_v4 }
 0x335   :  { %v526_v43 = vpop.f32.mrf.mxu2 }
 0x336   :  { %v532_v44 = vadd.f32 %v526_v43, %v402_v42 }
 0x337   :  { %v404_v10 = vpop.f32.mrf.mxu0 }
 0x338   :  { %7610 = vtanh.f32 %v532_v44  ;;  %v7183_v47 = vmul.f32 -1.442695, %v532_v44  ;;  %v405_v11 = vadd.f32 %v8850_v9, %v404_v10 }
 0x33a   :  { %7612 = vpow2.f32 %v7183_v47 }
 0x33d   :  { %v528_v45 = vpop.f32.mrf.mxu2 }
 0x33e   :  { %v7611_v46 = vpop.eup %7610 }
 0x33f   :  { %555 = vrot.lane.b32.xlu2 %v7611_v46, %s8549_s1  ;;  %v406_v40 = vpop.f32.mrf.mxu0 }
 0x340   :  { %v7613_v48 = vpop.eup %7612  ;;  %v407_v41 = vadd.f32 %v8850_v9, %v406_v40 }
 0x341   :  { %v536_v49 = vadd.f32 1.0, %v7613_v48 }
 0x343   :  { %7614 = vrcp.f32 %v536_v49  ;;  %v548_v55 = vand.u32 2147483648, %v536_v49  ;;  %vm542_vm6 = vweird.f32 %v536_v49  ;;  %v546_v56 = vand.u32 2147483647, %v536_v49 }
 0x345   :  { %v549_v58 = vor.u32 1.1754944e-38, %v548_v55  ;;  %vm547_vm8 = vcmp.eq.f32.partialorder %v546_v56, 8.507059e+37 }
 0x349   :  { %v7615_v50 = vpop.eup %7614 }
 0x34a   :  { %v538_v51 = vmul.f32 %v7615_v50, %v536_v49  ;;  %vm543_vm5 = vweird.f32 %v7615_v50 }
 0x34b   :  { %vm544_vm7 = vmor %vm542_vm6, %vm543_vm5 }
 0x34c   :  { %v539_v52 = vsub.f32 1.0, %v538_v51 }
 0x34e   :  { %v540_v53 = vmul.f32 %v7615_v50, %v539_v52 }
 0x350   :  { %v541_v54 = vadd.f32 %v7615_v50, %v540_v53 }
 0x352   :  { %v545_v57 = vsel %vm544_vm7, %v7615_v50, %v541_v54 }
 0x353   :  { %v550_v60 = vsel %vm547_vm8, %v549_v58, %v545_v57 }
 0x354   :  { %v553_v62 = vmul.f32 %v550_v60, %v498_v35 }
 0x399   :  { %v556_v59 = vpop.permute.xlu2 %555 }
 0x39a   :  { %v558_v61 = vmul.f32 %v556_v59, %v550_v60 }
 0x39c   :  { %560 = vrot.lane.b32.xlu0 %v558_v61, %s8569_s17 }
 0x40e   :  { %v561_v63 = vpop.permute.xlu0 %560 }
 0x40f   :  { %v563_v0 = vadd.f32 %v561_v63, %v553_v62 }
 0x411   :  { %7616 = vtanh.f32 %v563_v0 }
 0x417   :  { %v7617_v1 = vpop.eup %7616 }
 0x418   :  { %566 = vrot.lane.b32.xlu1 %v7617_v1, %s8549_s1  ;;  %v349_v1 = vld [vmem:[%s11391_s26 + $0x20] sm:$0xff] }
 0x419   :  { %v355_v3 = vpack.c.bf16 %v350_v2, %v349_v1  ;;  %v351_v2 = vld [vmem:[%s11391_s26 + $0x30] sm:$0xff] }
 0x41b   :  { %7170 = vmatmul.msk.bf16.gmra.mxu0 %vm377_vm0, %v355_v3  ;;  %v352_v3 = vld [vmem:[%s11391_s26 + $0x38] sm:$0xff]  ;;  %s8572_s26 = smov 120  }
 0x48a   :  { %v567_v5 = vpop.permute.xlu1 %566 }
 0x48b   :  { %v8876_v6 = vmul.f32 %v567_v5, %v550_v60 }
 0x48d   :  { %v576_v7 = vpack.c.bf16 %v8876_v6, %v8876_v6 }
 0x48f   :  { %578 = vrot.lane.b32.xlu2 %v576_v7, %s8569_s17 }
 0x498   :  { %v409_v10 = vpop.f32.mrf.mxu0 }
 0x4e9   :  { %v579_v8 = vpop.permute.xlu2 %578 }
 0x4ea   :  { %7184 = vmatmul.msk.bf16.vlgmr.msra.gmra.mxu3 %vm377_vm0, %v579_v8 }
 0x56d   :  { %v592_v12 = vpop.f32.mrf.mxu3 }
 0x56e   :  { %v598_v13 = vadd.f32 %v592_v12, %v405_v11  ;;  %v410_v11 = vadd.f32 %v8850_v9, %v409_v10 }
 0x570   :  { %7618 = vtanh.f32 %v598_v13  ;;  %v7185_v16 = vmul.f32 -1.442695, %v598_v13 }
 0x572   :  { %7620 = vpow2.f32 %v7185_v16 }
 0x575   :  { %v594_v14 = vpop.f32.mrf.mxu3 }
 0x576   :  { %v7619_v15 = vpop.eup %7618 }
 0x577   :  { %621 = vrot.lane.b32.xlu0 %v7619_v15, %s8549_s1 }
 0x578   :  { %v7621_v17 = vpop.eup %7620 }
 0x579   :  { %v602_v18 = vadd.f32 1.0, %v7621_v17 }
 0x57b   :  { %7622 = vrcp.f32 %v602_v18  ;;  %v614_v24 = vand.u32 2147483648, %v602_v18  ;;  %vm608_vm10 = vweird.f32 %v602_v18  ;;  %v612_v25 = vand.u32 2147483647, %v602_v18 }
 0x57d   :  { %v615_v27 = vor.u32 1.1754944e-38, %v614_v24  ;;  %vm613_vm12 = vcmp.eq.f32.partialorder %v612_v25, 8.507059e+37 }
 0x581   :  { %v7623_v19 = vpop.eup %7622 }
 0x582   :  { %v604_v20 = vmul.f32 %v7623_v19, %v602_v18  ;;  %vm609_vm9 = vweird.f32 %v7623_v19 }
 0x583   :  { %vm610_vm11 = vmor %vm608_vm10, %vm609_vm9 }
 0x584   :  { %v605_v21 = vsub.f32 1.0, %v604_v20 }
 0x586   :  { %v606_v22 = vmul.f32 %v7623_v19, %v605_v21 }
 0x588   :  { %v607_v23 = vadd.f32 %v7623_v19, %v606_v22 }
 0x58a   :  { %v611_v26 = vsel %vm610_vm11, %v7623_v19, %v607_v23 }
 0x58b   :  { %v616_v29 = vsel %vm613_vm12, %v615_v27, %v611_v26 }
 0x58c   :  { %v619_v31 = vmul.f32 %v616_v29, %v563_v0 }
 0x5e9   :  { %v622_v28 = vpop.permute.xlu0 %621 }
 0x5ea   :  { %v624_v30 = vmul.f32 %v622_v28, %v616_v29 }
 0x5ec   :  { %626 = vrot.lane.b32.xlu1 %v624_v30, %s8569_s17 }
 0x65e   :  { %v627_v32 = vpop.permute.xlu1 %626 }
 0x65f   :  { %v629_v33 = vadd.f32 %v627_v32, %v619_v31 }
 0x661   :  { %7624 = vtanh.f32 %v629_v33 }
 0x667   :  { %v7625_v34 = vpop.eup %7624 }
 0x668   :  { %632 = vrot.lane.b32.xlu2 %v7625_v34, %s8549_s1 }
 0x6c2   :  { %v633_v35 = vpop.permute.xlu2 %632 }
 0x6c3   :  { %v8886_v36 = vmul.f32 %v633_v35, %v616_v29 }
 0x6c5   :  { %v642_v37 = vpack.c.bf16 %v8886_v36, %v8886_v36 }
 0x6c7   :  { %644 = vrot.lane.b32.xlu0 %v642_v37, %s8569_s17 }
 0x739   :  { %v645_v39 = vpop.permute.xlu0 %644 }
 0x73a   :  { %7186 = vmatmul.msk.bf16.vlgmr.msrb.gmra.mxu1 %vm377_vm0, %v645_v39 }
 0x7b7   :  { %v658_v42 = vpop.f32.mrf.mxu1 }
 0x7b8   :  { %v664_v43 = vadd.f32 %v658_v42, %v407_v41  ;;  %v411_v41 = vpop.f32.mrf.mxu0 }
 0x7b9   :  { %v412_v42 = vadd.f32 %v8850_v9, %v411_v41 }
 0x7ba   :  { %7626 = vtanh.f32 %v664_v43  ;;  %v7187_v46 = vmul.f32 -1.442695, %v664_v43 }
 0x7bc   :  { %7628 = vpow2.f32 %v7187_v46 }
 0x7bf   :  { %v660_v44 = vpop.f32.mrf.mxu1 }
 0x7c0   :  { %v7627_v45 = vpop.eup %7626 }
 0x7c1   :  { %687 = vrot.lane.b32.xlu1 %v7627_v45, %s8549_s1 }
 0x7c2   :  { %v7629_v47 = vpop.eup %7628 }
 0x7c3   :  { %v668_v48 = vadd.f32 1.0, %v7629_v47 }
 0x7c5   :  { %7630 = vrcp.f32 %v668_v48  ;;  %v680_v54 = vand.u32 2147483648, %v668_v48  ;;  %vm674_vm14 = vweird.f32 %v668_v48  ;;  %v678_v55 = vand.u32 2147483647, %v668_v48 }
 0x7c7   :  { %v681_v57 = vor.u32 1.1754944e-38, %v680_v54  ;;  %vm679_vm1 = vcmp.eq.f32.partialorder %v678_v55, 8.507059e+37 }
 0x7cb   :  { %v7631_v49 = vpop.eup %7630 }
 0x7cc   :  { %v670_v50 = vmul.f32 %v7631_v49, %v668_v48  ;;  %vm675_vm13 = vweird.f32 %v7631_v49 }
 0x7cd   :  { %vm676_vm15 = vmor %vm674_vm14, %vm675_vm13 }
 0x7ce   :  { %v671_v51 = vsub.f32 1.0, %v670_v50 }
 0x7d0   :  { %v672_v52 = vmul.f32 %v7631_v49, %v671_v51 }
 0x7d2   :  { %v673_v53 = vadd.f32 %v7631_v49, %v672_v52 }
 0x7d4   :  { %v677_v56 = vsel %vm676_vm15, %v7631_v49, %v673_v53 }
 0x7d5   :  { %v682_v59 = vsel %vm679_vm1, %v681_v57, %v677_v56 }
 0x7d6   :  { %v685_v61 = vmul.f32 %v682_v59, %v629_v33 }
 0x833   :  { %v688_v58 = vpop.permute.xlu1 %687 }
 0x834   :  { %v690_v60 = vmul.f32 %v688_v58, %v682_v59 }
 0x836   :  { %692 = vrot.lane.b32.xlu2 %v690_v60, %s8569_s17 }
 0x890   :  { %v693_v62 = vpop.permute.xlu2 %692 }
 0x891   :  { %v695_v63 = vadd.f32 %v693_v62, %v685_v61 }
 0x893   :  { %7632 = vtanh.f32 %v695_v63 }
 0x899   :  { %v7633_v0 = vpop.eup %7632 }
 0x89a   :  { %698 = vrot.lane.b32.xlu0 %v7633_v0, %s8549_s1 }
 0x90c   :  { %v699_v4 = vpop.permute.xlu0 %698 }
 0x90d   :  { %v8903_v5 = vmul.f32 %v699_v4, %v682_v59  ;;  %v356_v4 = vpack.c.bf16 %v352_v3, %v351_v2 }
 0x90f   :  { %v708_v7 = vpack.c.bf16 %v8903_v5, %v8903_v5  ;;  %7171 = vmatmul.msk.bf16.gmra.mxu0 %vm377_vm0, %v356_v4 }
 0x911   :  { %710 = vrot.lane.b32.xlu1 %v708_v7, %s8569_s17 }
 0x983   :  { %v711_v8 = vpop.permute.xlu1 %710 }
 0x984   :  { %7188 = vmatmul.msk.bf16.vlgmr.msrb.gmra.mxu2 %vm377_vm0, %v711_v8 }
 0xa07   :  { %v724_v12 = vpop.f32.mrf.mxu2 }
 0xa08   :  { %v730_v13 = vadd.f32 %v724_v12, %v410_v11  ;;  %v414_v12 = vpop.f32.mrf.mxu0 }
 0xa0a   :  { %7634 = vtanh.f32 %v730_v13  ;;  %v7189_v16 = vmul.f32 -1.442695, %v730_v13  ;;  %v415_v13 = vadd.f32 %v8850_v9, %v414_v12  ;;  %v7514_v12 = vld [vmem:[%s11393_s10 + $0x8] sm:$0xff] }
 0xa0b   :  { %1147 = vmatpush.bf16.msra.mxu3 %v7514_v12 }
 0xa0c   :  { %7636 = vpow2.f32 %v7189_v16 }
 0xa0f   :  { %v726_v14 = vpop.f32.mrf.mxu2 }
 0xa10   :  { %v7635_v15 = vpop.eup %7634 }
 0xa11   :  { %753 = vrot.lane.b32.xlu2 %v7635_v15, %s8549_s1 }
 0xa12   :  { %v7637_v17 = vpop.eup %7636 }
 0xa13   :  { %v734_v18 = vadd.f32 1.0, %v7637_v17 }
 0xa15   :  { %7638 = vrcp.f32 %v734_v18  ;;  %v746_v24 = vand.u32 2147483648, %v734_v18  ;;  %vm740_vm3 = vweird.f32 %v734_v18  ;;  %v744_v25 = vand.u32 2147483647, %v734_v18 }
 0xa17   :  { %v747_v27 = vor.u32 1.1754944e-38, %v746_v24  ;;  %vm745_vm5 = vcmp.eq.f32.partialorder %v744_v25, 8.507059e+37 }
 0xa1b   :  { %v7639_v19 = vpop.eup %7638 }
 0xa1c   :  { %v736_v20 = vmul.f32 %v7639_v19, %v734_v18  ;;  %vm741_vm2 = vweird.f32 %v7639_v19 }
 0xa1d   :  { %vm742_vm4 = vmor %vm740_vm3, %vm741_vm2  ;;  %vm993_vm3 = vcmask 1047556  }
 0xa1e   :  { %v737_v21 = vsub.f32 1.0, %v736_v20 }
 0xa20   :  { %v738_v22 = vmul.f32 %v7639_v19, %v737_v21 }
 0xa22   :  { %v739_v23 = vadd.f32 %v7639_v19, %v738_v22 }
 0xa24   :  { %v743_v26 = vsel %vm742_vm4, %v7639_v19, %v739_v23  ;;  %vm1292_vm4 = vcmask 64512  }
 0xa25   :  { %v748_v29 = vsel %vm745_vm5, %v747_v27, %v743_v26  ;;  %vm1560_vm5 = vcmask 1043456  }
 0xa26   :  { %v751_v31 = vmul.f32 %v748_v29, %v695_v63 }
 0xa6b   :  { %v754_v28 = vpop.permute.xlu2 %753 }
 0xa6c   :  { %v756_v30 = vmul.f32 %v754_v28, %v748_v29 }
 0xa6e   :  { %758 = vrot.lane.b32.xlu0 %v756_v30, %s8569_s17 }
 0xae0   :  { %v759_v32 = vpop.permute.xlu0 %758 }
 0xae1   :  { %v761_v33 = vadd.f32 %v759_v32, %v751_v31 }
 0xae3   :  { %7640 = vtanh.f32 %v761_v33 }
 0xae9   :  { %v7641_v34 = vpop.eup %7640 }
 0xaea   :  { %764 = vrot.lane.b32.xlu1 %v7641_v34, %s8549_s1 }
 0xb5c   :  { %v765_v35 = vpop.permute.xlu1 %764 }
 0xb5d   :  { %v8913_v37 = vmul.f32 %v765_v35, %v748_v29 }
 0xb5f   :  { %v774_v39 = vpack.c.bf16 %v8913_v37, %v8913_v37 }
 0xb61   :  { %776 = vrot.lane.b32.xlu2 %v774_v39, %s8569_s17 }
 0xbbb   :  { %v777_v40 = vpop.permute.xlu2 %776 }
 0xbbc   :  { %7190 = vmatmul.msk.bf16.vlgmr.msrb.gmra.mxu3 %vm377_vm0, %v777_v40 }
 0xc3f   :  { %v790_v43 = vpop.f32.mrf.mxu3 }
 0xc40   :  { %v796_v44 = vadd.f32 %v790_v43, %v412_v42 }
 0xc42   :  { %7642 = vtanh.f32 %v796_v44  ;;  %v7191_v47 = vmul.f32 -1.442695, %v796_v44  ;;  %v416_v44 = vpop.f32.mrf.mxu0 }
 0xc44   :  { %7644 = vpow2.f32 %v7191_v47 }
 0xc47   :  { %v792_v45 = vpop.f32.mrf.mxu3 }
 0xc48   :  { %v7643_v46 = vpop.eup %7642  ;;  %v417_v45 = vadd.f32 %v8850_v9, %v416_v44 }
 0xc49   :  { %819 = vrot.lane.b32.xlu0 %v7643_v46, %s8549_s1 }
 0xc4a   :  { %v7645_v48 = vpop.eup %7644 }
 0xc4b   :  { %v800_v49 = vadd.f32 1.0, %v7645_v48 }
 0xc4d   :  { %7646 = vrcp.f32 %v800_v49  ;;  %v812_v55 = vand.u32 2147483648, %v800_v49  ;;  %vm806_vm7 = vweird.f32 %v800_v49  ;;  %v810_v56 = vand.u32 2147483647, %v800_v49 }
 0xc4f   :  { %v813_v58 = vor.u32 1.1754944e-38, %v812_v55  ;;  %vm811_vm9 = vcmp.eq.f32.partialorder %v810_v56, 8.507059e+37 }
 0xc53   :  { %v7647_v50 = vpop.eup %7646 }
 0xc54   :  { %v802_v51 = vmul.f32 %v7647_v50, %v800_v49  ;;  %vm807_vm6 = vweird.f32 %v7647_v50 }
 0xc55   :  { %vm808_vm8 = vmor %vm806_vm7, %vm807_vm6  ;;  %vm2286_vm7 = vcmask 130112  }
 0xc56   :  { %v803_v52 = vsub.f32 1.0, %v802_v51 }
 0xc58   :  { %v804_v53 = vmul.f32 %v7647_v50, %v803_v52 }
 0xc5a   :  { %v805_v54 = vadd.f32 %v7647_v50, %v804_v53 }
 0xc5c   :  { %v809_v57 = vsel %vm808_vm8, %v7647_v50, %v805_v54  ;;  %vm2791_vm8 = vcmask 195712  }
 0xc5d   :  { %v814_v60 = vsel %vm811_vm9, %v813_v58, %v809_v57  ;;  %vm3296_vm9 = vcmask 261312  }
 0xc5e   :  { %v817_v62 = vmul.f32 %v814_v60, %v761_v33 }
 0xcbb   :  { %v820_v59 = vpop.permute.xlu0 %819 }
 0xcbc   :  { %v822_v61 = vmul.f32 %v820_v59, %v814_v60 }
 0xcbe   :  { %824 = vrot.lane.b32.xlu1 %v822_v61, %s8569_s17 }
 0xd30   :  { %v825_v63 = vpop.permute.xlu1 %824 }
 0xd31   :  { %v827_v0 = vadd.f32 %v825_v63, %v817_v62 }
 0xd33   :  { %7648 = vtanh.f32 %v827_v0 }
 0xd39   :  { %v7649_v1 = vpop.eup %7648 }
 0xd3a   :  { %830 = vrot.lane.b32.xlu2 %v7649_v1, %s8549_s1 }
 0xd94   :  { %v831_v7 = vpop.permute.xlu2 %830 }
 0xd95   :  { %v8930_v8 = vmul.f32 %v831_v7, %v814_v60 }
 0xd97   :  { %v840_v10 = vpack.c.bf16 %v8930_v8, %v8930_v8 }
 0xd99   :  { %842 = vrot.lane.b32.xlu0 %v840_v10, %s8569_s17 }
 0xe0b   :  { %v843_v11 = vpop.permute.xlu0 %842 }
 0xe0c   :  { %7192 = vmatmul.msk.bf16.vlgmr.msra.gmra.mxu1 %vm377_vm0, %v843_v11 }
 0xe89   :  { %v856_v14 = vpop.f32.mrf.mxu1 }
 0xe8a   :  { %v862_v15 = vadd.f32 %v856_v14, %v415_v13  ;;  %v7518_v13 = vld [vmem:[#allocation13 + $0x8] sm:$0xff]  ;;  %v7513_v14 = vld [vmem:[%s11393_s10] sm:$0xff] }
 0xe8b   :  { %1245 = vmatpush.bf16.msrb.mxu2 %v7518_v13  ;;  %1148 = vmatpush.bf16.msra.mxu3 %v7513_v14 }
 0xe8c   :  { %7650 = vtanh.f32 %v862_v15  ;;  %v7193_v18 = vmul.f32 -1.442695, %v862_v15  ;;  %v7515_v15 = vld [vmem:[#allocation12] sm:$0xff] }
 0xe8e   :  { %7652 = vpow2.f32 %v7193_v18 }
 0xe91   :  { %v858_v16 = vpop.f32.mrf.mxu1 }
 0xe92   :  { %v7651_v17 = vpop.eup %7650  ;;  %v7517_v16 = vld [vmem:[#allocation13] sm:$0xff] }
 0xe93   :  { %885 = vrot.lane.b32.xlu1 %v7651_v17, %s8549_s1  ;;  %1246 = vmatpush.bf16.msrb.mxu2 %v7517_v16 }
 0xe94   :  { %v7653_v19 = vpop.eup %7652 }
 0xe95   :  { %v866_v20 = vadd.f32 1.0, %v7653_v19  ;;  %v8570_v19 = vmov 1983009808  }
 0xe97   :  { %7654 = vrcp.f32 %v866_v20  ;;  %v878_v26 = vand.u32 2147483648, %v866_v20  ;;  %vm872_vm11 = vweird.f32 %v866_v20  ;;  %v876_v27 = vand.u32 2147483647, %v866_v20 }
 0xe99   :  { %v879_v29 = vor.u32 1.1754944e-38, %v878_v26  ;;  %vm877_vm13 = vcmp.eq.f32.partialorder %v876_v27, 8.507059e+37 }
 0xe9d   :  { %v7655_v21 = vpop.eup %7654 }
 0xe9e   :  { %v868_v22 = vmul.f32 %v7655_v21, %v866_v20  ;;  %vm873_vm10 = vweird.f32 %v7655_v21  ;;  %v998_v20 = vunpack.c.l.s4 %v8570_v19 }
 0xe9f   :  { %vm874_vm12 = vmor %vm872_vm11, %vm873_vm10 }
 0xea0   :  { %v869_v23 = vsub.f32 1.0, %v868_v22 }
 0xea2   :  { %v870_v24 = vmul.f32 %v7655_v21, %v869_v23 }
 0xea4   :  { %v871_v25 = vadd.f32 %v7655_v21, %v870_v24  ;;  %v8978_v24 = vunpack.c.0.s8 %v998_v20 }
 0xea6   :  { %v875_v28 = vsel %vm874_vm12, %v7655_v21, %v871_v25 }
 0xea7   :  { %v880_v31 = vsel %vm877_vm13, %v879_v29, %v875_v28 }
 0xea8   :  { %v883_v33 = vmul.f32 %v880_v31, %v827_v0 }
 0xf05   :  { %v886_v30 = vpop.permute.xlu1 %885 }
 0xf06   :  { %v888_v32 = vmul.f32 %v886_v30, %v880_v31 }
 0xf08   :  { %890 = vrot.lane.b32.xlu2 %v888_v32, %s8569_s17 }
 0xf62   :  { %v891_v34 = vpop.permute.xlu2 %890 }
 0xf63   :  { %v893_v35 = vadd.f32 %v891_v34, %v883_v33 }
 0xf65   :  { %7656 = vtanh.f32 %v893_v35 }
 0xf6b   :  { %v7657_v39 = vpop.eup %7656 }
 0xf6c   :  { %896 = vrot.lane.b32.xlu0 %v7657_v39, %s8549_s1  ;;  %v8571_v39 = vmov 1934713408  }
 0xfde   :  { %v897_v40 = vpop.permute.xlu0 %896 }
 0xfdf   :  { %v899_v41 = vmul.f32 %v897_v40, %v880_v31  ;;  %v1046_v40 = vunpack.c.l.s4 %v8571_v39 }
 0xfe1   :  { %v906_v42 = vpack.c.bf16 %v899_v41, %v899_v41 }
 0xfe3   :  { %908 = vrot.lane.b32.xlu1 %v906_v42, %s8569_s17 }
0x1055   :  { %v909_v43 = vpop.permute.xlu1 %908 }
0x1056   :  { %7194 = vmatmul.msk.bf16.vlgmr.msra.gmra.mxu2 %vm377_vm0, %v909_v43 }
0x10d9   :  { %v922_v46 = vpop.f32.mrf.mxu2 }
0x10da   :  { %v928_v47 = vadd.f32 %v922_v46, %v417_v45 }
0x10dc   :  { %7658 = vtanh.f32 %v928_v47  ;;  %v7195_v50 = vmul.f32 -1.442695, %v928_v47  ;;  %v8988_v47 = vunpack.c.0.s8 %v1046_v40 }
0x10de   :  { %7660 = vpow2.f32 %v7195_v50 }
0x10e1   :  { %v924_v48 = vpop.f32.mrf.mxu2 }
0x10e2   :  { %v7659_v49 = vpop.eup %7658 }
0x10e3   :  { %951 = vrot.lane.b32.xlu2 %v7659_v49, %s8549_s1 }
0x10e4   :  { %v7661_v51 = vpop.eup %7660 }
0x10e5   :  { %v932_v9 = vadd.f32 1.0, %v7661_v51 }
0x10e7   :  { %7662 = vrcp.f32 %v932_v9  ;;  %v944_v57 = vand.u32 2147483648, %v932_v9  ;;  %vm938_vm15 = vweird.f32 %v932_v9 }
0x10eb   :  { %703 = vrot.lane.b32.xlu2 %v8903_v5, %s8569_s17  ;;  %v942_v5 = vand.u32 2147483647, %v932_v9 }
0x10ed   :  { %v7663_v52 = vpop.eup %7662  ;;  %vm943_vm2 = vcmp.eq.f32.partialorder %v942_v5, 8.507059e+37 }
0x10ee   :  { %v934_v53 = vmul.f32 %v7663_v52, %v932_v9  ;;  %vm939_vm14 = vweird.f32 %v7663_v52 }
0x10ef   :  { %vm940_vm1 = vmor %vm938_vm15, %vm939_vm14 }
0x10f0   :  { %v935_v54 = vsub.f32 1.0, %v934_v53 }
0x10f2   :  { %v936_v55 = vmul.f32 %v7663_v52, %v935_v54 }
0x10f3   :  { %637 = vrot.lane.b32.xlu2 %v8886_v36, %s8569_s17  ;;  %v945_v36 = vor.u32 1.1754944e-38, %v944_v57 }
0x10f4   :  { %v937_v56 = vadd.f32 %v7663_v52, %v936_v55 }
0x10f6   :  { %v941_v58 = vsel %vm940_vm1, %v7663_v52, %v937_v56 }
0x10fb   :  { %506 = vrot.lane.b32.xlu2 %v8857_v38, %s8569_s17  ;;  %v946_v38 = vsel %vm943_vm2, %v945_v36, %v941_v58 }
0x10fc   :  { %v949_v0 = vmul.f32 %v946_v38, %v893_v35 }
0x113d   :  { %v952_v59 = vpop.permute.xlu2 %951 }
0x113e   :  { %v954_v60 = vmul.f32 %v952_v59, %v946_v38 }
0x1140   :  { %956 = vrot.lane.b32.xlu0 %v954_v60, %s8569_s17 }
0x1145   :  { %v704_v61 = vpop.permute.xlu2 %703 }
0x1146   :  { %707 = vst.msk [vmem:[#allocation35 + $0x18] sm:$0xff] %vm377_vm0, %v704_v61 }
0x1148   :  { %835 = vrot.lane.b32.xlu0 %v8930_v8, %s8569_s17 }
0x114d   :  { %v638_v62 = vpop.permute.xlu2 %637  ;;  %v987_v17 = vld [vmem:[#allocation35 + $0x18] sm:$0xff] }
0x114e   :  { %641 = vst.msk [vmem:[#allocation35 + $0x10] sm:$0xff] %vm377_vm0, %v638_v62  ;;  %v1005_v21 = vrot.slane %v987_v17, 4 }
0x1155   :  { %v507_v63 = vpop.permute.xlu2 %506  ;;  %v986_v23 = vld [vmem:[#allocation35 + $0x10] sm:$0xff] }
0x1156   :  { %509 = vst.msk [vmem:[#allocation35] sm:$0xff] %vm377_vm0, %v507_v63  ;;  %v992_v29 = vrot.slane %v986_v23, 4 }
0x115d   :  { %v984_v26 = vld [vmem:[#allocation35] sm:$0xff] }
0x115e   :  { %v994_v32 = vsel %vm993_vm3, %v992_v29, %v984_v26 }
0x11b2   :  { %v957_v1 = vpop.permute.xlu0 %956 }
0x11b3   :  { %v8956_v2 = vadd.f32 %v957_v1, %v949_v0 }
0x11b5   :  { %7664 = vtanh.f32 %v8956_v2 }
0x11ba   :  { %v836_v3 = vpop.permute.xlu0 %835 }
0x11bb   :  { %v7665_v4 = vpop.eup %7664  ;;  %839 = vst.msk [vmem:[#allocation35 + $0x28] sm:$0xff] %vm377_vm0, %v836_v3 }
0x11bc   :  { %962 = vrot.lane.b32.xlu1 %v7665_v4, %s8549_s1  ;;  %s11394_s1 = sld [smem:[#allocation62_spill]] }
0x11c2   :  { %v989_v31 = vld [vmem:[#allocation35 + $0x28] sm:$0xff] }
0x11c3   :  { %v1031_v61 = vrot.slane %v989_v31, 4 }
0x11c4   :  { %571 = vrot.lane.b32.xlu1 %v8876_v6, %s8569_s17  ;;  %v7516_v6 = vld [vmem:[#allocation12 + $0x8] sm:$0xff] }
0x11c5   :  { %1196 = vmatpush.bf16.msrb.mxu1 %v7516_v6 }
0x11c9   :  { %1197 = vmatpush.bf16.msrb.mxu1 %v7515_v15 }
0x11cc   :  { %901 = vrot.lane.b32.xlu1 %v899_v41, %s8569_s17  ;;  %v1000_v41 = vperm.slane %v994_v32, %v8978_v24 }
0x11ce   :  { %v1043_v58 = vrot.slane %v1000_v41, 4 }
0x122e   :  { %v963_v7 = vpop.permute.xlu1 %962 }
0x122f   :  { %v965_v8 = vmul.f32 %v963_v7, %v946_v38 }
0x1231   :  { %967 = vrot.lane.b32.xlu0 %v965_v8, %s8569_s17 }
0x1236   :  { %v572_v10 = vpop.permute.xlu1 %571 }
0x1237   :  { %575 = vst.msk [vmem:[#allocation35 + $0x8] sm:$0xff] %vm377_vm0, %v572_v10  ;;  %v995_v10 = vrot.slane %v984_v26, 4 }
0x1239   :  { %769 = vrot.lane.b32.xlu0 %v8913_v37, %s8569_s17  ;;  %v996_v15 = vsel %vm993_vm3, %v986_v23, %v995_v10 }
0x123e   :  { %v902_v11 = vpop.permute.xlu1 %901  ;;  %v985_v18 = vld [vmem:[#allocation35 + $0x8] sm:$0xff] }
0x123f   :  { %905 = vst.msk [vmem:[#allocation35 + $0x30] sm:$0xff] %vm377_vm0, %v902_v11  ;;  %v1006_v22 = vsel %vm993_vm3, %v1005_v21, %v985_v18  ;;  %v1007_v38 = vrot.slane %v985_v18, 4 }
0x1240   :  { %v1012_v28 = vperm.slane %v1006_v22, %v8978_v24 }
0x1241   :  { %v1008_v1 = vsel %vm993_vm3, %v987_v17, %v1007_v38  ;;  %v1004_v17 = vperm.slane %v996_v15, %v8978_v24 }
0x1242   :  { %v1041_v35 = vrot.slane %v1012_v28, 4  ;;  %v1044_v59 = vsel %vm993_vm3, %v1012_v28, %v1043_v58  ;;  %v1016_v11 = vperm.slane %v1008_v1, %v8978_v24 }
0x1243   :  { %v1052_v62 = vperm.slane %v1044_v59, %v8988_v47  ;;  %v1055_v29 = vrot.slane %v1004_v17, 4 }
0x1244   :  { %v1042_v45 = vsel %vm993_vm3, %v1041_v35, %v1000_v41  ;;  %v1053_v16 = vrot.slane %v1016_v11, 4  ;;  %v9058_v41 = vld [vmem:[#allocation16] ss:$0 sm:$0xff] }
0x1245   :  { %v1048_v50 = vperm.slane %v1042_v45, %v8988_v47  ;;  %v1095_v8 = vrot.slane %v1052_v62, 4  ;;  %v9061_v45 = vld [vmem:[#allocation15] ss:$0 sm:$0xff] }
0x1246   :  { %v990_v34 = vld [vmem:[#allocation35 + $0x30] sm:$0xff]  ;;  %v1054_v19 = vsel %vm993_vm3, %v1053_v16, %v1004_v17 }
0x1247   :  { %v1017_v43 = vrot.slane %v990_v34, 4  ;;  %v1091_v53 = vrot.slane %v1048_v50, 4  ;;  %v1060_v20 = vperm.slane %v1054_v19, %v8988_v47 }
0x1249   :  { %v1099_v23 = vrot.slane %v1060_v20, 4 }
0x12a3   :  { %v968_v37 = vpop.permute.xlu0 %967 }
0x12a4   :  { %971 = vst.msk [vmem:[#allocation35 + $0x38] sm:$0xff] %vm377_vm0, %v968_v37 }
0x12a5   :  { %972 = vst.msk [vmem:[#allocation32] sm:$0xff] %vm377_vm0, %v968_v37 }
0x12a6   :  { %7107 = dma.vmem_to_hbm [thread:$0]  %s7103_s12, 128, %s7105_s8, [#allocation33]  }
0x12ab   :  { %v770_v25 = vpop.permute.xlu0 %769  ;;  %v991_v27 = vld [vmem:[#allocation35 + $0x38] sm:$0xff] }
0x12ac   :  { %773 = vst.msk [vmem:[#allocation35 + $0x20] sm:$0xff] %vm377_vm0, %v770_v25  ;;  %v1029_v30 = vrot.slane %v991_v27, 4  ;;  %v1032_v0 = vsel %vm993_vm3, %v991_v27, %v1031_v61 }
0x12ad   :  { %v1040_v4 = vperm.slane %v1032_v0, %v8978_v24 }
0x12ae   :  { %v1030_v33 = vsel %vm993_vm3, %v1029_v30, %v989_v31  ;;  %v1056_v31 = vsel %vm993_vm3, %v1016_v11, %v1055_v29 }
0x12af   :  { %v1036_v42 = vperm.slane %v1030_v33, %v8978_v24  ;;  %v1077_v14 = vrot.slane %v1040_v4, 4  ;;  %v1064_v32 = vperm.slane %v1056_v31, %v8988_v47 }
0x12b1   :  { %v1065_v49 = vrot.slane %v1036_v42, 4  ;;  %v1103_v35 = vrot.slane %v1064_v32, 4 }
0x12b3   :  { %v988_v44 = vld [vmem:[#allocation35 + $0x20] sm:$0xff] }
0x12b4   :  { %v1018_v46 = vsel %vm993_vm3, %v1017_v43, %v988_v44  ;;  %v1019_v60 = vrot.slane %v988_v44, 4 }
0x12b5   :  { %v1024_v48 = vperm.slane %v1018_v46, %v8978_v24 }
0x12b6   :  { %v1020_v3 = vsel %vm993_vm3, %v990_v34, %v1019_v60 }
0x12b7   :  { %v1066_v51 = vsel %vm993_vm3, %v1065_v49, %v1024_v48  ;;  %v1067_v54 = vrot.slane %v1024_v48, 4  ;;  %v1028_v12 = vperm.slane %v1020_v3, %v8978_v24 }
0x12b8   :  { %v1072_v9 = vperm.slane %v1066_v51, %v8988_v47 }
0x12b9   :  { %v1068_v5 = vsel %vm993_vm3, %v1036_v42, %v1067_v54  ;;  %v1078_v37 = vsel %vm993_vm3, %v1077_v14, %v1028_v12  ;;  %v1079_v25 = vrot.slane %v1028_v12, 4 }
0x12ba   :  { %v1089_v52 = vrot.slane %v1072_v9, 4  ;;  %v8998_v56 = vsel %vm993_vm3, %v1072_v9, %v1091_v53  ;;  %v1076_v36 = vperm.slane %v1068_v5, %v8988_v47  ;;  %v1084_v18 = vperm.slane %v1078_v37, %v8988_v47 }
0x12bb   :  { %v1080_v28 = vsel %vm993_vm3, %v1040_v4, %v1079_v25 }
0x12bc   :  { %v8995_v55 = vsel %vm993_vm3, %v1089_v52, %v1048_v50  ;;  %v1093_v63 = vrot.slane %v1076_v36, 4  ;;  %v9019_v6 = vsel %vm993_vm3, %v1076_v36, %v1095_v8  ;;  %v1097_v21 = vrot.slane %v1084_v18, 4 }
0x12bd   :  { %v1105_v57 = vpack.c.bf16 %v8998_v56, %v8995_v55  ;;  %v9036_v26 = vsel %vm993_vm3, %v1084_v18, %v1099_v23  ;;  %v1088_v30 = vperm.slane %v1080_v28, %v8988_v47 }
0x12be   :  { %v9014_v7 = vsel %vm993_vm3, %v1093_v63, %v1052_v62  ;;  %v9033_v22 = vsel %vm993_vm3, %v1097_v21, %v1060_v20 }
0x12bf   :  { %7204 = vmatmul.msk.bf16.vlgmr.msra.gmra.mxu3 %vm377_vm0, %v1105_v57  ;;  %7216 = vmatmul.msk.bf16.vlgmr.msrb.gmra.mxu1 %vm377_vm0, %v1105_v57  ;;  %v1106_v13 = vpack.c.bf16 %v9019_v6, %v9014_v7  ;;  %v1107_v27 = vpack.c.bf16 %v9036_v26, %v9033_v22  ;;  %v1101_v33 = vrot.slane %v1088_v30, 4  ;;  %v9051_v39 = vsel %vm993_vm3, %v1088_v30, %v1103_v35 }
0x12c0   :  { %7228 = vmatmul.msk.bf16.vlgmr.msrb.gmra.mxu2 %vm377_vm0, %v1105_v57 }
0x12c1   :  { %v9048_v34 = vsel %vm993_vm3, %v1101_v33, %v1064_v32 }
0x12c2   :  { %v1108_v40 = vpack.c.bf16 %v9051_v39, %v9048_v34 }
0x12cf   :  { %7205 = vmatmul.msk.bf16.gmra.mxu3 %vm377_vm0, %v1106_v13  ;;  %7217 = vmatmul.msk.bf16.gmra.mxu1 %vm377_vm0, %v1106_v13 }
0x12d0   :  { %7229 = vmatmul.msk.bf16.gmra.mxu2 %vm377_vm0, %v1106_v13 }
0x12df   :  { %7206 = vmatmul.msk.bf16.gmra.mxu3 %vm377_vm0, %v1107_v27  ;;  %7218 = vmatmul.msk.bf16.gmra.mxu1 %vm377_vm0, %v1107_v27 }
0x12e0   :  { %7230 = vmatmul.msk.bf16.gmra.mxu2 %vm377_vm0, %v1107_v27  ;;  %v9100_v27 = vld [vmem:[#allocation18] ss:$0 sm:$0xff] }
0x12ef   :  { %7207 = vmatmul.msk.bf16.gmra.mxu3 %vm377_vm0, %v1108_v40  ;;  %7219 = vmatmul.msk.bf16.gmra.mxu1 %vm377_vm0, %v1108_v40 }
0x12f0   :  { %7231 = vmatmul.msk.bf16.gmra.mxu2 %vm377_vm0, %v1108_v40 }
0x133c   :  { %v1199_v42 = vpop.f32.mrf.mxu1 }
0x133d   :  { %v1200_v43 = vadd.f32 %v9058_v41, %v1199_v42 }
0x133f   :  { %v1276_v44 = vpack.c.bf16 %v1200_v43, %v1200_v43 }
0x1341   :  { %v1724_v46 = vunpack.c.l.b16 %v1276_v44  ;;  %v1297_v48 = vsel %vm1292_vm4, %v1276_v44, 0 }
0x1342   :  { %v1150_v49 = vpop.f32.mrf.mxu3  ;;  %1306 = vmatpush.bf16.xpose.msrb.mxu0 %v1297_v48 }
0x1343   :  { %v9064_v50 = vpack.c.b16 %v1724_v46, %v1724_v46  ;;  %v1151_v51 = vadd.f32 %v9061_v45, %v1150_v49  ;;  %v1248_v9 = vpop.f32.mrf.mxu2 }
0x1344   :  { %v1201_v52 = vpop.f32.mrf.mxu1  ;;  %v1249_v32 = vadd.f32 %v9100_v27, %v1248_v9 }
0x1345   :  { %v1202_v53 = vadd.f32 %v9058_v41, %v1201_v52  ;;  %1726 = vrot.lane.b32.xlu0 %v9064_v50, %s8572_s26  ;;  %v9070_v54 = vpack.c.bf16 %v1151_v51, %v1151_v51 }
0x1346   :  { %v9114_v46 = vpack.c.bf16 %v1249_v32, %v1249_v32 }
0x1347   :  { %v1277_v57 = vpack.c.bf16 %v1202_v53, %v1202_v53 }
0x1348   :  { %v1562_v9 = vsel %vm1560_vm5, %v9114_v46, 0 }
0x1349   :  { %v1753_v5 = vunpack.c.l.b16 %v1277_v57  ;;  %7232 = vmatmul.msk.bf16.vlgmr.msrb.gmra.mxu0 %vm1292_vm4, %v9070_v54  ;;  %v1316_v58 = vsel %vm1292_vm4, %v1277_v57, 0 }
0x134a   :  { %v1152_v36 = vpop.f32.mrf.mxu3  ;;  %1325 = vmatpush.bf16.xpose.msra.mxu0 %v1316_v58 }
0x134b   :  { %v1250_v59 = vpop.f32.mrf.mxu2  ;;  %v9075_v38 = vpack.c.b16 %v1753_v5, %v1753_v5  ;;  %v1153_v3 = vadd.f32 %v9061_v45, %v1152_v36 }
0x134c   :  { %v1204_v60 = vpop.f32.mrf.mxu1  ;;  %v1251_v35 = vadd.f32 %v9100_v27, %v1250_v59 }
0x134d   :  { %v1205_v61 = vadd.f32 %v9058_v41, %v1204_v60  ;;  %1755 = vrot.lane.b32.xlu1 %v9075_v38, %s8572_s26  ;;  %v9088_v14 = vpack.c.bf16 %v1153_v3, %v1153_v3 }
0x134e   :  { %v9119_v49 = vpack.c.bf16 %v1251_v35, %v1251_v35 }
0x134f   :  { %v1278_v62 = vpack.c.bf16 %v1205_v61, %v1205_v61 }
0x1350   :  { %v1581_v5 = vsel %vm1560_vm5, %v9119_v49, 0 }
0x1351   :  { %v1335_v63 = vsel %vm1292_vm4, %v1278_v62, 0  ;;  %v1782_v0 = vunpack.c.l.b16 %v1278_v62 }
0x1352   :  { %v1155_v1 = vpop.f32.mrf.mxu3  ;;  %1344 = vmatpush.bf16.xpose.msrb.mxu0 %v1335_v63 }
0x1353   :  { %v9082_v4 = vpack.c.b16 %v1782_v0, %v1782_v0  ;;  %v1156_v8 = vadd.f32 %v9061_v45, %v1155_v1  ;;  %v1253_v10 = vpop.f32.mrf.mxu2 }
0x1354   :  { %v1206_v11 = vpop.f32.mrf.mxu1  ;;  %v1254_v53 = vadd.f32 %v9100_v27, %v1253_v10 }
0x1355   :  { %v1270_v12 = vpack.c.bf16 %v1156_v8, %v1156_v8  ;;  %v1207_v13 = vadd.f32 %v9058_v41, %v1206_v11  ;;  %1784 = vrot.lane.b32.xlu1 %v9082_v4, %s8572_s26 }
0x1356   :  { %v9134_v62 = vpack.c.bf16 %v1254_v53, %v1254_v53 }
0x1357   :  { %v1777_v15 = vunpack.c.l.b16 %v1270_v12  ;;  %v1279_v16 = vpack.c.bf16 %v1207_v13, %v1207_v13 }
0x1358   :  { %v1600_v11 = vsel %vm1560_vm5, %v9134_v62, 0 }
0x1359   :  { %v9090_v37 = vpack.c.b16 %v1777_v15, %v1777_v15  ;;  %v1811_v17 = vunpack.c.l.b16 %v1279_v16  ;;  %7233 = vmatmul.msk.bf16.vlgmr.msra.gmra.mxu0 %vm1292_vm4, %v9088_v14  ;;  %v1354_v18 = vsel %vm1292_vm4, %v1279_v16, 0 }
0x135a   :  { %v1157_v19 = vpop.f32.mrf.mxu3  ;;  %1363 = vmatpush.bf16.xpose.msrb.mxu3 %v1354_v18 }
0x135b   :  { %v1158_v20 = vadd.f32 %v9061_v45, %v1157_v19  ;;  %v1255_v21 = vpop.f32.mrf.mxu2  ;;  %1779 = vrot.lane.b32.xlu0 %v9090_v37, %s8572_s26  ;;  %v9098_v23 = vpack.c.b16 %v1811_v17, %v1811_v17 }
0x135c   :  { %v1209_v25 = vpop.f32.mrf.mxu1 }
0x135d   :  { %v1271_v28 = vpack.c.bf16 %v1158_v20, %v1158_v20  ;;  %v1210_v29 = vadd.f32 %v9058_v41, %v1209_v25  ;;  %1813 = vrot.lane.b32.xlu2 %v9098_v23, %s8572_s26 }
0x135f   :  { %v1806_v30 = vunpack.c.l.b16 %v1271_v28  ;;  %v9105_v31 = vpack.c.bf16 %v1210_v29, %v1210_v29 }
0x1361   :  { %v1373_v33 = vsel %vm1292_vm4, %v9105_v31, 0  ;;  %7235 = vmatmul.msk.bf16.vlgmr.msrb.gmra.mxu3 %vm1292_vm4, %v1271_v28  ;;  %v9112_v43 = vpack.c.b16 %v1806_v30, %v1806_v30 }
0x1362   :  { %v1160_v40 = vpop.f32.mrf.mxu3  ;;  %1382 = vmatpush.bf16.xpose.msra.mxu0 %v1373_v33 }
0x1363   :  { %v1258_v42 = vpop.f32.mrf.mxu2  ;;  %v1161_v15 = vadd.f32 %v9061_v45, %v1160_v40 }
0x1364   :  { %v1211_v44 = vpop.f32.mrf.mxu1  ;;  %v1259_v3 = vadd.f32 %v9100_v27, %v1258_v42 }
0x1365   :  { %v1212_v48 = vadd.f32 %v9058_v41, %v1211_v44  ;;  %1808 = vrot.lane.b32.xlu2 %v9112_v43, %s8572_s26 }
0x1366   :  { %v9155_v20 = vpack.c.bf16 %v1259_v3, %v1259_v3 }
0x1367   :  { %v9121_v51 = vpack.c.bf16 %v1212_v48, %v1212_v48 }
0x1368   :  { %v1638_v33 = vsel %vm1560_vm5, %v9155_v20, 0 }
0x1369   :  { %7234 = vmatmul.msk.bf16.vlgmr.msrb.gmra.mxu0 %vm1292_vm4, %v1270_v12  ;;  %v1392_v52 = vsel %vm1292_vm4, %v9121_v51, 0  ;;  %v1256_v12 = vadd.f32 %v9100_v27, %v1255_v21  ;;  %v9162_v21 = vpack.c.bf16 %v1161_v15, %v1161_v15 }
0x136a   :  { %1571 = vmatpush.bf16.msrb.mxu0 %v1562_v9  ;;  %v1162_v57 = vpop.f32.mrf.mxu3  ;;  %1401 = vmatpush.bf16.xpose.msra.mxu1 %v1392_v52 }
0x136b   :  { %v1163_v58 = vadd.f32 %v9061_v45, %v1162_v57  ;;  %v1260_v36 = vpop.f32.mrf.mxu2  ;;  %v9158_v28 = vpack.c.bf16 %v1256_v12, %v1256_v12 }
0x136c   :  { %v1261_v59 = vadd.f32 %v9100_v27, %v1260_v36  ;;  %v1214_v60 = vpop.f32.mrf.mxu1 }
0x136d   :  { %v1215_v61 = vadd.f32 %v9058_v41, %v1214_v60  ;;  %v9138_v0 = vpack.c.bf16 %v1163_v58, %v1163_v58  ;;  %v1619_v42 = vsel %vm1560_vm5, %v9158_v28, 0 }
0x136e   :  { %v9136_v63 = vpack.c.bf16 %v1261_v59, %v1261_v59  ;;  %v8573_v59 = vmov -1e+30  }
0x136f   :  { %v9140_v1 = vpack.c.bf16 %v1215_v61, %v1215_v61 }
0x1370   :  { %v1657_v10 = vsel %vm1560_vm5, %v9136_v63, 0 }
0x1371   :  { %v1411_v8 = vsel %vm1292_vm4, %v9140_v1, 0  ;;  %7237 = vmatmul.msk.bf16.vlgmr.msra.gmra.mxu1 %vm1292_vm4, %v9138_v0 }
0x1372   :  { %1590 = vmatpush.bf16.msrb.mxu1 %v1581_v5  ;;  %v1165_v13 = vpop.f32.mrf.mxu3  ;;  %1420 = vmatpush.bf16.xpose.msra.mxu2 %v1411_v8  ;;  %v978_v5 = vlaneseq }
0x1373   :  { %v1166_v16 = vadd.f32 %v9061_v45, %v1165_v13  ;;  %v1263_v17 = vpop.f32.mrf.mxu2 }
0x1374   :  { %v1264_v18 = vadd.f32 %v9100_v27, %v1263_v17  ;;  %v1216_v19 = vpop.f32.mrf.mxu1  ;;  %v979_v58 = vshrl.u32 %v978_v5, 7  ;;  %v981_v36 = vand.u32 127, %v978_v5 }
0x1375   :  { %v1217_v25 = vadd.f32 %v9058_v41, %v1216_v19  ;;  %v9164_v30 = vpack.c.bf16 %v1166_v16, %v1166_v16 }
0x1376   :  { %1666 = vmatpush.bf16.msra.mxu1 %v1657_v10  ;;  %v9160_v29 = vpack.c.bf16 %v1264_v18, %v1264_v18  ;;  %vm982_vm6 = vcmp.le.s32.totalorder %v981_v36, %v979_v58 }
0x1377   :  { %v9166_v32 = vpack.c.bf16 %v1217_v25, %v1217_v25  ;;  %v9190_v60 = vsel %vm982_vm6, 0.0, %v8573_v59 }
0x1378   :  { %v1676_v35 = vsel %vm1560_vm5, %v9160_v29, 0 }
0x1379   :  { %7236 = vmatmul.msk.bf16.vlgmr.msra.gmra.mxu0 %vm1292_vm4, %v9162_v21  ;;  %7238 = vmatmul.msk.bf16.vlgmr.msra.gmra.mxu2 %vm1292_vm4, %v9164_v30  ;;  %v1430_v41 = vsel %vm1292_vm4, %v9166_v32, 0 }
0x137a   :  { %1609 = vmatpush.bf16.msrb.mxu2 %v1600_v11  ;;  %1647 = vmatpush.bf16.msra.mxu0 %v1638_v33  ;;  %v1167_v40 = vpop.f32.mrf.mxu3 }
0x137b   :  { %1439 = vmatpush.bf16.xpose.msra.mxu3 %v1430_v41  ;;  %v1168_v44 = vadd.f32 %v9061_v45, %v1167_v40  ;;  %v1265_v48 = vpop.f32.mrf.mxu2 }
0x137c   :  { %v1266_v9 = vadd.f32 %v9100_v27, %v1265_v48 }
0x137d   :  { %v9184_v53 = vpack.c.bf16 %v1168_v44, %v1168_v44 }
0x137e   :  { %1685 = vmatpush.bf16.msra.mxu2 %v1676_v35  ;;  %v9182_v52 = vpack.c.bf16 %v1266_v9, %v1266_v9 }
0x1380   :  { %v1695_v57 = vsel %vm1560_vm5, %v9182_v52, 0 }
0x1382   :  { %7239 = vmatmul.msk.bf16.vlgmr.msra.gmra.mxu3 %vm1292_vm4, %v9184_v53 }
0x1383   :  { %1628 = vmatpush.bf16.msrb.mxu3 %v1619_v42 }
0x1387   :  { %1704 = vmatpush.bf16.msra.mxu3 %v1695_v57 }
0x13c6   :  { %v1308_v45 = vpop.f32.mrf.mxu0 }
0x13c7   :  { %v1445_v27 = vmul.f32 0.35355338, %v1308_v45 }
0x13c9   :  { %v1453_v61 = vadd.f32 %v1445_v27, %v9190_v60 }
0x13cb   :  { %v1461_v3 = vsel %vm1292_vm4, %v1453_v61, -inf }
0x13cc   :  { %1462 = vmax.xlane.f32.xlu0 %v1461_v3 }
0x13ce   :  { %v1310_v8 = vpop.f32.mrf.mxu0 }
0x13d6   :  { %v1327_v10 = vpop.f32.mrf.mxu0 }
0x13d7   :  { %v1446_v11 = vmul.f32 0.35355338, %v1327_v10 }
0x13d9   :  { %v1454_v12 = vadd.f32 %v1446_v11, %v9190_v60 }
0x13db   :  { %v1464_v13 = vsel %vm1292_vm4, %v1454_v12, -inf }
0x13dc   :  { %1465 = vmax.xlane.f32.xlu2 %v1464_v13 }
0x13de   :  { %v1329_v15 = vpop.f32.mrf.mxu0 }
0x13e4   :  { %v1365_v16 = vpop.f32.mrf.mxu3 }
0x13e5   :  { %v1448_v17 = vmul.f32 0.35355338, %v1365_v16 }
0x13e6   :  { %v1346_v18 = vpop.f32.mrf.mxu0 }
0x13e7   :  { %v1447_v19 = vmul.f32 0.35355338, %v1346_v18  ;;  %v1456_v25 = vadd.f32 %v1448_v17, %v9190_v60 }
0x13e9   :  { %v1470_v33 = vsel %vm1292_vm4, %v1456_v25, -inf  ;;  %v1455_v41 = vadd.f32 %v1447_v19, %v9190_v60  ;;  %v1748_v19 = vunpack.c.l.b16 %v9088_v14 }
0x13ea   :  { %1471 = vmax.xlane.f32.xlu2 %v1470_v33 }
0x13eb   :  { %v1467_v35 = vsel %vm1292_vm4, %v1455_v41, -inf }
0x13ec   :  { %v1367_v40 = vpop.f32.mrf.mxu3  ;;  %1468 = vmax.xlane.f32.xlu1 %v1467_v35  ;;  %v9212_v35 = vpack.c.b16 %v1748_v19, %v1748_v19 }
0x13ed   :  { %v1719_v40 = vunpack.c.l.b16 %v9070_v54 }
0x13ee   :  { %v1348_v42 = vpop.f32.mrf.mxu0  ;;  %v1403_v44 = vpop.f32.mrf.mxu1 }
0x13ef   :  { %v1450_v48 = vmul.f32 0.35355338, %v1403_v44  ;;  %v9217_v42 = vpack.c.b16 %v1719_v40, %v1719_v40  ;;  %v9221_v44 = vpop.permute.xlu0 %1726 }
0x13f1   :  { %v1458_v9 = vadd.f32 %v1450_v48, %v9190_v60 }
0x13f3   :  { %v1476_v57 = vsel %vm1292_vm4, %v1458_v9, -inf }
0x13f4   :  { %1477 = vmax.xlane.f32.xlu1 %v1476_v57  ;;  %v9225_v57 = vpop.permute.xlu2 %1813 }
0x13f6   :  { %v1384_v5 = vpop.f32.mrf.mxu0  ;;  %v1405_v58 = vpop.f32.mrf.mxu1 }
0x13f7   :  { %v1449_v36 = vmul.f32 0.35355338, %v1384_v5  ;;  %v9223_v48 = vpop.permute.xlu0 %1779 }
0x13f9   :  { %v9203_v45 = vadd.f32 %v1449_v36, %v9190_v60 }
0x13fb   :  { %v1473_v59 = vsel %vm1292_vm4, %v9203_v45, -inf }
0x13fc   :  { %1474 = vmax.xlane.f32.xlu0 %v1473_v59  ;;  %v1422_v27 = vpop.f32.mrf.mxu2  ;;  %v9227_v36 = vpop.permute.xlu2 %1808 }
0x13fd   :  { %v1451_v3 = vmul.f32 0.35355338, %v1422_v27  ;;  %v9233_v27 = vpop.permute.xlu1 %1755 }
0x13fe   :  { %v1386_v8 = vpop.f32.mrf.mxu0 }
0x13ff   :  { %v1459_v10 = vadd.f32 %v1451_v3, %v9190_v60 }
0x1401   :  { %v1479_v11 = vsel %vm1292_vm4, %v1459_v10, -inf }
0x1402   :  { %1480 = vmax.xlane.f32.xlu1 %v1479_v11 }
0x1404   :  { %v1424_v13 = vpop.f32.mrf.mxu2 }
0x1405   :  { %v1441_v15 = vpop.f32.mrf.mxu3  ;;  %v9235_v13 = vpop.permute.xlu1 %1784 }
0x1406   :  { %v1452_v16 = vmul.f32 0.35355338, %v1441_v15 }
0x1408   :  { %v1460_v17 = vadd.f32 %v1452_v16, %v9190_v60 }
0x140a   :  { %v1482_v18 = vsel %vm1292_vm4, %v1460_v17, -inf }
0x140b   :  { %1483 = vmax.xlane.f32.xlu2 %v1482_v18 }
0x140d   :  { %v1443_v33 = vpop.f32.mrf.mxu3 }
0x1410   :  { %1750 = vrot.lane.b32.xlu0 %v9212_v35, %s8572_s26 }
0x141b   :  { %1721 = vrot.lane.b32.xlu1 %v9217_v42, %s8572_s26 }
0x143f   :  { %v1463_v14 = vpop.xlane.xlu0 %1462 }
0x1440   :  { %v1485_v5 = vsub.f32 %v1453_v61, %v1463_v14 }
0x1442   :  { %v1493_v58 = vmul.f32 1.442695, %v1485_v5 }
0x1444   :  { %7666 = vpow2.f32 %v1493_v58 }
0x144a   :  { %v9229_v59 = vpop.eup %7666 }
0x144b   :  { %v1509_v54 = vsel %vm1292_vm4, %v9229_v59, 0.0 }
0x144c   :  { %1510 = vadd.xlane.f32.xlu1 %v1509_v54 }
0x144f   :  { %v1466_v3 = vpop.xlane.xlu2 %1465 }
0x1450   :  { %v1486_v8 = vsub.f32 %v1454_v12, %v1466_v3 }
0x1452   :  { %v1495_v11 = vmul.f32 1.442695, %v1486_v8 }
0x1454   :  { %7668 = vpow2.f32 %v1495_v11 }
0x145a   :  { %v9237_v15 = vpop.eup %7668 }
0x145b   :  { %v1512_v61 = vsel %vm1292_vm4, %v9237_v15, 0.0 }
0x145c   :  { %1513 = vadd.xlane.f32.xlu2 %v1512_v61 }
0x145d   :  { %v1472_v16 = vpop.xlane.xlu2 %1471 }
0x145e   :  { %v1488_v18 = vsub.f32 %v1456_v25, %v1472_v16 }
0x145f   :  { %v1469_v19 = vpop.xlane.xlu1 %1468 }
0x1460   :  { %v1499_v33 = vmul.f32 1.442695, %v1488_v18  ;;  %v1487_v40 = vsub.f32 %v1455_v41, %v1469_v19  ;;  %v1898_v19 = vunpack.c.l.b16 %v9140_v1  ;;  %v1840_v1 = vunpack.c.l.b16 %v9105_v31 }
0x1461   :  { %v2111_v31 = vunpack.c.l.b16 %v9134_v62 }
0x1462   :  { %7670 = vpow2.f32 %v1499_v33  ;;  %v1497_v14 = vmul.f32 1.442695, %v1487_v40 }
0x1464   :  { %7672 = vpow2.f32 %v1497_v14 }
0x1467   :  { %v1478_v5 = vpop.xlane.xlu1 %1477 }
0x1468   :  { %v9241_v12 = vpop.eup %7670  ;;  %v1490_v58 = vsub.f32 %v1458_v9, %v1478_v5 }
0x1469   :  { %v1518_v54 = vsel %vm1292_vm4, %v9241_v12, 0.0 }
0x146a   :  { %v9245_v3 = vpop.eup %7672  ;;  %v1503_v8 = vmul.f32 1.442695, %v1490_v58  ;;  %1519 = vadd.xlane.f32.xlu0 %v1518_v54  ;;  %v9258_v58 = vpack.c.b16 %v1898_v19, %v1898_v19 }
0x146b   :  { %v1515_v25 = vsel %vm1292_vm4, %v9245_v3, 0.0 }
0x146c   :  { %7674 = vpow2.f32 %v1503_v8  ;;  %1516 = vadd.xlane.f32.xlu2 %v1515_v25  ;;  %v1922_v8 = vunpack.c.l.b16 %v9184_v53  ;;  %v9283_v53 = vpack.c.b16 %v2111_v31, %v2111_v31 }
0x146f   :  { %v1475_v25 = vpop.xlane.xlu0 %1474 }
0x1472   :  { %v9249_v41 = vpop.eup %7674 }
0x1473   :  { %v1524_v11 = vsel %vm1292_vm4, %v9249_v41, 0.0 }
0x1474   :  { %1525 = vadd.xlane.f32.xlu0 %v1524_v11  ;;  %v1489_v11 = vsub.f32 %v9203_v45, %v1475_v25  ;;  %v1893_v45 = vunpack.c.l.b16 %v9164_v30 }
0x1475   :  { %v1481_v61 = vpop.xlane.xlu1 %1480 }
0x1476   :  { %v1491_v9 = vsub.f32 %v1459_v10, %v1481_v61  ;;  %v9273_v61 = vpack.c.b16 %v1922_v8, %v1922_v8 }
0x1478   :  { %v1505_v16 = vmul.f32 1.442695, %v1491_v9  ;;  %v1927_v9 = vunpack.c.l.b16 %v9166_v32  ;;  %v2087_v32 = vunpack.c.l.b16 %v9119_v49  ;;  %v2207_v49 = vunpack.c.l.b16 %v9160_v29 }
0x147a   :  { %7676 = vpow2.f32 %v1505_v16  ;;  %v1501_v16 = vmul.f32 1.442695, %v1489_v11  ;;  %v2231_v11 = vunpack.c.l.b16 %v9182_v52  ;;  %v1835_v52 = vunpack.c.l.b16 %v9162_v21 }
0x147b   :  { %v2135_v21 = vunpack.c.l.b16 %v9158_v28  ;;  %v1761_v28 = vsel %vm1292_vm4, %v9233_v27, 0 }
0x147e   :  { %v1484_v18 = vpop.xlane.xlu2 %1483 }
0x147f   :  { %v1492_v33 = vsub.f32 %v1460_v17, %v1484_v18  ;;  %v9267_v17 = vpack.c.b16 %v1840_v1, %v1840_v1  ;;  %v9279_v18 = vpack.c.b16 %v1927_v9, %v1927_v9  ;;  %v2063_v1 = vunpack.c.l.b16 %v9114_v46 }
0x1480   :  { %v9254_v40 = vpop.eup %7676  ;;  %v1869_v46 = vunpack.c.l.b16 %v9121_v51 }
0x1481   :  { %v1507_v14 = vmul.f32 1.442695, %v1492_v33  ;;  %v1527_v5 = vsel %vm1292_vm4, %v9254_v40, 0.0  ;;  %v9291_v33 = vpack.c.b16 %v1893_v45, %v1893_v45  ;;  %v9315_v25 = vpack.c.b16 %v2063_v1, %v2063_v1 }
0x1482   :  { %1528 = vadd.xlane.f32.xlu0 %v1527_v5  ;;  %v1864_v5 = vunpack.c.l.b16 %v9138_v0  ;;  %v2183_v0 = vunpack.c.l.b16 %v9136_v63  ;;  %v9329_v63 = vpack.c.b16 %v1869_v46, %v1869_v46  ;;  %v2159_v1 = vunpack.c.l.b16 %v9155_v20 }
0x1483   :  { %7678 = vpow2.f32 %v1507_v14  ;;  %v9297_v14 = vpack.c.b16 %v2087_v32, %v2087_v32  ;;  %v9337_v32 = vpack.c.b16 %v1835_v52, %v1835_v52 }
0x1484   :  { %1900 = vrot.lane.b32.xlu2 %v9258_v58, %s8572_s26  ;;  %7680 = vpow2.f32 %v1501_v16  ;;  %v9303_v30 = vpack.c.b16 %v1864_v5, %v1864_v5  ;;  %v9319_v29 = vpack.c.b16 %v2183_v0, %v2183_v0  ;;  %v9325_v16 = vpack.c.b16 %v2231_v11, %v2231_v11  ;;  %v1751_v5 = vpop.permute.xlu0 %1750 }
0x1485   :  { %v9357_v46 = vpack.c.b16 %v2159_v1, %v2159_v1 }
0x1489   :  { %v9262_v10 = vpop.eup %7678 }
0x148a   :  { %v1530_v54 = vsel %vm1292_vm4, %v9262_v10, 0.0  ;;  %v9289_v19 = vpop.eup %7680 }
0x148b   :  { %1531 = vadd.xlane.f32.xlu1 %v1530_v54  ;;  %v1521_v62 = vsel %vm1292_vm4, %v9289_v19, 0.0  ;;  %v9307_v54 = vpack.c.b16 %v2207_v49, %v2207_v49 }
0x148d   :  { %v9312_v8 = vpop.permute.xlu1 %1721 }
0x1496   :  { %1842 = vrot.lane.b32.xlu0 %v9267_v17, %s8572_s26 }
0x149e   :  { %1924 = vrot.lane.b32.xlu0 %v9273_v61, %s8572_s26 }
0x14a4   :  { %1929 = vrot.lane.b32.xlu1 %v9279_v18, %s8572_s26 }
0x14a6   :  { %2113 = vrot.lane.b32.xlu0 %v9283_v53, %s8572_s26 }
0x14ac   :  { %1895 = vrot.lane.b32.xlu1 %v9291_v33, %s8572_s26 }
0x14ad   :  { %1522 = vadd.xlane.f32.xlu2 %v1521_v62  ;;  %v1732_v62 = vsel %vm1292_vm4, %v9221_v44, 0  ;;  %v9351_v44 = vpack.c.b16 %v2135_v21, %v2135_v21 }
0x14ae   :  { %2089 = vrot.lane.b32.xlu0 %v9297_v14, %s8572_s26 }
0x14b4   :  { %1866 = vrot.lane.b32.xlu1 %v9303_v30, %s8572_s26 }
0x14b6   :  { %2209 = vrot.lane.b32.xlu0 %v9307_v54, %s8572_s26 }
0x14bc   :  { %2065 = vrot.lane.b32.xlu1 %v9315_v25, %s8572_s26 }
0x14be   :  { %2185 = vrot.lane.b32.xlu0 %v9319_v29, %s8572_s26 }
0x14bf   :  { %v1511_v9 = vpop.xlane.xlu1 %1510 }
0x14c0   :  { %7682 = vrcp.f32 %v1511_v9 }
0x14c4   :  { %2233 = vrot.lane.b32.xlu1 %v9325_v16, %s8572_s26 }
0x14c5   :  { %1871 = vrot.lane.b32.xlu2 %v9329_v63, %s8572_s26 }
0x14c6   :  { %v7683_v31 = vpop.eup %7682  ;;  %2366 = vrot.lane.b32.xlu0 %v9098_v23, %s8574_s4 }
0x14c7   :  { %v1541_v51 = vmul.f32 %v7683_v31, %v9229_v59 }
0x14c9   :  { %v1549_v45 = vpack.c.bf16 %v1541_v51, %v1541_v51 }
0x14cb   :  { %7240 = vmatmul.msk.bf16.vlgmr.msrb.gmra.mxu0 %vm1292_vm4, %v1549_v45 }
0x14cc   :  { %2343 = vrot.lane.b32.xlu1 %v9082_v4, %s8574_s4  ;;  %1741 = vmatpush.bf16.xpose.msrb.mxu0 %v1732_v62  ;;  %v1819_v62 = vsel %vm1292_vm4, %v9225_v57, 0 }
0x14cd   :  { %1837 = vrot.lane.b32.xlu2 %v9337_v32, %s8572_s26 }
0x14ce   :  { %2341 = vrot.lane.b32.xlu0 %v9090_v37, %s8574_s4 }
0x14cf   :  { %v1514_v59 = vpop.xlane.xlu2 %1513 }
0x14d0   :  { %7684 = vrcp.f32 %v1514_v59  ;;  %v1790_v59 = vsel %vm1292_vm4, %v9235_v13, 0 }
0x14d4   :  { %2320 = vrot.lane.b32.xlu1 %v9075_v38, %s8574_s4 }
0x14d5   :  { %2137 = vrot.lane.b32.xlu2 %v9351_v44, %s8572_s26 }
0x14d6   :  { %v7685_v49 = vpop.eup %7684 }
0x14d7   :  { %v1542_v0 = vmul.f32 %v7685_v49, %v9237_v15 }
0x14d9   :  { %v1550_v11 = vpack.c.bf16 %v1542_v0, %v1542_v0 }
0x14db   :  { %7241 = vmatmul.msk.bf16.vlgmr.msrb.gmra.mxu1 %vm1292_vm4, %v1550_v11 }
0x14dc   :  { %1770 = vmatpush.bf16.xpose.msrb.mxu1 %v1761_v28 }
0x14dd   :  { %v1520_v9 = vpop.xlane.xlu0 %1519  ;;  %2161 = vrot.lane.b32.xlu2 %v9357_v46, %s8572_s26 }
0x14de   :  { %7686 = vrcp.f32 %v1520_v9 }
0x14df   :  { %v1517_v31 = vpop.xlane.xlu2 %1516 }
0x14e0   :  { %7688 = vrcp.f32 %v1517_v31 }
0x14e4   :  { %v7687_v52 = vpop.eup %7686 }
0x14e5   :  { %v1544_v20 = vmul.f32 %v7687_v52, %v9241_v12  ;;  %2297 = vrot.lane.b32.xlu2 %v9064_v50, %s8574_s4 }
0x14e6   :  { %v7689_v15 = vpop.eup %7688 }
0x14e7   :  { %v1552_v51 = vpack.c.bf16 %v1544_v20, %v1544_v20  ;;  %v1543_v27 = vmul.f32 %v7689_v15, %v9245_v3  ;;  %v1526_v45 = vpop.xlane.xlu0 %1525  ;;  %v1901_v28 = vpop.permute.xlu2 %1900 }
0x14e8   :  { %7690 = vrcp.f32 %v1526_v45  ;;  %v1906_v9 = vsel %vm1292_vm4, %v1901_v28, 0 }
0x14e9   :  { %v1551_v21 = vpack.c.bf16 %v1543_v27, %v1543_v27  ;;  %7243 = vmatmul.msk.bf16.vlgmr.msrb.gmra.mxu3 %vm1292_vm4, %v1552_v51 }
0x14ea   :  { %1828 = vmatpush.bf16.xpose.msrb.mxu3 %v1819_v62 }
0x14eb   :  { %7242 = vmatmul.msk.bf16.vlgmr.msrb.gmra.mxu2 %vm1292_vm4, %v1551_v21 }
0x14ec   :  { %1799 = vmatpush.bf16.xpose.msrb.mxu2 %v1790_v59 }
0x14ed   :  { %2364 = vrot.lane.b32.xlu2 %v9112_v43, %s8574_s4 }
0x14ee   :  { %v7691_v12 = vpop.eup %7690 }
0x14ef   :  { %v1546_v3 = vmul.f32 %v7691_v12, %v9249_v41 }
0x14f1   :  { %v1554_v49 = vpack.c.bf16 %v1546_v3, %v1546_v3 }
0x14f3   :  { %7245 = vmatmul.msk.bf16.vlgmr.msra.gmra.mxu1 %vm1292_vm4, %v1554_v49 }
0x14f5   :  { %v1529_v57 = vpop.xlane.xlu0 %1528 }
0x14f6   :  { %7692 = vrcp.f32 %v1529_v57 }
0x14fc   :  { %v7693_v1 = vpop.eup %7692 }
0x14fd   :  { %v1547_v0 = vmul.f32 %v7693_v1, %v9254_v40 }
0x14fe   :  { %v1532_v11 = vpop.xlane.xlu1 %1531 }
0x14ff   :  { %7694 = vrcp.f32 %v1532_v11  ;;  %v1555_v13 = vpack.c.bf16 %v1547_v0, %v1547_v0 }
0x1501   :  { %7246 = vmatmul.msk.bf16.vlgmr.msra.gmra.mxu2 %vm1292_vm4, %v1555_v13 }
0x1502   :  { %1915 = vmatpush.bf16.xpose.msra.mxu2 %v1906_v9 }
0x1503   :  { %7249 = vmatmul.msk.bf16.vlgmr.msrb.gmra.mxu1 %vm1292_vm4, %v1751_v5 }
0x1505   :  { %v7695_v41 = vpop.eup %7694 }
0x1506   :  { %v1548_v31 = vmul.f32 %v7695_v41, %v9262_v10 }
0x1508   :  { %v1556_v52 = vpack.c.bf16 %v1548_v31, %v1548_v31  ;;  %v1843_v20 = vpop.permute.xlu0 %1842 }
0x1509   :  { %v1848_v0 = vsel %vm1292_vm4, %v1843_v20, 0 }
0x150a   :  { %7247 = vmatmul.msk.bf16.vlgmr.msra.gmra.mxu3 %vm1292_vm4, %v1556_v52 }
0x1510   :  { %v1925_v15 = vpop.permute.xlu0 %1924 }
0x1511   :  { %7250 = vmatmul.msk.bf16.vlgmr.msrb.gmra.mxu2 %vm1292_vm4, %v9223_v48 }
0x1516   :  { %v1930_v40 = vpop.permute.xlu1 %1929 }
0x1517   :  { %v1935_v51 = vsel %vm1292_vm4, %v1930_v40, 0 }
0x1518   :  { %1944 = vmatpush.bf16.xpose.msra.mxu3 %v1935_v51  ;;  %v2114_v27 = vpop.permute.xlu0 %2113 }
0x1519   :  { %v2119_v45 = vsel %vm1560_vm5, %v2114_v27, 0 }
0x151a   :  { %7251 = vmatmul.msk.bf16.vlgmr.msrb.gmra.mxu3 %vm1292_vm4, %v9227_v36  ;;  %2128 = vmatpush.bf16.msrb.mxu2 %v2119_v45 }
0x151e   :  { %v1896_v10 = vpop.permute.xlu1 %1895 }
0x1520   :  { %v1523_v5 = vpop.xlane.xlu2 %1522  ;;  %v2090_v62 = vpop.permute.xlu0 %2089 }
0x1521   :  { %7696 = vrcp.f32 %v1523_v5  ;;  %7254 = vmatmul.msk.bf16.vlgmr.msra.gmra.mxu2 %vm1292_vm4, %v1896_v10  ;;  %v2095_v1 = vsel %vm1560_vm5, %v2090_v62, 0 }
0x1526   :  { %v1867_v21 = vpop.permute.xlu1 %1866 }
0x1527   :  { %v7697_v59 = vpop.eup %7696 }
0x1528   :  { %v1545_v48 = vmul.f32 %v7697_v59, %v9289_v19  ;;  %v1872_v12 = vpop.permute.xlu2 %1871  ;;  %v2210_v3 = vpop.permute.xlu0 %2209 }
0x1529   :  { %v1877_v49 = vsel %vm1292_vm4, %v1872_v12, 0  ;;  %v2215_v57 = vsel %vm1560_vm5, %v2210_v3, 0 }
0x152a   :  { %7255 = vmatmul.msk.bf16.vlgmr.msra.gmra.mxu3 %vm1292_vm4, %v1925_v15  ;;  %v1553_v36 = vpack.c.bf16 %v1545_v48, %v1545_v48  ;;  %1886 = vmatpush.bf16.xpose.msra.mxu1 %v1877_v49 }
0x152b   :  { %2224 = vmatpush.bf16.msra.mxu2 %v2215_v57 }
0x152c   :  { %7244 = vmatmul.msk.bf16.vlgmr.msra.gmra.mxu0 %vm1292_vm4, %v1553_v36 }
0x152d   :  { %1857 = vmatpush.bf16.xpose.msra.mxu0 %v1848_v0 }
0x152e   :  { %v2066_v19 = vpop.permute.xlu1 %2065 }
0x152f   :  { %v2071_v20 = vsel %vm1560_vm5, %v2066_v19, 0 }
0x1530   :  { %v1838_v11 = vpop.permute.xlu2 %1837  ;;  %v2186_v28 = vpop.permute.xlu0 %2185 }
0x1531   :  { %v2191_v13 = vsel %vm1560_vm5, %v2186_v28, 0  ;;  %7253 = vmatmul.msk.bf16.vlgmr.msra.gmra.mxu1 %vm1292_vm4, %v1867_v21 }
0x1532   :  { %2104 = vmatpush.bf16.msrb.mxu1 %v2095_v1 }
0x1536   :  { %2200 = vmatpush.bf16.msra.mxu1 %v2191_v13  ;;  %v2234_v9 = vpop.permute.xlu1 %2233 }
0x1537   :  { %v2239_v52 = vsel %vm1560_vm5, %v2234_v9, 0 }
0x1538   :  { %v2138_v41 = vpop.permute.xlu2 %2137 }
0x1539   :  { %v2143_v31 = vsel %vm1560_vm5, %v2138_v41, 0 }
0x153a   :  { %2152 = vmatpush.bf16.msrb.mxu3 %v2143_v31 }
0x153c   :  { %7248 = vmatmul.msk.bf16.vlgmr.msrb.gmra.mxu0 %vm1292_vm4, %v9312_v8 }
0x153d   :  { %2080 = vmatpush.bf16.msrb.mxu0 %v2071_v20 }
0x153e   :  { %2248 = vmatpush.bf16.msra.mxu3 %v2239_v52 }
0x1540   :  { %v2162_v40 = vpop.permute.xlu2 %2161 }
0x1541   :  { %v2167_v51 = vsel %vm1560_vm5, %v2162_v40, 0 }
0x1548   :  { %v1573_v15 = vpop.f32.mrf.mxu0 }
0x1549   :  { %1710 = vst.msk [vmem:[#allocation3] sm:$0xff] %vm1292_vm4, %v1573_v15 }
0x154c   :  { %7252 = vmatmul.msk.bf16.vlgmr.msra.gmra.mxu0 %vm1292_vm4, %v1838_v11 }
0x154d   :  { %2176 = vmatpush.bf16.msra.mxu0 %v2167_v51 }
0x1550   :  { %v1575_v27 = vpop.f32.mrf.mxu0 }
0x1558   :  { %v1592_v45 = vpop.f32.mrf.mxu1 }
0x1559   :  { %1711 = vst.msk [vmem:[#allocation3 + $0x8] sm:$0xff] %vm1292_vm4, %v1592_v45 }
0x1560   :  { %v1594_v10 = vpop.f32.mrf.mxu1 }
0x156c   :  { %v1630_v5 = vpop.f32.mrf.mxu3 }
0x156d   :  { %1713 = vst.msk [vmem:[#allocation3 + $0x18] sm:$0xff] %vm1292_vm4, %v1630_v5 }
0x156e   :  { %v1611_v62 = vpop.f32.mrf.mxu2 }
0x156f   :  { %1712 = vst.msk [vmem:[#allocation3 + $0x10] sm:$0xff] %vm1292_vm4, %v1611_v62 }
0x1570   :  { %v1668_v8 = vpop.f32.mrf.mxu1 }
0x1571   :  { %1715 = vst.msk [vmem:[#allocation3 + $0x28] sm:$0xff] %vm1292_vm4, %v1668_v8 }
0x1574   :  { %v1632_v21 = vpop.f32.mrf.mxu3 }
0x1576   :  { %v1613_v59 = vpop.f32.mrf.mxu2 }
0x1578   :  { %v1670_v48 = vpop.f32.mrf.mxu1 }
0x1580   :  { %v1772_v12 = vpop.f32.mrf.mxu1 }
0x1581   :  { %v1951_v3 = vmul.f32 0.35355338, %v1772_v12 }
0x1583   :  { %v1959_v49 = vadd.f32 %v1951_v3, %v9190_v60 }
0x1584   :  { %v1687_v57 = vpop.f32.mrf.mxu2 }
0x1585   :  { %1716 = vst.msk [vmem:[#allocation3 + $0x30] sm:$0xff] %vm1292_vm4, %v1687_v57  ;;  %v1969_v36 = vsel %vm1292_vm4, %v1959_v49, -inf }
0x1586   :  { %1970 = vmax.xlane.f32.xlu0 %v1969_v36 }
0x1588   :  { %v1774_v1 = vpop.f32.mrf.mxu1 }
0x158c   :  { %v1689_v0 = vpop.f32.mrf.mxu2 }
0x158d   :  { %v1706_v19 = vpop.f32.mrf.mxu3 }
0x158e   :  { %1717 = vst.msk [vmem:[#allocation3 + $0x38] sm:$0xff] %vm1292_vm4, %v1706_v19 }
0x1594   :  { %v1801_v28 = vpop.f32.mrf.mxu2 }
0x1595   :  { %v1708_v11 = vpop.f32.mrf.mxu3  ;;  %v1952_v13 = vmul.f32 0.35355338, %v1801_v28 }
0x1597   :  { %v1960_v9 = vadd.f32 %v1952_v13, %v9190_v60 }
0x1599   :  { %v1972_v41 = vsel %vm1292_vm4, %v1960_v9, -inf }
0x159a   :  { %1973 = vmax.xlane.f32.xlu0 %v1972_v41 }
0x159c   :  { %v1803_v31 = vpop.f32.mrf.mxu2 }
0x159d   :  { %v1830_v52 = vpop.f32.mrf.mxu3 }
0x159e   :  { %v1953_v8 = vmul.f32 0.35355338, %v1830_v52 }
0x15a0   :  { %v1961_v12 = vadd.f32 %v1953_v8, %v9190_v60 }
0x15a2   :  { %v1975_v1 = vsel %vm1292_vm4, %v1961_v12, -inf }
0x15a4   :  { %v1917_v15 = vpop.f32.mrf.mxu2 }
0x15a5   :  { %v1832_v20 = vpop.f32.mrf.mxu3  ;;  %v1956_v36 = vmul.f32 0.35355338, %v1917_v15 }
0x15a7   :  { %v9426_v28 = vadd.f32 %v1956_v36, %v9190_v60 }
0x15a9   :  { %v1649_v40 = vpop.f32.mrf.mxu0  ;;  %v1984_v31 = vsel %vm1292_vm4, %v9426_v28, -inf }
0x15aa   :  { %1714 = vst.msk [vmem:[#allocation3 + $0x20] sm:$0xff] %vm1292_vm4, %v1649_v40 }
0x15ac   :  { %v1919_v51 = vpop.f32.mrf.mxu2 }
0x15ad   :  { %v1946_v27 = vpop.f32.mrf.mxu3 }
0x15ae   :  { %v1888_v45 = vpop.f32.mrf.mxu1  ;;  %v1957_v19 = vmul.f32 0.35355338, %v1946_v27 }
0x15af   :  { %v1955_v10 = vmul.f32 0.35355338, %v1888_v45  ;;  %v9439_v45 = vpop.permute.xlu0 %2366 }
0x15b0   :  { %v9429_v41 = vadd.f32 %v1957_v19, %v9190_v60 }
0x15b1   :  { %v1651_v5 = vpop.f32.mrf.mxu0  ;;  %v1963_v62 = vadd.f32 %v1955_v10, %v9190_v60 }
0x15b2   :  { %v1987_v52 = vsel %vm1292_vm4, %v9429_v41, -inf }
0x15b3   :  { %v1981_v21 = vsel %vm1292_vm4, %v1963_v62, -inf }
0x15b4   :  { %1982 = vmax.xlane.f32.xlu2 %v1981_v21 }
0x15b5   :  { %v1948_v59 = vpop.f32.mrf.mxu3 }
0x15b6   :  { %v1890_v48 = vpop.f32.mrf.mxu1 }
0x15b7   :  { %v9441_v10 = vpop.permute.xlu0 %2341 }
0x15b9   :  { %v1743_v3 = vpop.f32.mrf.mxu0 }
0x15ba   :  { %v1950_v57 = vmul.f32 0.35355338, %v1743_v3 }
0x15bc   :  { %1976 = vmax.xlane.f32.xlu2 %v1975_v1  ;;  %v1958_v0 = vadd.f32 %v1950_v57, %v9190_v60  ;;  %v9447_v1 = vpop.permute.xlu2 %2297 }
0x15be   :  { %v1966_v11 = vsel %vm1292_vm4, %v1958_v0, -inf }
0x15bf   :  { %1967 = vmax.xlane.f32.xlu1 %v1966_v11 }
0x15c1   :  { %v1745_v13 = vpop.f32.mrf.mxu0 }
0x15c2   :  { %v9455_v13 = vpop.permute.xlu1 %2343 }
0x15c4   :  { %1985 = vmax.xlane.f32.xlu2 %v1984_v31 }
0x15c7   :  { %1988 = vmax.xlane.f32.xlu1 %v1987_v52 }
0x15c9   :  { %v1859_v20 = vpop.f32.mrf.mxu0 }
0x15ca   :  { %v1954_v15 = vmul.f32 0.35355338, %v1859_v20  ;;  %v2321_v52 = vpop.permute.xlu1 %2320 }
0x15cc   :  { %v1962_v40 = vadd.f32 %v1954_v15, %v9190_v60 }
0x15ce   :  { %v1978_v51 = vsel %vm1292_vm4, %v1962_v40, -inf }
0x15cf   :  { %1979 = vmax.xlane.f32.xlu0 %v1978_v51 }
0x15d1   :  { %v1861_v27 = vpop.f32.mrf.mxu0 }
0x15e0   :  { %2295 = vrot.lane.b32.xlu1 %v9217_v42, %s8574_s4 }
0x15f9   :  { %v1971_v5 = vpop.xlane.xlu0 %1970 }
0x15fa   :  { %v1991_v8 = vsub.f32 %v1959_v49, %v1971_v5  ;;  %v9453_v49 = vpop.permute.xlu2 %2364 }
0x15fc   :  { %v2000_v21 = vmul.f32 1.442695, %v1991_v8 }
0x15fe   :  { %7698 = vpow2.f32 %v2000_v21 }
0x1604   :  { %v9443_v59 = vpop.eup %7698 }
0x1605   :  { %v2017_v48 = vsel %vm1292_vm4, %v9443_v59, 0.0 }
0x160a   :  { %2018 = vadd.xlane.f32.xlu1 %v2017_v48 }
0x160d   :  { %v1974_v3 = vpop.xlane.xlu0 %1973 }
0x160e   :  { %v1992_v57 = vsub.f32 %v1960_v9, %v1974_v3 }
0x1610   :  { %v2002_v36 = vmul.f32 1.442695, %v1992_v57 }
0x1612   :  { %7700 = vpow2.f32 %v2002_v36 }
0x1618   :  { %v9449_v19 = vpop.eup %7700 }
0x1619   :  { %v2020_v11 = vsel %vm1292_vm4, %v9449_v19, 0.0 }
0x161a   :  { %2021 = vadd.xlane.f32.xlu1 %v2020_v11 }
0x1627   :  { %v1983_v31 = vpop.xlane.xlu2 %1982 }
0x1628   :  { %v1995_v5 = vsub.f32 %v1963_v62, %v1983_v31 }
0x162a   :  { %v2008_v21 = vmul.f32 1.442695, %v1995_v5 }
0x162f   :  { %v1977_v20 = vpop.xlane.xlu2 %1976 }
0x1630   :  { %v1993_v15 = vsub.f32 %v1961_v12, %v1977_v20 }
0x1632   :  { %v2004_v51 = vmul.f32 1.442695, %v1993_v15  ;;  %v1968_v9 = vpop.xlane.xlu1 %1967 }
0x1633   :  { %v1990_v27 = vsub.f32 %v1958_v0, %v1968_v9 }
0x1634   :  { %7702 = vpow2.f32 %v2004_v51 }
0x1635   :  { %v1998_v8 = vmul.f32 1.442695, %v1990_v27 }
0x1637   :  { %7704 = vpow2.f32 %v1998_v8  ;;  %v1986_v27 = vpop.xlane.xlu2 %1985 }
0x1638   :  { %7706 = vpow2.f32 %v2008_v21  ;;  %v1996_v5 = vsub.f32 %v9426_v28, %v1986_v27  ;;  %v2349_v27 = vsel %vm1292_vm4, %v9455_v13, 0 }
0x163a   :  { %v9457_v48 = vpop.eup %7702  ;;  %v1989_v51 = vpop.xlane.xlu1 %1988 }
0x163b   :  { %v2023_v3 = vsel %vm1292_vm4, %v9457_v48, 0.0 }
0x163c   :  { %2024 = vadd.xlane.f32.xlu0 %v2023_v3  ;;  %v2010_v3 = vmul.f32 1.442695, %v1996_v5 }
0x163d   :  { %v9461_v57 = vpop.eup %7704 }
0x163e   :  { %v2014_v12 = vsel %vm1292_vm4, %v9461_v57, 0.0  ;;  %v9465_v0 = vpop.eup %7706 }
0x163f   :  { %2015 = vadd.xlane.f32.xlu2 %v2014_v12  ;;  %v2029_v31 = vsel %vm1292_vm4, %v9465_v0, 0.0 }
0x1642   :  { %v1980_v36 = vpop.xlane.xlu0 %1979 }
0x1643   :  { %v1994_v62 = vsub.f32 %v1962_v40, %v1980_v36  ;;  %v1997_v40 = vsub.f32 %v9429_v41, %v1989_v51 }
0x1645   :  { %v2006_v11 = vmul.f32 1.442695, %v1994_v62  ;;  %v2012_v9 = vmul.f32 1.442695, %v1997_v40 }
0x1647   :  { %7708 = vpow2.f32 %v2006_v11  ;;  %2030 = vadd.xlane.f32.xlu2 %v2029_v31 }
0x1648   :  { %7710 = vpow2.f32 %v2012_v9 }
0x1649   :  { %7712 = vpow2.f32 %v2010_v3 }
0x164d   :  { %v9469_v20 = vpop.eup %7708 }
0x164e   :  { %v2026_v15 = vsel %vm1292_vm4, %v9469_v20, 0.0  ;;  %v9485_v21 = vpop.eup %7710 }
0x164f   :  { %2027 = vadd.xlane.f32.xlu1 %v2026_v15  ;;  %v2035_v41 = vsel %vm1292_vm4, %v9485_v21, 0.0  ;;  %v9493_v36 = vpop.eup %7712  ;;  %v2326_v15 = vsel %vm1292_vm4, %v2321_v52, 0 }
0x1650   :  { %2318 = vrot.lane.b32.xlu0 %v9212_v35, %s8574_s4  ;;  %v2032_v31 = vsel %vm1292_vm4, %v9493_v36, 0.0 }
0x1652   :  { %v9483_v8 = vpop.permute.xlu1 %2295 }
0x165f   :  { %2435 = vrot.lane.b32.xlu2 %v9258_v58, %s8574_s4 }
0x1668   :  { %2458 = vrot.lane.b32.xlu1 %v9279_v18, %s8574_s4 }
0x1670   :  { %2433 = vrot.lane.b32.xlu1 %v9291_v33, %s8574_s4 }
0x1678   :  { %2410 = vrot.lane.b32.xlu1 %v9303_v30, %s8574_s4 }
0x167a   :  { %2036 = vadd.xlane.f32.xlu0 %v2035_v41 }
0x167d   :  { %v2019_v12 = vpop.xlane.xlu1 %2018 }
0x167e   :  { %7714 = vrcp.f32 %v2019_v12 }
0x1680   :  { %2633 = vrot.lane.b32.xlu1 %v9283_v53, %s8574_s4 }
0x1684   :  { %v7715_v28 = vpop.eup %7714 }
0x1685   :  { %v2047_v62 = vmul.f32 %v7715_v28, %v9443_v59 }
0x1687   :  { %v2055_v11 = vpack.c.bf16 %v2047_v62, %v2047_v62  ;;  %v2372_v62 = vsel %vm1292_vm4, %v9439_v45, 0 }
0x1688   :  { %2033 = vadd.xlane.f32.xlu2 %v2032_v31  ;;  %2717 = vrot.lane.b32.xlu1 %v9307_v54, %s8574_s4  ;;  %v2303_v31 = vsel %vm1292_vm4, %v9447_v1, 0 }
0x1689   :  { %7257 = vmatmul.msk.bf16.vlgmr.msrb.gmra.mxu1 %vm1292_vm4, %v2055_v11 }
0x168a   :  { %2335 = vmatpush.bf16.xpose.msrb.mxu1 %v2326_v15 }
0x168d   :  { %v2022_v51 = vpop.xlane.xlu1 %2021 }
0x168e   :  { %7716 = vrcp.f32 %v2022_v51  ;;  %2389 = vrot.lane.b32.xlu0 %v9267_v17, %s8574_s4 }
0x1694   :  { %v7717_v40 = vpop.eup %7716 }
0x1695   :  { %v2048_v59 = vmul.f32 %v7717_v40, %v9449_v19 }
0x1696   :  { %2456 = vrot.lane.b32.xlu0 %v9273_v61, %s8574_s4 }
0x1697   :  { %v2056_v9 = vpack.c.bf16 %v2048_v59, %v2048_v59 }
0x1699   :  { %7258 = vmatmul.msk.bf16.vlgmr.msrb.gmra.mxu2 %vm1292_vm4, %v2056_v9 }
0x169a   :  { %2358 = vmatpush.bf16.xpose.msrb.mxu2 %v2349_v27 }
0x169e   :  { %2591 = vrot.lane.b32.xlu0 %v9315_v25, %s8574_s4 }
0x16a0   :  { %2412 = vrot.lane.b32.xlu2 %v9329_v63, %s8574_s4 }
0x16a6   :  { %2654 = vrot.lane.b32.xlu0 %v9351_v44, %s8574_s4 }
0x16a8   :  { %2387 = vrot.lane.b32.xlu2 %v9337_v32, %s8574_s4 }
0x16ae   :  { %2675 = vrot.lane.b32.xlu0 %v9357_v46, %s8574_s4 }
0x16af   :  { %v2025_v19 = vpop.xlane.xlu0 %2024 }
0x16b0   :  { %7718 = vrcp.f32 %v2025_v19  ;;  %2612 = vrot.lane.b32.xlu2 %v9297_v14, %s8574_s4 }
0x16b2   :  { %v2016_v13 = vpop.xlane.xlu2 %2015 }
0x16b3   :  { %7720 = vrcp.f32 %v2016_v13 }
0x16b6   :  { %v7719_v52 = vpop.eup %7718  ;;  %2738 = vrot.lane.b32.xlu0 %v9325_v16, %s8574_s4 }
0x16b7   :  { %v2049_v5 = vmul.f32 %v7719_v52, %v9457_v48 }
0x16b8   :  { %2696 = vrot.lane.b32.xlu2 %v9319_v29, %s8574_s4 }
0x16b9   :  { %v7721_v3 = vpop.eup %7720  ;;  %v2057_v41 = vpack.c.bf16 %v2049_v5, %v2049_v5 }
0x16ba   :  { %v2046_v12 = vmul.f32 %v7721_v3, %v9461_v57  ;;  %v2031_v28 = vpop.xlane.xlu2 %2030 }
0x16bb   :  { %7722 = vrcp.f32 %v2031_v28  ;;  %7259 = vmatmul.msk.bf16.vlgmr.msrb.gmra.mxu3 %vm1292_vm4, %v2057_v41 }
0x16bc   :  { %v2054_v11 = vpack.c.bf16 %v2046_v12, %v2046_v12  ;;  %2381 = vmatpush.bf16.xpose.msrb.mxu3 %v2372_v62 }
0x16be   :  { %7256 = vmatmul.msk.bf16.vlgmr.msrb.gmra.mxu0 %vm1292_vm4, %v2054_v11  ;;  %2825 = vrot.lane.b32.xlu0 %v9075_v38, %s8575_s7 }
0x16bf   :  { %2312 = vmatpush.bf16.xpose.msrb.mxu0 %v2303_v31 }
0x16c0   :  { %2802 = vrot.lane.b32.xlu2 %v9064_v50, %s8575_s7 }
0x16c1   :  { %v7723_v48 = vpop.eup %7722 }
0x16c2   :  { %v2051_v45 = vmul.f32 %v7723_v48, %v9465_v0  ;;  %v2028_v57 = vpop.xlane.xlu1 %2027  ;;  %v2319_v59 = vpop.permute.xlu0 %2318 }
0x16c3   :  { %7724 = vrcp.f32 %v2028_v57  ;;  %v2436_v38 = vpop.permute.xlu2 %2435 }
0x16c4   :  { %v2059_v15 = vpack.c.bf16 %v2051_v45, %v2051_v45  ;;  %v2441_v11 = vsel %vm1292_vm4, %v2436_v38, 0 }
0x16c6   :  { %7261 = vmatmul.msk.bf16.vlgmr.msra.gmra.mxu1 %vm1292_vm4, %v2059_v15 }
0x16c9   :  { %v7725_v51 = vpop.eup %7724 }
0x16ca   :  { %v2050_v1 = vmul.f32 %v7725_v51, %v9469_v20 }
0x16cc   :  { %v2058_v40 = vpack.c.bf16 %v2050_v1, %v2050_v1 }
0x16ce   :  { %7260 = vmatmul.msk.bf16.vlgmr.msra.gmra.mxu0 %vm1292_vm4, %v2058_v40 }
0x16d6   :  { %7265 = vmatmul.msk.bf16.vlgmr.msrb.gmra.mxu1 %vm1292_vm4, %v2319_v59 }
0x16da   :  { %v2459_v27 = vpop.permute.xlu1 %2458 }
0x16db   :  { %v2464_v13 = vsel %vm1292_vm4, %v2459_v27, 0 }
0x16de   :  { %7264 = vmatmul.msk.bf16.vlgmr.msrb.gmra.mxu0 %vm1292_vm4, %v9483_v8 }
0x16e2   :  { %v2434_v52 = vpop.permute.xlu1 %2433 }
0x16ea   :  { %v2411_v48 = vpop.permute.xlu1 %2410 }
0x16ed   :  { %v2037_v50 = vpop.xlane.xlu0 %2036 }
0x16ee   :  { %7726 = vrcp.f32 %v2037_v50 }
0x16f2   :  { %v2634_v1 = vpop.permute.xlu1 %2633 }
0x16f3   :  { %v2639_v59 = vsel %vm1560_vm5, %v2634_v1, 0 }
0x16f4   :  { %v7727_v0 = vpop.eup %7726 }
0x16f5   :  { %v2053_v9 = vmul.f32 %v7727_v0, %v9485_v21 }
0x16f7   :  { %v2061_v19 = vpack.c.bf16 %v2053_v9, %v2053_v9 }
0x16f9   :  { %7263 = vmatmul.msk.bf16.vlgmr.msra.gmra.mxu3 %vm1292_vm4, %v2061_v19 }
0x16fa   :  { %2473 = vmatpush.bf16.xpose.msra.mxu3 %v2464_v13  ;;  %v2718_v13 = vpop.permute.xlu1 %2717 }
0x16fb   :  { %v2034_v20 = vpop.xlane.xlu2 %2033 }
0x16fc   :  { %7728 = vrcp.f32 %v2034_v20 }
0x1700   :  { %v2390_v5 = vpop.permute.xlu0 %2389 }
0x1701   :  { %v2395_v3 = vsel %vm1292_vm4, %v2390_v5, 0 }
0x1702   :  { %v7729_v8 = vpop.eup %7728  ;;  %2404 = vmatpush.bf16.xpose.msra.mxu0 %v2395_v3 }
0x1703   :  { %v2052_v41 = vmul.f32 %v7729_v8, %v9493_v36  ;;  %v2413_v12 = vpop.permute.xlu2 %2412 }
0x1704   :  { %v2418_v21 = vsel %vm1292_vm4, %v2413_v12, 0 }
0x1705   :  { %v2060_v28 = vpack.c.bf16 %v2052_v41, %v2052_v41  ;;  %2427 = vmatpush.bf16.xpose.msra.mxu1 %v2418_v21 }
0x1706   :  { %v9551_v62 = vpop.f32.mrf.mxu1 }
0x1707   :  { %7262 = vmatmul.msk.bf16.vlgmr.msra.gmra.mxu2 %vm1292_vm4, %v2060_v28 }
0x1708   :  { %2450 = vmatpush.bf16.xpose.msra.mxu2 %v2441_v11  ;;  %v2457_v31 = vpop.permute.xlu0 %2456 }
0x1709   :  { %7267 = vmatmul.msk.bf16.vlgmr.msrb.gmra.mxu3 %vm1292_vm4, %v9453_v49 }
0x170b   :  { %v2388_v45 = vpop.permute.xlu2 %2387 }
0x170c   :  { %7268 = vmatmul.msk.bf16.vlgmr.msra.gmra.mxu0 %vm1292_vm4, %v2388_v45  ;;  %7269 = vmatmul.msk.bf16.vlgmr.msra.gmra.mxu1 %vm1292_vm4, %v2411_v48 }
0x170e   :  { %v2108_v36 = vpop.f32.mrf.mxu1 }
0x1710   :  { %v2592_v57 = vpop.permute.xlu0 %2591 }
0x1711   :  { %v2597_v15 = vsel %vm1560_vm5, %v2592_v57, 0 }
0x1712   :  { %2606 = vmatpush.bf16.msrb.mxu0 %v2597_v15 }
0x1713   :  { %v2613_v51 = vpop.permute.xlu2 %2612 }
0x1714   :  { %v2618_v40 = vsel %vm1560_vm5, %v2613_v51, 0 }
0x1715   :  { %2627 = vmatpush.bf16.msrb.mxu1 %v2618_v40 }
0x1717   :  { %7266 = vmatmul.msk.bf16.vlgmr.msrb.gmra.mxu2 %vm1292_vm4, %v9441_v10  ;;  %v2723_v10 = vsel %vm1560_vm5, %v2718_v13, 0 }
0x1718   :  { %2648 = vmatpush.bf16.msrb.mxu2 %v2639_v59  ;;  %v2655_v49 = vpop.permute.xlu0 %2654 }
0x1719   :  { %v2660_v50 = vsel %vm1560_vm5, %v2655_v49, 0  ;;  %7271 = vmatmul.msk.bf16.vlgmr.msra.gmra.mxu3 %vm1292_vm4, %v2457_v31 }
0x171a   :  { %2669 = vmatpush.bf16.msrb.mxu3 %v2660_v50 }
0x171b   :  { %v2697_v38 = vpop.permute.xlu2 %2696 }
0x171c   :  { %v2702_v0 = vsel %vm1560_vm5, %v2697_v38, 0  ;;  %v9567_v9 = vpop.f32.mrf.mxu2 }
0x171d   :  { %2711 = vmatpush.bf16.msra.mxu1 %v2702_v0 }
0x1720   :  { %v2676_v27 = vpop.permute.xlu0 %2675 }
0x1721   :  { %v2681_v19 = vsel %vm1560_vm5, %v2676_v27, 0 }
0x1722   :  { %2690 = vmatpush.bf16.msra.mxu0 %v2681_v19 }
0x1724   :  { %v2132_v20 = vpop.f32.mrf.mxu2 }
0x1727   :  { %7270 = vmatmul.msk.bf16.vlgmr.msra.gmra.mxu2 %vm1292_vm4, %v2434_v52 }
0x1728   :  { %2732 = vmatpush.bf16.msra.mxu2 %v2723_v10  ;;  %v2739_v5 = vpop.permute.xlu0 %2738 }
0x1729   :  { %v2744_v3 = vsel %vm1560_vm5, %v2739_v5, 0 }
0x172a   :  { %2753 = vmatpush.bf16.msra.mxu3 %v2744_v3 }
0x173b   :  { %v9573_v8 = vpop.f32.mrf.mxu0 }
0x173e   :  { %v9575_v41 = vpop.f32.mrf.mxu3 }
0x1743   :  { %v2084_v12 = vpop.f32.mrf.mxu0  ;;  %v9577_v21 = vpop.f32.mrf.mxu1 }
0x1746   :  { %v2156_v28 = vpop.f32.mrf.mxu3 }
0x174b   :  { %v9579_v11 = vpop.f32.mrf.mxu0  ;;  %v2204_v31 = vpop.f32.mrf.mxu1 }
0x1753   :  { %v2180_v48 = vpop.f32.mrf.mxu0  ;;  %v2337_v45 = vpop.f32.mrf.mxu1 }
0x1754   :  { %v2480_v36 = vmul.f32 0.35355338, %v2337_v45 }
0x1756   :  { %v2488_v52 = vadd.f32 %v2480_v36, %v9190_v60 }
0x1758   :  { %v2498_v57 = vsel %vm1292_vm4, %v2488_v52, -inf }
0x1759   :  { %2499 = vmax.xlane.f32.xlu2 %v2498_v57 }
0x175b   :  { %v2314_v15 = vpop.f32.mrf.mxu0  ;;  %v2339_v51 = vpop.f32.mrf.mxu1 }
0x175c   :  { %v2479_v1 = vmul.f32 0.35355338, %v2314_v15 }
0x175e   :  { %v2487_v40 = vadd.f32 %v2479_v1, %v9190_v60 }
0x1760   :  { %v2495_v59 = vsel %vm1292_vm4, %v2487_v40, -inf }
0x1761   :  { %2496 = vmax.xlane.f32.xlu0 %v2495_v59 }
0x1763   :  { %v2316_v49 = vpop.f32.mrf.mxu0 }
0x177c   :  { %v9585_v50 = vpop.f32.mrf.mxu3 }
0x1784   :  { %v2252_v38 = vpop.f32.mrf.mxu3 }
0x1789   :  { %v2406_v0 = vpop.f32.mrf.mxu0  ;;  %v2429_v27 = vpop.f32.mrf.mxu1 }
0x178a   :  { %v2483_v19 = vmul.f32 0.35355338, %v2406_v0  ;;  %v2484_v13 = vmul.f32 0.35355338, %v2429_v27  ;;  %v9587_v20 = vpop.f32.mrf.mxu2 }
0x178c   :  { %v2383_v10 = vpop.f32.mrf.mxu3  ;;  %v2492_v5 = vadd.f32 %v2484_v13, %v9190_v60  ;;  %v2491_v3 = vadd.f32 %v2483_v19, %v9190_v60 }
0x178d   :  { %v2482_v12 = vmul.f32 0.35355338, %v2383_v10 }
0x178e   :  { %v2510_v28 = vsel %vm1292_vm4, %v2492_v5, -inf  ;;  %v2507_v31 = vsel %vm1292_vm4, %v2491_v3, -inf }
0x178f   :  { %2511 = vmax.xlane.f32.xlu1 %v2510_v28  ;;  %2508 = vmax.xlane.f32.xlu2 %v2507_v31  ;;  %v2490_v48 = vadd.f32 %v2482_v12, %v9190_v60 }
0x1791   :  { %v2408_v45 = vpop.f32.mrf.mxu0  ;;  %v2431_v36 = vpop.f32.mrf.mxu1  ;;  %v2504_v57 = vsel %vm1292_vm4, %v2490_v48, -inf }
0x1792   :  { %v2228_v15 = vpop.f32.mrf.mxu2  ;;  %2505 = vmax.xlane.f32.xlu0 %v2504_v57 }
0x1793   :  { %v9607_v15 = vpop.permute.xlu0 %2825 }
0x1794   :  { %v2385_v51 = vpop.f32.mrf.mxu3 }
0x1795   :  { %v9609_v51 = vpop.permute.xlu2 %2802 }
0x179a   :  { %v2360_v1 = vpop.f32.mrf.mxu2 }
0x179b   :  { %v2481_v59 = vmul.f32 0.35355338, %v2360_v1 }
0x179c   :  { %v2475_v49 = vpop.f32.mrf.mxu3 }
0x179d   :  { %v2486_v38 = vmul.f32 0.35355338, %v2475_v49  ;;  %v2489_v0 = vadd.f32 %v2481_v59, %v9190_v60 }
0x179f   :  { %v2501_v27 = vsel %vm1292_vm4, %v2489_v0, -inf  ;;  %v2494_v19 = vadd.f32 %v2486_v38, %v9190_v60 }
0x17a0   :  { %2502 = vmax.xlane.f32.xlu1 %v2501_v27 }
0x17a1   :  { %v2516_v13 = vsel %vm1292_vm4, %v2494_v19, -inf }
0x17a2   :  { %v2362_v10 = vpop.f32.mrf.mxu2  ;;  %2517 = vmax.xlane.f32.xlu2 %v2516_v13 }
0x17a4   :  { %v2477_v12 = vpop.f32.mrf.mxu3 }
0x17aa   :  { %v2452_v28 = vpop.f32.mrf.mxu2 }
0x17ab   :  { %v2485_v31 = vmul.f32 0.35355338, %v2452_v28 }
0x17ad   :  { %v2493_v45 = vadd.f32 %v2485_v31, %v9190_v60 }
0x17af   :  { %v2513_v36 = vsel %vm1292_vm4, %v2493_v45, -inf }
0x17b0   :  { %2514 = vmax.xlane.f32.xlu0 %v2513_v36 }
0x17b2   :  { %v2454_v57 = vpop.f32.mrf.mxu2 }
0x17b9   :  { %2848 = vrot.lane.b32.xlu1 %v9082_v4, %s8575_s7 }
0x17ba   :  { %2871 = vrot.lane.b32.xlu2 %v9098_v23, %s8575_s7 }
0x17c4   :  { %2800 = vrot.lane.b32.xlu0 %v9217_v42, %s8575_s7 }
0x17cc   :  { %v2500_v38 = vpop.xlane.xlu2 %2499 }
0x17cd   :  { %v2520_v27 = vsub.f32 %v2488_v52, %v2500_v38 }
0x17cf   :  { %v2529_v10 = vmul.f32 1.442695, %v2520_v27 }
0x17d4   :  { %v2497_v1 = vpop.xlane.xlu0 %2496 }
0x17d5   :  { %v2519_v59 = vsub.f32 %v2487_v40, %v2497_v1 }
0x17d7   :  { %v2527_v49 = vmul.f32 1.442695, %v2519_v59 }
0x17d9   :  { %7730 = vpow2.f32 %v2527_v49 }
0x17da   :  { %7732 = vpow2.f32 %v2529_v10 }
0x17df   :  { %v9611_v13 = vpop.eup %7730 }
0x17e0   :  { %v2543_v4 = vsel %vm1292_vm4, %v9611_v13, 0.0  ;;  %v9615_v23 = vpop.eup %7732 }
0x17e1   :  { %v2546_v42 = vsel %vm1292_vm4, %v9615_v23, 0.0 }
0x17e3   :  { %2544 = vadd.xlane.f32.xlu1 %v2543_v4 }
0x17ee   :  { %2547 = vadd.xlane.f32.xlu0 %v2546_v42 }
0x1802   :  { %v2512_v12 = vpop.xlane.xlu1 %2511  ;;  %v2509_v40 = vpop.xlane.xlu2 %2508 }
0x1803   :  { %v2524_v28 = vsub.f32 %v2492_v5, %v2512_v12  ;;  %v2523_v31 = vsub.f32 %v2491_v3, %v2509_v40 }
0x1805   :  { %v2537_v36 = vmul.f32 1.442695, %v2524_v28  ;;  %v2535_v52 = vmul.f32 1.442695, %v2523_v31  ;;  %v2506_v57 = vpop.xlane.xlu0 %2505 }
0x1806   :  { %v2522_v1 = vsub.f32 %v2490_v48, %v2506_v57 }
0x1807   :  { %7734 = vpow2.f32 %v2537_v36 }
0x1808   :  { %7736 = vpow2.f32 %v2535_v52  ;;  %v2533_v59 = vmul.f32 1.442695, %v2522_v1 }
0x180a   :  { %7738 = vpow2.f32 %v2533_v59 }
0x180d   :  { %v9619_v49 = vpop.eup %7734 }
0x180e   :  { %v9621_v38 = vpop.eup %7736  ;;  %v2558_v27 = vsel %vm1292_vm4, %v9619_v49, 0.0 }
0x180f   :  { %2559 = vadd.xlane.f32.xlu0 %v2558_v27  ;;  %v2555_v5 = vsel %vm1292_vm4, %v9621_v38, 0.0 }
0x1810   :  { %v9627_v3 = vpop.eup %7738  ;;  %2556 = vadd.xlane.f32.xlu2 %v2555_v5 }
0x1811   :  { %v2552_v48 = vsel %vm1292_vm4, %v9627_v3, 0.0 }
0x1812   :  { %2553 = vadd.xlane.f32.xlu1 %v2552_v48 }
0x1813   :  { %v2503_v10 = vpop.xlane.xlu1 %2502 }
0x1814   :  { %v2521_v4 = vsub.f32 %v2489_v0, %v2503_v10 }
0x1815   :  { %v2518_v42 = vpop.xlane.xlu2 %2517 }
0x1816   :  { %v2531_v12 = vmul.f32 1.442695, %v2521_v4  ;;  %v2526_v40 = vsub.f32 %v2494_v19, %v2518_v42 }
0x1818   :  { %7740 = vpow2.f32 %v2531_v12  ;;  %v2541_v28 = vmul.f32 1.442695, %v2526_v40 }
0x181a   :  { %7742 = vpow2.f32 %v2541_v28 }
0x181e   :  { %v9631_v31 = vpop.eup %7740 }
0x181f   :  { %v2549_v36 = vsel %vm1292_vm4, %v9631_v31, 0.0 }
0x1820   :  { %2550 = vadd.xlane.f32.xlu2 %v2549_v36  ;;  %v9637_v57 = vpop.eup %7742 }
0x1821   :  { %v2564_v19 = vsel %vm1292_vm4, %v9637_v57, 0.0 }
0x1823   :  { %2869 = vrot.lane.b32.xlu0 %v9112_v43, %s8575_s7  ;;  %v2515_v52 = vpop.xlane.xlu0 %2514 }
0x1824   :  { %v2525_v1 = vsub.f32 %v2493_v45, %v2515_v52 }
0x1826   :  { %v2539_v0 = vmul.f32 1.442695, %v2525_v1 }
0x1828   :  { %7744 = vpow2.f32 %v2539_v0  ;;  %2565 = vadd.xlane.f32.xlu2 %v2564_v19 }
0x182b   :  { %2940 = vrot.lane.b32.xlu0 %v9258_v58, %s8575_s7  ;;  %v2849_v43 = vpop.permute.xlu1 %2848 }
0x182e   :  { %v9643_v59 = vpop.eup %7744 }
0x182f   :  { %v2561_v27 = vsel %vm1292_vm4, %v9643_v59, 0.0 }
0x1830   :  { %2562 = vadd.xlane.f32.xlu1 %v2561_v27 }
0x1833   :  { %2915 = vrot.lane.b32.xlu0 %v9303_v30, %s8575_s7 }
0x1836   :  { %v2801_v30 = vpop.permute.xlu0 %2800 }
0x1840   :  { %2846 = vrot.lane.b32.xlu2 %v9090_v37, %s8575_s7 }
0x1848   :  { %2917 = vrot.lane.b32.xlu2 %v9329_v63, %s8575_s7 }
0x1849   :  { %2823 = vrot.lane.b32.xlu1 %v9212_v35, %s8575_s7 }
0x1850   :  { %2892 = vrot.lane.b32.xlu2 %v9337_v32, %s8575_s7 }
0x1851   :  { %2894 = vrot.lane.b32.xlu1 %v9267_v17, %s8575_s7  ;;  %v2808_v17 = vsel %vm1292_vm4, %v9609_v51, 0 }
0x1856   :  { %v2545_v58 = vpop.xlane.xlu1 %2544 }
0x1857   :  { %7746 = vrcp.f32 %v2545_v58 }
0x1858   :  { %2961 = vrot.lane.b32.xlu2 %v9273_v61, %s8575_s7 }
0x1859   :  { %2963 = vrot.lane.b32.xlu1 %v9279_v18, %s8575_s7 }
0x185d   :  { %v7747_v37 = vpop.eup %7746 }
0x185e   :  { %v2575_v63 = vmul.f32 %v7747_v37, %v9611_v13  ;;  %v2831_v13 = vsel %vm1292_vm4, %v9607_v15, 0 }
0x1860   :  { %v2583_v35 = vpack.c.bf16 %v2575_v63, %v2575_v63 }
0x1861   :  { %2938 = vrot.lane.b32.xlu1 %v9291_v33, %s8575_s7  ;;  %v2548_v32 = vpop.xlane.xlu0 %2547  ;;  %v2872_v33 = vpop.permute.xlu2 %2871 }
0x1862   :  { %7748 = vrcp.f32 %v2548_v32  ;;  %7272 = vmatmul.msk.bf16.vlgmr.msrb.gmra.mxu0 %vm1292_vm4, %v2583_v35  ;;  %v2877_v36 = vsel %vm1292_vm4, %v2872_v33, 0 }
0x1863   :  { %2817 = vmatpush.bf16.xpose.msrb.mxu0 %v2808_v17 }
0x1868   :  { %v7749_v61 = vpop.eup %7748 }
0x1869   :  { %v2576_v45 = vmul.f32 %v7749_v61, %v9615_v23  ;;  %3096 = vrot.lane.b32.xlu1 %v9315_v25, %s8575_s7 }
0x186b   :  { %v2584_v18 = vpack.c.bf16 %v2576_v45, %v2576_v45 }
0x186d   :  { %7273 = vmatmul.msk.bf16.vlgmr.msrb.gmra.mxu1 %vm1292_vm4, %v2584_v18 }
0x186e   :  { %2840 = vmatpush.bf16.xpose.msrb.mxu1 %v2831_v13 }
0x1882   :  { %v2560_v5 = vpop.xlane.xlu0 %2559 }
0x1883   :  { %7750 = vrcp.f32 %v2560_v5  ;;  %v2557_v51 = vpop.xlane.xlu2 %2556 }
0x1884   :  { %7752 = vrcp.f32 %v2557_v51 }
0x1885   :  { %v2554_v48 = vpop.xlane.xlu1 %2553 }
0x1886   :  { %7754 = vrcp.f32 %v2554_v48 }
0x1889   :  { %v7751_v10 = vpop.eup %7750 }
0x188a   :  { %v7753_v4 = vpop.eup %7752  ;;  %v2580_v23 = vmul.f32 %v7751_v10, %v9619_v49 }
0x188b   :  { %v2579_v25 = vmul.f32 %v7753_v4, %v9621_v38 }
0x188c   :  { %v7755_v42 = vpop.eup %7754  ;;  %v2588_v12 = vpack.c.bf16 %v2580_v23, %v2580_v23 }
0x188d   :  { %v2587_v40 = vpack.c.bf16 %v2579_v25, %v2579_v25  ;;  %v2578_v15 = vmul.f32 %v7755_v42, %v9627_v3  ;;  %v2854_v3 = vsel %vm1292_vm4, %v2849_v43, 0 }
0x188e   :  { %7277 = vmatmul.msk.bf16.vlgmr.msra.gmra.mxu1 %vm1292_vm4, %v2588_v12 }
0x188f   :  { %v2586_v28 = vpack.c.bf16 %v2578_v15, %v2578_v15  ;;  %7276 = vmatmul.msk.bf16.vlgmr.msra.gmra.mxu0 %vm1292_vm4, %v2587_v40 }
0x1891   :  { %7275 = vmatmul.msk.bf16.vlgmr.msrb.gmra.mxu3 %vm1292_vm4, %v2586_v28 }
0x1892   :  { %2886 = vmatpush.bf16.xpose.msrb.mxu3 %v2877_v36 }
0x1893   :  { %v2551_v52 = vpop.xlane.xlu2 %2550 }
0x1894   :  { %7756 = vrcp.f32 %v2551_v52 }
0x1895   :  { %v2870_v27 = vpop.permute.xlu0 %2869 }
0x189a   :  { %v7757_v49 = vpop.eup %7756 }
0x189b   :  { %v2577_v38 = vmul.f32 %v7757_v49, %v9631_v31  ;;  %v2566_v1 = vpop.xlane.xlu2 %2565 }
0x189c   :  { %7758 = vrcp.f32 %v2566_v1 }
0x189d   :  { %v2585_v0 = vpack.c.bf16 %v2577_v38, %v2577_v38  ;;  %v2941_v43 = vpop.permute.xlu0 %2940 }
0x189e   :  { %v2946_v45 = vsel %vm1292_vm4, %v2941_v43, 0 }
0x189f   :  { %7280 = vmatmul.msk.bf16.vlgmr.msrb.gmra.mxu0 %vm1292_vm4, %v2801_v30  ;;  %7274 = vmatmul.msk.bf16.vlgmr.msrb.gmra.mxu2 %vm1292_vm4, %v2585_v0 }
0x18a0   :  { %2863 = vmatpush.bf16.xpose.msrb.mxu2 %v2854_v3 }
0x18a2   :  { %v7759_v19 = vpop.eup %7758 }
0x18a3   :  { %v2582_v58 = vmul.f32 %v7759_v19, %v9637_v57  ;;  %v2563_v37 = vpop.xlane.xlu1 %2562  ;;  %v2847_v63 = vpop.permute.xlu2 %2846 }
0x18a4   :  { %7760 = vrcp.f32 %v2563_v37 }
0x18a5   :  { %v2590_v35 = vpack.c.bf16 %v2582_v58, %v2582_v58  ;;  %v2916_v33 = vpop.permute.xlu0 %2915 }
0x18a7   :  { %7279 = vmatmul.msk.bf16.vlgmr.msra.gmra.mxu3 %vm1292_vm4, %v2590_v35 }
0x18aa   :  { %v7761_v31 = vpop.eup %7760 }
0x18ab   :  { %v2581_v32 = vmul.f32 %v7761_v31, %v9643_v59  ;;  %v2918_v17 = vpop.permute.xlu2 %2917 }
0x18ac   :  { %v2923_v30 = vsel %vm1292_vm4, %v2918_v17, 0 }
0x18ad   :  { %v2589_v61 = vpack.c.bf16 %v2581_v32, %v2581_v32  ;;  %2932 = vmatpush.bf16.xpose.msra.mxu1 %v2923_v30 }
0x18af   :  { %7278 = vmatmul.msk.bf16.vlgmr.msra.gmra.mxu2 %vm1292_vm4, %v2589_v61 }
0x18b0   :  { %2955 = vmatpush.bf16.xpose.msra.mxu2 %v2946_v45 }
0x18b3   :  { %v2893_v13 = vpop.permute.xlu2 %2892 }
0x18b7   :  { %7283 = vmatmul.msk.bf16.vlgmr.msrb.gmra.mxu3 %vm1292_vm4, %v2870_v27 }
0x18bb   :  { %v2824_v57 = vpop.permute.xlu1 %2823  ;;  %v2962_v48 = vpop.permute.xlu2 %2961 }
0x18bc   :  { %7281 = vmatmul.msk.bf16.vlgmr.msrb.gmra.mxu1 %vm1292_vm4, %v2824_v57 }
0x18bf   :  { %7282 = vmatmul.msk.bf16.vlgmr.msrb.gmra.mxu2 %vm1292_vm4, %v2847_v63 }
0x18c3   :  { %v2895_v18 = vpop.permute.xlu1 %2894 }
0x18c4   :  { %v2900_v59 = vsel %vm1292_vm4, %v2895_v18, 0 }
0x18c5   :  { %2909 = vmatpush.bf16.xpose.msra.mxu0 %v2900_v59 }
0x18cb   :  { %v2964_v5 = vpop.permute.xlu1 %2963 }
0x18cc   :  { %v2969_v51 = vsel %vm1292_vm4, %v2964_v5, 0  ;;  %7284 = vmatmul.msk.bf16.vlgmr.msra.gmra.mxu0 %vm1292_vm4, %v2893_v13  ;;  %7285 = vmatmul.msk.bf16.vlgmr.msra.gmra.mxu1 %vm1292_vm4, %v2916_v33 }
0x18cd   :  { %2978 = vmatpush.bf16.xpose.msra.mxu3 %v2969_v51 }
0x18d3   :  { %v2939_v10 = vpop.permute.xlu1 %2938 }
0x18d4   :  { %7286 = vmatmul.msk.bf16.vlgmr.msra.gmra.mxu2 %vm1292_vm4, %v2939_v10  ;;  %7287 = vmatmul.msk.bf16.vlgmr.msra.gmra.mxu3 %vm1292_vm4, %v2962_v48 }
0x18db   :  { %v3097_v4 = vpop.permute.xlu1 %3096 }
0x18dc   :  { %v3102_v23 = vsel %vm1560_vm5, %v3097_v4, 0 }
0x18dd   :  { %3111 = vmatpush.bf16.msrb.mxu0 %v3102_v23 }
0x18df   :  { %v9702_v25 = vpop.f32.mrf.mxu0 }
0x18e7   :  { %v2610_v42 = vpop.f32.mrf.mxu0 }
0x18ea   :  { %v9704_v12 = vpop.f32.mrf.mxu1 }
0x18f2   :  { %v2631_v40 = vpop.f32.mrf.mxu1 }
0x190b   :  { %v9706_v15 = vpop.f32.mrf.mxu1 }
0x190c   :  { %v9708_v28 = vpop.f32.mrf.mxu0 }
0x1913   :  { %v2715_v36 = vpop.f32.mrf.mxu1 }
0x1914   :  { %v2694_v52 = vpop.f32.mrf.mxu0  ;;  %v9710_v49 = vpop.f32.mrf.mxu3 }
0x191c   :  { %v2819_v38 = vpop.f32.mrf.mxu0  ;;  %v2673_v1 = vpop.f32.mrf.mxu3 }
0x191d   :  { %v2984_v0 = vmul.f32 0.35355338, %v2819_v38 }
0x191f   :  { %v2992_v3 = vadd.f32 %v2984_v0, %v9190_v60 }
0x1921   :  { %v3000_v19 = vsel %vm1292_vm4, %v2992_v3, -inf }
0x1922   :  { %3001 = vmax.xlane.f32.xlu0 %v3000_v19  ;;  %v9714_v27 = vpop.f32.mrf.mxu2 }
0x1924   :  { %v2821_v58 = vpop.f32.mrf.mxu0 }
0x192a   :  { %v2652_v37 = vpop.f32.mrf.mxu2  ;;  %v9716_v63 = vpop.f32.mrf.mxu3 }
0x1932   :  { %v9718_v35 = vpop.f32.mrf.mxu2  ;;  %v2757_v31 = vpop.f32.mrf.mxu3 }
0x1936   :  { %3138 = vrot.lane.b32.xlu0 %v9283_v53, %s8575_s7 }
0x1939   :  { %v2842_v32 = vpop.f32.mrf.mxu1 }
0x193a   :  { %v2985_v17 = vmul.f32 0.35355338, %v2842_v32  ;;  %v2736_v43 = vpop.f32.mrf.mxu2  ;;  %v2888_v30 = vpop.f32.mrf.mxu3 }
0x193b   :  { %v2987_v1 = vmul.f32 0.35355338, %v2888_v30 }
0x193c   :  { %v2993_v61 = vadd.f32 %v2985_v17, %v9190_v60 }
0x193d   :  { %v2995_v31 = vadd.f32 %v2987_v1, %v9190_v60 }
0x193e   :  { %v3003_v45 = vsel %vm1292_vm4, %v2993_v61, -inf }
0x193f   :  { %3004 = vmax.xlane.f32.xlu1 %v3003_v45 }
0x1941   :  { %v2844_v57 = vpop.f32.mrf.mxu1 }
0x1942   :  { %v2865_v18 = vpop.f32.mrf.mxu2  ;;  %v2890_v59 = vpop.f32.mrf.mxu3  ;;  %v3009_v57 = vsel %vm1292_vm4, %v2995_v31, -inf }
0x1943   :  { %v2986_v4 = vmul.f32 0.35355338, %v2865_v18 }
0x1945   :  { %v2994_v52 = vadd.f32 %v2986_v4, %v9190_v60 }
0x1947   :  { %v3006_v38 = vsel %vm1292_vm4, %v2994_v52, -inf }
0x1949   :  { %v2911_v13 = vpop.f32.mrf.mxu0  ;;  %v2934_v33 = vpop.f32.mrf.mxu1 }
0x194a   :  { %v2988_v5 = vmul.f32 0.35355338, %v2911_v13  ;;  %v2989_v51 = vmul.f32 0.35355338, %v2934_v33  ;;  %v2867_v48 = vpop.f32.mrf.mxu2 }
0x194c   :  { %v2996_v10 = vadd.f32 %v2988_v5, %v9190_v60  ;;  %v2997_v53 = vadd.f32 %v2989_v51, %v9190_v60 }
0x194e   :  { %v3015_v23 = vsel %vm1292_vm4, %v2997_v53, -inf  ;;  %v3012_v42 = vsel %vm1292_vm4, %v2996_v10, -inf }
0x194f   :  { %3016 = vmax.xlane.f32.xlu2 %v3015_v23  ;;  %3013 = vmax.xlane.f32.xlu1 %v3012_v42 }
0x1951   :  { %v2913_v40 = vpop.f32.mrf.mxu0  ;;  %v2936_v36 = vpop.f32.mrf.mxu1 }
0x1957   :  { %v2957_v0 = vpop.f32.mrf.mxu2  ;;  %3007 = vmax.xlane.f32.xlu2 %v3006_v38  ;;  %v2980_v19 = vpop.f32.mrf.mxu3 }
0x1958   :  { %v2991_v58 = vmul.f32 0.35355338, %v2980_v19  ;;  %v2990_v17 = vmul.f32 0.35355338, %v2957_v0 }
0x195a   :  { %v2999_v37 = vadd.f32 %v2991_v58, %v9190_v60  ;;  %v9735_v18 = vadd.f32 %v2990_v17, %v9190_v60 }
0x195c   :  { %v3021_v32 = vsel %vm1292_vm4, %v2999_v37, -inf  ;;  %v3018_v30 = vsel %vm1292_vm4, %v9735_v18, -inf }
0x195d   :  { %3022 = vmax.xlane.f32.xlu1 %v3021_v32 }
0x195f   :  { %v2959_v43 = vpop.f32.mrf.mxu2  ;;  %v2982_v45 = vpop.f32.mrf.mxu3 }
0x1960   :  { %3010 = vmax.xlane.f32.xlu0 %v3009_v57 }
0x1968   :  { %3019 = vmax.xlane.f32.xlu0 %v3018_v30 }
0x196f   :  { %3117 = vrot.lane.b32.xlu2 %v9297_v14, %s8575_s7 }
0x1976   :  { %3159 = vrot.lane.b32.xlu1 %v9351_v44, %s8575_s7 }
0x197c   :  { %3180 = vrot.lane.b32.xlu0 %v9357_v46, %s8575_s7 }
0x1995   :  { %v3002_v59 = vpop.xlane.xlu0 %3001 }
0x1996   :  { %v3024_v13 = vsub.f32 %v2992_v3, %v3002_v59 }
0x1998   :  { %v3032_v33 = vmul.f32 1.442695, %v3024_v13 }
0x199a   :  { %7762 = vpow2.f32 %v3032_v33 }
0x19a0   :  { %v9745_v5 = vpop.eup %7762 }
0x19a1   :  { %v3048_v51 = vsel %vm1292_vm4, %v9745_v5, 0.0 }
0x19a2   :  { %3049 = vadd.xlane.f32.xlu2 %v3048_v51 }
0x19a8   :  { %v3139_v48 = vpop.permute.xlu0 %3138 }
0x19a9   :  { %v3144_v4 = vsel %vm1560_vm5, %v3139_v48, 0 }
0x19aa   :  { %3153 = vmatpush.bf16.msrb.mxu2 %v3144_v4 }
0x19b2   :  { %v3005_v14 = vpop.xlane.xlu1 %3004 }
0x19b3   :  { %v3025_v23 = vsub.f32 %v2993_v61, %v3005_v14 }
0x19b5   :  { %v3034_v44 = vmul.f32 1.442695, %v3025_v23 }
0x19b7   :  { %7764 = vpow2.f32 %v3034_v44 }
0x19bd   :  { %v9750_v42 = vpop.eup %7764 }
0x19be   :  { %v3051_v46 = vsel %vm1292_vm4, %v9750_v42, 0.0 }
0x19bf   :  { %3052 = vadd.xlane.f32.xlu0 %v3051_v46 }
0x19c2   :  { %v3017_v3 = vpop.xlane.xlu2 %3016  ;;  %v3014_v40 = vpop.xlane.xlu1 %3013 }
0x19c3   :  { %v3029_v36 = vsub.f32 %v2997_v53, %v3017_v3  ;;  %v3028_v38 = vsub.f32 %v2996_v10, %v3014_v40 }
0x19c5   :  { %v3042_v1 = vmul.f32 1.442695, %v3029_v36  ;;  %v3040_v0 = vmul.f32 1.442695, %v3028_v38 }
0x19c7   :  { %7766 = vpow2.f32 %v3042_v1 }
0x19c8   :  { %7768 = vpow2.f32 %v3040_v0 }
0x19ca   :  { %v3008_v19 = vpop.xlane.xlu2 %3007 }
0x19cb   :  { %v3026_v58 = vsub.f32 %v2994_v52, %v3008_v19 }
0x19cd   :  { %v9754_v32 = vpop.eup %7766  ;;  %v3036_v61 = vmul.f32 1.442695, %v3026_v58 }
0x19ce   :  { %v9756_v17 = vpop.eup %7768  ;;  %v3063_v43 = vsel %vm1292_vm4, %v9754_v32, 0.0 }
0x19cf   :  { %7770 = vpow2.f32 %v3036_v61  ;;  %3064 = vadd.xlane.f32.xlu1 %v3063_v43  ;;  %v3060_v53 = vsel %vm1292_vm4, %v9756_v17, 0.0 }
0x19d0   :  { %3061 = vadd.xlane.f32.xlu2 %v3060_v53  ;;  %v3023_v10 = vpop.xlane.xlu1 %3022 }
0x19d1   :  { %v3031_v45 = vsub.f32 %v2999_v37, %v3023_v10 }
0x19d2   :  { %v3118_v57 = vpop.permute.xlu2 %3117 }
0x19d3   :  { %v3046_v30 = vmul.f32 1.442695, %v3031_v45  ;;  %v3123_v52 = vsel %vm1560_vm5, %v3118_v57, 0  ;;  %v3011_v59 = vpop.xlane.xlu0 %3010 }
0x19d4   :  { %v3027_v13 = vsub.f32 %v2995_v31, %v3011_v59  ;;  %3132 = vmatpush.bf16.msrb.mxu1 %v3123_v52 }
0x19d5   :  { %v7771_v33 = vpop.eup %7770  ;;  %7772 = vpow2.f32 %v3046_v30 }
0x19d6   :  { %v3038_v51 = vmul.f32 1.442695, %v3027_v13  ;;  %v3054_v48 = vsel %vm1292_vm4, %v7771_v33, 0.0 }
0x19d7   :  { %3055 = vadd.xlane.f32.xlu0 %v3054_v48 }
0x19d8   :  { %7774 = vpow2.f32 %v3038_v51 }
0x19db   :  { %v9764_v4 = vpop.eup %7772  ;;  %v3020_v44 = vpop.xlane.xlu0 %3019 }
0x19dc   :  { %v3069_v14 = vsel %vm1292_vm4, %v9764_v4, 0.0 }
0x19dd   :  { %3070 = vadd.xlane.f32.xlu2 %v3069_v14 }
0x19de   :  { %v7775_v37 = vpop.eup %7774 }
0x19df   :  { %v3057_v23 = vsel %vm1292_vm4, %v7775_v37, 0.0 }
0x19e0   :  { %3058 = vadd.xlane.f32.xlu0 %v3057_v23 }
0x19e8   :  { %3222 = vrot.lane.b32.xlu1 %v9307_v54, %s8575_s7  ;;  %v3160_v31 = vpop.permute.xlu1 %3159  ;;  %v3030_v54 = vsub.f32 %v9735_v18, %v3020_v44 }
0x19e9   :  { %v3165_v46 = vsel %vm1560_vm5, %v3160_v31, 0 }
0x19ea   :  { %3174 = vmatpush.bf16.msrb.mxu3 %v3165_v46  ;;  %v3044_v36 = vmul.f32 1.442695, %v3030_v54 }
0x19ec   :  { %7776 = vpow2.f32 %v3044_v36 }
0x19ee   :  { %v3181_v3 = vpop.permute.xlu0 %3180 }
0x19ef   :  { %v3186_v40 = vsel %vm1560_vm5, %v3181_v3, 0 }
0x19f0   :  { %3195 = vmatpush.bf16.msra.mxu0 %v3186_v40  ;;  %2262 = vrot.lane.b32.xlu1 %v9573_v8, %s8576_s5 }
0x19f2   :  { %v9784_v1 = vpop.eup %7776 }
0x19f4   :  { %3201 = vrot.lane.b32.xlu0 %v9319_v29, %s8575_s7 }
0x19f5   :  { %3243 = vrot.lane.b32.xlu2 %v9325_v16, %s8575_s7  ;;  %v3066_v16 = vsel %vm1292_vm4, %v9784_v1, 0.0 }
0x19f8   :  { %2769 = vrot.lane.b32.xlu1 %v9704_v12, %s8554_s29 }
0x19fd   :  { %2767 = vrot.lane.b32.xlu2 %v9702_v25, %s8554_s29 }
0x1a15   :  { %v3050_v38 = vpop.xlane.xlu2 %3049 }
0x1a16   :  { %7778 = vrcp.f32 %v3050_v38 }
0x1a1c   :  { %v7779_v8 = vpop.eup %7778 }
0x1a1d   :  { %v3080_v29 = vmul.f32 %v7779_v8, %v9745_v5 }
0x1a1e   :  { %3067 = vadd.xlane.f32.xlu0 %v3066_v16 }
0x1a1f   :  { %v3088_v0 = vpack.c.bf16 %v3080_v29, %v3080_v29 }
0x1a21   :  { %7288 = vmatmul.msk.bf16.vlgmr.msrb.gmra.mxu0 %vm1292_vm4, %v3088_v0 }
0x1a32   :  { %2264 = vrot.lane.b32.xlu0 %v9551_v62, %s8576_s5  ;;  %v3053_v25 = vpop.xlane.xlu0 %3052 }
0x1a33   :  { %7780 = vrcp.f32 %v3053_v25 }
0x1a39   :  { %v7781_v12 = vpop.eup %7780 }
0x1a3a   :  { %v3081_v18 = vmul.f32 %v7781_v12, %v9750_v42  ;;  %2268 = vrot.lane.b32.xlu0 %v9575_v41, %s8576_s5 }
0x1a3c   :  { %v3089_v19 = vpack.c.bf16 %v3081_v18, %v3081_v18 }
0x1a3e   :  { %7289 = vmatmul.msk.bf16.vlgmr.msrb.gmra.mxu1 %vm1292_vm4, %v3089_v19 }
0x1a42   :  { %v3065_v45 = vpop.xlane.xlu1 %3064 }
0x1a43   :  { %v3062_v5 = vpop.xlane.xlu2 %3061 }
0x1a44   :  { %7782 = vrcp.f32 %v3062_v5 }
0x1a4a   :  { %v7783_v58 = vpop.eup %7782  ;;  %v3056_v61 = vpop.xlane.xlu0 %3055 }
0x1a4b   :  { %v3084_v43 = vmul.f32 %v7783_v58, %v9756_v17  ;;  %7784 = vrcp.f32 %v3056_v61  ;;  %v7520_v61 = vld [vmem:[#allocation19 + $0x8] sm:$0xff] }
0x1a4c   :  { %3355 = vmatpush.bf16.msrb.mxu0 %v7520_v61 }
0x1a4d   :  { %v3092_v53 = vpack.c.bf16 %v3084_v43, %v3084_v43  ;;  %v7519_v43 = vld [vmem:[#allocation19] sm:$0xff] }
0x1a4f   :  { %7292 = vmatmul.msk.bf16.vlgmr.msra.gmra.mxu0 %vm1292_vm4, %v3092_v53 }
0x1a50   :  { %v3071_v62 = vpop.xlane.xlu2 %3070  ;;  %3356 = vmatpush.bf16.msrb.mxu0 %v7519_v43  ;;  %v8578_v43 = vmov 32.0  }
0x1a51   :  { %v7785_v10 = vpop.eup %7784 }
0x1a52   :  { %v3082_v42 = vmul.f32 %v7785_v10, %v7771_v33 }
0x1a53   :  { %v3059_v57 = vpop.xlane.xlu0 %3058 }
0x1a54   :  { %v3090_v30 = vpack.c.bf16 %v3082_v42, %v3082_v42  ;;  %7786 = vrcp.f32 %v3059_v57 }
0x1a55   :  { %7788 = vrcp.f32 %v3065_v45 }
0x1a56   :  { %7290 = vmatmul.msk.bf16.vlgmr.msrb.gmra.mxu2 %vm1292_vm4, %v3090_v30  ;;  %7790 = vrcp.f32 %v3071_v62 }
0x1a58   :  { %v3244_v41 = vpop.permute.xlu2 %3243 }
0x1a59   :  { %v3249_v52 = vsel %vm1560_vm5, %v3244_v41, 0 }
0x1a5a   :  { %v7787_v59 = vpop.eup %7786  ;;  %3258 = vmatpush.bf16.msra.mxu3 %v3249_v52  ;;  %v3223_v13 = vpop.permute.xlu1 %3222 }
0x1a5b   :  { %v3083_v17 = vmul.f32 %v7787_v59, %v7775_v37  ;;  %v3228_v51 = vsel %vm1560_vm5, %v3223_v13, 0  ;;  %v7789_v33 = vpop.eup %7788 }
0x1a5c   :  { %3237 = vmatpush.bf16.msra.mxu2 %v3228_v51  ;;  %v3085_v44 = vmul.f32 %v7789_v33, %v9754_v32  ;;  %v7791_v37 = vpop.eup %7790 }
0x1a5d   :  { %v3091_v48 = vpack.c.bf16 %v3083_v17, %v3083_v17  ;;  %v3087_v40 = vmul.f32 %v7791_v37, %v9764_v4 }
0x1a5e   :  { %v3093_v3 = vpack.c.bf16 %v3085_v44, %v3085_v44 }
0x1a5f   :  { %7291 = vmatmul.msk.bf16.vlgmr.msrb.gmra.mxu3 %vm1292_vm4, %v3091_v48  ;;  %v3095_v54 = vpack.c.bf16 %v3087_v40, %v3087_v40 }
0x1a60   :  { %v2768_v23 = vpop.permute.xlu2 %2767 }
0x1a62   :  { %v2263_v14 = vpop.permute.xlu1 %2262 }
0x1a63   :  { %2287 = vst.msk [vmem:[#allocation3] sm:$0xff] %vm2286_vm7, %v2263_v14 }
0x1a64   :  { %2792 = vst.msk [vmem:[#allocation3] sm:$0xff] %vm2791_vm8, %v2768_v23 }
0x1a66   :  { %v3202_v31 = vpop.permute.xlu0 %3201 }
0x1a67   :  { %v3207_v46 = vsel %vm1560_vm5, %v3202_v31, 0 }
0x1a68   :  { %3216 = vmatpush.bf16.msra.mxu1 %v3207_v46 }
0x1a6a   :  { %v2770_v0 = vpop.permute.xlu1 %2769 }
0x1a6b   :  { %7293 = vmatmul.msk.bf16.vlgmr.msra.gmra.mxu1 %vm1292_vm4, %v3093_v3 }
0x1a6f   :  { %7295 = vmatmul.msk.bf16.vlgmr.msra.gmra.mxu3 %vm1292_vm4, %v3095_v54 }
0x1a91   :  { %v3068_v36 = vpop.xlane.xlu0 %3067 }
0x1a92   :  { %7792 = vrcp.f32 %v3068_v36 }
0x1a93   :  { %7794 = vrcp.f32 %v8578_v43 }
0x1a98   :  { %v7793_v38 = vpop.eup %7792 }
0x1a99   :  { %v3086_v8 = vmul.f32 %v7793_v38, %v9784_v1 }
0x1a9b   :  { %v3094_v29 = vpack.c.bf16 %v3086_v8, %v3086_v8 }
0x1a9d   :  { %7294 = vmatmul.msk.bf16.vlgmr.msra.gmra.mxu2 %vm1292_vm4, %v3094_v29 }
0x1a9e   :  { %v3113_v32 = vpop.f32.mrf.mxu0 }
0x1a9f   :  { %3272 = vrot.lane.b32.xlu2 %v3113_v32, %s8577_s6  ;;  %v7584_v32 = vld [vmem:[#allocation21] ss:$0 sm:$0xff] }
0x1aa4   :  { %v2265_v16 = vpop.permute.xlu0 %2264 }
0x1aa5   :  { %2288 = vst.msk [vmem:[#allocation3 + $0x8] sm:$0xff] %vm2286_vm7, %v2265_v16 }
0x1aa6   :  { %v3115_v4 = vpop.f32.mrf.mxu0  ;;  %2793 = vst.msk [vmem:[#allocation3 + $0x8] sm:$0xff] %vm2791_vm8, %v2770_v0 }
0x1aa7   :  { %2266 = vrot.lane.b32.xlu2 %v9567_v9, %s8576_s5 }
0x1aac   :  { %v2269_v25 = vpop.permute.xlu0 %2268 }
0x1aad   :  { %2290 = vst.msk [vmem:[#allocation3 + $0x18] sm:$0xff] %vm2286_vm7, %v2269_v25 }
0x1aaf   :  { %2773 = vrot.lane.b32.xlu2 %v9710_v49, %s8554_s29 }
0x1ab7   :  { %2270 = vrot.lane.b32.xlu2 %v9579_v11, %s8576_s5 }
0x1abb   :  { %v3134_v1 = vpop.f32.mrf.mxu1 }
0x1abc   :  { %3274 = vrot.lane.b32.xlu1 %v3134_v1, %s8577_s6 }
0x1abf   :  { %2777 = vrot.lane.b32.xlu2 %v9706_v15, %s8554_s29 }
0x1ac3   :  { %v3136_v12 = vpop.f32.mrf.mxu1 }
0x1ac4   :  { %2771 = vrot.lane.b32.xlu1 %v9714_v27, %s8554_s29 }
0x1ac7   :  { %2274 = vrot.lane.b32.xlu2 %v9587_v20, %s8576_s5 }
0x1acc   :  { %v3197_v9 = vpop.f32.mrf.mxu0 }
0x1acf   :  { %2781 = vrot.lane.b32.xlu2 %v9716_v63, %s8554_s29 }
0x1ad4   :  { %v3199_v49 = vpop.f32.mrf.mxu0 }
0x1ad9   :  { %v3155_v18 = vpop.f32.mrf.mxu2 }
0x1ada   :  { %3276 = vrot.lane.b32.xlu0 %v3155_v18, %s8577_s6 }
0x1ae1   :  { %v3157_v11 = vpop.f32.mrf.mxu2 }
0x1ae2   :  { %v3176_v19 = vpop.f32.mrf.mxu3  ;;  %2272 = vrot.lane.b32.xlu0 %v9577_v21, %s8576_s5 }
0x1ae3   :  { %3278 = vrot.lane.b32.xlu1 %v3176_v19, %s8577_s6 }
0x1ae8   :  { %v3218_v15 = vpop.f32.mrf.mxu1 }
0x1aea   :  { %v3178_v27 = vpop.f32.mrf.mxu3  ;;  %3280 = vrot.lane.b32.xlu0 %v3197_v9, %s8577_s6 }
0x1aeb   :  { %2775 = vrot.lane.b32.xlu1 %v9708_v28, %s8554_s29 }
0x1af0   :  { %v3220_v20 = vpop.f32.mrf.mxu1 }
0x1af2   :  { %v3260_v63 = vpop.f32.mrf.mxu3  ;;  %2276 = vrot.lane.b32.xlu0 %v9585_v50, %s8576_s5 }
0x1af3   :  { %3282 = vrot.lane.b32.xlu1 %v3218_v15, %s8577_s6 }
0x1af9   :  { %v3273_v5 = vpop.permute.xlu2 %3272 }
0x1afa   :  { %3297 = vst.msk [vmem:[#allocation3] sm:$0xff] %vm3296_vm9, %v3273_v5  ;;  %v3262_v21 = vpop.f32.mrf.mxu3 }
0x1afb   :  { %2779 = vrot.lane.b32.xlu1 %v9718_v35, %s8554_s29 }
0x1b01   :  { %v2267_v58 = vpop.permute.xlu2 %2266  ;;  %v3305_v57 = vld [vmem:[#allocation3] sm:$0xff] }
0x1b02   :  { %2289 = vst.msk [vmem:[#allocation3 + $0x10] sm:$0xff] %vm2286_vm7, %v2267_v58 }
0x1b03   :  { %3286 = vrot.lane.b32.xlu1 %v3260_v63, %s8577_s6 }
0x1b09   :  { %v2774_v28 = vpop.permute.xlu2 %2773 }
0x1b0a   :  { %2795 = vst.msk [vmem:[#allocation3 + $0x18] sm:$0xff] %vm2791_vm8, %v2774_v28 }
0x1b11   :  { %v2271_v50 = vpop.permute.xlu2 %2270 }
0x1b12   :  { %2291 = vst.msk [vmem:[#allocation3 + $0x20] sm:$0xff] %vm2286_vm7, %v2271_v50 }
0x1b19   :  { %v2778_v53 = vpop.permute.xlu2 %2777 }
0x1b20   :  { %v3239_v62 = vpop.f32.mrf.mxu2 }
0x1b21   :  { %v2275_v10 = vpop.permute.xlu2 %2274  ;;  %3284 = vrot.lane.b32.xlu0 %v3239_v62, %s8577_s6 }
0x1b22   :  { %2293 = vst.msk [vmem:[#allocation3 + $0x30] sm:$0xff] %vm2286_vm7, %v2275_v10 }
0x1b28   :  { %v3241_v35 = vpop.f32.mrf.mxu2 }
0x1b29   :  { %v2782_v37 = vpop.permute.xlu2 %2781 }
0x1b2e   :  { %v3275_v45 = vpop.permute.xlu1 %3274 }
0x1b2f   :  { %3298 = vst.msk [vmem:[#allocation3 + $0x8] sm:$0xff] %vm3296_vm9, %v3275_v45 }
0x1b36   :  { %v2772_v42 = vpop.permute.xlu1 %2771  ;;  %v3306_v30 = vld [vmem:[#allocation3 + $0x8] sm:$0xff] }
0x1b37   :  { %2794 = vst.msk [vmem:[#allocation3 + $0x10] sm:$0xff] %vm2791_vm8, %v2772_v42  ;;  %v3313_v41 = vpack.c.bf16 %v3306_v30, %v3305_v57 }
0x1b39   :  { %7304 = vmatmul.msk.bf16.vlgmr.msrb.gmra.mxu0 %vm377_vm0, %v3313_v41 }
0x1b4c   :  { %v3277_v52 = vpop.permute.xlu0 %3276 }
0x1b4d   :  { %3299 = vst.msk [vmem:[#allocation3 + $0x10] sm:$0xff] %vm3296_vm9, %v3277_v52 }
0x1b54   :  { %v2273_v59 = vpop.permute.xlu0 %2272  ;;  %v3307_v48 = vld [vmem:[#allocation3 + $0x10] sm:$0xff] }
0x1b55   :  { %2292 = vst.msk [vmem:[#allocation3 + $0x28] sm:$0xff] %vm2286_vm7, %v2273_v59  ;;  %v3279_v13 = vpop.permute.xlu1 %3278 }
0x1b56   :  { %2797 = vst.msk [vmem:[#allocation3 + $0x28] sm:$0xff] %vm2791_vm8, %v2778_v53 }
0x1b57   :  { %3300 = vst.msk [vmem:[#allocation3 + $0x18] sm:$0xff] %vm3296_vm9, %v3279_v13 }
0x1b5c   :  { %v3281_v17 = vpop.permute.xlu0 %3280 }
0x1b5d   :  { %v2776_v51 = vpop.permute.xlu1 %2775 }
0x1b5e   :  { %2796 = vst.msk [vmem:[#allocation3 + $0x20] sm:$0xff] %vm2791_vm8, %v2776_v51  ;;  %v3308_v33 = vld [vmem:[#allocation3 + $0x18] sm:$0xff] }
0x1b5f   :  { %3301 = vst.msk [vmem:[#allocation3 + $0x20] sm:$0xff] %vm3296_vm9, %v3281_v17  ;;  %v3314_v14 = vpack.c.bf16 %v3308_v33, %v3307_v48 }
0x1b61   :  { %7305 = vmatmul.msk.bf16.gmra.mxu0 %vm377_vm0, %v3314_v14 }
0x1b64   :  { %v2277_v23 = vpop.permute.xlu0 %2276 }
0x1b65   :  { %v3283_v44 = vpop.permute.xlu1 %3282  ;;  %2294 = vst.msk [vmem:[#allocation3 + $0x38] sm:$0xff] %vm2286_vm7, %v2277_v23 }
0x1b66   :  { %3302 = vst.msk [vmem:[#allocation3 + $0x28] sm:$0xff] %vm3296_vm9, %v3283_v44  ;;  %v3309_v46 = vld [vmem:[#allocation3 + $0x20] sm:$0xff] }
0x1b67   :  { %2799 = vst.msk [vmem:[#allocation3 + $0x38] sm:$0xff] %vm2791_vm8, %v2782_v37 }
0x1b6d   :  { %v2780_v31 = vpop.permute.xlu1 %2779  ;;  %v3310_v3 = vld [vmem:[#allocation3 + $0x28] sm:$0xff] }
0x1b6e   :  { %2798 = vst.msk [vmem:[#allocation3 + $0x30] sm:$0xff] %vm2791_vm8, %v2780_v31  ;;  %v3315_v40 = vpack.c.bf16 %v3310_v3, %v3309_v46 }
0x1b71   :  { %7306 = vmatmul.msk.bf16.gmra.mxu0 %vm377_vm0, %v3315_v40 }
0x1b75   :  { %v3287_v54 = vpop.permute.xlu1 %3286 }
0x1b76   :  { %3304 = vst.msk [vmem:[#allocation3 + $0x38] sm:$0xff] %vm3296_vm9, %v3287_v54 }
0x1b7d   :  { %v3312_v8 = vld [vmem:[#allocation3 + $0x38] sm:$0xff] }
0x1b93   :  { %v3285_v36 = vpop.permute.xlu0 %3284 }
0x1b94   :  { %3303 = vst.msk [vmem:[#allocation3 + $0x30] sm:$0xff] %vm3296_vm9, %v3285_v36 }
0x1b9b   :  { %v3311_v38 = vld [vmem:[#allocation3 + $0x30] sm:$0xff] }
0x1b9c   :  { %v3316_v29 = vpack.c.bf16 %v3312_v8, %v3311_v38 }
0x1b9e   :  { %7307 = vmatmul.msk.bf16.gmra.mxu0 %vm377_vm0, %v3316_v29 }
0x1bb6   :  { %v3358_v16 = vpop.f32.mrf.mxu0 }
0x1bb7   :  { %v3359_v0 = vadd.f32 %v7584_v32, %v3358_v16 }
0x1bb9   :  { %v3378_v4 = vadd.f32 %v3359_v0, %v8995_v55 }
0x1bbb   :  { %v3388_v25 = vsel %vm377_vm0, %v3378_v4, 0.0 }
0x1bbc   :  { %3389 = vadd.xlane.f32.xlu2 %v3388_v25 }
0x1bbe   :  { %v3360_v1 = vpop.f32.mrf.mxu0 }
0x1bbf   :  { %v3361_v12 = vadd.f32 %v7584_v32, %v3360_v1 }
0x1bc1   :  { %v3379_v9 = vadd.f32 %v3361_v12, %v8998_v56 }
0x1bc3   :  { %v3391_v49 = vsel %vm377_vm0, %v3379_v9, 0.0 }
0x1bc4   :  { %3392 = vadd.xlane.f32.xlu0 %v3391_v49 }
0x1bde   :  { %v3363_v18 = vpop.f32.mrf.mxu0 }
0x1bdf   :  { %v3364_v11 = vadd.f32 %v7584_v32, %v3363_v18 }
0x1be1   :  { %v3380_v19 = vadd.f32 %v3364_v11, %v9014_v7 }
0x1be3   :  { %v3394_v15 = vsel %vm377_vm0, %v3380_v19, 0.0 }
0x1be4   :  { %3395 = vadd.xlane.f32.xlu1 %v3394_v15 }
0x1be6   :  { %v3365_v27 = vpop.f32.mrf.mxu0 }
0x1be7   :  { %v3366_v20 = vadd.f32 %v7584_v32, %v3365_v27 }
0x1be9   :  { %v3381_v55 = vadd.f32 %v3366_v20, %v9019_v6  ;;  %v7795_v6 = vpop.eup %7794 }
0x1bea   :  { %v3413_v10 = vmul.f32 32.0, %v7795_v6  ;;  %vm3417_vm10 = vweird.f32 %v7795_v6 }
0x1beb   :  { %v3397_v63 = vsel %vm377_vm0, %v3381_v55, 0.0 }
0x1bec   :  { %3398 = vadd.xlane.f32.xlu2 %v3397_v63  ;;  %v3414_v45 = vsub.f32 1.0, %v3413_v10  ;;  %v7522_v63 = vld [vmem:[#allocation22 + $0x8] sm:$0xff] }
0x1bed   :  { %3635 = vmatpush.bf16.msrb.mxu1 %v7522_v63 }
0x1bee   :  { %v3368_v5 = vpop.f32.mrf.mxu0  ;;  %v3415_v42 = vmul.f32 %v7795_v6, %v3414_v45 }
0x1bef   :  { %v3369_v21 = vadd.f32 %v7584_v32, %v3368_v5 }
0x1bf0   :  { %v3416_v57 = vadd.f32 %v7795_v6, %v3415_v42 }
0x1bf1   :  { %v3382_v56 = vadd.f32 %v3369_v21, %v9033_v22 }
0x1bf2   :  { %v9881_v30 = vsel %vm3417_vm10, %v7795_v6, %v3416_v57 }
0x1bf3   :  { %v3400_v58 = vsel %vm377_vm0, %v3382_v56, 0.0 }
0x1bf4   :  { %3401 = vadd.xlane.f32.xlu0 %v3400_v58 }
0x1bf6   :  { %v3370_v28 = vpop.f32.mrf.mxu0 }
0x1bf7   :  { %v3371_v61 = vadd.f32 %v7584_v32, %v3370_v28 }
0x1bf9   :  { %v3383_v7 = vadd.f32 %v3371_v61, %v9036_v26 }
0x1bfb   :  { %v3403_v50 = vsel %vm377_vm0, %v3383_v7, 0.0 }
0x1bfc   :  { %3404 = vadd.xlane.f32.xlu1 %v3403_v50 }
0x1c1b   :  { %v3373_v53 = vpop.f32.mrf.mxu0 }
0x1c1c   :  { %v3374_v62 = vadd.f32 %v7584_v32, %v3373_v53 }
0x1c1e   :  { %v3384_v35 = vadd.f32 %v3374_v62, %v9048_v34 }
0x1c20   :  { %v3406_v22 = vsel %vm377_vm0, %v3384_v35, 0.0 }
0x1c21   :  { %3407 = vadd.xlane.f32.xlu1 %v3406_v22 }
0x1c23   :  { %v3375_v59 = vpop.f32.mrf.mxu0 }
0x1c24   :  { %v3376_v17 = vadd.f32 %v7584_v32, %v3375_v59 }
0x1c26   :  { %v3385_v14 = vadd.f32 %v3376_v17, %v9051_v39 }
0x1c28   :  { %v3409_v37 = vsel %vm377_vm0, %v3385_v14, 0.0 }
0x1c2f   :  { %v3390_v26 = vpop.xlane.xlu2 %3389 }
0x1c30   :  { %v3419_v41 = vmul.f32 %v9881_v30, %v3390_v26 }
0x1c32   :  { %v9884_v52 = vsub.f32 %v3378_v4, %v3419_v41 }
0x1c34   :  { %v3435_v13 = vmul.f32 %v9884_v52, %v9884_v52 }
0x1c36   :  { %v3443_v34 = vsel %vm377_vm0, %v3435_v13, 0.0 }
0x1c37   :  { %v3393_v51 = vpop.xlane.xlu0 %3392  ;;  %3444 = vadd.xlane.f32.xlu2 %v3443_v34  ;;  %v9935_v34 = vld [vmem:[#allocation27] ss:$0 sm:$0xff] }
0x1c38   :  { %v3420_v48 = vmul.f32 %v9881_v30, %v3393_v51 }
0x1c3a   :  { %v9890_v33 = vsub.f32 %v3379_v9, %v3420_v48 }
0x1c3c   :  { %v3436_v23 = vmul.f32 %v9890_v33, %v9890_v33 }
0x1c3e   :  { %v3446_v44 = vsel %vm377_vm0, %v3436_v23, 0.0  ;;  %v9938_v23 = vld [vmem:[#allocation28] ss:$0 sm:$0xff] }
0x1c3f   :  { %3447 = vadd.xlane.f32.xlu0 %v3446_v44  ;;  %3410 = vadd.xlane.f32.xlu2 %v3409_v37 }
0x1c57   :  { %v3396_v31 = vpop.xlane.xlu1 %3395 }
0x1c58   :  { %v3421_v46 = vmul.f32 %v9881_v30, %v3396_v31 }
0x1c5a   :  { %v9898_v3 = vsub.f32 %v3380_v19, %v3421_v46 }
0x1c5c   :  { %v3437_v40 = vmul.f32 %v9898_v3, %v9898_v3 }
0x1c5e   :  { %v3449_v54 = vsel %vm377_vm0, %v3437_v40, 0.0 }
0x1c5f   :  { %3450 = vadd.xlane.f32.xlu0 %v3449_v54  ;;  %v3399_v39 = vpop.xlane.xlu2 %3398 }
0x1c60   :  { %v3422_v36 = vmul.f32 %v9881_v30, %v3399_v39 }
0x1c62   :  { %v9904_v38 = vsub.f32 %v3381_v55, %v3422_v36 }
0x1c64   :  { %v3438_v8 = vmul.f32 %v9904_v38, %v9904_v38 }
0x1c66   :  { %v3452_v29 = vsel %vm377_vm0, %v3438_v8, 0.0 }
0x1c67   :  { %v3402_v32 = vpop.xlane.xlu0 %3401  ;;  %3453 = vadd.xlane.f32.xlu1 %v3452_v29 }
0x1c68   :  { %v3423_v16 = vmul.f32 %v9881_v30, %v3402_v32 }
0x1c6a   :  { %v9910_v0 = vsub.f32 %v3382_v56, %v3423_v16  ;;  %v7521_v56 = vld [vmem:[#allocation22] sm:$0xff] }
0x1c6b   :  { %3636 = vmatpush.bf16.msrb.mxu1 %v7521_v56 }
0x1c6c   :  { %v3439_v4 = vmul.f32 %v9910_v0, %v9910_v0 }
0x1c6e   :  { %v3455_v25 = vsel %vm377_vm0, %v3439_v4, 0.0 }
0x1c6f   :  { %v3405_v1 = vpop.xlane.xlu1 %3404  ;;  %3456 = vadd.xlane.f32.xlu2 %v3455_v25 }
0x1c70   :  { %v3424_v12 = vmul.f32 %v9881_v30, %v3405_v1 }
0x1c72   :  { %v9916_v9 = vsub.f32 %v3383_v7, %v3424_v12 }
0x1c74   :  { %v3440_v49 = vmul.f32 %v9916_v9, %v9916_v9 }
0x1c76   :  { %v3458_v18 = vsel %vm377_vm0, %v3440_v49, 0.0 }
0x1c77   :  { %3459 = vadd.xlane.f32.xlu0 %v3458_v18 }
0x1c94   :  { %v3408_v11 = vpop.xlane.xlu1 %3407 }
0x1c95   :  { %v3425_v19 = vmul.f32 %v9881_v30, %v3408_v11 }
0x1c97   :  { %v9922_v15 = vsub.f32 %v3384_v35, %v3425_v19 }
0x1c99   :  { %v3441_v27 = vmul.f32 %v9922_v15, %v9922_v15 }
0x1c9b   :  { %v3461_v20 = vsel %vm377_vm0, %v3441_v27, 0.0 }
0x1c9c   :  { %3462 = vadd.xlane.f32.xlu1 %v3461_v20 }
0x1caa   :  { %v3445_v55 = vpop.xlane.xlu2 %3444 }
0x1cab   :  { %v3467_v5 = vmul.f32 %v3445_v55, %v9881_v30 }
0x1cad   :  { %v3475_v21 = vadd.f32 1e-05, %v3467_v5 }
0x1caf   :  { %7796 = vrsqrt.f32 %v3475_v21  ;;  %vm3489_vm12 = vweird.f32 %v3475_v21 }
0x1cb2   :  { %v3448_v58 = vpop.xlane.xlu0 %3447  ;;  %v3411_v28 = vpop.xlane.xlu2 %3410 }
0x1cb3   :  { %v3468_v61 = vmul.f32 %v3448_v58, %v9881_v30  ;;  %v3426_v7 = vmul.f32 %v9881_v30, %v3411_v28 }
0x1cb5   :  { %v7797_v50 = vpop.eup %7796  ;;  %v3476_v43 = vadd.f32 1e-05, %v3468_v61  ;;  %v9930_v6 = vsub.f32 %v3385_v14, %v3426_v7 }
0x1cb6   :  { %v3484_v53 = vmul.f32 %v7797_v50, %v3475_v21  ;;  %vm3490_vm11 = vweird.f32 %v7797_v50 }
0x1cb7   :  { %7798 = vrsqrt.f32 %v3476_v43  ;;  %v3442_v62 = vmul.f32 %v9930_v6, %v9930_v6  ;;  %vm3491_vm13 = vmor %vm3489_vm12, %vm3490_vm11  ;;  %vm3499_vm15 = vweird.f32 %v3476_v43 }
0x1cb8   :  { %v3485_v10 = vmul.f32 %v7797_v50, %v3484_v53 }
0x1cb9   :  { %v3464_v35 = vsel %vm377_vm0, %v3442_v62, 0.0 }
0x1cba   :  { %v3486_v22 = vmul.f32 0.5, %v3485_v10  ;;  %3465 = vadd.xlane.f32.xlu2 %v3464_v35 }
0x1cbc   :  { %v3487_v45 = vsub.f32 1.5, %v3486_v22 }
0x1cbd   :  { %v7799_v42 = vpop.eup %7798 }
0x1cbe   :  { %v3488_v57 = vmul.f32 %v7797_v50, %v3487_v45  ;;  %v3494_v26 = vmul.f32 %v7799_v42, %v3476_v43  ;;  %vm3500_vm14 = vweird.f32 %v7799_v42 }
0x1cbf   :  { %vm3501_vm1 = vmor %vm3499_vm15, %vm3500_vm14 }
0x1cc0   :  { %v3495_v41 = vmul.f32 %v7799_v42, %v3494_v26  ;;  %v3492_v59 = vsel %vm3491_vm13, %v7797_v50, %v3488_v57 }
0x1cc1   :  { %v3563_v51 = vmul.f32 %v3492_v59, %v9884_v52 }
0x1cc2   :  { %v3496_v13 = vmul.f32 0.5, %v3495_v41 }
0x1cc3   :  { %v3574_v44 = vmul.f32 %v9935_v34, %v3563_v51 }
0x1cc4   :  { %v3497_v17 = vsub.f32 1.5, %v3496_v13 }
0x1cc5   :  { %v9944_v46 = vadd.f32 %v9938_v23, %v3574_v44 }
0x1cc6   :  { %v3498_v48 = vmul.f32 %v7799_v42, %v3497_v17 }
0x1cc8   :  { %v3502_v14 = vsel %vm3501_vm1, %v7799_v42, %v3498_v48 }
0x1cc9   :  { %v3564_v37 = vmul.f32 %v3502_v14, %v9890_v33 }
0x1ccb   :  { %v3575_v31 = vmul.f32 %v9935_v34, %v3564_v37 }
0x1ccd   :  { %v9947_v40 = vadd.f32 %v9938_v23, %v3575_v31 }
0x1ccf   :  { %v3593_v52 = vpack.c.bf16 %v9947_v40, %v9944_v46 }
0x1cd1   :  { %7316 = vmatmul.msk.bf16.vlgmr.msrb.gmra.mxu1 %vm377_vm0, %v3593_v52 }
0x1cd2   :  { %v3451_v54 = vpop.xlane.xlu0 %3450 }
0x1cd3   :  { %v3469_v39 = vmul.f32 %v3451_v54, %v9881_v30 }
0x1cd5   :  { %v3477_v36 = vadd.f32 1e-05, %v3469_v39 }
0x1cd7   :  { %7800 = vrsqrt.f32 %v3477_v36  ;;  %vm3509_vm6 = vweird.f32 %v3477_v36 }
0x1cda   :  { %v3454_v8 = vpop.xlane.xlu1 %3453 }
0x1cdb   :  { %v3470_v33 = vmul.f32 %v3454_v8, %v9881_v30 }
0x1cdd   :  { %v7801_v29 = vpop.eup %7800  ;;  %v3478_v32 = vadd.f32 1e-05, %v3470_v33 }
0x1cde   :  { %v3504_v16 = vmul.f32 %v7801_v29, %v3477_v36  ;;  %vm3510_vm2 = vweird.f32 %v7801_v29 }
0x1cdf   :  { %7802 = vrsqrt.f32 %v3478_v32  ;;  %vm3511_vm10 = vmor %vm3509_vm6, %vm3510_vm2  ;;  %vm3519_vm12 = vweird.f32 %v3478_v32 }
0x1ce0   :  { %v3505_v4 = vmul.f32 %v7801_v29, %v3504_v16 }
0x1ce2   :  { %v3506_v25 = vmul.f32 0.5, %v3505_v4  ;;  %v3457_v1 = vpop.xlane.xlu2 %3456 }
0x1ce3   :  { %v3471_v12 = vmul.f32 %v3457_v1, %v9881_v30 }
0x1ce4   :  { %v3507_v49 = vsub.f32 1.5, %v3506_v25  ;;  %v7526_v25 = vld [vmem:[%s11354_s16 + $0x18] sm:$0xff] }
0x1ce5   :  { %v7803_v18 = vpop.eup %7802  ;;  %v3479_v11 = vadd.f32 1e-05, %v3471_v12  ;;  %3723 = vmatpush.bf16.msrb.mxu2 %v7526_v25 }
0x1ce6   :  { %v3508_v19 = vmul.f32 %v7801_v29, %v3507_v49  ;;  %v3514_v27 = vmul.f32 %v7803_v18, %v3478_v32  ;;  %vm3520_vm11 = vweird.f32 %v7803_v18  ;;  %v7525_v49 = vld [vmem:[%s11354_s16 + $0x10] sm:$0xff] }
0x1ce7   :  { %7804 = vrsqrt.f32 %v3479_v11  ;;  %vm3521_vm13 = vmor %vm3519_vm12, %vm3520_vm11  ;;  %vm3529_vm15 = vweird.f32 %v3479_v11 }
0x1ce8   :  { %v3515_v20 = vmul.f32 %v7803_v18, %v3514_v27  ;;  %v3512_v55 = vsel %vm3511_vm10, %v7801_v29, %v3508_v19 }
0x1ce9   :  { %v3565_v28 = vmul.f32 %v3512_v55, %v9898_v3  ;;  %3724 = vmatpush.bf16.msrb.mxu2 %v7525_v49  ;;  %v7523_v55 = vld [vmem:[%s11354_s16] sm:$0xff] }
0x1cea   :  { %v3516_v63 = vmul.f32 0.5, %v3515_v20  ;;  %v3460_v5 = vpop.xlane.xlu0 %3459 }
0x1ceb   :  { %v3472_v21 = vmul.f32 %v3460_v5, %v9881_v30  ;;  %v3576_v10 = vmul.f32 %v9935_v34, %v3565_v28 }
0x1cec   :  { %v3517_v56 = vsub.f32 1.5, %v3516_v63 }
0x1ced   :  { %v7805_v58 = vpop.eup %7804  ;;  %v3480_v61 = vadd.f32 1e-05, %v3472_v21  ;;  %v9961_v57 = vadd.f32 %v9938_v23, %v3576_v10 }
0x1cee   :  { %v3518_v7 = vmul.f32 %v7803_v18, %v3517_v56  ;;  %v3524_v50 = vmul.f32 %v7805_v58, %v3479_v11  ;;  %vm3530_vm14 = vweird.f32 %v7805_v58  ;;  %v7524_v11 = vld [vmem:[%s11354_s16 + $0x8] sm:$0xff] }
0x1cef   :  { %7806 = vrsqrt.f32 %v3480_v61  ;;  %vm3531_vm1 = vmor %vm3529_vm15, %vm3530_vm14  ;;  %vm3539_vm6 = vweird.f32 %v3480_v61  ;;  %3725 = vmatpush.bf16.msrb.mxu2 %v7524_v11 }
0x1cf0   :  { %v3522_v43 = vsel %vm3521_vm13, %v7803_v18, %v3518_v7  ;;  %v3525_v53 = vmul.f32 %v7805_v58, %v3524_v50 }
0x1cf1   :  { %v3566_v62 = vmul.f32 %v3522_v43, %v9904_v38 }
0x1cf2   :  { %v3526_v35 = vmul.f32 0.5, %v3525_v53 }
0x1cf3   :  { %v3577_v22 = vmul.f32 %v9935_v34, %v3566_v62  ;;  %3726 = vmatpush.bf16.msrb.mxu2 %v7523_v55 }
0x1cf4   :  { %v3527_v45 = vsub.f32 1.5, %v3526_v35  ;;  %v7587_v35 = vld [vmem:[#allocation24] ss:$0 sm:$0xff] }
0x1cf5   :  { %v7807_v42 = vpop.eup %7806  ;;  %v9964_v3 = vadd.f32 %v9938_v23, %v3577_v22 }
0x1cf6   :  { %v3528_v26 = vmul.f32 %v7805_v58, %v3527_v45  ;;  %v3534_v41 = vmul.f32 %v7807_v42, %v3480_v61  ;;  %vm3540_vm2 = vweird.f32 %v7807_v42 }
0x1cf7   :  { %v3594_v59 = vpack.c.bf16 %v9964_v3, %v9961_v57  ;;  %vm3541_vm10 = vmor %vm3539_vm6, %vm3540_vm2  ;;  %vm3706_vm2 = vcmask 523264  }
0x1cf8   :  { %v3535_v38 = vmul.f32 %v7807_v42, %v3534_v41  ;;  %v3532_v13 = vsel %vm3531_vm1, %v7805_v58, %v3528_v26 }
0x1cf9   :  { %7317 = vmatmul.msk.bf16.gmra.mxu1 %vm377_vm0, %v3594_v59  ;;  %v3567_v48 = vmul.f32 %v3532_v13, %v9910_v0 }
0x1cfa   :  { %v3536_v17 = vmul.f32 0.5, %v3535_v38 }
0x1cfb   :  { %v3578_v31 = vmul.f32 %v9935_v34, %v3567_v48 }
0x1cfc   :  { %v3537_v51 = vsub.f32 1.5, %v3536_v17 }
0x1cfd   :  { %v9974_v54 = vadd.f32 %v9938_v23, %v3578_v31 }
0x1cfe   :  { %v3538_v14 = vmul.f32 %v7807_v42, %v3537_v51 }
0x1d00   :  { %v3542_v44 = vsel %vm3541_vm10, %v7807_v42, %v3538_v14 }
0x1d01   :  { %v3568_v37 = vmul.f32 %v3542_v44, %v9916_v9 }
0x1d03   :  { %v3579_v52 = vmul.f32 %v9935_v34, %v3568_v37 }
0x1d05   :  { %v9977_v39 = vadd.f32 %v9938_v23, %v3579_v52 }
0x1d07   :  { %v3595_v36 = vpack.c.bf16 %v9977_v39, %v9974_v54 }
0x1d09   :  { %7318 = vmatmul.msk.bf16.gmra.mxu1 %vm377_vm0, %v3595_v36 }
0x1d0f   :  { %v3463_v0 = vpop.xlane.xlu1 %3462 }
0x1d10   :  { %v3473_v8 = vmul.f32 %v3463_v0, %v9881_v30 }
0x1d12   :  { %v3481_v33 = vadd.f32 1e-05, %v3473_v8 }
0x1d14   :  { %7808 = vrsqrt.f32 %v3481_v33  ;;  %vm3549_vm12 = vweird.f32 %v3481_v33 }
0x1d1a   :  { %v7809_v9 = vpop.eup %7808 }
0x1d1b   :  { %v3544_v29 = vmul.f32 %v7809_v9, %v3481_v33  ;;  %vm3550_vm11 = vweird.f32 %v7809_v9 }
0x1d1c   :  { %vm3551_vm13 = vmor %vm3549_vm12, %vm3550_vm11 }
0x1d1d   :  { %v3545_v32 = vmul.f32 %v7809_v9, %v3544_v29 }
0x1d1f   :  { %v3546_v12 = vmul.f32 0.5, %v3545_v32 }
0x1d21   :  { %v3547_v18 = vsub.f32 1.5, %v3546_v12 }
0x1d23   :  { %v3548_v27 = vmul.f32 %v7809_v9, %v3547_v18 }
0x1d25   :  { %v3552_v5 = vsel %vm3551_vm13, %v7809_v9, %v3548_v27 }
0x1d26   :  { %v3569_v58 = vmul.f32 %v3552_v5, %v9922_v15 }
0x1d28   :  { %v3580_v50 = vmul.f32 %v9935_v34, %v3569_v58 }
0x1d2a   :  { %v10001_v53 = vadd.f32 %v9938_v23, %v3580_v50 }
0x1d2d   :  { %v3466_v16 = vpop.xlane.xlu2 %3465 }
0x1d2e   :  { %v3474_v4 = vmul.f32 %v3466_v16, %v9881_v30 }
0x1d30   :  { %v3482_v1 = vadd.f32 1e-05, %v3474_v4  ;;  %v7588_v4 = vld [vmem:[#allocation25] ss:$0 sm:$0xff] }
0x1d32   :  { %7810 = vrsqrt.f32 %v3482_v1  ;;  %vm3559_vm15 = vweird.f32 %v3482_v1 }
0x1d38   :  { %v7811_v19 = vpop.eup %7810 }
0x1d39   :  { %v3554_v20 = vmul.f32 %v7811_v19, %v3482_v1  ;;  %vm3560_vm14 = vweird.f32 %v7811_v19 }
0x1d3a   :  { %vm3561_vm1 = vmor %vm3559_vm15, %vm3560_vm14 }
0x1d3b   :  { %v3555_v63 = vmul.f32 %v7811_v19, %v3554_v20 }
0x1d3d   :  { %v3556_v21 = vmul.f32 0.5, %v3555_v63 }
0x1d3f   :  { %v3557_v56 = vsub.f32 1.5, %v3556_v21 }
0x1d41   :  { %v3558_v28 = vmul.f32 %v7811_v19, %v3557_v56 }
0x1d43   :  { %v3562_v61 = vsel %vm3561_vm1, %v7811_v19, %v3558_v28 }
0x1d44   :  { %v3570_v7 = vmul.f32 %v3562_v61, %v9930_v6 }
0x1d46   :  { %v3581_v43 = vmul.f32 %v9935_v34, %v3570_v7 }
0x1d48   :  { %v10004_v62 = vadd.f32 %v9938_v23, %v3581_v43 }
0x1d4a   :  { %v3596_v10 = vpack.c.bf16 %v10004_v62, %v10001_v53 }
0x1d4c   :  { %7319 = vmatmul.msk.bf16.gmra.mxu1 %vm377_vm0, %v3596_v10 }
0x1d4e   :  { %v3638_v15 = vpop.f32.mrf.mxu1 }
0x1d4f   :  { %v3639_v22 = vadd.f32 %v7587_v35, %v3638_v15 }
0x1d51   :  { %v3658_v42 = vmax.f32 %v3639_v22, 0.0 }
0x1d56   :  { %v3640_v45 = vpop.f32.mrf.mxu1 }
0x1d57   :  { %v3641_v6 = vadd.f32 %v7587_v35, %v3640_v45 }
0x1d59   :  { %v3659_v26 = vmax.f32 %v3641_v6, 0.0 }
0x1d5b   :  { %v3666_v34 = vpack.c.bf16 %v3659_v26, %v3658_v42 }
0x1d5d   :  { %7336 = vmatmul.msk.bf16.vlgmr.msrb.gmra.mxu2 %vm3706_vm2, %v3666_v34 }
0x1d76   :  { %v3643_v41 = vpop.f32.mrf.mxu1 }
0x1d77   :  { %v3644_v59 = vadd.f32 %v7587_v35, %v3643_v41 }
0x1d79   :  { %v3660_v13 = vmax.f32 %v3644_v59, 0.0 }
0x1d7e   :  { %v3645_v23 = vpop.f32.mrf.mxu1 }
0x1d7f   :  { %v3646_v38 = vadd.f32 %v7587_v35, %v3645_v23 }
0x1d81   :  { %v3661_v17 = vmax.f32 %v3646_v38, 0.0 }
0x1d83   :  { %v3667_v51 = vpack.c.bf16 %v3661_v17, %v3660_v13 }
0x1d85   :  { %7337 = vmatmul.msk.bf16.gmra.mxu2 %vm3706_vm2, %v3667_v51 }
0x1d86   :  { %v3648_v48 = vpop.f32.mrf.mxu1 }
0x1d87   :  { %v3649_v14 = vadd.f32 %v7587_v35, %v3648_v48 }
0x1d89   :  { %v3662_v31 = vmax.f32 %v3649_v14, 0.0 }
0x1d8e   :  { %v3650_v44 = vpop.f32.mrf.mxu1 }
0x1d8f   :  { %v3651_v37 = vadd.f32 %v7587_v35, %v3650_v44 }
0x1d91   :  { %v3663_v52 = vmax.f32 %v3651_v37, 0.0 }
0x1d93   :  { %v3668_v36 = vpack.c.bf16 %v3663_v52, %v3662_v31 }
0x1d95   :  { %7338 = vmatmul.msk.bf16.gmra.mxu2 %vm3706_vm2, %v3668_v36 }
0x1dc9   :  { %v3653_v0 = vpop.f32.mrf.mxu1 }
0x1dca   :  { %v3654_v8 = vadd.f32 %v7587_v35, %v3653_v0 }
0x1dcc   :  { %v3664_v29 = vmax.f32 %v3654_v8, 0.0 }
0x1dd1   :  { %v3655_v33 = vpop.f32.mrf.mxu1 }
0x1dd2   :  { %v3656_v9 = vadd.f32 %v7587_v35, %v3655_v33 }
0x1dd4   :  { %v3665_v32 = vmax.f32 %v3656_v9, 0.0 }
0x1dd6   :  { %v3669_v16 = vpack.c.bf16 %v3665_v32, %v3664_v29 }
0x1dd8   :  { %7339 = vmatmul.msk.bf16.gmra.mxu2 %vm3706_vm2, %v3669_v16 }
0x1de0   :  { %v3728_v25 = vpop.f32.mrf.mxu2 }
0x1de1   :  { %v3729_v1 = vadd.f32 %v7588_v4, %v3728_v25 }
0x1de3   :  { %v3748_v12 = vadd.f32 %v3729_v1, %v9944_v46 }
0x1de5   :  { %v3758_v49 = vsel %vm377_vm0, %v3748_v12, 0.0 }
0x1de6   :  { %3759 = vadd.xlane.f32.xlu0 %v3758_v49 }
0x1de8   :  { %v3730_v18 = vpop.f32.mrf.mxu2 }
0x1de9   :  { %v3731_v11 = vadd.f32 %v7588_v4, %v3730_v18 }
0x1deb   :  { %v3749_v19 = vadd.f32 %v3731_v11, %v9947_v40  ;;  %v7528_v11 = vld [vmem:[%s11393_s10 + $0x18] sm:$0xff] }
0x1dec   :  { %4121 = vmatpush.bf16.msrb.mxu3 %v7528_v11 }
0x1ded   :  { %v3761_v27 = vsel %vm377_vm0, %v3749_v19, 0.0 }
0x1dee   :  { %3762 = vadd.xlane.f32.xlu1 %v3761_v27  ;;  %v7532_v27 = vld [vmem:[#allocation13 + $0x18] sm:$0xff] }
0x1def   :  { %4223 = vmatpush.bf16.msra.mxu1 %v7532_v27 }
0x1e08   :  { %v3733_v20 = vpop.f32.mrf.mxu2 }
0x1e09   :  { %v3734_v55 = vadd.f32 %v7588_v4, %v3733_v20 }
0x1e0b   :  { %v3750_v63 = vadd.f32 %v3734_v55, %v9961_v57 }
0x1e0d   :  { %v3764_v5 = vsel %vm377_vm0, %v3750_v63, 0.0 }
0x1e0e   :  { %3765 = vadd.xlane.f32.xlu2 %v3764_v5 }
0x1e10   :  { %v3735_v21 = vpop.f32.mrf.mxu2 }
0x1e11   :  { %v3736_v56 = vadd.f32 %v7588_v4, %v3735_v21  ;;  %v7527_v21 = vld [vmem:[%s11393_s10 + $0x10] sm:$0xff]  ;;  %s7115_s10 = sshll.u32 %s11394_s1, 4  ;;  %s7116_s10 = int_to_ptr.hbm [resolvable:$true] %s7115_s10 }
0x1e12   :  { %4122 = vmatpush.bf16.msrb.mxu3 %v7527_v21 }
0x1e13   :  { %v3751_v46 = vadd.f32 %v3736_v56, %v9964_v3  ;;  %v7529_v56 = vld [vmem:[#allocation12 + $0x10] sm:$0xff] }
0x1e15   :  { %v3767_v58 = vsel %vm377_vm0, %v3751_v46, 0.0 }
0x1e16   :  { %3768 = vadd.xlane.f32.xlu0 %v3767_v58 }
0x1e18   :  { %v3738_v28 = vpop.f32.mrf.mxu2 }
0x1e19   :  { %v3739_v61 = vadd.f32 %v7588_v4, %v3738_v28 }
0x1e1b   :  { %v3752_v40 = vadd.f32 %v3739_v61, %v9974_v54 }
0x1e1d   :  { %v3770_v7 = vsel %vm377_vm0, %v3752_v40, 0.0 }
0x1e1e   :  { %3771 = vadd.xlane.f32.xlu1 %v3770_v7 }
0x1e20   :  { %v3740_v50 = vpop.f32.mrf.mxu2 }
0x1e21   :  { %v3741_v43 = vadd.f32 %v7588_v4, %v3740_v50 }
0x1e23   :  { %v3753_v57 = vadd.f32 %v3741_v43, %v9977_v39 }
0x1e25   :  { %v3773_v10 = vsel %vm377_vm0, %v3753_v57, 0.0 }
0x1e26   :  { %3774 = vadd.xlane.f32.xlu2 %v3773_v10 }
0x1e59   :  { %v3760_v15 = vpop.xlane.xlu0 %3759 }
0x1e5a   :  { %v3782_v3 = vmul.f32 %v3760_v15, %v9881_v30 }
0x1e5b   :  { %v3743_v35 = vpop.f32.mrf.mxu2 }
0x1e5c   :  { %v10026_v22 = vsub.f32 %v3748_v12, %v3782_v3  ;;  %v3744_v45 = vadd.f32 %v7588_v4, %v3743_v35 }
0x1e5e   :  { %v3754_v6 = vadd.f32 %v3744_v45, %v10001_v53  ;;  %v3798_v54 = vmul.f32 %v10026_v22, %v10026_v22 }
0x1e60   :  { %v3806_v42 = vsel %vm377_vm0, %v3798_v54, 0.0  ;;  %v3776_v26 = vsel %vm377_vm0, %v3754_v6, 0.0 }
0x1e61   :  { %v3763_v39 = vpop.xlane.xlu1 %3762  ;;  %3807 = vadd.xlane.f32.xlu0 %v3806_v42  ;;  %3777 = vadd.xlane.f32.xlu2 %v3776_v26 }
0x1e62   :  { %v3783_v34 = vmul.f32 %v3763_v39, %v9881_v30 }
0x1e63   :  { %v3745_v41 = vpop.f32.mrf.mxu2 }
0x1e64   :  { %v10034_v59 = vsub.f32 %v3749_v19, %v3783_v34  ;;  %v3746_v23 = vadd.f32 %v7588_v4, %v3745_v41  ;;  %v7530_v19 = vld [vmem:[#allocation12 + $0x18] sm:$0xff] }
0x1e65   :  { %4172 = vmatpush.bf16.msra.mxu0 %v7530_v19 }
0x1e66   :  { %v3799_v38 = vmul.f32 %v10034_v59, %v10034_v59  ;;  %v3755_v53 = vadd.f32 %v3746_v23, %v10004_v62 }
0x1e68   :  { %v3809_v13 = vsel %vm377_vm0, %v3799_v38, 0.0  ;;  %v3779_v17 = vsel %vm377_vm0, %v3755_v53, 0.0 }
0x1e69   :  { %3810 = vadd.xlane.f32.xlu1 %v3809_v13  ;;  %3780 = vadd.xlane.f32.xlu0 %v3779_v17 }
0x1e6a   :  { %4173 = vmatpush.bf16.msra.mxu0 %v7529_v56 }
0x1e81   :  { %v3766_v51 = vpop.xlane.xlu2 %3765 }
0x1e82   :  { %v3784_v48 = vmul.f32 %v3766_v51, %v9881_v30 }
0x1e84   :  { %v10042_v14 = vsub.f32 %v3750_v63, %v3784_v48  ;;  %v10091_v48 = vld [vmem:[#allocation30] ss:$0 sm:$0xff] }
0x1e86   :  { %v3800_v44 = vmul.f32 %v10042_v14, %v10042_v14 }
0x1e88   :  { %v3812_v37 = vsel %vm377_vm0, %v3800_v44, 0.0 }
0x1e89   :  { %v3769_v31 = vpop.xlane.xlu0 %3768  ;;  %3813 = vadd.xlane.f32.xlu1 %v3812_v37 }
0x1e8a   :  { %v3785_v62 = vmul.f32 %v3769_v31, %v9881_v30 }
0x1e8c   :  { %v10048_v52 = vsub.f32 %v3751_v46, %v3785_v62  ;;  %v7531_v46 = vld [vmem:[#allocation13 + $0x10] sm:$0xff] }
0x1e8d   :  { %4224 = vmatpush.bf16.msra.mxu1 %v7531_v46 }
0x1e8e   :  { %v3801_v36 = vmul.f32 %v10048_v52, %v10048_v52 }
0x1e90   :  { %v3815_v0 = vsel %vm377_vm0, %v3801_v36, 0.0 }
0x1e91   :  { %v3772_v8 = vpop.xlane.xlu1 %3771  ;;  %3816 = vadd.xlane.f32.xlu2 %v3815_v0 }
0x1e92   :  { %v3786_v33 = vmul.f32 %v3772_v8, %v9881_v30 }
0x1e94   :  { %v10054_v9 = vsub.f32 %v3752_v40, %v3786_v33 }
0x1e96   :  { %v3802_v29 = vmul.f32 %v10054_v9, %v10054_v9 }
0x1e98   :  { %v3818_v32 = vsel %vm377_vm0, %v3802_v29, 0.0 }
0x1e99   :  { %3819 = vadd.xlane.f32.xlu0 %v3818_v32  ;;  %v3775_v16 = vpop.xlane.xlu2 %3774 }
0x1e9a   :  { %v3787_v4 = vmul.f32 %v3775_v16, %v9881_v30 }
0x1e9c   :  { %v10060_v25 = vsub.f32 %v3753_v57, %v3787_v4 }
0x1e9e   :  { %v3803_v1 = vmul.f32 %v10060_v25, %v10060_v25 }
0x1ea0   :  { %v3821_v12 = vsel %vm377_vm0, %v3803_v1, 0.0 }
0x1ea1   :  { %3822 = vadd.xlane.f32.xlu1 %v3821_v12 }
0x1ed4   :  { %v3808_v49 = vpop.xlane.xlu0 %3807  ;;  %v3778_v18 = vpop.xlane.xlu2 %3777 }
0x1ed5   :  { %v3830_v20 = vmul.f32 %v3808_v49, %v9881_v30  ;;  %v3788_v55 = vmul.f32 %v3778_v18, %v9881_v30 }
0x1ed7   :  { %v3838_v63 = vadd.f32 1e-05, %v3830_v20  ;;  %v10070_v5 = vsub.f32 %v3754_v6, %v3788_v55 }
0x1ed9   :  { %7812 = vrsqrt.f32 %v3838_v63  ;;  %v3804_v58 = vmul.f32 %v10070_v5, %v10070_v5  ;;  %vm3852_vm10 = vweird.f32 %v3838_v63 }
0x1edb   :  { %v3824_v28 = vsel %vm377_vm0, %v3804_v58, 0.0 }
0x1edc   :  { %v3811_v61 = vpop.xlane.xlu1 %3810  ;;  %v3781_v40 = vpop.xlane.xlu0 %3780  ;;  %3825 = vadd.xlane.f32.xlu2 %v3824_v28 }
0x1edd   :  { %v3831_v7 = vmul.f32 %v3811_v61, %v9881_v30  ;;  %v3789_v50 = vmul.f32 %v3781_v40, %v9881_v30 }
0x1edf   :  { %v7813_v43 = vpop.eup %7812  ;;  %v3839_v57 = vadd.f32 1e-05, %v3831_v7  ;;  %v10080_v10 = vsub.f32 %v3755_v53, %v3789_v50  ;;  %v10088_v53 = vld [vmem:[%s11358_s20] ss:$0 sm:$0xff] }
0x1ee0   :  { %v3847_v15 = vmul.f32 %v7813_v43, %v3838_v63  ;;  %vm3853_vm6 = vweird.f32 %v7813_v43 }
0x1ee1   :  { %7814 = vrsqrt.f32 %v3839_v57  ;;  %v3805_v3 = vmul.f32 %v10080_v10, %v10080_v10  ;;  %vm3854_vm11 = vmor %vm3852_vm10, %vm3853_vm6  ;;  %vm3862_vm13 = vweird.f32 %v3839_v57 }
0x1ee2   :  { %v3848_v35 = vmul.f32 %v7813_v43, %v3847_v15 }
0x1ee3   :  { %v3827_v45 = vsel %vm377_vm0, %v3805_v3, 0.0 }
0x1ee4   :  { %v3849_v6 = vmul.f32 0.5, %v3848_v35  ;;  %3828 = vadd.xlane.f32.xlu0 %v3827_v45 }
0x1ee6   :  { %v3850_v54 = vsub.f32 1.5, %v3849_v6 }
0x1ee7   :  { %v7815_v42 = vpop.eup %7814 }
0x1ee8   :  { %v3851_v26 = vmul.f32 %v7813_v43, %v3850_v54  ;;  %v3857_v39 = vmul.f32 %v7815_v42, %v3839_v57  ;;  %vm3863_vm12 = vweird.f32 %v7815_v42 }
0x1ee9   :  { %vm3864_vm14 = vmor %vm3862_vm13, %vm3863_vm12 }
0x1eea   :  { %v3858_v34 = vmul.f32 %v7815_v42, %v3857_v39  ;;  %v3855_v41 = vsel %vm3854_vm11, %v7813_v43, %v3851_v26 }
0x1eeb   :  { %v3926_v13 = vmul.f32 %v3855_v41, %v10026_v22 }
0x1eec   :  { %v3859_v23 = vmul.f32 0.5, %v3858_v34 }
0x1eed   :  { %v3937_v44 = vmul.f32 %v10088_v53, %v3926_v13 }
0x1eee   :  { %v3860_v38 = vsub.f32 1.5, %v3859_v23 }
0x1eef   :  { %v10097_v62 = vadd.f32 %v10091_v48, %v3937_v44 }
0x1ef0   :  { %v3861_v17 = vmul.f32 %v7815_v42, %v3860_v38 }
0x1ef2   :  { %v3865_v51 = vsel %vm3864_vm14, %v7815_v42, %v3861_v17 }
0x1ef3   :  { %v3927_v37 = vmul.f32 %v3865_v51, %v10034_v59 }
0x1ef5   :  { %v3938_v31 = vmul.f32 %v10088_v53, %v3927_v37 }
0x1ef7   :  { %v10100_v36 = vadd.f32 %v10091_v48, %v3938_v31 }
0x1ef9   :  { %v4077_v22 = vpack.c.bf16 %v10100_v36, %v10097_v62 }
0x1efb   :  { %7352 = vmatmul.msk.bf16.vlgmr.msrb.gmra.mxu3 %vm377_vm0, %v4077_v22  ;;  %7364 = vmatmul.msk.bf16.vlgmr.msra.gmra.mxu0 %vm377_vm0, %v4077_v22 }
0x1efc   :  { %v3814_v0 = vpop.xlane.xlu1 %3813  ;;  %7376 = vmatmul.msk.bf16.vlgmr.msra.gmra.mxu1 %vm377_vm0, %v4077_v22 }
0x1efd   :  { %v3832_v59 = vmul.f32 %v3814_v0, %v9881_v30 }
0x1eff   :  { %v3840_v8 = vadd.f32 1e-05, %v3832_v59 }
0x1f01   :  { %7816 = vrsqrt.f32 %v3840_v8  ;;  %vm3872_vm1 = vweird.f32 %v3840_v8 }
0x1f04   :  { %v3817_v33 = vpop.xlane.xlu2 %3816 }
0x1f05   :  { %v3833_v29 = vmul.f32 %v3817_v33, %v9881_v30 }
0x1f07   :  { %v7817_v32 = vpop.eup %7816  ;;  %v3841_v16 = vadd.f32 1e-05, %v3833_v29 }
0x1f08   :  { %v3867_v4 = vmul.f32 %v7817_v32, %v3840_v8  ;;  %vm3873_vm15 = vweird.f32 %v7817_v32 }
0x1f09   :  { %7818 = vrsqrt.f32 %v3841_v16  ;;  %vm3874_vm6 = vmor %vm3872_vm1, %vm3873_vm15  ;;  %vm3882_vm11 = vweird.f32 %v3841_v16 }
0x1f0a   :  { %v3868_v1 = vmul.f32 %v7817_v32, %v3867_v4 }
0x1f0c   :  { %v3869_v12 = vmul.f32 0.5, %v3868_v1  ;;  %v3820_v49 = vpop.xlane.xlu0 %3819 }
0x1f0d   :  { %v3834_v18 = vmul.f32 %v3820_v49, %v9881_v30 }
0x1f0e   :  { %v3870_v11 = vsub.f32 1.5, %v3869_v12 }
0x1f0f   :  { %v7819_v19 = vpop.eup %7818  ;;  %v3842_v27 = vadd.f32 1e-05, %v3834_v18 }
0x1f10   :  { %v3871_v20 = vmul.f32 %v7817_v32, %v3870_v11  ;;  %v3877_v55 = vmul.f32 %v7819_v19, %v3841_v16  ;;  %vm3883_vm10 = vweird.f32 %v7819_v19 }
0x1f11   :  { %7820 = vrsqrt.f32 %v3842_v27  ;;  %vm3884_vm12 = vmor %vm3882_vm11, %vm3883_vm10  ;;  %vm3892_vm14 = vweird.f32 %v3842_v27 }
0x1f12   :  { %v3878_v63 = vmul.f32 %v7819_v19, %v3877_v55  ;;  %v3875_v21 = vsel %vm3874_vm6, %v7817_v32, %v3871_v20  ;;  %v3970_v55 = vrot.slane %v10100_v36, 4 }
0x1f13   :  { %v3928_v40 = vmul.f32 %v3875_v21, %v10042_v14  ;;  %v3958_v21 = vrot.slane %v10097_v62, 4 }
0x1f14   :  { %v3879_v56 = vmul.f32 0.5, %v3878_v63  ;;  %v3823_v46 = vpop.xlane.xlu1 %3822 }
0x1f15   :  { %v3835_v58 = vmul.f32 %v3823_v46, %v9881_v30  ;;  %v3939_v3 = vmul.f32 %v10088_v53, %v3928_v40 }
0x1f16   :  { %v3880_v28 = vsub.f32 1.5, %v3879_v56 }
0x1f17   :  { %v7821_v61 = vpop.eup %7820  ;;  %v3843_v7 = vadd.f32 1e-05, %v3835_v58  ;;  %v10116_v26 = vadd.f32 %v10091_v48, %v3939_v3 }
0x1f18   :  { %v3881_v50 = vmul.f32 %v7819_v19, %v3880_v28  ;;  %v3887_v43 = vmul.f32 %v7821_v61, %v3842_v27  ;;  %vm3893_vm13 = vweird.f32 %v7821_v61 }
0x1f19   :  { %7822 = vrsqrt.f32 %v3843_v7  ;;  %vm3894_vm15 = vmor %vm3892_vm14, %vm3893_vm13  ;;  %vm3902_vm6 = vweird.f32 %v3843_v7  ;;  %v3959_v40 = vsel %vm993_vm3, %v10116_v26, %v3958_v21 }
0x1f1a   :  { %v3885_v57 = vsel %vm3884_vm12, %v7819_v19, %v3881_v50  ;;  %v3888_v15 = vmul.f32 %v7821_v61, %v3887_v43  ;;  %v3956_v19 = vrot.slane %v10116_v26, 4 }
0x1f1b   :  { %v3929_v35 = vmul.f32 %v3885_v57, %v10048_v52 }
0x1f1c   :  { %v3889_v45 = vmul.f32 0.5, %v3888_v15 }
0x1f1d   :  { %v3940_v6 = vmul.f32 %v10088_v53, %v3929_v35 }
0x1f1e   :  { %v3890_v54 = vsub.f32 1.5, %v3889_v45 }
0x1f1f   :  { %v7823_v42 = vpop.eup %7822  ;;  %v10119_v14 = vadd.f32 %v10091_v48, %v3940_v6 }
0x1f20   :  { %v3891_v39 = vmul.f32 %v7821_v61, %v3890_v54  ;;  %v3897_v34 = vmul.f32 %v7823_v42, %v3843_v7  ;;  %vm3903_vm1 = vweird.f32 %v7823_v42 }
0x1f21   :  { %v4078_v41 = vpack.c.bf16 %v10119_v14, %v10116_v26  ;;  %vm3904_vm10 = vmor %vm3902_vm6, %vm3903_vm1  ;;  %v3968_v63 = vrot.slane %v10119_v14, 4  ;;  %v3971_v58 = vsel %vm993_vm3, %v10119_v14, %v3970_v55  ;;  %v10201_v55 = vld [vmem:[#allocation18 + $0x1] ss:$0 sm:$0xff] }
0x1f22   :  { %v3898_v23 = vmul.f32 %v7823_v42, %v3897_v34  ;;  %v3895_v52 = vsel %vm3894_vm15, %v7821_v61, %v3891_v39  ;;  %v3957_v61 = vsel %vm993_vm3, %v3956_v19, %v10097_v62  ;;  %v3979_v57 = vperm.slane %v3971_v58, %v8978_v24 }
0x1f23   :  { %7353 = vmatmul.msk.bf16.gmra.mxu3 %vm377_vm0, %v4078_v41  ;;  %7365 = vmatmul.msk.bf16.gmra.mxu0 %vm377_vm0, %v4078_v41  ;;  %v3930_v17 = vmul.f32 %v3895_v52, %v10054_v9  ;;  %v3969_v50 = vsel %vm993_vm3, %v3968_v63, %v10100_v36  ;;  %v3963_v3 = vperm.slane %v3957_v61, %v8978_v24 }
0x1f24   :  { %v3899_v38 = vmul.f32 0.5, %v3898_v23  ;;  %7377 = vmatmul.msk.bf16.gmra.mxu1 %vm377_vm0, %v4078_v41  ;;  %v3975_v45 = vperm.slane %v3969_v50, %v8978_v24  ;;  %v4016_v39 = vrot.slane %v3979_v57, 4 }
0x1f25   :  { %v3941_v37 = vmul.f32 %v10088_v53, %v3930_v17  ;;  %v4006_v41 = vrot.slane %v3963_v3, 4 }
0x1f26   :  { %v3900_v13 = vsub.f32 1.5, %v3899_v38 }
0x1f27   :  { %v10131_v0 = vadd.f32 %v10091_v48, %v3941_v37  ;;  %v4007_v17 = vsel %vm993_vm3, %v3975_v45, %v4006_v41 }
0x1f28   :  { %v3901_v51 = vmul.f32 %v7823_v42, %v3900_v13  ;;  %v4004_v13 = vrot.slane %v3975_v45, 4 }
0x1f29   :  { %v3982_v54 = vrot.slane %v10131_v0, 4 }
0x1f2a   :  { %v3905_v44 = vsel %vm3904_vm10, %v7823_v42, %v3901_v51 }
0x1f2b   :  { %v3931_v31 = vmul.f32 %v3905_v44, %v10060_v25 }
0x1f2d   :  { %v3942_v22 = vmul.f32 %v10088_v53, %v3931_v31 }
0x1f2f   :  { %v10134_v59 = vadd.f32 %v10091_v48, %v3942_v22 }
0x1f31   :  { %v4079_v8 = vpack.c.bf16 %v10134_v59, %v10131_v0 }
0x1f33   :  { %7354 = vmatmul.msk.bf16.gmra.mxu3 %vm377_vm0, %v4079_v8  ;;  %7366 = vmatmul.msk.bf16.gmra.mxu0 %vm377_vm0, %v4079_v8 }
0x1f34   :  { %7378 = vmatmul.msk.bf16.gmra.mxu1 %vm377_vm0, %v4079_v8  ;;  %v3994_v8 = vrot.slane %v10134_v59, 4 }
0x1f4f   :  { %v3826_v9 = vpop.xlane.xlu2 %3825 }
0x1f50   :  { %v3836_v25 = vmul.f32 %v3826_v9, %v9881_v30 }
0x1f52   :  { %v3844_v33 = vadd.f32 1e-05, %v3836_v25  ;;  %v4015_v25 = vperm.slane %v4007_v17, %v8988_v47 }
0x1f54   :  { %7824 = vrsqrt.f32 %v3844_v33  ;;  %vm3912_vm12 = vweird.f32 %v3844_v33  ;;  %v4058_v63 = vrot.slane %v4015_v25, 4 }
0x1f57   :  { %v3829_v29 = vpop.xlane.xlu0 %3828 }
0x1f58   :  { %v3837_v32 = vmul.f32 %v3829_v29, %v9881_v30 }
0x1f5a   :  { %v7825_v16 = vpop.eup %7824  ;;  %v3845_v4 = vadd.f32 1e-05, %v3837_v32 }
0x1f5b   :  { %v3907_v1 = vmul.f32 %v7825_v16, %v3844_v33  ;;  %vm3913_vm11 = vweird.f32 %v7825_v16 }
0x1f5c   :  { %7826 = vrsqrt.f32 %v3845_v4  ;;  %vm3914_vm13 = vmor %vm3912_vm12, %vm3913_vm11  ;;  %vm3922_vm15 = vweird.f32 %v3845_v4 }
0x1f5d   :  { %v3908_v12 = vmul.f32 %v7825_v16, %v3907_v1 }
0x1f5f   :  { %v3909_v49 = vmul.f32 0.5, %v3908_v12  ;;  %v10191_v12 = vld [vmem:[#allocation16 + $0x1] ss:$0 sm:$0xff] }
0x1f61   :  { %v3910_v18 = vsub.f32 1.5, %v3909_v49 }
0x1f62   :  { %v7827_v11 = vpop.eup %7826 }
0x1f63   :  { %v3911_v27 = vmul.f32 %v7825_v16, %v3910_v18  ;;  %v3917_v20 = vmul.f32 %v7827_v11, %v3845_v4  ;;  %vm3923_vm14 = vweird.f32 %v7827_v11 }
0x1f64   :  { %vm3924_vm1 = vmor %vm3922_vm15, %vm3923_vm14 }
0x1f65   :  { %v3915_v56 = vsel %vm3914_vm13, %v7825_v16, %v3911_v27  ;;  %v3918_v46 = vmul.f32 %v7827_v11, %v3917_v20 }
0x1f66   :  { %v3932_v28 = vmul.f32 %v3915_v56, %v10070_v5  ;;  %v3967_v5 = vperm.slane %v3959_v40, %v8978_v24 }
0x1f67   :  { %v3919_v7 = vmul.f32 0.5, %v3918_v46 }
0x1f68   :  { %v3943_v43 = vmul.f32 %v10088_v53, %v3932_v28  ;;  %v4018_v23 = vrot.slane %v3967_v5, 4  ;;  %v4017_v31 = vsel %vm993_vm3, %v4016_v39, %v3967_v5 }
0x1f69   :  { %v3920_v15 = vsub.f32 1.5, %v3919_v7  ;;  %v4023_v32 = vperm.slane %v4017_v31, %v8988_v47 }
0x1f6a   :  { %v10161_v35 = vadd.f32 %v10091_v48, %v3943_v43  ;;  %v4019_v51 = vsel %vm993_vm3, %v3979_v57, %v4018_v23 }
0x1f6b   :  { %v3921_v6 = vmul.f32 %v7827_v11, %v3920_v15  ;;  %v4027_v33 = vperm.slane %v4019_v51, %v8988_v47  ;;  %v4062_v21 = vrot.slane %v4023_v32, 4 }
0x1f6c   :  { %v3980_v42 = vrot.slane %v10161_v35, 4  ;;  %v3983_v52 = vsel %vm993_vm3, %v10161_v35, %v3982_v54  ;;  %v10213_v54 = vld [vmem:[#allocation15 + $0x1] ss:$0 sm:$0xff] }
0x1f6d   :  { %v3925_v34 = vsel %vm3924_vm1, %v7827_v11, %v3921_v6  ;;  %v3991_v22 = vperm.slane %v3983_v52, %v8978_v24  ;;  %v4066_v56 = vrot.slane %v4027_v33, 4 }
0x1f6e   :  { %v3933_v38 = vmul.f32 %v3925_v34, %v10080_v10  ;;  %v3981_v44 = vsel %vm993_vm3, %v3980_v42, %v10131_v0  ;;  %v4005_v10 = vsel %vm993_vm3, %v4004_v13, %v3963_v3 }
0x1f6f   :  { %v3987_v29 = vperm.slane %v3981_v44, %v8978_v24  ;;  %v4011_v49 = vperm.slane %v4005_v10, %v8988_v47 }
0x1f70   :  { %v3944_v37 = vmul.f32 %v10088_v53, %v3933_v38 }
0x1f71   :  { %v4030_v11 = vrot.slane %v3987_v29, 4  ;;  %v4054_v50 = vrot.slane %v4011_v49, 4 }
0x1f72   :  { %v10178_v9 = vadd.f32 %v10091_v48, %v3944_v37  ;;  %v4042_v48 = vrot.slane %v3991_v22, 4 }
0x1f74   :  { %v3992_v53 = vrot.slane %v10178_v9, 4  ;;  %v3995_v16 = vsel %vm993_vm3, %v10178_v9, %v3994_v8  ;;  %v4080_v4 = vpack.c.bf16 %v10178_v9, %v10161_v35 }
0x1f75   :  { %v4003_v1 = vperm.slane %v3995_v16, %v8978_v24 }
0x1f76   :  { %v3993_v18 = vsel %vm993_vm3, %v3992_v53, %v10134_v59  ;;  %7355 = vmatmul.msk.bf16.gmra.mxu3 %vm377_vm0, %v4080_v4  ;;  %7367 = vmatmul.msk.bf16.gmra.mxu0 %vm377_vm0, %v4080_v4 }
0x1f77   :  { %v3999_v19 = vperm.slane %v3993_v18, %v8978_v24  ;;  %v4040_v27 = vrot.slane %v4003_v1, 4  ;;  %v4043_v20 = vsel %vm993_vm3, %v4003_v1, %v4042_v48  ;;  %7379 = vmatmul.msk.bf16.gmra.mxu1 %vm377_vm0, %v4080_v4 }
0x1f78   :  { %v4051_v46 = vperm.slane %v4043_v20, %v8988_v47  ;;  %v4175_v58 = vpop.f32.mrf.mxu0 }
0x1f79   :  { %v4028_v28 = vrot.slane %v3999_v19, 4  ;;  %v4031_v61 = vsel %vm993_vm3, %v3999_v19, %v4030_v11  ;;  %v4041_v40 = vsel %vm993_vm3, %v4040_v27, %v3991_v22  ;;  %v4176_v24 = vadd.f32 %v10191_v12, %v4175_v58  ;;  %v4226_v7 = vpop.f32.mrf.mxu1 }
0x1f7a   :  { %v4039_v43 = vperm.slane %v4031_v61, %v8988_v47  ;;  %v4047_v57 = vperm.slane %v4041_v40, %v8988_v47  ;;  %v4067_v15 = vsel %vm993_vm3, %v4051_v46, %v4066_v56  ;;  %v4064_v5 = vrot.slane %v4051_v46, 4 }
0x1f7b   :  { %v4029_v3 = vsel %vm993_vm3, %v4028_v28, %v3987_v29  ;;  %4076 = vst.msk [vmem:[#allocation35 + $0x78] sm:$0xff] %vm377_vm0, %v4067_v15  ;;  %v4254_v45 = vpack.c.bf16 %v4176_v24, %v4176_v24  ;;  %v4227_v6 = vadd.f32 %v10201_v55, %v4226_v7 }
0x1f7c   :  { %v4035_v42 = vperm.slane %v4029_v3, %v8988_v47  ;;  %v4056_v39 = vrot.slane %v4039_v43, 4  ;;  %v4059_v34 = vsel %vm993_vm3, %v4039_v43, %v4058_v63  ;;  %v4060_v41 = vrot.slane %v4047_v57, 4 }
0x1f7d   :  { %v4063_v23 = vsel %vm993_vm3, %v4047_v57, %v4062_v21  ;;  %4072 = vst.msk [vmem:[#allocation35 + $0x58] sm:$0xff] %vm377_vm0, %v4059_v34  ;;  %v4274_v52 = vsel %vm1292_vm4, %v4254_v45, 0  ;;  %v4700_v38 = vunpack.c.l.b16 %v4254_v45  ;;  %v10227_v31 = vpack.c.bf16 %v4227_v6, %v4227_v6 }
0x1f7e   :  { %v4052_v13 = vrot.slane %v4035_v42, 4  ;;  %v4055_v17 = vsel %vm993_vm3, %v4035_v42, %v4054_v50  ;;  %v4057_v51 = vsel %vm993_vm3, %v4056_v39, %v4015_v25  ;;  %4074 = vst.msk [vmem:[#allocation35 + $0x68] sm:$0xff] %vm377_vm0, %v4063_v23  ;;  %v4124_v44 = vpop.f32.mrf.mxu3  ;;  %4283 = vmatpush.bf16.xpose.msra.mxu2 %v4274_v52  ;;  %v4061_v47 = vsel %vm993_vm3, %v4060_v41, %v4023_v32 }
0x1f7f   :  { %4070 = vst.msk [vmem:[#allocation35 + $0x48] sm:$0xff] %vm377_vm0, %v4055_v17  ;;  %v10225_v37 = vpack.c.b16 %v4700_v38, %v4700_v38  ;;  %v4125_v22 = vadd.f32 %v10213_v54, %v4124_v44  ;;  %v4065_v10 = vsel %vm993_vm3, %v4064_v5, %v4027_v33  ;;  %v4538_v29 = vsel %vm1560_vm5, %v10227_v31, 0 }
0x1f80   :  { %v4053_v8 = vsel %vm993_vm3, %v4052_v13, %v4011_v49  ;;  %4071 = vst.msk [vmem:[#allocation35 + $0x50] sm:$0xff] %vm377_vm0, %v4057_v51  ;;  %v4177_v25 = vpop.f32.mrf.mxu0  ;;  %4547 = vmatpush.bf16.msrb.mxu0 %v4538_v29 }
0x1f81   :  { %4069 = vst.msk [vmem:[#allocation35 + $0x40] sm:$0xff] %vm377_vm0, %v4053_v8  ;;  %v4178_v32 = vadd.f32 %v10191_v12, %v4177_v25  ;;  %v4228_v53 = vpop.f32.mrf.mxu1  ;;  %4702 = vrot.lane.b32.xlu1 %v10225_v37, %s8572_s26  ;;  %v10242_v33 = vpack.c.bf16 %v4125_v22, %v4125_v22 }
0x1f82   :  { %4073 = vst.msk [vmem:[#allocation35 + $0x60] sm:$0xff] %vm377_vm0, %v4061_v47  ;;  %v4229_v16 = vadd.f32 %v10201_v55, %v4228_v53 }
0x1f83   :  { %4075 = vst.msk [vmem:[#allocation35 + $0x70] sm:$0xff] %vm377_vm0, %v4065_v10  ;;  %v4255_v4 = vpack.c.bf16 %v4178_v32, %v4178_v32 }
0x1f84   :  { %v10244_v48 = vpack.c.bf16 %v4229_v16, %v4229_v16  ;;  %7131 = dma.vmem_to_hbm [thread:$0]  %s7124_s11, 2048, %s7126_s15, [#allocation36], %s8582_s25, %s8582_s25, %s8576_s5  }
0x1f85   :  { %v4729_v1 = vunpack.c.l.b16 %v4255_v4  ;;  %7380 = vmatmul.msk.bf16.vlgmr.msra.gmra.mxu2 %vm1292_vm4, %v10242_v33  ;;  %v4293_v49 = vsel %vm1292_vm4, %v4255_v4, 0 }
0x1f86   :  { %v4126_v18 = vpop.f32.mrf.mxu3  ;;  %4302 = vmatpush.bf16.xpose.msra.mxu3 %v4293_v49  ;;  %v4557_v11 = vsel %vm1560_vm5, %v10244_v48, 0 }
0x1f87   :  { %v10251_v19 = vpack.c.b16 %v4729_v1, %v4729_v1  ;;  %v4127_v27 = vadd.f32 %v10213_v54, %v4126_v18  ;;  %4566 = vmatpush.bf16.msrb.mxu1 %v4557_v11 }
0x1f89   :  { %4731 = vrot.lane.b32.xlu0 %v10251_v19, %s8572_s26  ;;  %v10256_v20 = vpack.c.bf16 %v4127_v27, %v4127_v27 }
0x1f8d   :  { %7381 = vmatmul.msk.bf16.vlgmr.msra.gmra.mxu3 %vm1292_vm4, %v10256_v20 }
0x1fa0   :  { %v4180_v63 = vpop.f32.mrf.mxu0 }
0x1fa1   :  { %v4181_v21 = vadd.f32 %v10191_v12, %v4180_v63  ;;  %v4231_v56 = vpop.f32.mrf.mxu1 }
0x1fa3   :  { %v4256_v46 = vpack.c.bf16 %v4181_v21, %v4181_v21 }
0x1fa5   :  { %v4312_v58 = vsel %vm1292_vm4, %v4256_v46, 0  ;;  %v4758_v28 = vunpack.c.l.b16 %v4256_v46  ;;  %v4232_v46 = vadd.f32 %v10201_v55, %v4231_v56 }
0x1fa6   :  { %v4129_v61 = vpop.f32.mrf.mxu3  ;;  %4321 = vmatpush.bf16.xpose.msrb.mxu2 %v4312_v58 }
0x1fa7   :  { %v10262_v40 = vpack.c.b16 %v4758_v28, %v4758_v28  ;;  %v4130_v24 = vadd.f32 %v10213_v54, %v4129_v61 }
0x1fa8   :  { %v4182_v7 = vpop.f32.mrf.mxu0 }
0x1fa9   :  { %v4248_v50 = vpack.c.bf16 %v4130_v24, %v4130_v24  ;;  %v4183_v43 = vadd.f32 %v10191_v12, %v4182_v7  ;;  %v4233_v57 = vpop.f32.mrf.mxu1  ;;  %4760 = vrot.lane.b32.xlu2 %v10262_v40, %s8572_s26  ;;  %v10316_v24 = vpack.c.bf16 %v4232_v46, %v4232_v46 }
0x1fab   :  { %v4753_v15 = vunpack.c.l.b16 %v4248_v50  ;;  %v4257_v3 = vpack.c.bf16 %v4183_v43, %v4183_v43 }
0x1fad   :  { %v4787_v5 = vunpack.c.l.b16 %v4257_v3  ;;  %7382 = vmatmul.msk.bf16.vlgmr.msrb.gmra.mxu2 %vm1292_vm4, %v4248_v50  ;;  %v4331_v45 = vsel %vm1292_vm4, %v4257_v3, 0  ;;  %v10270_v42 = vpack.c.b16 %v4753_v15, %v4753_v15  ;;  %v4576_v15 = vsel %vm1560_vm5, %v10316_v24, 0 }
0x1fae   :  { %v4131_v6 = vpop.f32.mrf.mxu3  ;;  %4340 = vmatpush.bf16.xpose.msrb.mxu3 %v4331_v45  ;;  %v4234_v3 = vadd.f32 %v10201_v55, %v4233_v57 }
0x1faf   :  { %v10272_v39 = vpack.c.b16 %v4787_v5, %v4787_v5  ;;  %v4132_v34 = vadd.f32 %v10213_v54, %v4131_v6 }
0x1fb0   :  { %v4185_v41 = vpop.f32.mrf.mxu0 }
0x1fb1   :  { %v4249_v23 = vpack.c.bf16 %v4132_v34, %v4132_v34  ;;  %v4186_v52 = vadd.f32 %v10191_v12, %v4185_v41  ;;  %v4236_v38 = vpop.f32.mrf.mxu1  ;;  %4789 = vrot.lane.b32.xlu0 %v10272_v39, %s8572_s26  ;;  %4755 = vrot.lane.b32.xlu2 %v10270_v42, %s8572_s26  ;;  %v10330_v41 = vpack.c.bf16 %v4234_v3, %v4234_v3 }
0x1fb2   :  { %v4237_v13 = vadd.f32 %v10201_v55, %v4236_v38 }
0x1fb3   :  { %v4782_v17 = vunpack.c.l.b16 %v4249_v23  ;;  %v10281_v51 = vpack.c.bf16 %v4186_v52, %v4186_v52 }
0x1fb4   :  { %v10283_v44 = vpack.c.bf16 %v4237_v13, %v4237_v13 }
0x1fb5   :  { %v4350_v47 = vsel %vm1292_vm4, %v10281_v51, 0  ;;  %7383 = vmatmul.msk.bf16.vlgmr.msrb.gmra.mxu3 %vm1292_vm4, %v4249_v23  ;;  %v10290_v10 = vpack.c.b16 %v4782_v17, %v4782_v17 }
0x1fb6   :  { %v4614_v22 = vsel %vm1560_vm5, %v10283_v44, 0  ;;  %v4134_v8 = vpop.f32.mrf.mxu3  ;;  %4359 = vmatpush.bf16.xpose.msra.mxu2 %v4350_v47 }
0x1fb7   :  { %v4135_v25 = vadd.f32 %v10213_v54, %v4134_v8  ;;  %4623 = vmatpush.bf16.msra.mxu0 %v4614_v22 }
0x1fb8   :  { %v4187_v29 = vpop.f32.mrf.mxu0 }
0x1fb9   :  { %v4188_v32 = vadd.f32 %v10191_v12, %v4187_v29  ;;  %v4238_v53 = vpop.f32.mrf.mxu1  ;;  %4784 = vrot.lane.b32.xlu0 %v10290_v10, %s8572_s26  ;;  %v10297_v4 = vpack.c.bf16 %v4135_v25, %v4135_v25 }
0x1fba   :  { %v4239_v16 = vadd.f32 %v10201_v55, %v4238_v53 }
0x1fbb   :  { %v10299_v1 = vpack.c.bf16 %v4188_v32, %v4188_v32 }
0x1fbc   :  { %v10301_v49 = vpack.c.bf16 %v4239_v16, %v4239_v16 }
0x1fbd   :  { %7384 = vmatmul.msk.bf16.vlgmr.msra.gmra.mxu2 %vm1292_vm4, %v10297_v4  ;;  %v4369_v18 = vsel %vm1292_vm4, %v10299_v1, 0 }
0x1fbe   :  { %v4136_v11 = vpop.f32.mrf.mxu3  ;;  %4378 = vmatpush.bf16.xpose.msra.mxu3 %v4369_v18  ;;  %v4633_v27 = vsel %vm1560_vm5, %v10301_v49, 0 }
0x1fbf   :  { %v4137_v63 = vadd.f32 %v10213_v54, %v4136_v11  ;;  %4642 = vmatpush.bf16.msra.mxu1 %v4633_v27 }
0x1fc1   :  { %v10310_v21 = vpack.c.bf16 %v4137_v63, %v4137_v63 }
0x1fc5   :  { %7385 = vmatmul.msk.bf16.vlgmr.msra.gmra.mxu3 %vm1292_vm4, %v10310_v21 }
0x1ff3   :  { %v4190_v58 = vpop.f32.mrf.mxu0 }
0x1ff4   :  { %v4191_v28 = vadd.f32 %v10191_v12, %v4190_v58  ;;  %v4241_v61 = vpop.f32.mrf.mxu1 }
0x1ff5   :  { %v4242_v43 = vadd.f32 %v10201_v55, %v4241_v61 }
0x1ff6   :  { %v10318_v7 = vpack.c.bf16 %v4191_v28, %v4191_v28 }
0x1ff7   :  { %v10327_v6 = vpack.c.bf16 %v4242_v43, %v4242_v43 }
0x1ff8   :  { %v4388_v50 = vsel %vm1292_vm4, %v10318_v7, 0 }
0x1ff9   :  { %v4139_v5 = vpop.f32.mrf.mxu3  ;;  %4397 = vmatpush.bf16.xpose.msrb.mxu2 %v4388_v50  ;;  %v4652_v57 = vsel %vm1560_vm5, %v10327_v6, 0 }
0x1ffa   :  { %v4140_v56 = vadd.f32 %v10213_v54, %v4139_v5 }
0x1ffb   :  { %v4192_v45 = vpop.f32.mrf.mxu0 }
0x1ffc   :  { %v4193_v34 = vadd.f32 %v10191_v12, %v4192_v45  ;;  %v4243_v23 = vpop.f32.mrf.mxu1  ;;  %v10332_v52 = vpack.c.bf16 %v4140_v56, %v4140_v56  ;;  %v4595_v12 = vsel %vm1560_vm5, %v10330_v41, 0 }
0x1ffd   :  { %v4244_v13 = vadd.f32 %v10201_v55, %v4243_v23 }
0x1ffe   :  { %v10334_v38 = vpack.c.bf16 %v4193_v34, %v4193_v34 }
0x1fff   :  { %v10346_v8 = vpack.c.bf16 %v4244_v13, %v4244_v13 }
0x2000   :  { %7386 = vmatmul.msk.bf16.vlgmr.msrb.gmra.mxu2 %vm1292_vm4, %v10332_v52  ;;  %v4407_v17 = vsel %vm1292_vm4, %v10334_v38, 0 }
0x2001   :  { %4585 = vmatpush.bf16.msra.mxu2 %v4576_v15  ;;  %v4141_v47 = vpop.f32.mrf.mxu3  ;;  %4416 = vmatpush.bf16.xpose.msrb.mxu3 %v4407_v17  ;;  %v4671_v29 = vsel %vm1560_vm5, %v10346_v8, 0 }
0x2002   :  { %v4142_v22 = vadd.f32 %v10213_v54, %v4141_v47 }
0x2004   :  { %v10348_v25 = vpack.c.bf16 %v4142_v22, %v4142_v22 }
0x2005   :  { %4661 = vmatpush.bf16.msrb.mxu2 %v4652_v57 }
0x2008   :  { %v4285_v55 = vpop.f32.mrf.mxu2  ;;  %7387 = vmatmul.msk.bf16.vlgmr.msrb.gmra.mxu3 %vm1292_vm4, %v10348_v25 }
0x2009   :  { %4604 = vmatpush.bf16.msra.mxu3 %v4595_v12  ;;  %v4422_v32 = vmul.f32 0.35355338, %v4285_v55 }
0x200b   :  { %v10355_v53 = vadd.f32 %v4422_v32, %v9190_v60  ;;  %v4695_v32 = vunpack.c.l.b16 %v10242_v33 }
0x200d   :  { %4680 = vmatpush.bf16.msrb.mxu3 %v4671_v29  ;;  %v4438_v54 = vsel %vm1292_vm4, %v10355_v53, -inf }
0x200e   :  { %4439 = vmax.xlane.f32.xlu0 %v4438_v54  ;;  %v10373_v54 = vpack.c.b16 %v4695_v32, %v4695_v32 }
0x2010   :  { %v4287_v16 = vpop.f32.mrf.mxu2  ;;  %v4304_v18 = vpop.f32.mrf.mxu3 }
0x2011   :  { %v4423_v11 = vmul.f32 0.35355338, %v4304_v18  ;;  %v10377_v16 = vpop.permute.xlu1 %4702 }
0x2013   :  { %v4431_v27 = vadd.f32 %v4423_v11, %v9190_v60 }
0x2015   :  { %v4441_v63 = vsel %vm1292_vm4, %v4431_v27, -inf }
0x2016   :  { %4442 = vmax.xlane.f32.xlu1 %v4441_v63 }
0x2018   :  { %v4306_v46 = vpop.f32.mrf.mxu3 }
0x2030   :  { %v4323_v58 = vpop.f32.mrf.mxu2 }
0x2031   :  { %v4424_v28 = vmul.f32 0.35355338, %v4323_v58 }
0x2033   :  { %v4432_v61 = vadd.f32 %v4424_v28, %v9190_v60 }
0x2035   :  { %v4444_v50 = vsel %vm1292_vm4, %v4432_v61, -inf }
0x2036   :  { %4445 = vmax.xlane.f32.xlu1 %v4444_v50 }
0x2038   :  { %v4325_v43 = vpop.f32.mrf.mxu2  ;;  %v4342_v15 = vpop.f32.mrf.mxu3 }
0x2039   :  { %v4425_v3 = vmul.f32 0.35355338, %v4342_v15 }
0x203b   :  { %v4433_v5 = vadd.f32 %v4425_v3, %v9190_v60 }
0x203d   :  { %v4447_v56 = vsel %vm1292_vm4, %v4433_v5, -inf }
0x203e   :  { %4448 = vmax.xlane.f32.xlu2 %v4447_v56 }
0x2040   :  { %v4344_v45 = vpop.f32.mrf.mxu3  ;;  %v4361_v34 = vpop.f32.mrf.mxu2 }
0x2041   :  { %v4426_v23 = vmul.f32 0.35355338, %v4361_v34 }
0x2043   :  { %v10366_v57 = vadd.f32 %v4426_v23, %v9190_v60 }
0x2045   :  { %v4450_v13 = vsel %vm1292_vm4, %v10366_v57, -inf }
0x2046   :  { %4451 = vmax.xlane.f32.xlu1 %v4450_v13  ;;  %v10394_v13 = vpop.permute.xlu0 %4731 }
0x2048   :  { %v4363_v17 = vpop.f32.mrf.mxu2  ;;  %v4380_v47 = vpop.f32.mrf.mxu3 }
0x2049   :  { %v4427_v12 = vmul.f32 0.35355338, %v4380_v47  ;;  %v10398_v47 = vpop.permute.xlu2 %4760 }
0x204b   :  { %v4435_v22 = vadd.f32 %v4427_v12, %v9190_v60 }
0x204d   :  { %v4453_v55 = vsel %vm1292_vm4, %v4435_v22, -inf }
0x204e   :  { %4454 = vmax.xlane.f32.xlu2 %v4453_v55  ;;  %v10402_v12 = vpop.permute.xlu0 %4789 }
0x2050   :  { %v4382_v29 = vpop.f32.mrf.mxu3 }
0x2051   :  { %v10404_v55 = vpop.permute.xlu2 %4755 }
0x205f   :  { %4697 = vrot.lane.b32.xlu1 %v10373_v54, %s8572_s26 }
0x2083   :  { %v4399_v18 = vpop.f32.mrf.mxu2 }
0x2084   :  { %v4428_v11 = vmul.f32 0.35355338, %v4399_v18 }
0x2086   :  { %v10380_v63 = vadd.f32 %v4428_v11, %v9190_v60  ;;  %v10406_v11 = vpop.permute.xlu0 %4784 }
0x2088   :  { %v4456_v46 = vsel %vm1292_vm4, %v10380_v63, -inf }
0x2089   :  { %v4443_v58 = vpop.xlane.xlu1 %4442  ;;  %4457 = vmax.xlane.f32.xlu2 %v4456_v46 }
0x208a   :  { %v4463_v28 = vsub.f32 %v4431_v27, %v4443_v58  ;;  %v4724_v27 = vunpack.c.l.b16 %v10256_v20 }
0x208b   :  { %v4401_v50 = vpop.f32.mrf.mxu2  ;;  %v4418_v33 = vpop.f32.mrf.mxu3 }
0x208c   :  { %v4472_v43 = vmul.f32 1.442695, %v4463_v28  ;;  %v4429_v15 = vmul.f32 0.35355338, %v4418_v33  ;;  %v10396_v17 = vpack.c.b16 %v4724_v27, %v4724_v27 }
0x208e   :  { %v10385_v3 = vadd.f32 %v4429_v15, %v9190_v60  ;;  %7828 = vpow2.f32 %v4472_v43  ;;  %v4440_v50 = vpop.xlane.xlu0 %4439 }
0x208f   :  { %v4462_v43 = vsub.f32 %v10355_v53, %v4440_v50 }
0x2090   :  { %v4459_v56 = vsel %vm1292_vm4, %v10385_v3, -inf }
0x2091   :  { %4460 = vmax.xlane.f32.xlu0 %v4459_v56 }
0x2093   :  { %v4420_v45 = vpop.f32.mrf.mxu3 }
0x2094   :  { %v10389_v34 = vpop.eup %7828 }
0x2095   :  { %v4489_v23 = vsel %vm1292_vm4, %v10389_v34, 0.0 }
0x2099   :  { %4490 = vadd.xlane.f32.xlu0 %v4489_v23  ;;  %v4874_v23 = vunpack.c.l.b16 %v10318_v7 }
0x20a1   :  { %4726 = vrot.lane.b32.xlu2 %v10396_v17, %s8572_s26 }
0x20a9   :  { %v4446_v29 = vpop.xlane.xlu1 %4445 }
0x20aa   :  { %v4464_v32 = vsub.f32 %v4432_v61, %v4446_v29  ;;  %v4470_v61 = vmul.f32 1.442695, %v4462_v43 }
0x20ac   :  { %v4474_v18 = vmul.f32 1.442695, %v4464_v32  ;;  %v10420_v32 = vpack.c.b16 %v4874_v23, %v4874_v23 }
0x20ae   :  { %7830 = vpow2.f32 %v4474_v18 }
0x20b1   :  { %v4449_v20 = vpop.xlane.xlu2 %4448 }
0x20b2   :  { %v4465_v46 = vsub.f32 %v4433_v5, %v4449_v20 }
0x20b4   :  { %v10408_v58 = vpop.eup %7830  ;;  %v4476_v28 = vmul.f32 1.442695, %v4465_v46 }
0x20b5   :  { %v4492_v33 = vsel %vm1292_vm4, %v10408_v58, 0.0 }
0x20b6   :  { %7832 = vpow2.f32 %v4476_v28  ;;  %4493 = vadd.xlane.f32.xlu0 %v4492_v33 }
0x20b7   :  { %7834 = vpow2.f32 %v4470_v61 }
0x20b9   :  { %v4452_v7 = vpop.xlane.xlu1 %4451 }
0x20ba   :  { %v4466_v20 = vsub.f32 %v10366_v57, %v4452_v7 }
0x20bc   :  { %v10413_v15 = vpop.eup %7832  ;;  %v4478_v46 = vmul.f32 1.442695, %v4466_v20  ;;  %v5039_v20 = vunpack.c.l.b16 %v10227_v31 }
0x20bd   :  { %v4495_v56 = vsel %vm1292_vm4, %v10413_v15, 0.0  ;;  %v10418_v29 = vpop.eup %7834 }
0x20be   :  { %4496 = vadd.xlane.f32.xlu1 %v4495_v56  ;;  %v4486_v53 = vsel %vm1292_vm4, %v10418_v29, 0.0  ;;  %v4845_v56 = vunpack.c.l.b16 %v10299_v1 }
0x20c0   :  { %v10438_v23 = vpack.c.b16 %v4845_v56, %v4845_v56  ;;  %v4903_v56 = vunpack.c.l.b16 %v10334_v38 }
0x20c1   :  { %v4455_v5 = vpop.xlane.xlu2 %4454 }
0x20c2   :  { %v4467_v45 = vsub.f32 %v4435_v22, %v4455_v5 }
0x20c4   :  { %v4480_v27 = vmul.f32 1.442695, %v4467_v45 }
0x20c6   :  { %7836 = vpow2.f32 %v4480_v27 }
0x20c7   :  { %7838 = vpow2.f32 %v4478_v46 }
0x20ca   :  { %4876 = vrot.lane.b32.xlu0 %v10420_v32, %s8572_s26  ;;  %4487 = vadd.xlane.f32.xlu2 %v4486_v53 }
0x20cc   :  { %v10426_v18 = vpop.eup %7836 }
0x20cd   :  { %v4501_v22 = vsel %vm1292_vm4, %v10426_v18, 0.0  ;;  %v10431_v28 = vpop.eup %7838 }
0x20ce   :  { %4502 = vadd.xlane.f32.xlu1 %v4501_v22  ;;  %v4498_v50 = vsel %vm1292_vm4, %v10431_v28, 0.0 }
0x20f4   :  { %4499 = vadd.xlane.f32.xlu0 %v4498_v50 }
0x20fc   :  { %v4458_v33 = vpop.xlane.xlu2 %4457 }
0x20fd   :  { %v4468_v43 = vsub.f32 %v10380_v63, %v4458_v33  ;;  %v4811_v63 = vunpack.c.l.b16 %v10297_v4  ;;  %v10457_v33 = vpack.c.b16 %v5039_v20, %v5039_v20 }
0x20ff   :  { %v4482_v61 = vmul.f32 1.442695, %v4468_v43  ;;  %v10447_v1 = vpack.c.b16 %v4811_v63, %v4811_v63  ;;  %v4737_v43 = vsel %vm1292_vm4, %v10394_v13, 0  ;;  %v4869_v13 = vunpack.c.l.b16 %v10332_v52 }
0x2100   :  { %v4840_v52 = vunpack.c.l.b16 %v10310_v21  ;;  %v5111_v21 = vunpack.c.l.b16 %v10330_v41 }
0x2101   :  { %7840 = vpow2.f32 %v4482_v61  ;;  %v5135_v61 = vunpack.c.l.b16 %v10283_v44  ;;  %v10482_v44 = vpop.permute.xlu1 %4697 }
0x2103   :  { %v10466_v31 = vpack.c.b16 %v5135_v61, %v5135_v61 }
0x2104   :  { %v4461_v5 = vpop.xlane.xlu0 %4460 }
0x2105   :  { %v4469_v45 = vsub.f32 %v10385_v3, %v4461_v5  ;;  %v10468_v5 = vpack.c.b16 %v4903_v56, %v4903_v56 }
0x2107   :  { %v10440_v57 = vpop.eup %7840  ;;  %v4484_v27 = vmul.f32 1.442695, %v4469_v45 }
0x2108   :  { %4847 = vrot.lane.b32.xlu0 %v10438_v23, %s8572_s26  ;;  %v4504_v53 = vsel %vm1292_vm4, %v10440_v57, 0.0 }
0x2109   :  { %7842 = vpow2.f32 %v4484_v27  ;;  %4505 = vadd.xlane.f32.xlu1 %v4504_v53  ;;  %v10478_v27 = vpack.c.b16 %v4869_v13, %v4869_v13 }
0x210c   :  { %v4491_v22 = vpop.xlane.xlu0 %4490 }
0x210d   :  { %7844 = vrcp.f32 %v4491_v22  ;;  %v10492_v22 = vpack.c.b16 %v4840_v52, %v4840_v52 }
0x210f   :  { %v10449_v3 = vpop.eup %7842 }
0x2110   :  { %4813 = vrot.lane.b32.xlu0 %v10447_v1, %s8572_s26  ;;  %v4507_v7 = vsel %vm1292_vm4, %v10449_v3, 0.0 }
0x2111   :  { %4508 = vadd.xlane.f32.xlu2 %v4507_v7 }
0x2113   :  { %v7845_v46 = vpop.eup %7844 }
0x2114   :  { %v4519_v50 = vmul.f32 %v7845_v46, %v10389_v34  ;;  %v4816_v34 = vunpack.c.l.b16 %v10281_v51  ;;  %v4898_v51 = vunpack.c.l.b16 %v10348_v25  ;;  %v5087_v46 = vunpack.c.l.b16 %v10316_v24 }
0x2115   :  { %v5183_v24 = vunpack.c.l.b16 %v10327_v6 }
0x2116   :  { %v4527_v4 = vpack.c.bf16 %v4519_v50, %v4519_v50  ;;  %v10476_v45 = vpack.c.b16 %v4816_v34, %v4816_v34  ;;  %v10490_v53 = vpack.c.b16 %v4898_v51, %v4898_v51  ;;  %v4766_v50 = vsel %vm1292_vm4, %v10398_v47, 0 }
0x2117   :  { %v10508_v61 = vpack.c.b16 %v5087_v46, %v5087_v46  ;;  %v5063_v47 = vunpack.c.l.b16 %v10244_v48  ;;  %v4795_v34 = vsel %vm1292_vm4, %v10402_v12, 0  ;;  %v5159_v48 = vunpack.c.l.b16 %v10301_v49 }
0x2118   :  { %5041 = vrot.lane.b32.xlu0 %v10457_v33, %s8572_s26  ;;  %7389 = vmatmul.msk.bf16.vlgmr.msrb.gmra.mxu1 %vm1292_vm4, %v4527_v4  ;;  %v4727_v4 = vpop.permute.xlu2 %4726  ;;  %v5207_v12 = vunpack.c.l.b16 %v10346_v8 }
0x2119   :  { %4746 = vmatpush.bf16.xpose.msrb.mxu1 %v4737_v43 }
0x2120   :  { %5137 = vrot.lane.b32.xlu0 %v10466_v31, %s8572_s26 }
0x2122   :  { %4905 = vrot.lane.b32.xlu1 %v10468_v5, %s8572_s26 }
0x2128   :  { %5318 = vrot.lane.b32.xlu0 %v10262_v40, %s8574_s4 }
0x2129   :  { %v4494_v38 = vpop.xlane.xlu0 %4493  ;;  %4818 = vrot.lane.b32.xlu2 %v10476_v45, %s8572_s26 }
0x212a   :  { %7846 = vrcp.f32 %v4494_v38  ;;  %4871 = vrot.lane.b32.xlu1 %v10478_v27, %s8572_s26  ;;  %v10522_v38 = vpack.c.b16 %v5063_v47, %v5063_v47 }
0x2130   :  { %v7847_v63 = vpop.eup %7846  ;;  %5295 = vrot.lane.b32.xlu0 %v10251_v19, %s8574_s4 }
0x2131   :  { %v4520_v7 = vmul.f32 %v7847_v63, %v10408_v58  ;;  %v4497_v20 = vpop.xlane.xlu1 %4496  ;;  %4900 = vrot.lane.b32.xlu2 %v10490_v53, %s8572_s26  ;;  %v10506_v58 = vpack.c.b16 %v5111_v21, %v5111_v21  ;;  %v10531_v63 = vpack.c.b16 %v5159_v48, %v5159_v48  ;;  %v10533_v21 = vpack.c.b16 %v5207_v12, %v5207_v12 }
0x2132   :  { %7848 = vrcp.f32 %v4497_v20  ;;  %4842 = vrot.lane.b32.xlu1 %v10492_v22, %s8572_s26 }
0x2133   :  { %v4528_v25 = vpack.c.bf16 %v4520_v7, %v4520_v7 }
0x2135   :  { %7390 = vmatmul.msk.bf16.vlgmr.msra.gmra.mxu2 %vm1292_vm4, %v4528_v25  ;;  %v4708_v25 = vsel %vm1292_vm4, %v10377_v16, 0 }
0x2136   :  { %4775 = vmatpush.bf16.xpose.msra.mxu2 %v4766_v50 }
0x2138   :  { %v7849_v43 = vpop.eup %7848 }
0x2139   :  { %v4521_v56 = vmul.f32 %v7849_v43, %v10413_v15  ;;  %5113 = vrot.lane.b32.xlu2 %v10506_v58, %s8572_s26  ;;  %v10520_v15 = vpack.c.b16 %v5183_v24, %v5183_v24 }
0x213a   :  { %5089 = vrot.lane.b32.xlu1 %v10508_v61, %s8572_s26 }
0x213b   :  { %v4529_v41 = vpack.c.bf16 %v4521_v56, %v4521_v56 }
0x213c   :  { %v4877_v8 = vpop.permute.xlu0 %4876 }
0x213d   :  { %7391 = vmatmul.msk.bf16.vlgmr.msra.gmra.mxu3 %vm1292_vm4, %v4529_v41  ;;  %v4488_v13 = vpop.xlane.xlu2 %4487 }
0x213e   :  { %4804 = vmatpush.bf16.xpose.msra.mxu3 %v4795_v34  ;;  %7850 = vrcp.f32 %v4488_v13 }
0x2141   :  { %v4503_v51 = vpop.xlane.xlu1 %4502  ;;  %5185 = vrot.lane.b32.xlu2 %v10520_v15, %s8572_s26 }
0x2142   :  { %7852 = vrcp.f32 %v4503_v51  ;;  %5065 = vrot.lane.b32.xlu1 %v10522_v38, %s8572_s26 }
0x2144   :  { %v7851_v6 = vpop.eup %7850 }
0x2145   :  { %v4518_v52 = vmul.f32 %v7851_v6, %v10418_v29 }
0x2147   :  { %v4526_v7 = vpack.c.bf16 %v4518_v52, %v4518_v52 }
0x2148   :  { %v7853_v20 = vpop.eup %7852 }
0x2149   :  { %v4523_v46 = vmul.f32 %v7853_v20, %v10426_v18  ;;  %5161 = vrot.lane.b32.xlu2 %v10531_v63, %s8572_s26  ;;  %7388 = vmatmul.msk.bf16.vlgmr.msrb.gmra.mxu0 %vm1292_vm4, %v4526_v7 }
0x214a   :  { %4717 = vmatpush.bf16.xpose.msrb.mxu0 %v4708_v25  ;;  %5209 = vrot.lane.b32.xlu1 %v10533_v21, %s8572_s26 }
0x214b   :  { %v4531_v49 = vpack.c.bf16 %v4523_v46, %v4523_v46 }
0x214d   :  { %7393 = vmatmul.msk.bf16.vlgmr.msra.gmra.mxu1 %vm1292_vm4, %v4531_v49 }
0x215d   :  { %7397 = vmatmul.msk.bf16.vlgmr.msrb.gmra.mxu1 %vm1292_vm4, %v4727_v4 }
0x2167   :  { %v4500_v29 = vpop.xlane.xlu0 %4499 }
0x2168   :  { %7854 = vrcp.f32 %v4500_v29 }
0x216e   :  { %v7855_v16 = vpop.eup %7854 }
0x216f   :  { %v4522_v18 = vmul.f32 %v7855_v16, %v10431_v28  ;;  %v4882_v28 = vsel %vm1292_vm4, %v4877_v8, 0 }
0x2171   :  { %v4530_v50 = vpack.c.bf16 %v4522_v18, %v4522_v18 }
0x2173   :  { %7392 = vmatmul.msk.bf16.vlgmr.msra.gmra.mxu0 %vm1292_vm4, %v4530_v50 }
0x217a   :  { %v4848_v43 = vpop.permute.xlu0 %4847 }
0x217b   :  { %v4853_v56 = vsel %vm1292_vm4, %v4848_v43, 0 }
0x217c   :  { %4862 = vmatpush.bf16.xpose.msra.mxu1 %v4853_v56  ;;  %v4506_v24 = vpop.xlane.xlu1 %4505 }
0x217d   :  { %7856 = vrcp.f32 %v4506_v24 }
0x2182   :  { %v4814_v41 = vpop.permute.xlu0 %4813 }
0x2183   :  { %v7857_v47 = vpop.eup %7856  ;;  %7396 = vmatmul.msk.bf16.vlgmr.msrb.gmra.mxu0 %vm1292_vm4, %v10482_v44 }
0x2184   :  { %v4524_v4 = vmul.f32 %v7857_v47, %v10440_v57  ;;  %v4509_v34 = vpop.xlane.xlu2 %4508 }
0x2185   :  { %7858 = vrcp.f32 %v4509_v34 }
0x2186   :  { %v4532_v13 = vpack.c.bf16 %v4524_v4, %v4524_v4 }
0x2188   :  { %7394 = vmatmul.msk.bf16.vlgmr.msrb.gmra.mxu2 %vm1292_vm4, %v4532_v13 }
0x2189   :  { %4891 = vmatpush.bf16.xpose.msrb.mxu2 %v4882_v28 }
0x218a   :  { %v5042_v51 = vpop.permute.xlu0 %5041 }
0x218b   :  { %v7859_v48 = vpop.eup %7858  ;;  %v5047_v44 = vsel %vm1560_vm5, %v5042_v51, 0 }
0x218c   :  { %v4525_v6 = vmul.f32 %v7859_v48, %v10449_v3  ;;  %v4819_v12 = vpop.permute.xlu2 %4818 }
0x218d   :  { %v4824_v52 = vsel %vm1292_vm4, %v4819_v12, 0 }
0x218e   :  { %v4533_v7 = vpack.c.bf16 %v4525_v6, %v4525_v6  ;;  %4833 = vmatpush.bf16.xpose.msra.mxu0 %v4824_v52 }
0x2190   :  { %7395 = vmatmul.msk.bf16.vlgmr.msrb.gmra.mxu3 %vm1292_vm4, %v4533_v7 }
0x2192   :  { %v5138_v57 = vpop.permute.xlu0 %5137 }
0x2193   :  { %v5143_v46 = vsel %vm1560_vm5, %v5138_v57, 0 }
0x2194   :  { %v4906_v20 = vpop.permute.xlu1 %4905  ;;  %v4901_v25 = vpop.permute.xlu2 %4900 }
0x2195   :  { %v4911_v49 = vsel %vm1292_vm4, %v4906_v20, 0  ;;  %v4568_v8 = vpop.f32.mrf.mxu1  ;;  %7400 = vmatmul.msk.bf16.vlgmr.msra.gmra.mxu0 %vm1292_vm4, %v4814_v41 }
0x2196   :  { %5056 = vmatpush.bf16.msrb.mxu0 %v5047_v44  ;;  %4687 = vst.msk [vmem:[#allocation3 + $0x8] sm:$0xff] %vm1292_vm4, %v4568_v8  ;;  %4920 = vmatpush.bf16.xpose.msrb.mxu3 %v4911_v49 }
0x2198   :  { %7398 = vmatmul.msk.bf16.vlgmr.msra.gmra.mxu2 %vm1292_vm4, %v10404_v55 }
0x219a   :  { %5152 = vmatpush.bf16.msra.mxu0 %v5143_v46 }
0x219c   :  { %v4872_v3 = vpop.permute.xlu1 %4871  ;;  %v5114_v29 = vpop.permute.xlu2 %5113 }
0x219d   :  { %v4570_v16 = vpop.f32.mrf.mxu1  ;;  %v5119_v18 = vsel %vm1560_vm5, %v5114_v29, 0 }
0x21a0   :  { %7399 = vmatmul.msk.bf16.vlgmr.msra.gmra.mxu3 %vm1292_vm4, %v10406_v11 }
0x21a1   :  { %5128 = vmatpush.bf16.msra.mxu3 %v5119_v18 }
0x21a4   :  { %v4843_v50 = vpop.permute.xlu1 %4842  ;;  %v5186_v43 = vpop.permute.xlu2 %5185 }
0x21a5   :  { %7401 = vmatmul.msk.bf16.vlgmr.msra.gmra.mxu1 %vm1292_vm4, %v4843_v50  ;;  %v5191_v55 = vsel %vm1560_vm5, %v5186_v43, 0 }
0x21a8   :  { %7402 = vmatmul.msk.bf16.vlgmr.msrb.gmra.mxu2 %vm1292_vm4, %v4872_v3 }
0x21ac   :  { %v5090_v56 = vpop.permute.xlu1 %5089  ;;  %v5162_v41 = vpop.permute.xlu2 %5161 }
0x21ad   :  { %v5095_v24 = vsel %vm1560_vm5, %v5090_v56, 0  ;;  %v5167_v4 = vsel %vm1560_vm5, %v5162_v41, 0 }
0x21ae   :  { %5104 = vmatpush.bf16.msra.mxu2 %v5095_v24 }
0x21b0   :  { %7403 = vmatmul.msk.bf16.vlgmr.msrb.gmra.mxu3 %vm1292_vm4, %v4901_v25 }
0x21b2   :  { %5200 = vmatpush.bf16.msrb.mxu2 %v5191_v55 }
0x21b4   :  { %v5066_v47 = vpop.permute.xlu1 %5065 }
0x21b5   :  { %v5071_v11 = vsel %vm1560_vm5, %v5066_v47, 0 }
0x21b6   :  { %5080 = vmatpush.bf16.msrb.mxu1 %v5071_v11 }
0x21b8   :  { %v4587_v34 = vpop.f32.mrf.mxu2 }
0x21b9   :  { %4688 = vst.msk [vmem:[#allocation3 + $0x10] sm:$0xff] %vm1292_vm4, %v4587_v34 }
0x21ba   :  { %5176 = vmatpush.bf16.msra.mxu1 %v5167_v4 }
0x21bc   :  { %v5210_v13 = vpop.permute.xlu1 %5209 }
0x21bd   :  { %v5215_v28 = vsel %vm1560_vm5, %v5210_v13, 0 }
0x21be   :  { %5224 = vmatpush.bf16.msrb.mxu3 %v5215_v28 }
0x21c0   :  { %v4589_v51 = vpop.f32.mrf.mxu2  ;;  %v4606_v48 = vpop.f32.mrf.mxu3 }
0x21c1   :  { %4689 = vst.msk [vmem:[#allocation3 + $0x18] sm:$0xff] %vm1292_vm4, %v4606_v48 }
0x21c6   :  { %v4549_v6 = vpop.f32.mrf.mxu0 }
0x21c7   :  { %4686 = vst.msk [vmem:[#allocation3] sm:$0xff] %vm1292_vm4, %v4549_v6 }
0x21c8   :  { %v4608_v12 = vpop.f32.mrf.mxu3 }
0x21ca   :  { %v4644_v52 = vpop.f32.mrf.mxu1 }
0x21cb   :  { %4691 = vst.msk [vmem:[#allocation3 + $0x28] sm:$0xff] %vm1292_vm4, %v4644_v52 }
0x21ce   :  { %v4551_v7 = vpop.f32.mrf.mxu0 }
0x21d2   :  { %v4646_v44 = vpop.f32.mrf.mxu1 }
0x21da   :  { %v4748_v57 = vpop.f32.mrf.mxu1 }
0x21db   :  { %v4927_v20 = vmul.f32 0.35355338, %v4748_v57 }
0x21dd   :  { %v4935_v25 = vadd.f32 %v4927_v20, %v9190_v60 }
0x21df   :  { %v4945_v46 = vsel %vm1292_vm4, %v4935_v25, -inf }
0x21e0   :  { %4946 = vmax.xlane.f32.xlu2 %v4945_v46 }
0x21e2   :  { %v4750_v49 = vpop.f32.mrf.mxu1 }
0x21f0   :  { %v4625_v8 = vpop.f32.mrf.mxu0 }
0x21f1   :  { %4690 = vst.msk [vmem:[#allocation3 + $0x20] sm:$0xff] %vm1292_vm4, %v4625_v8 }
0x21f8   :  { %5272 = vrot.lane.b32.xlu2 %v10225_v37, %s8574_s4  ;;  %v4627_v3 = vpop.f32.mrf.mxu0 }
0x2200   :  { %v4719_v29 = vpop.f32.mrf.mxu0 }
0x2201   :  { %v4926_v16 = vmul.f32 0.35355338, %v4719_v29 }
0x2203   :  { %v4934_v18 = vadd.f32 %v4926_v16, %v9190_v60 }
0x2205   :  { %v4942_v50 = vsel %vm1292_vm4, %v4934_v18, -inf }
0x2206   :  { %4943 = vmax.xlane.f32.xlu1 %v4942_v50 }
0x2208   :  { %v4721_v43 = vpop.f32.mrf.mxu0 }
0x220b   :  { %v4663_v56 = vpop.f32.mrf.mxu2 }
0x220c   :  { %4692 = vst.msk [vmem:[#allocation3 + $0x30] sm:$0xff] %vm1292_vm4, %v4663_v56 }
0x2212   :  { %v4835_v24 = vpop.f32.mrf.mxu0 }
0x2213   :  { %v4930_v55 = vmul.f32 0.35355338, %v4835_v24  ;;  %v4665_v41 = vpop.f32.mrf.mxu2  ;;  %v4682_v47 = vpop.f32.mrf.mxu3 }
0x2214   :  { %4693 = vst.msk [vmem:[#allocation3 + $0x38] sm:$0xff] %vm1292_vm4, %v4682_v47 }
0x2215   :  { %v4938_v11 = vadd.f32 %v4930_v55, %v9190_v60 }
0x2217   :  { %v4954_v4 = vsel %vm1292_vm4, %v4938_v11, -inf }
0x2218   :  { %4955 = vmax.xlane.f32.xlu1 %v4954_v4 }
0x221a   :  { %v4837_v34 = vpop.f32.mrf.mxu0 }
0x221b   :  { %v4684_v13 = vpop.f32.mrf.mxu3  ;;  %v4777_v28 = vpop.f32.mrf.mxu2 }
0x221c   :  { %v4928_v51 = vmul.f32 0.35355338, %v4777_v28 }
0x221e   :  { %v4936_v48 = vadd.f32 %v4928_v51, %v9190_v60 }
0x2220   :  { %v4948_v6 = vsel %vm1292_vm4, %v4936_v48, -inf }
0x2221   :  { %4949 = vmax.xlane.f32.xlu2 %v4948_v6 }
0x2222   :  { %v4864_v12 = vpop.f32.mrf.mxu1 }
0x2223   :  { %v4931_v52 = vmul.f32 0.35355338, %v4864_v12  ;;  %v4779_v7 = vpop.f32.mrf.mxu2  ;;  %v4806_v44 = vpop.f32.mrf.mxu3 }
0x2224   :  { %v4929_v57 = vmul.f32 0.35355338, %v4806_v44 }
0x2225   :  { %v4939_v20 = vadd.f32 %v4931_v52, %v9190_v60 }
0x2226   :  { %v4937_v46 = vadd.f32 %v4929_v57, %v9190_v60 }
0x2227   :  { %v4957_v49 = vsel %vm1292_vm4, %v4939_v20, -inf }
0x2228   :  { %v4951_v8 = vsel %vm1292_vm4, %v4937_v46, -inf }
0x2229   :  { %4958 = vmax.xlane.f32.xlu2 %v4957_v49  ;;  %4952 = vmax.xlane.f32.xlu0 %v4951_v8  ;;  %v10609_v8 = vpop.permute.xlu0 %5318 }
0x222a   :  { %v4866_v3 = vpop.f32.mrf.mxu1 }
0x222b   :  { %v4808_v29 = vpop.f32.mrf.mxu3  ;;  %v4893_v16 = vpop.f32.mrf.mxu2 }
0x222c   :  { %v4932_v50 = vmul.f32 0.35355338, %v4893_v16 }
0x222e   :  { %v10596_v43 = vadd.f32 %v4932_v50, %v9190_v60 }
0x2230   :  { %v4960_v56 = vsel %vm1292_vm4, %v10596_v43, -inf }
0x2231   :  { %4961 = vmax.xlane.f32.xlu2 %v4960_v56  ;;  %5341 = vrot.lane.b32.xlu1 %v10272_v39, %s8574_s4  ;;  %v5296_v50 = vpop.permute.xlu0 %5295 }
0x2233   :  { %v4895_v24 = vpop.f32.mrf.mxu2  ;;  %v4922_v55 = vpop.f32.mrf.mxu3 }
0x2234   :  { %v4933_v41 = vmul.f32 0.35355338, %v4922_v55 }
0x2236   :  { %v4941_v47 = vadd.f32 %v4933_v41, %v9190_v60 }
0x2238   :  { %v4963_v4 = vsel %vm1292_vm4, %v4941_v47, -inf }
0x2239   :  { %4964 = vmax.xlane.f32.xlu0 %v4963_v4 }
0x223b   :  { %v4924_v34 = vpop.f32.mrf.mxu3 }
0x2253   :  { %v4947_v13 = vpop.xlane.xlu2 %4946 }
0x2254   :  { %v4967_v28 = vsub.f32 %v4935_v25, %v4947_v13 }
0x2256   :  { %v4976_v51 = vmul.f32 1.442695, %v4967_v28 }
0x2258   :  { %7860 = vpow2.f32 %v4976_v51 }
0x225b   :  { %v10611_v25 = vpop.permute.xlu2 %5272 }
0x225e   :  { %v7861_v6 = vpop.eup %7860 }
0x225f   :  { %v4993_v12 = vsel %vm1292_vm4, %v7861_v6, 0.0 }
0x2260   :  { %4994 = vadd.xlane.f32.xlu0 %v4993_v12 }
0x2279   :  { %v4944_v52 = vpop.xlane.xlu1 %4943 }
0x227a   :  { %v4966_v7 = vsub.f32 %v4934_v18, %v4944_v52 }
0x227c   :  { %v4974_v44 = vmul.f32 1.442695, %v4966_v7 }
0x227e   :  { %7862 = vpow2.f32 %v4974_v44 }
0x2284   :  { %v10605_v57 = vpop.eup %7862 }
0x2285   :  { %v4990_v49 = vsel %vm1292_vm4, %v10605_v57, 0.0 }
0x2286   :  { %4991 = vadd.xlane.f32.xlu2 %v4990_v49 }
0x228b   :  { %v4956_v3 = vpop.xlane.xlu1 %4955 }
0x228c   :  { %v4970_v29 = vsub.f32 %v4938_v11, %v4956_v3 }
0x228e   :  { %v4982_v16 = vmul.f32 1.442695, %v4970_v29 }
0x2290   :  { %7864 = vpow2.f32 %v4982_v16 }
0x2294   :  { %v4950_v56 = vpop.xlane.xlu2 %4949 }
0x2295   :  { %v4968_v24 = vsub.f32 %v4936_v48, %v4950_v56 }
0x2296   :  { %v10613_v18 = vpop.eup %7864 }
0x2297   :  { %v4978_v55 = vmul.f32 1.442695, %v4968_v24  ;;  %v5002_v41 = vsel %vm1292_vm4, %v10613_v18, 0.0 }
0x2298   :  { %5003 = vadd.xlane.f32.xlu1 %v5002_v41 }
0x2299   :  { %7866 = vpow2.f32 %v4978_v55 }
0x229c   :  { %v4953_v4 = vpop.xlane.xlu0 %4952  ;;  %v4959_v34 = vpop.xlane.xlu2 %4958 }
0x229d   :  { %v4969_v13 = vsub.f32 %v4937_v46, %v4953_v4  ;;  %v4971_v28 = vsub.f32 %v4939_v20, %v4959_v34  ;;  %v5301_v34 = vsel %vm1292_vm4, %v5296_v50, 0 }
0x229e   :  { %5339 = vrot.lane.b32.xlu2 %v10290_v10, %s8574_s4 }
0x229f   :  { %v10619_v11 = vpop.eup %7866  ;;  %v4980_v51 = vmul.f32 1.442695, %v4969_v13  ;;  %v4984_v12 = vmul.f32 1.442695, %v4971_v28 }
0x22a0   :  { %v4996_v48 = vsel %vm1292_vm4, %v10619_v11, 0.0 }
0x22a1   :  { %7868 = vpow2.f32 %v4980_v51  ;;  %4997 = vadd.xlane.f32.xlu0 %v4996_v48 }
0x22a2   :  { %7870 = vpow2.f32 %v4984_v12 }
0x22a3   :  { %v5342_v12 = vpop.permute.xlu1 %5341 }
0x22a4   :  { %v4962_v24 = vpop.xlane.xlu2 %4961 }
0x22a5   :  { %v4972_v4 = vsub.f32 %v10596_v43, %v4962_v24 }
0x22a6   :  { %5410 = vrot.lane.b32.xlu2 %v10420_v32, %s8574_s4 }
0x22a7   :  { %v10625_v52 = vpop.eup %7868  ;;  %v4986_v13 = vmul.f32 1.442695, %v4972_v4 }
0x22a8   :  { %v10627_v46 = vpop.eup %7870  ;;  %v4999_v20 = vsel %vm1292_vm4, %v10625_v52, 0.0 }
0x22a9   :  { %5000 = vadd.xlane.f32.xlu1 %v4999_v20  ;;  %v5005_v7 = vsel %vm1292_vm4, %v10627_v46, 0.0  ;;  %v5278_v20 = vsel %vm1292_vm4, %v10611_v25, 0 }
0x22aa   :  { %5006 = vadd.xlane.f32.xlu0 %v5005_v7 }
0x22ac   :  { %v4965_v44 = vpop.xlane.xlu0 %4964 }
0x22ad   :  { %v4973_v49 = vsub.f32 %v4941_v47, %v4965_v44 }
0x22af   :  { %v4988_v3 = vmul.f32 1.442695, %v4973_v49 }
0x22b1   :  { %7872 = vpow2.f32 %v4988_v3 }
0x22b7   :  { %v10641_v29 = vpop.eup %7872 }
0x22b8   :  { %v5011_v16 = vsel %vm1292_vm4, %v10641_v29, 0.0 }
0x22be   :  { %5270 = vrot.lane.b32.xlu0 %v10373_v54, %s8574_s4 }
0x22c2   :  { %5316 = vrot.lane.b32.xlu1 %v10270_v42, %s8574_s4 }
0x22c6   :  { %5433 = vrot.lane.b32.xlu0 %v10468_v5, %s8574_s4 }
0x22ca   :  { %5293 = vrot.lane.b32.xlu1 %v10396_v17, %s8574_s4 }
0x22cf   :  { %5012 = vadd.xlane.f32.xlu2 %v5011_v16 }
0x22d2   :  { %5364 = vrot.lane.b32.xlu1 %v10476_v45, %s8574_s4 }
0x22d3   :  { %v4995_v47 = vpop.xlane.xlu0 %4994 }
0x22d4   :  { %7874 = vrcp.f32 %v4995_v47 }
0x22d5   :  { %7876 = vpow2.f32 %v4986_v13  ;;  %v5347_v13 = vsel %vm1292_vm4, %v5342_v12, 0 }
0x22da   :  { %v7875_v56 = vpop.eup %7874  ;;  %5431 = vrot.lane.b32.xlu1 %v10490_v53, %s8574_s4 }
0x22db   :  { %v5023_v55 = vmul.f32 %v7875_v56, %v7861_v6  ;;  %v10658_v6 = vpop.eup %7876 }
0x22dc   :  { %v5008_v43 = vsel %vm1292_vm4, %v10658_v6, 0.0 }
0x22dd   :  { %v5031_v41 = vpack.c.bf16 %v5023_v55, %v5023_v55 }
0x22df   :  { %7405 = vmatmul.msk.bf16.vlgmr.msrb.gmra.mxu1 %vm1292_vm4, %v5031_v41 }
0x22e0   :  { %5310 = vmatpush.bf16.xpose.msrb.mxu1 %v5301_v34 }
0x22e2   :  { %5566 = vrot.lane.b32.xlu1 %v10457_v33, %s8574_s4 }
0x22e7   :  { %5387 = vrot.lane.b32.xlu2 %v10438_v23, %s8574_s4 }
0x22ea   :  { %5629 = vrot.lane.b32.xlu1 %v10506_v58, %s8574_s4 }
0x22ef   :  { %5362 = vrot.lane.b32.xlu2 %v10447_v1, %s8574_s4 }
0x22f0   :  { %5009 = vadd.xlane.f32.xlu0 %v5008_v43 }
0x22f2   :  { %5671 = vrot.lane.b32.xlu1 %v10531_v63, %s8574_s4 }
0x22f7   :  { %5587 = vrot.lane.b32.xlu2 %v10522_v38, %s8574_s4 }
0x22f9   :  { %v4992_v50 = vpop.xlane.xlu2 %4991 }
0x22fa   :  { %7878 = vrcp.f32 %v4992_v50  ;;  %5799 = vrot.lane.b32.xlu1 %v10251_v19, %s8575_s7 }
0x22ff   :  { %5650 = vrot.lane.b32.xlu2 %v10466_v31, %s8574_s4 }
0x2300   :  { %v7879_v28 = vpop.eup %7878 }
0x2301   :  { %v5022_v51 = vmul.f32 %v7879_v28, %v10605_v57 }
0x2303   :  { %v5030_v48 = vpack.c.bf16 %v5022_v51, %v5022_v51 }
0x2304   :  { %5408 = vrot.lane.b32.xlu0 %v10478_v27, %s8574_s4 }
0x2305   :  { %7404 = vmatmul.msk.bf16.vlgmr.msrb.gmra.mxu0 %vm1292_vm4, %v5030_v48 }
0x2306   :  { %5287 = vmatpush.bf16.xpose.msrb.mxu0 %v5278_v20 }
0x2307   :  { %5713 = vrot.lane.b32.xlu2 %v10533_v21, %s8574_s4 }
0x230b   :  { %v5004_v19 = vpop.xlane.xlu1 %5003 }
0x230c   :  { %7880 = vrcp.f32 %v5004_v19  ;;  %5385 = vrot.lane.b32.xlu0 %v10492_v22, %s8574_s4 }
0x2312   :  { %v7881_v57 = vpop.eup %7880 }
0x2313   :  { %v5026_v7 = vmul.f32 %v7881_v57, %v10613_v18  ;;  %v5324_v18 = vsel %vm1292_vm4, %v10609_v8, 0  ;;  %v5340_v8 = vpop.permute.xlu2 %5339 }
0x2314   :  { %5608 = vrot.lane.b32.xlu0 %v10508_v61, %s8574_s4  ;;  %v4998_v44 = vpop.xlane.xlu0 %4997 }
0x2315   :  { %v5034_v49 = vpack.c.bf16 %v5026_v7, %v5026_v7  ;;  %7882 = vrcp.f32 %v4998_v44 }
0x2317   :  { %7408 = vmatmul.msk.bf16.vlgmr.msra.gmra.mxu0 %vm1292_vm4, %v5034_v49 }
0x231b   :  { %v7883_v25 = vpop.eup %7882 }
0x231c   :  { %v5024_v3 = vmul.f32 %v7883_v25, %v10619_v11  ;;  %5692 = vrot.lane.b32.xlu0 %v10520_v15, %s8574_s4  ;;  %v5001_v16 = vpop.xlane.xlu1 %5000 }
0x231d   :  { %7884 = vrcp.f32 %v5001_v16  ;;  %v5007_v47 = vpop.xlane.xlu0 %5006 }
0x231e   :  { %v5032_v56 = vpack.c.bf16 %v5024_v3, %v5024_v3  ;;  %7886 = vrcp.f32 %v5007_v47 }
0x2320   :  { %7406 = vmatmul.msk.bf16.vlgmr.msra.gmra.mxu2 %vm1292_vm4, %v5032_v56 }
0x2321   :  { %5333 = vmatpush.bf16.xpose.msra.mxu2 %v5324_v18 }
0x2323   :  { %v7885_v24 = vpop.eup %7884 }
0x2324   :  { %v7887_v55 = vpop.eup %7886  ;;  %v5025_v41 = vmul.f32 %v7885_v24, %v10625_v52  ;;  %5776 = vrot.lane.b32.xlu0 %v10225_v37, %s8575_s7  ;;  %v5411_v52 = vpop.permute.xlu2 %5410 }
0x2325   :  { %v5027_v11 = vmul.f32 %v7887_v55, %v10627_v46 }
0x2326   :  { %v5033_v4 = vpack.c.bf16 %v5025_v41, %v5025_v41 }
0x2327   :  { %v5035_v34 = vpack.c.bf16 %v5027_v11, %v5027_v11 }
0x2328   :  { %7407 = vmatmul.msk.bf16.vlgmr.msra.gmra.mxu3 %vm1292_vm4, %v5033_v4 }
0x2329   :  { %7409 = vmatmul.msk.bf16.vlgmr.msra.gmra.mxu1 %vm1292_vm4, %v5035_v34  ;;  %5356 = vmatpush.bf16.xpose.msra.mxu3 %v5347_v13 }
0x2330   :  { %v5271_v43 = vpop.permute.xlu0 %5270 }
0x2331   :  { %7412 = vmatmul.msk.bf16.vlgmr.msrb.gmra.mxu0 %vm1292_vm4, %v5271_v43 }
0x2334   :  { %v5317_v50 = vpop.permute.xlu1 %5316 }
0x2338   :  { %v5434_v19 = vpop.permute.xlu0 %5433 }
0x2339   :  { %v5439_v49 = vsel %vm1292_vm4, %v5434_v19, 0 }
0x233c   :  { %v5294_v28 = vpop.permute.xlu1 %5293 }
0x233d   :  { %7413 = vmatmul.msk.bf16.vlgmr.msrb.gmra.mxu1 %vm1292_vm4, %v5294_v28 }
0x2342   :  { %v5013_v37 = vpop.xlane.xlu2 %5012 }
0x2343   :  { %7888 = vrcp.f32 %v5013_v37 }
0x2344   :  { %v5365_v46 = vpop.permute.xlu1 %5364 }
0x2345   :  { %v5370_v51 = vsel %vm1292_vm4, %v5365_v46, 0  ;;  %v5416_v46 = vsel %vm1292_vm4, %v5411_v52, 0 }
0x2346   :  { %5379 = vmatpush.bf16.xpose.msra.mxu0 %v5370_v51 }
0x2349   :  { %v7889_v12 = vpop.eup %7888 }
0x234a   :  { %v5029_v48 = vmul.f32 %v7889_v12, %v10641_v29  ;;  %v5388_v20 = vpop.permute.xlu2 %5387 }
0x234b   :  { %v5393_v57 = vsel %vm1292_vm4, %v5388_v20, 0 }
0x234c   :  { %v5037_v7 = vpack.c.bf16 %v5029_v48, %v5029_v48  ;;  %5402 = vmatpush.bf16.xpose.msra.mxu1 %v5393_v57  ;;  %v5432_v44 = vpop.permute.xlu1 %5431 }
0x234e   :  { %7411 = vmatmul.msk.bf16.vlgmr.msrb.gmra.mxu3 %vm1292_vm4, %v5037_v7 }
0x234f   :  { %5448 = vmatpush.bf16.xpose.msrb.mxu3 %v5439_v49 }
0x2352   :  { %v5363_v25 = vpop.permute.xlu2 %5362 }
0x2353   :  { %7416 = vmatmul.msk.bf16.vlgmr.msra.gmra.mxu0 %vm1292_vm4, %v5363_v25 }
0x2354   :  { %v5567_v3 = vpop.permute.xlu1 %5566 }
0x2355   :  { %v5572_v16 = vsel %vm1560_vm5, %v5567_v3, 0 }
0x2356   :  { %5581 = vmatpush.bf16.msrb.mxu0 %v5572_v16 }
0x235a   :  { %v5588_v29 = vpop.permute.xlu2 %5587 }
0x235b   :  { %v5593_v47 = vsel %vm1560_vm5, %v5588_v29, 0 }
0x235c   :  { %v10709_v56 = vpop.f32.mrf.mxu1  ;;  %5602 = vmatpush.bf16.msrb.mxu1 %v5593_v47  ;;  %v5630_v18 = vpop.permute.xlu1 %5629 }
0x235d   :  { %v5635_v24 = vsel %vm1560_vm5, %v5630_v18, 0 }
0x235e   :  { %7415 = vmatmul.msk.bf16.vlgmr.msra.gmra.mxu3 %vm1292_vm4, %v5340_v8 }
0x235f   :  { %5644 = vmatpush.bf16.msra.mxu3 %v5635_v24 }
0x2362   :  { %v5651_v55 = vpop.permute.xlu2 %5650 }
0x2363   :  { %v5656_v41 = vsel %vm1560_vm5, %v5651_v55, 0  ;;  %v5010_v11 = vpop.xlane.xlu0 %5009 }
0x2364   :  { %v5084_v4 = vpop.f32.mrf.mxu1  ;;  %7890 = vrcp.f32 %v5010_v11  ;;  %5665 = vmatpush.bf16.msra.mxu0 %v5656_v41  ;;  %v5672_v51 = vpop.permute.xlu1 %5671 }
0x2365   :  { %v5677_v48 = vsel %vm1560_vm5, %v5672_v51, 0 }
0x236a   :  { %v7891_v34 = vpop.eup %7890  ;;  %v5714_v43 = vpop.permute.xlu2 %5713 }
0x236b   :  { %v5028_v13 = vmul.f32 %v7891_v34, %v10658_v6  ;;  %v5719_v37 = vsel %vm1560_vm5, %v5714_v43, 0 }
0x236d   :  { %v5036_v28 = vpack.c.bf16 %v5028_v13, %v5028_v13 }
0x236e   :  { %7419 = vmatmul.msk.bf16.vlgmr.msrb.gmra.mxu3 %vm1292_vm4, %v5432_v44 }
0x236f   :  { %5728 = vmatpush.bf16.msrb.mxu3 %v5719_v37  ;;  %7410 = vmatmul.msk.bf16.vlgmr.msrb.gmra.mxu2 %vm1292_vm4, %v5036_v28 }
0x2370   :  { %5425 = vmatpush.bf16.xpose.msrb.mxu2 %v5416_v46 }
0x2376   :  { %v5409_v8 = vpop.permute.xlu0 %5408 }
0x237e   :  { %v5386_v12 = vpop.permute.xlu0 %5385 }
0x237f   :  { %7414 = vmatmul.msk.bf16.vlgmr.msra.gmra.mxu2 %vm1292_vm4, %v5317_v50  ;;  %7417 = vmatmul.msk.bf16.vlgmr.msra.gmra.mxu1 %vm1292_vm4, %v5386_v12 }
0x2380   :  { %5686 = vmatpush.bf16.msra.mxu1 %v5677_v48 }
0x2382   :  { %v10722_v6 = vpop.f32.mrf.mxu0 }
0x2386   :  { %v5609_v20 = vpop.permute.xlu0 %5608 }
0x2387   :  { %v5614_v19 = vsel %vm1560_vm5, %v5609_v20, 0 }
0x2388   :  { %5623 = vmatpush.bf16.msra.mxu2 %v5614_v19 }
0x238a   :  { %v5060_v52 = vpop.f32.mrf.mxu0 }
0x238e   :  { %v5693_v57 = vpop.permute.xlu0 %5692 }
0x238f   :  { %v5698_v7 = vsel %vm1560_vm5, %v5693_v57, 0  ;;  %7418 = vmatmul.msk.bf16.vlgmr.msrb.gmra.mxu2 %vm1292_vm4, %v5409_v8 }
0x2390   :  { %5707 = vmatpush.bf16.msrb.mxu2 %v5698_v7 }
0x2394   :  { %v10727_v44 = vpop.f32.mrf.mxu0 }
0x239c   :  { %v5156_v49 = vpop.f32.mrf.mxu0 }
0x23a3   :  { %v10729_v50 = vpop.f32.mrf.mxu2 }
0x23a6   :  { %v10731_v25 = vpop.f32.mrf.mxu1 }
0x23ab   :  { %v5108_v3 = vpop.f32.mrf.mxu2  ;;  %v10733_v16 = vpop.f32.mrf.mxu3 }
0x23ae   :  { %v5180_v29 = vpop.f32.mrf.mxu1  ;;  %v5289_v47 = vpop.f32.mrf.mxu0 }
0x23af   :  { %v5454_v18 = vmul.f32 0.35355338, %v5289_v47 }
0x23b1   :  { %v5462_v24 = vadd.f32 %v5454_v18, %v9190_v60 }
0x23b3   :  { %v5132_v55 = vpop.f32.mrf.mxu3  ;;  %v5470_v41 = vsel %vm1292_vm4, %v5462_v24, -inf }
0x23b4   :  { %5471 = vmax.xlane.f32.xlu1 %v5470_v41 }
0x23b6   :  { %v5291_v11 = vpop.f32.mrf.mxu0 }
0x23ba   :  { %v5312_v4 = vpop.f32.mrf.mxu1 }
0x23bb   :  { %v5455_v34 = vmul.f32 0.35355338, %v5312_v4 }
0x23bd   :  { %v5463_v13 = vadd.f32 %v5455_v34, %v9190_v60 }
0x23bf   :  { %v5473_v43 = vsel %vm1292_vm4, %v5463_v13, -inf }
0x23c0   :  { %5474 = vmax.xlane.f32.xlu2 %v5473_v43 }
0x23c2   :  { %v5314_v28 = vpop.f32.mrf.mxu1 }
0x23d0   :  { %v5381_v37 = vpop.f32.mrf.mxu0 }
0x23d1   :  { %v5458_v46 = vmul.f32 0.35355338, %v5381_v37  ;;  %v10739_v8 = vpop.f32.mrf.mxu3 }
0x23d3   :  { %v5466_v51 = vadd.f32 %v5458_v46, %v9190_v60 }
0x23d5   :  { %v5482_v12 = vsel %vm1292_vm4, %v5466_v51, -inf }
0x23d6   :  { %5483 = vmax.xlane.f32.xlu2 %v5482_v12 }
0x23d8   :  { %v5383_v48 = vpop.f32.mrf.mxu0 }
0x23d9   :  { %v5228_v20 = vpop.f32.mrf.mxu3 }
0x23e1   :  { %v5358_v19 = vpop.f32.mrf.mxu3 }
0x23e2   :  { %v5457_v52 = vmul.f32 0.35355338, %v5358_v19 }
0x23e4   :  { %v5465_v57 = vadd.f32 %v5457_v52, %v9190_v60 }
0x23e6   :  { %v5479_v7 = vsel %vm1292_vm4, %v5465_v57, -inf }
0x23e7   :  { %5480 = vmax.xlane.f32.xlu1 %v5479_v7 }
0x23e9   :  { %v5360_v49 = vpop.f32.mrf.mxu3 }
0x23f1   :  { %v5450_v3 = vpop.f32.mrf.mxu3 }
0x23f2   :  { %v5461_v29 = vmul.f32 0.35355338, %v5450_v3  ;;  %v10745_v47 = vpop.f32.mrf.mxu2 }
0x23f4   :  { %v5469_v18 = vadd.f32 %v5461_v29, %v9190_v60 }
0x23f6   :  { %v5491_v55 = vsel %vm1292_vm4, %v5469_v18, -inf }
0x23f7   :  { %5492 = vmax.xlane.f32.xlu2 %v5491_v55  ;;  %v10759_v55 = vpop.permute.xlu1 %5799 }
0x23f9   :  { %v5452_v41 = vpop.f32.mrf.mxu3 }
0x23fa   :  { %v5204_v11 = vpop.f32.mrf.mxu2 }
0x23fc   :  { %v5404_v4 = vpop.f32.mrf.mxu1 }
0x23fd   :  { %v5459_v34 = vmul.f32 0.35355338, %v5404_v4 }
0x23ff   :  { %v5467_v43 = vadd.f32 %v5459_v34, %v9190_v60 }
0x2401   :  { %v5485_v28 = vsel %vm1292_vm4, %v5467_v43, -inf }
0x2402   :  { %v5335_v37 = vpop.f32.mrf.mxu2  ;;  %5486 = vmax.xlane.f32.xlu0 %v5485_v28 }
0x2403   :  { %v5456_v46 = vmul.f32 0.35355338, %v5335_v37 }
0x2404   :  { %v5406_v12 = vpop.f32.mrf.mxu1 }
0x2405   :  { %v5464_v48 = vadd.f32 %v5456_v46, %v9190_v60 }
0x2407   :  { %v5476_v20 = vsel %vm1292_vm4, %v5464_v48, -inf }
0x240a   :  { %v5337_v19 = vpop.f32.mrf.mxu2  ;;  %5477 = vmax.xlane.f32.xlu0 %v5476_v20 }
0x240f   :  { %5822 = vrot.lane.b32.xlu2 %v10262_v40, %s8575_s7 }
0x2412   :  { %v5427_v52 = vpop.f32.mrf.mxu2 }
0x2413   :  { %v5460_v7 = vmul.f32 0.35355338, %v5427_v52 }
0x2415   :  { %v5468_v49 = vadd.f32 %v5460_v7, %v9190_v60 }
0x2417   :  { %v5488_v3 = vsel %vm1292_vm4, %v5468_v49, -inf }
0x2418   :  { %5489 = vmax.xlane.f32.xlu1 %v5488_v3 }
0x241a   :  { %v5429_v29 = vpop.f32.mrf.mxu2 }
0x241e   :  { %5845 = vrot.lane.b32.xlu0 %v10272_v39, %s8575_s7 }
0x2427   :  { %v5472_v41 = vpop.xlane.xlu1 %5471 }
0x2428   :  { %v5494_v11 = vsub.f32 %v5462_v24, %v5472_v41 }
0x242a   :  { %v5502_v4 = vmul.f32 1.442695, %v5494_v11 }
0x242c   :  { %7892 = vpow2.f32 %v5502_v4  ;;  %v5777_v4 = vpop.permute.xlu0 %5776 }
0x2431   :  { %5774 = vrot.lane.b32.xlu1 %v10373_v54, %s8575_s7 }
0x2432   :  { %v10763_v34 = vpop.eup %7892 }
0x2433   :  { %v5475_v40 = vpop.xlane.xlu2 %5474  ;;  %v5518_v28 = vsel %vm1292_vm4, %v10763_v34, 0.0 }
0x2434   :  { %v5495_v37 = vsub.f32 %v5463_v13, %v5475_v40 }
0x2436   :  { %v5504_v20 = vmul.f32 1.442695, %v5495_v37 }
0x2448   :  { %5519 = vadd.xlane.f32.xlu0 %v5518_v28 }
0x2449   :  { %v5484_v46 = vpop.xlane.xlu2 %5483 }
0x244a   :  { %v5498_v12 = vsub.f32 %v5466_v51, %v5484_v46 }
0x244c   :  { %v5510_v39 = vmul.f32 1.442695, %v5498_v12 }
0x244e   :  { %7894 = vpow2.f32 %v5510_v39 }
0x244f   :  { %7896 = vpow2.f32 %v5504_v20 }
0x2454   :  { %v10767_v19 = vpop.eup %7894 }
0x2455   :  { %v5530_v54 = vsel %vm1292_vm4, %v10767_v19, 0.0  ;;  %v10771_v24 = vpop.eup %7896 }
0x2456   :  { %5531 = vadd.xlane.f32.xlu0 %v5530_v54  ;;  %v5521_v7 = vsel %vm1292_vm4, %v10771_v24, 0.0 }
0x245a   :  { %v5481_v52 = vpop.xlane.xlu1 %5480 }
0x245b   :  { %v5497_v3 = vsub.f32 %v5465_v57, %v5481_v52  ;;  %5522 = vadd.xlane.f32.xlu1 %v5521_v7 }
0x245d   :  { %v5508_v13 = vmul.f32 1.442695, %v5497_v3 }
0x245f   :  { %7898 = vpow2.f32 %v5508_v13 }
0x2465   :  { %v10775_v51 = vpop.eup %7898 }
0x2466   :  { %v5527_v29 = vsel %vm1292_vm4, %v10775_v51, 0.0 }
0x2467   :  { %5528 = vadd.xlane.f32.xlu0 %v5527_v29 }
0x246a   :  { %v5493_v41 = vpop.xlane.xlu2 %5492 }
0x246b   :  { %v5501_v11 = vsub.f32 %v5469_v18, %v5493_v41 }
0x246d   :  { %v5516_v40 = vmul.f32 1.442695, %v5501_v11 }
0x246f   :  { %7900 = vpow2.f32 %v5516_v40 }
0x2475   :  { %v10779_v28 = vpop.eup %7900  ;;  %v5487_v37 = vpop.xlane.xlu0 %5486 }
0x2476   :  { %v5499_v46 = vsub.f32 %v5467_v43, %v5487_v37  ;;  %v5539_v57 = vsel %vm1292_vm4, %v10779_v28, 0.0 }
0x2477   :  { %5540 = vadd.xlane.f32.xlu0 %v5539_v57 }
0x2478   :  { %v5512_v12 = vmul.f32 1.442695, %v5499_v46 }
0x247a   :  { %7902 = vpow2.f32 %v5512_v12 }
0x247d   :  { %v5478_v39 = vpop.xlane.xlu0 %5477 }
0x247e   :  { %v5496_v20 = vsub.f32 %v5464_v48, %v5478_v39  ;;  %v5823_v39 = vpop.permute.xlu2 %5822 }
0x2480   :  { %v10783_v54 = vpop.eup %7902  ;;  %v5506_v52 = vmul.f32 1.442695, %v5496_v20 }
0x2481   :  { %v5533_v18 = vsel %vm1292_vm4, %v10783_v54, 0.0 }
0x2482   :  { %7904 = vpow2.f32 %v5506_v52  ;;  %5534 = vadd.xlane.f32.xlu2 %v5533_v18 }
0x2488   :  { %v10787_v7 = vpop.eup %7904 }
0x2489   :  { %v5524_v43 = vsel %vm1292_vm4, %v10787_v7, 0.0 }
0x248a   :  { %5525 = vadd.xlane.f32.xlu2 %v5524_v43 }
0x248b   :  { %5820 = vrot.lane.b32.xlu0 %v10270_v42, %s8575_s7  ;;  %v5490_v3 = vpop.xlane.xlu1 %5489 }
0x248c   :  { %v5500_v13 = vsub.f32 %v5468_v49, %v5490_v3 }
0x248e   :  { %v5514_v48 = vmul.f32 1.442695, %v5500_v13 }
0x2490   :  { %7906 = vpow2.f32 %v5514_v48  ;;  %v5846_v42 = vpop.permute.xlu0 %5845 }
0x2493   :  { %5891 = vrot.lane.b32.xlu0 %v10438_v23, %s8575_s7 }
0x2496   :  { %v10795_v29 = vpop.eup %7906 }
0x2497   :  { %v5536_v41 = vsel %vm1292_vm4, %v10795_v29, 0.0 }
0x2498   :  { %5537 = vadd.xlane.f32.xlu1 %v5536_v41 }
0x249b   :  { %5866 = vrot.lane.b32.xlu0 %v10447_v1, %s8575_s7 }
0x24a2   :  { %5797 = vrot.lane.b32.xlu2 %v10396_v17, %s8575_s7 }
0x24a3   :  { %5935 = vrot.lane.b32.xlu0 %v10490_v53, %s8575_s7  ;;  %v5782_v53 = vsel %vm1292_vm4, %v5777_v4, 0  ;;  %v5805_v4 = vsel %vm1292_vm4, %v10759_v55, 0 }
0x24aa   :  { %5868 = vrot.lane.b32.xlu2 %v10476_v45, %s8575_s7 }
0x24b1   :  { %5843 = vrot.lane.b32.xlu1 %v10290_v10, %s8575_s7  ;;  %v5775_v10 = vpop.permute.xlu1 %5774 }
0x24b2   :  { %5937 = vrot.lane.b32.xlu2 %v10468_v5, %s8575_s7 }
0x24b9   :  { %5914 = vrot.lane.b32.xlu1 %v10420_v32, %s8575_s7 }
0x24ba   :  { %5912 = vrot.lane.b32.xlu2 %v10478_v27, %s8575_s7 }
0x24bb   :  { %v5520_v17 = vpop.xlane.xlu0 %5519 }
0x24bc   :  { %7908 = vrcp.f32 %v5520_v17 }
0x24c1   :  { %5889 = vrot.lane.b32.xlu1 %v10492_v22, %s8575_s7 }
0x24c2   :  { %v7909_v23 = vpop.eup %7908 }
0x24c3   :  { %v5550_v1 = vmul.f32 %v7909_v23, %v10763_v34 }
0x24c5   :  { %v5558_v45 = vpack.c.bf16 %v5550_v1, %v5550_v1 }
0x24c7   :  { %7420 = vmatmul.msk.bf16.vlgmr.msrb.gmra.mxu0 %vm1292_vm4, %v5558_v45  ;;  %v5828_v45 = vsel %vm1292_vm4, %v5823_v39, 0 }
0x24c8   :  { %5791 = vmatpush.bf16.xpose.msrb.mxu0 %v5782_v53 }
0x24c9   :  { %v5532_v5 = vpop.xlane.xlu0 %5531 }
0x24ca   :  { %7910 = vrcp.f32 %v5532_v5 }
0x24ce   :  { %v5523_v32 = vpop.xlane.xlu1 %5522 }
0x24cf   :  { %7912 = vrcp.f32 %v5523_v32 }
0x24d0   :  { %v7911_v27 = vpop.eup %7910 }
0x24d1   :  { %v5554_v49 = vmul.f32 %v7911_v27, %v10767_v19  ;;  %v5851_v19 = vsel %vm1292_vm4, %v5846_v42, 0 }
0x24d3   :  { %v5562_v40 = vpack.c.bf16 %v5554_v49, %v5554_v49 }
0x24d5   :  { %v7913_v11 = vpop.eup %7912 }
0x24d6   :  { %v5551_v22 = vmul.f32 %v7913_v11, %v10771_v24 }
0x24d7   :  { %7424 = vmatmul.msk.bf16.vlgmr.msra.gmra.mxu0 %vm1292_vm4, %v5562_v40 }
0x24d8   :  { %v5559_v34 = vpack.c.bf16 %v5551_v22, %v5551_v22 }
0x24da   :  { %v5529_v37 = vpop.xlane.xlu0 %5528  ;;  %7421 = vmatmul.msk.bf16.vlgmr.msrb.gmra.mxu1 %vm1292_vm4, %v5559_v34 }
0x24db   :  { %7914 = vrcp.f32 %v5529_v37  ;;  %5814 = vmatpush.bf16.xpose.msrb.mxu1 %v5805_v4 }
0x24e1   :  { %v7915_v46 = vpop.eup %7914 }
0x24e2   :  { %v5553_v57 = vmul.f32 %v7915_v46, %v10775_v51 }
0x24e4   :  { %v5561_v12 = vpack.c.bf16 %v5553_v57, %v5553_v57 }
0x24e6   :  { %7423 = vmatmul.msk.bf16.vlgmr.msra.gmra.mxu3 %vm1292_vm4, %v5561_v12 }
0x24e7   :  { %5860 = vmatpush.bf16.xpose.msra.mxu3 %v5851_v19  ;;  %7428 = vmatmul.msk.bf16.vlgmr.msrb.gmra.mxu0 %vm1292_vm4, %v5775_v10 }
0x24ea   :  { %v5541_v24 = vpop.xlane.xlu0 %5540 }
0x24eb   :  { %7916 = vrcp.f32 %v5541_v24 }
0x24f1   :  { %v7917_v55 = vpop.eup %7916 }
0x24f2   :  { %v5557_v20 = vmul.f32 %v7917_v55, %v10779_v28 }
0x24f4   :  { %v5565_v52 = vpack.c.bf16 %v5557_v20, %v5557_v20 }
0x24f5   :  { %v5535_v18 = vpop.xlane.xlu2 %5534 }
0x24f6   :  { %7427 = vmatmul.msk.bf16.vlgmr.msrb.gmra.mxu3 %vm1292_vm4, %v5565_v52  ;;  %7918 = vrcp.f32 %v5535_v18 }
0x24fc   :  { %v7919_v51 = vpop.eup %7918 }
0x24fd   :  { %v5555_v43 = vmul.f32 %v7919_v51, %v10783_v54  ;;  %v5821_v3 = vpop.permute.xlu0 %5820  ;;  %v5526_v13 = vpop.xlane.xlu2 %5525 }
0x24fe   :  { %7920 = vrcp.f32 %v5526_v13 }
0x24ff   :  { %v5563_v48 = vpack.c.bf16 %v5555_v43, %v5555_v43 }
0x2501   :  { %7425 = vmatmul.msk.bf16.vlgmr.msra.gmra.mxu1 %vm1292_vm4, %v5563_v48 }
0x2504   :  { %v7921_v41 = vpop.eup %7920 }
0x2505   :  { %v5552_v42 = vmul.f32 %v7921_v41, %v10787_v7  ;;  %v5892_v17 = vpop.permute.xlu0 %5891  ;;  %v5798_v23 = vpop.permute.xlu2 %5797 }
0x2506   :  { %v5897_v28 = vsel %vm1292_vm4, %v5892_v17, 0 }
0x2507   :  { %v5560_v1 = vpack.c.bf16 %v5552_v42, %v5552_v42  ;;  %5906 = vmatpush.bf16.xpose.msra.mxu1 %v5897_v28 }
0x2509   :  { %7422 = vmatmul.msk.bf16.vlgmr.msra.gmra.mxu2 %vm1292_vm4, %v5560_v1 }
0x250a   :  { %5837 = vmatpush.bf16.xpose.msra.mxu2 %v5828_v45 }
0x250b   :  { %v5538_v54 = vpop.xlane.xlu1 %5537 }
0x250c   :  { %7922 = vrcp.f32 %v5538_v54 }
0x250d   :  { %v5869_v10 = vpop.permute.xlu2 %5868  ;;  %v5867_v32 = vpop.permute.xlu0 %5866 }
0x250e   :  { %v5874_v53 = vsel %vm1292_vm4, %v5869_v10, 0 }
0x250f   :  { %5883 = vmatpush.bf16.xpose.msra.mxu0 %v5874_v53 }
0x2511   :  { %7429 = vmatmul.msk.bf16.vlgmr.msrb.gmra.mxu1 %vm1292_vm4, %v5798_v23 }
0x2512   :  { %v7923_v7 = vpop.eup %7922 }
0x2513   :  { %v5556_v5 = vmul.f32 %v7923_v7, %v10795_v29 }
0x2515   :  { %v5938_v27 = vpop.permute.xlu2 %5937  ;;  %v5564_v11 = vpack.c.bf16 %v5556_v5, %v5556_v5  ;;  %v5936_v29 = vpop.permute.xlu0 %5935 }
0x2516   :  { %v5943_v49 = vsel %vm1292_vm4, %v5938_v27, 0  ;;  %7432 = vmatmul.msk.bf16.vlgmr.msra.gmra.mxu0 %vm1292_vm4, %v5867_v32 }
0x2517   :  { %5952 = vmatpush.bf16.xpose.msrb.mxu3 %v5943_v49 }
0x2519   :  { %7426 = vmatmul.msk.bf16.vlgmr.msrb.gmra.mxu2 %vm1292_vm4, %v5564_v11 }
0x251d   :  { %v5913_v37 = vpop.permute.xlu2 %5912 }
0x2523   :  { %v5844_v40 = vpop.permute.xlu1 %5843 }
0x2524   :  { %7431 = vmatmul.msk.bf16.vlgmr.msra.gmra.mxu3 %vm1292_vm4, %v5844_v40 }
0x2529   :  { %7430 = vmatmul.msk.bf16.vlgmr.msra.gmra.mxu2 %vm1292_vm4, %v5821_v3 }
0x252b   :  { %v5915_v22 = vpop.permute.xlu1 %5914 }
0x252c   :  { %v5920_v34 = vsel %vm1292_vm4, %v5915_v22, 0 }
0x252d   :  { %5929 = vmatpush.bf16.xpose.msrb.mxu2 %v5920_v34 }
0x2533   :  { %v5890_v4 = vpop.permute.xlu1 %5889 }
0x2534   :  { %7433 = vmatmul.msk.bf16.vlgmr.msra.gmra.mxu1 %vm1292_vm4, %v5890_v4  ;;  %7435 = vmatmul.msk.bf16.vlgmr.msrb.gmra.mxu3 %vm1292_vm4, %v5936_v29 }
0x2539   :  { %7434 = vmatmul.msk.bf16.vlgmr.msrb.gmra.mxu2 %vm1292_vm4, %v5913_v37 }
0x2544   :  { %v10850_v46 = vpop.f32.mrf.mxu0 }
0x254c   :  { %v5585_v57 = vpop.f32.mrf.mxu0 }
0x2554   :  { %v10852_v12 = vpop.f32.mrf.mxu0 }
0x2557   :  { %v10854_v19 = vpop.f32.mrf.mxu1 }
0x255c   :  { %v5669_v24 = vpop.f32.mrf.mxu0 }
0x255f   :  { %v5606_v39 = vpop.f32.mrf.mxu1 }
0x2564   :  { %v5793_v55 = vpop.f32.mrf.mxu0 }
0x2565   :  { %v5958_v20 = vmul.f32 0.35355338, %v5793_v55 }
0x2567   :  { %v10857_v52 = vadd.f32 %v5958_v20, %v9190_v60 }
0x2569   :  { %v10859_v18 = vpop.f32.mrf.mxu3  ;;  %v5974_v51 = vsel %vm1292_vm4, %v10857_v52, -inf }
0x256a   :  { %5975 = vmax.xlane.f32.xlu1 %v5974_v51 }
0x256c   :  { %v5795_v43 = vpop.f32.mrf.mxu0 }
0x2571   :  { %v5648_v3 = vpop.f32.mrf.mxu3 }
0x2579   :  { %v10863_v13 = vpop.f32.mrf.mxu3 }
0x257e   :  { %v10865_v48 = vpop.f32.mrf.mxu1 }
0x2581   :  { %v5732_v41 = vpop.f32.mrf.mxu3 }
0x2586   :  { %v5690_v42 = vpop.f32.mrf.mxu1 }
0x258c   :  { %v10867_v17 = vpop.f32.mrf.mxu2 }
0x258e   :  { %v5816_v23 = vpop.f32.mrf.mxu1 }
0x258f   :  { %v5959_v28 = vmul.f32 0.35355338, %v5816_v23 }
0x2591   :  { %v5967_v1 = vadd.f32 %v5959_v28, %v9190_v60 }
0x2593   :  { %v5885_v45 = vpop.f32.mrf.mxu0  ;;  %v5977_v54 = vsel %vm1292_vm4, %v5967_v1, -inf }
0x2594   :  { %v5962_v10 = vmul.f32 0.35355338, %v5885_v45  ;;  %v5627_v53 = vpop.f32.mrf.mxu2  ;;  %5978 = vmax.xlane.f32.xlu2 %v5977_v54 }
0x2596   :  { %v5970_v7 = vadd.f32 %v5962_v10, %v9190_v60  ;;  %v5818_v5 = vpop.f32.mrf.mxu1 }
0x2598   :  { %v5986_v32 = vsel %vm1292_vm4, %v5970_v7, -inf }
0x2599   :  { %5987 = vmax.xlane.f32.xlu1 %v5986_v32 }
0x259b   :  { %v5887_v27 = vpop.f32.mrf.mxu0 }
0x259c   :  { %v10873_v49 = vpop.f32.mrf.mxu2 }
0x25a4   :  { %v5711_v11 = vpop.f32.mrf.mxu2 }
0x25a7   :  { %v5862_v40 = vpop.f32.mrf.mxu3 }
0x25a8   :  { %v5961_v22 = vmul.f32 0.35355338, %v5862_v40 }
0x25aa   :  { %v10876_v34 = vadd.f32 %v5961_v22, %v9190_v60 }
0x25ac   :  { %v5839_v29 = vpop.f32.mrf.mxu2  ;;  %v5983_v4 = vsel %vm1292_vm4, %v10876_v34, -inf }
0x25ad   :  { %5984 = vmax.xlane.f32.xlu2 %v5983_v4  ;;  %v5960_v20 = vmul.f32 0.35355338, %v5839_v29 }
0x25af   :  { %v5864_v37 = vpop.f32.mrf.mxu3  ;;  %v5968_v42 = vadd.f32 %v5960_v20, %v9190_v60 }
0x25b1   :  { %v5908_v57 = vpop.f32.mrf.mxu1  ;;  %v5980_v10 = vsel %vm1292_vm4, %v5968_v42, -inf }
0x25b2   :  { %v5963_v24 = vmul.f32 0.35355338, %v5908_v57 }
0x25b4   :  { %v5971_v39 = vadd.f32 %v5963_v24, %v9190_v60  ;;  %v5841_v55 = vpop.f32.mrf.mxu2 }
0x25b6   :  { %v5989_v51 = vsel %vm1292_vm4, %v5971_v39, -inf }
0x25b7   :  { %5990 = vmax.xlane.f32.xlu0 %v5989_v51  ;;  %v5954_v43 = vpop.f32.mrf.mxu3 }
0x25b8   :  { %v5965_v3 = vmul.f32 0.35355338, %v5954_v43 }
0x25b9   :  { %v5910_v41 = vpop.f32.mrf.mxu1 }
0x25ba   :  { %v5973_v23 = vadd.f32 %v5965_v3, %v9190_v60 }
0x25bc   :  { %v5931_v28 = vpop.f32.mrf.mxu2  ;;  %v5995_v45 = vsel %vm1292_vm4, %v5973_v23, -inf }
0x25bd   :  { %v5964_v54 = vmul.f32 0.35355338, %v5931_v28  ;;  %5996 = vmax.xlane.f32.xlu1 %v5995_v45 }
0x25bf   :  { %v10887_v53 = vadd.f32 %v5964_v54, %v9190_v60  ;;  %5981 = vmax.xlane.f32.xlu0 %v5980_v10  ;;  %v5956_v5 = vpop.f32.mrf.mxu3 }
0x25c1   :  { %v5992_v32 = vsel %vm1292_vm4, %v10887_v53, -inf }
0x25c2   :  { %5993 = vmax.xlane.f32.xlu2 %v5992_v32 }
0x25c4   :  { %v5933_v27 = vpop.f32.mrf.mxu2 }
0x25d3   :  { %6091 = vrot.lane.b32.xlu0 %v10522_v38, %s8575_s7 }
0x25d6   :  { %6070 = vrot.lane.b32.xlu1 %v10457_v33, %s8575_s7 }
0x25da   :  { %6112 = vrot.lane.b32.xlu2 %v10508_v61, %s8575_s7 }
0x25db   :  { %6133 = vrot.lane.b32.xlu0 %v10506_v58, %s8575_s7 }
0x25dd   :  { %v5976_v60 = vpop.xlane.xlu1 %5975 }
0x25de   :  { %v5998_v11 = vsub.f32 %v10857_v52, %v5976_v60 }
0x25e0   :  { %v6006_v40 = vmul.f32 1.442695, %v5998_v11 }
0x25e2   :  { %6154 = vrot.lane.b32.xlu2 %v10466_v31, %s8575_s7  ;;  %7924 = vpow2.f32 %v6006_v40 }
0x25e8   :  { %v10902_v22 = vpop.eup %7924 }
0x25e9   :  { %v6022_v38 = vsel %vm1292_vm4, %v10902_v22, 0.0 }
0x2605   :  { %6023 = vadd.xlane.f32.xlu0 %v6022_v38 }
0x2607   :  { %v5979_v33 = vpop.xlane.xlu2 %5978 }
0x2608   :  { %v5999_v29 = vsub.f32 %v5967_v1, %v5979_v33 }
0x260a   :  { %v6008_v61 = vmul.f32 1.442695, %v5999_v29 }
0x260c   :  { %7926 = vpow2.f32 %v6008_v61  ;;  %v5988_v4 = vpop.xlane.xlu1 %5987 }
0x260d   :  { %v6002_v58 = vsub.f32 %v5970_v7, %v5988_v4 }
0x260f   :  { %v6014_v37 = vmul.f32 1.442695, %v6002_v58 }
0x2611   :  { %7928 = vpow2.f32 %v6014_v37 }
0x2612   :  { %v10906_v31 = vpop.eup %7926 }
0x2613   :  { %v6025_v52 = vsel %vm1292_vm4, %v10906_v31, 0.0 }
0x2614   :  { %6026 = vadd.xlane.f32.xlu2 %v6025_v52 }
0x2617   :  { %v10910_v57 = vpop.eup %7928 }
0x2618   :  { %v6034_v24 = vsel %vm1292_vm4, %v10910_v57, 0.0 }
0x2619   :  { %6035 = vadd.xlane.f32.xlu1 %v6034_v24 }
0x2620   :  { %v5985_v20 = vpop.xlane.xlu2 %5984 }
0x2621   :  { %v6001_v54 = vsub.f32 %v10876_v34, %v5985_v20 }
0x262a   :  { %v5991_v55 = vpop.xlane.xlu0 %5990 }
0x262b   :  { %v6003_v1 = vsub.f32 %v5971_v39, %v5991_v55  ;;  %v6012_v39 = vmul.f32 1.442695, %v6001_v54 }
0x262d   :  { %v6016_v51 = vmul.f32 1.442695, %v6003_v1 }
0x262f   :  { %7930 = vpow2.f32 %v6016_v51 }
0x2630   :  { %v5997_v7 = vpop.xlane.xlu1 %5996 }
0x2631   :  { %v6005_v43 = vsub.f32 %v5973_v23, %v5997_v7 }
0x2632   :  { %v5982_v3 = vpop.xlane.xlu0 %5981 }
0x2633   :  { %v6020_v41 = vmul.f32 1.442695, %v6005_v43  ;;  %v6000_v28 = vsub.f32 %v5968_v42, %v5982_v3 }
0x2635   :  { %v10914_v45 = vpop.eup %7930  ;;  %7932 = vpow2.f32 %v6020_v41  ;;  %v6010_v10 = vmul.f32 1.442695, %v6000_v28  ;;  %v5994_v5 = vpop.xlane.xlu2 %5993 }
0x2636   :  { %v6037_v32 = vsel %vm1292_vm4, %v10914_v45, 0.0 }
0x2637   :  { %7934 = vpow2.f32 %v6010_v10  ;;  %6038 = vadd.xlane.f32.xlu0 %v6037_v32 }
0x2638   :  { %7936 = vpow2.f32 %v6012_v39 }
0x263b   :  { %v10919_v27 = vpop.eup %7932 }
0x263c   :  { %v6043_v23 = vsel %vm1292_vm4, %v10919_v27, 0.0 }
0x263d   :  { %v7935_v60 = vpop.eup %7934  ;;  %6044 = vadd.xlane.f32.xlu1 %v6043_v23  ;;  %v6113_v42 = vpop.permute.xlu2 %6112 }
0x263e   :  { %v6118_v34 = vsel %vm1560_vm5, %v6113_v42, 0  ;;  %v6028_v11 = vsel %vm1292_vm4, %v7935_v60, 0.0  ;;  %v10925_v40 = vpop.eup %7936 }
0x263f   :  { %6029 = vadd.xlane.f32.xlu2 %v6028_v11  ;;  %6127 = vmatpush.bf16.msra.mxu2 %v6118_v34  ;;  %v6031_v29 = vsel %vm1292_vm4, %v10925_v40, 0.0 }
0x2645   :  { %v6092_v38 = vpop.permute.xlu0 %6091  ;;  %v6155_v61 = vpop.permute.xlu2 %6154 }
0x2646   :  { %v6097_v33 = vsel %vm1560_vm5, %v6092_v38, 0  ;;  %v6160_v37 = vsel %vm1560_vm5, %v6155_v61, 0 }
0x2647   :  { %6106 = vmatpush.bf16.msrb.mxu1 %v6097_v33  ;;  %6032 = vadd.xlane.f32.xlu2 %v6031_v29 }
0x2648   :  { %v6071_v4 = vpop.permute.xlu1 %6070 }
0x2649   :  { %v6076_v58 = vsel %vm1560_vm5, %v6071_v4, 0 }
0x264a   :  { %6085 = vmatpush.bf16.msrb.mxu0 %v6076_v58 }
0x264b   :  { %6196 = vrot.lane.b32.xlu0 %v10520_v15, %s8575_s7  ;;  %v6004_v15 = vsub.f32 %v10887_v53, %v5994_v5 }
0x264d   :  { %v6134_v52 = vpop.permute.xlu0 %6133 }
0x264e   :  { %6169 = vmatpush.bf16.msra.mxu0 %v6160_v37  ;;  %v6139_v24 = vsel %vm1560_vm5, %v6134_v52, 0 }
0x264f   :  { %6148 = vmatpush.bf16.msra.mxu3 %v6139_v24 }
0x2653   :  { %5238 = vrot.lane.b32.xlu0 %v10722_v6, %s8576_s5  ;;  %v6018_v6 = vmul.f32 1.442695, %v6004_v15 }
0x2656   :  { %6217 = vrot.lane.b32.xlu1 %v10533_v21, %s8575_s7 }
0x265b   :  { %5742 = vrot.lane.b32.xlu0 %v10850_v46, %s8554_s29 }
0x265e   :  { %5240 = vrot.lane.b32.xlu1 %v10709_v56, %s8576_s5 }
0x265f   :  { %6175 = vrot.lane.b32.xlu2 %v10531_v63, %s8575_s7 }
0x2666   :  { %5242 = vrot.lane.b32.xlu1 %v10729_v50, %s8576_s5 }
0x2678   :  { %v6024_v55 = vpop.xlane.xlu0 %6023 }
0x2679   :  { %7938 = vrcp.f32 %v6024_v55 }
0x267a   :  { %7940 = vpow2.f32 %v6018_v6 }
0x267f   :  { %v7939_v1 = vpop.eup %7938 }
0x2680   :  { %v6054_v21 = vmul.f32 %v7939_v1, %v10902_v22  ;;  %v10949_v46 = vpop.eup %7940 }
0x2681   :  { %v6040_v63 = vsel %vm1292_vm4, %v10949_v46, 0.0 }
0x2682   :  { %v6062_v20 = vpack.c.bf16 %v6054_v21, %v6054_v21 }
0x2684   :  { %7436 = vmatmul.msk.bf16.vlgmr.msrb.gmra.mxu0 %vm1292_vm4, %v6062_v20 }
0x2687   :  { %v6027_v56 = vpop.xlane.xlu2 %6026 }
0x2688   :  { %7942 = vrcp.f32 %v6027_v56  ;;  %6041 = vadd.xlane.f32.xlu2 %v6040_v63 }
0x268c   :  { %v6036_v50 = vpop.xlane.xlu1 %6035 }
0x268d   :  { %7944 = vrcp.f32 %v6036_v50 }
0x268e   :  { %v7943_v53 = vpop.eup %7942 }
0x268f   :  { %v6055_v51 = vmul.f32 %v7943_v53, %v10906_v31 }
0x2691   :  { %v6063_v7 = vpack.c.bf16 %v6055_v51, %v6055_v51 }
0x2693   :  { %v7945_v43 = vpop.eup %7944  ;;  %7437 = vmatmul.msk.bf16.vlgmr.msrb.gmra.mxu1 %vm1292_vm4, %v6063_v7 }
0x2694   :  { %v6058_v22 = vmul.f32 %v7945_v43, %v10910_v57 }
0x2696   :  { %v6066_v3 = vpack.c.bf16 %v6058_v22, %v6058_v22 }
0x2698   :  { %7440 = vmatmul.msk.bf16.vlgmr.msra.gmra.mxu0 %vm1292_vm4, %v6066_v3 }
0x26a0   :  { %5744 = vrot.lane.b32.xlu2 %v10854_v19, %s8554_s29 }
0x26aa   :  { %v6039_v28 = vpop.xlane.xlu0 %6038 }
0x26b0   :  { %v6045_v57 = vpop.xlane.xlu1 %6044 }
0x26b2   :  { %v6030_v41 = vpop.xlane.xlu2 %6029 }
0x26b3   :  { %7946 = vrcp.f32 %v6030_v41 }
0x26b4   :  { %7948 = vrcp.f32 %v6039_v28 }
0x26b9   :  { %v7947_v54 = vpop.eup %7946 }
0x26ba   :  { %v6056_v10 = vmul.f32 %v7947_v54, %v7935_v60  ;;  %v6033_v5 = vpop.xlane.xlu2 %6032  ;;  %v7949_v39 = vpop.eup %7948 }
0x26bb   :  { %7950 = vrcp.f32 %v6033_v5  ;;  %v6059_v19 = vmul.f32 %v7949_v39, %v10914_v45 }
0x26bc   :  { %v6064_v31 = vpack.c.bf16 %v6056_v10, %v6056_v10  ;;  %7952 = vrcp.f32 %v6045_v57 }
0x26bd   :  { %v6197_v32 = vpop.permute.xlu0 %6196  ;;  %v6067_v33 = vpack.c.bf16 %v6059_v19, %v6059_v19 }
0x26be   :  { %v6202_v23 = vsel %vm1560_vm5, %v6197_v32, 0  ;;  %7438 = vmatmul.msk.bf16.vlgmr.msra.gmra.mxu2 %vm1292_vm4, %v6064_v31 }
0x26bf   :  { %6211 = vmatpush.bf16.msrb.mxu2 %v6202_v23 }
0x26c1   :  { %v7951_v42 = vpop.eup %7950 }
0x26c2   :  { %v6057_v34 = vmul.f32 %v7951_v42, %v10925_v40  ;;  %v6176_v11 = vpop.permute.xlu2 %6175  ;;  %v7953_v45 = vpop.eup %7952 }
0x26c3   :  { %v6181_v38 = vsel %vm1560_vm5, %v6176_v11, 0  ;;  %v6061_v58 = vmul.f32 %v7953_v45, %v10919_v27 }
0x26c4   :  { %v6065_v60 = vpack.c.bf16 %v6057_v34, %v6057_v34  ;;  %6190 = vmatpush.bf16.msra.mxu1 %v6181_v38 }
0x26c5   :  { %v5239_v29 = vpop.permute.xlu0 %5238  ;;  %v6069_v52 = vpack.c.bf16 %v6061_v58, %v6061_v58 }
0x26c6   :  { %5262 = vst.msk [vmem:[#allocation3] sm:$0xff] %vm2286_vm7, %v5239_v29  ;;  %7439 = vmatmul.msk.bf16.vlgmr.msra.gmra.mxu3 %vm1292_vm4, %v6065_v60 }
0x26c7   :  { %7441 = vmatmul.msk.bf16.vlgmr.msra.gmra.mxu1 %vm1292_vm4, %v6067_v33 }
0x26c8   :  { %v6218_v61 = vpop.permute.xlu1 %6217 }
0x26c9   :  { %v6223_v4 = vsel %vm1560_vm5, %v6218_v61, 0 }
0x26ca   :  { %6232 = vmatpush.bf16.msrb.mxu3 %v6223_v4 }
0x26cd   :  { %v5743_v40 = vpop.permute.xlu0 %5742 }
0x26ce   :  { %5766 = vst.msk [vmem:[#allocation3] sm:$0xff] %vm2791_vm8, %v5743_v40 }
0x26d0   :  { %v5241_v37 = vpop.permute.xlu1 %5240 }
0x26d1   :  { %5263 = vst.msk [vmem:[#allocation3 + $0x8] sm:$0xff] %vm2286_vm7, %v5241_v37 }
0x26d6   :  { %7443 = vmatmul.msk.bf16.vlgmr.msrb.gmra.mxu3 %vm1292_vm4, %v6069_v52 }
0x26d8   :  { %v5243_v24 = vpop.permute.xlu1 %5242 }
0x26d9   :  { %5264 = vst.msk [vmem:[#allocation3 + $0x10] sm:$0xff] %vm2286_vm7, %v5243_v24 }
0x26fb   :  { %v6042_v15 = vpop.xlane.xlu2 %6041 }
0x26fc   :  { %7954 = vrcp.f32 %v6042_v15  ;;  %v7594_v15 = vld [vmem:[#allocation21 + $0x1] ss:$0 sm:$0xff] }
0x2701   :  { %v6087_v55 = vpop.f32.mrf.mxu0 }
0x2702   :  { %v7955_v6 = vpop.eup %7954  ;;  %6246 = vrot.lane.b32.xlu1 %v6087_v55, %s8577_s6 }
0x2703   :  { %v6060_v1 = vmul.f32 %v7955_v6, %v10949_v46  ;;  %v5745_v21 = vpop.permute.xlu2 %5744 }
0x2704   :  { %5767 = vst.msk [vmem:[#allocation3 + $0x8] sm:$0xff] %vm2791_vm8, %v5745_v21 }
0x2705   :  { %v6068_v27 = vpack.c.bf16 %v6060_v1, %v6060_v1 }
0x2707   :  { %7442 = vmatmul.msk.bf16.vlgmr.msrb.gmra.mxu2 %vm1292_vm4, %v6068_v27 }
0x2709   :  { %v6089_v20 = vpop.f32.mrf.mxu0 }
0x270a   :  { %5746 = vrot.lane.b32.xlu1 %v10867_v17, %s8554_s29 }
0x2710   :  { %v6108_v56 = vpop.f32.mrf.mxu1 }
0x2711   :  { %6248 = vrot.lane.b32.xlu0 %v6108_v56, %s8577_s6 }
0x2715   :  { %v6171_v63 = vpop.f32.mrf.mxu0 }
0x2718   :  { %v6110_v50 = vpop.f32.mrf.mxu1 }
0x2719   :  { %5244 = vrot.lane.b32.xlu0 %v10733_v16, %s8576_s5 }
0x271d   :  { %v6173_v53 = vpop.f32.mrf.mxu0 }
0x2721   :  { %5748 = vrot.lane.b32.xlu0 %v10859_v18, %s8554_s29 }
0x2729   :  { %5246 = vrot.lane.b32.xlu0 %v10727_v44, %s8576_s5 }
0x2731   :  { %5752 = vrot.lane.b32.xlu0 %v10865_v48, %s8554_s29  ;;  %v7533_v48 = vld [vmem:[#allocation19 + $0x10] sm:$0xff] }
0x2739   :  { %5250 = vrot.lane.b32.xlu0 %v10745_v47, %s8576_s5 }
0x2741   :  { %5756 = vrot.lane.b32.xlu0 %v10863_v13, %s8554_s29  ;;  %v6129_v17 = vpop.f32.mrf.mxu2 }
0x2742   :  { %6250 = vrot.lane.b32.xlu2 %v6129_v17, %s8577_s6 }
0x2744   :  { %v6192_v16 = vpop.f32.mrf.mxu1 }
0x2749   :  { %v6131_v46 = vpop.f32.mrf.mxu2  ;;  %v6150_v51 = vpop.f32.mrf.mxu3 }
0x274a   :  { %5248 = vrot.lane.b32.xlu2 %v10731_v25, %s8576_s5  ;;  %6252 = vrot.lane.b32.xlu1 %v6150_v51, %s8577_s6  ;;  %v7534_v25 = vld [vmem:[#allocation19 + $0x18] sm:$0xff] }
0x274b   :  { %6330 = vmatpush.bf16.msrb.mxu0 %v7534_v25 }
0x274c   :  { %v6194_v44 = vpop.f32.mrf.mxu1 }
0x274f   :  { %6331 = vmatpush.bf16.msrb.mxu0 %v7533_v48 }
0x2751   :  { %v6152_v18 = vpop.f32.mrf.mxu3 }
0x2752   :  { %6254 = vrot.lane.b32.xlu2 %v6171_v63, %s8577_s6  ;;  %5750 = vrot.lane.b32.xlu1 %v10852_v12, %s8554_s29 }
0x2759   :  { %v6234_v47 = vpop.f32.mrf.mxu3 }
0x275a   :  { %5252 = vrot.lane.b32.xlu2 %v10739_v8, %s8576_s5  ;;  %6256 = vrot.lane.b32.xlu1 %v6192_v16, %s8577_s6 }
0x2761   :  { %v6236_v13 = vpop.f32.mrf.mxu3 }
0x2762   :  { %5754 = vrot.lane.b32.xlu1 %v10873_v49, %s8554_s29 }
0x276a   :  { %6260 = vrot.lane.b32.xlu1 %v6234_v47, %s8577_s6 }
0x2774   :  { %v6247_v7 = vpop.permute.xlu1 %6246 }
0x2775   :  { %6270 = vst.msk [vmem:[#allocation3] sm:$0xff] %vm3296_vm9, %v6247_v7 }
0x277c   :  { %v5747_v12 = vpop.permute.xlu1 %5746  ;;  %v6278_v49 = vld [vmem:[#allocation3] sm:$0xff] }
0x277d   :  { %5768 = vst.msk [vmem:[#allocation3 + $0x10] sm:$0xff] %vm2791_vm8, %v5747_v12 }
0x2783   :  { %v6249_v43 = vpop.permute.xlu0 %6248 }
0x2784   :  { %6271 = vst.msk [vmem:[#allocation3 + $0x8] sm:$0xff] %vm3296_vm9, %v6249_v43 }
0x278a   :  { %v6213_v8 = vpop.f32.mrf.mxu2 }
0x278b   :  { %v5245_v22 = vpop.permute.xlu0 %5244  ;;  %6258 = vrot.lane.b32.xlu2 %v6213_v8, %s8577_s6  ;;  %v6279_v3 = vld [vmem:[#allocation3 + $0x8] sm:$0xff] }
0x278c   :  { %5265 = vst.msk [vmem:[#allocation3 + $0x18] sm:$0xff] %vm2286_vm7, %v5245_v22  ;;  %v6286_v41 = vpack.c.bf16 %v6279_v3, %v6278_v49 }
0x278e   :  { %7452 = vmatmul.msk.bf16.vlgmr.msrb.gmra.mxu0 %vm377_vm0, %v6286_v41 }
0x2792   :  { %v6215_v28 = vpop.f32.mrf.mxu2 }
0x2793   :  { %v5749_v54 = vpop.permute.xlu0 %5748 }
0x2794   :  { %5769 = vst.msk [vmem:[#allocation3 + $0x18] sm:$0xff] %vm2791_vm8, %v5749_v54 }
0x279b   :  { %v5247_v10 = vpop.permute.xlu0 %5246 }
0x279c   :  { %5266 = vst.msk [vmem:[#allocation3 + $0x20] sm:$0xff] %vm2286_vm7, %v5247_v10  ;;  %v6251_v5 = vpop.permute.xlu2 %6250 }
0x279d   :  { %6272 = vst.msk [vmem:[#allocation3 + $0x10] sm:$0xff] %vm3296_vm9, %v6251_v5 }
0x27a3   :  { %v5753_v31 = vpop.permute.xlu0 %5752 }
0x27a4   :  { %v5249_v32 = vpop.permute.xlu2 %5248  ;;  %v6280_v11 = vld [vmem:[#allocation3 + $0x10] sm:$0xff] }
0x27a5   :  { %5267 = vst.msk [vmem:[#allocation3 + $0x28] sm:$0xff] %vm2286_vm7, %v5249_v32 }
0x27a6   :  { %5771 = vst.msk [vmem:[#allocation3 + $0x28] sm:$0xff] %vm2791_vm8, %v5753_v31 }
0x27ab   :  { %v5251_v39 = vpop.permute.xlu0 %5250 }
0x27ac   :  { %5268 = vst.msk [vmem:[#allocation3 + $0x30] sm:$0xff] %vm2286_vm7, %v5251_v39  ;;  %v6255_v23 = vpop.permute.xlu2 %6254 }
0x27b3   :  { %v5757_v42 = vpop.permute.xlu0 %5756 }
0x27b4   :  { %v5253_v57 = vpop.permute.xlu2 %5252 }
0x27b5   :  { %5269 = vst.msk [vmem:[#allocation3 + $0x38] sm:$0xff] %vm2286_vm7, %v5253_v57 }
0x27b6   :  { %5773 = vst.msk [vmem:[#allocation3 + $0x38] sm:$0xff] %vm2791_vm8, %v5757_v42 }
0x27bc   :  { %v6253_v19 = vpop.permute.xlu1 %6252 }
0x27bd   :  { %6273 = vst.msk [vmem:[#allocation3 + $0x18] sm:$0xff] %vm3296_vm9, %v6253_v19 }
0x27c4   :  { %v5751_v34 = vpop.permute.xlu1 %5750  ;;  %v6281_v38 = vld [vmem:[#allocation3 + $0x18] sm:$0xff] }
0x27c5   :  { %5770 = vst.msk [vmem:[#allocation3 + $0x20] sm:$0xff] %vm2791_vm8, %v5751_v34  ;;  %v6287_v60 = vpack.c.bf16 %v6281_v38, %v6280_v11 }
0x27c6   :  { %6274 = vst.msk [vmem:[#allocation3 + $0x20] sm:$0xff] %vm3296_vm9, %v6255_v23 }
0x27c7   :  { %7453 = vmatmul.msk.bf16.gmra.mxu0 %vm377_vm0, %v6287_v60 }
0x27cc   :  { %v6257_v33 = vpop.permute.xlu1 %6256 }
0x27cd   :  { %6275 = vst.msk [vmem:[#allocation3 + $0x28] sm:$0xff] %vm3296_vm9, %v6257_v33  ;;  %v6282_v61 = vld [vmem:[#allocation3 + $0x20] sm:$0xff] }
0x27d4   :  { %v5755_v29 = vpop.permute.xlu1 %5754  ;;  %v6283_v4 = vld [vmem:[#allocation3 + $0x28] sm:$0xff] }
0x27d5   :  { %5772 = vst.msk [vmem:[#allocation3 + $0x30] sm:$0xff] %vm2791_vm8, %v5755_v29  ;;  %v6288_v45 = vpack.c.bf16 %v6283_v4, %v6282_v61 }
0x27d7   :  { %7454 = vmatmul.msk.bf16.gmra.mxu0 %vm377_vm0, %v6288_v45 }
0x27dc   :  { %v6261_v40 = vpop.permute.xlu1 %6260 }
0x27dd   :  { %6277 = vst.msk [vmem:[#allocation3 + $0x38] sm:$0xff] %vm3296_vm9, %v6261_v40 }
0x27e4   :  { %v6285_v52 = vld [vmem:[#allocation3 + $0x38] sm:$0xff] }
0x27e5   :  { %v6259_v58 = vpop.permute.xlu2 %6258 }
0x27e6   :  { %6276 = vst.msk [vmem:[#allocation3 + $0x30] sm:$0xff] %vm3296_vm9, %v6259_v58 }
0x27ed   :  { %v6284_v37 = vld [vmem:[#allocation3 + $0x30] sm:$0xff] }
0x27ee   :  { %v6289_v24 = vpack.c.bf16 %v6285_v52, %v6284_v37 }
0x27f0   :  { %7455 = vmatmul.msk.bf16.gmra.mxu0 %vm377_vm0, %v6289_v24 }
0x280b   :  { %v6333_v55 = vpop.f32.mrf.mxu0 }
0x280c   :  { %v6334_v6 = vadd.f32 %v7594_v15, %v6333_v55 }
0x280e   :  { %v6353_v1 = vadd.f32 %v6334_v6, %v10097_v62 }
0x2810   :  { %v6365_v21 = vsel %vm377_vm0, %v6353_v1, 0.0 }
0x2811   :  { %6366 = vadd.xlane.f32.xlu0 %v6365_v21 }
0x2813   :  { %v6335_v27 = vpop.f32.mrf.mxu0 }
0x2814   :  { %v6336_v20 = vadd.f32 %v7594_v15, %v6335_v27 }
0x2816   :  { %v6354_v56 = vadd.f32 %v6336_v20, %v10100_v36 }
0x2818   :  { %v6368_v63 = vsel %vm377_vm0, %v6354_v56, 0.0 }
0x2819   :  { %6369 = vadd.xlane.f32.xlu2 %v6368_v63 }
0x2844   :  { %v6338_v50 = vpop.f32.mrf.mxu0 }
0x2845   :  { %v6339_v53 = vadd.f32 %v7594_v15, %v6338_v50  ;;  %v7536_v50 = vld [vmem:[#allocation22 + $0x18] sm:$0xff] }
0x2846   :  { %6607 = vmatpush.bf16.msrb.mxu1 %v7536_v50 }
0x2847   :  { %v6355_v17 = vadd.f32 %v6339_v53, %v10116_v26  ;;  %v7535_v53 = vld [vmem:[#allocation22 + $0x10] sm:$0xff] }
0x2849   :  { %v6371_v16 = vsel %vm377_vm0, %v6355_v17, 0.0 }
0x284a   :  { %6372 = vadd.xlane.f32.xlu1 %v6371_v16  ;;  %6608 = vmatpush.bf16.msrb.mxu1 %v7535_v53 }
0x284c   :  { %v6340_v46 = vpop.f32.mrf.mxu0 }
0x284d   :  { %v6341_v51 = vadd.f32 %v7594_v15, %v6340_v46 }
0x284f   :  { %v6356_v62 = vadd.f32 %v6341_v51, %v10119_v14 }
0x2851   :  { %v6374_v44 = vsel %vm377_vm0, %v6356_v62, 0.0 }
0x2852   :  { %6375 = vadd.xlane.f32.xlu0 %v6374_v44 }
0x2854   :  { %v6343_v18 = vpop.f32.mrf.mxu0 }
0x2855   :  { %v6344_v47 = vadd.f32 %v7594_v15, %v6343_v18 }
0x2857   :  { %v6357_v36 = vadd.f32 %v6344_v47, %v10131_v0 }
0x2859   :  { %v6377_v13 = vsel %vm377_vm0, %v6357_v36, 0.0 }
0x285a   :  { %6378 = vadd.xlane.f32.xlu2 %v6377_v13 }
0x285c   :  { %v6345_v25 = vpop.f32.mrf.mxu0 }
0x285d   :  { %v6346_v48 = vadd.f32 %v7594_v15, %v6345_v25 }
0x285f   :  { %v6358_v26 = vadd.f32 %v6346_v48, %v10134_v59 }
0x2861   :  { %v6380_v7 = vsel %vm377_vm0, %v6358_v26, 0.0 }
0x2862   :  { %6381 = vadd.xlane.f32.xlu1 %v6380_v7 }
0x286d   :  { %v6348_v12 = vpop.f32.mrf.mxu0 }
0x286e   :  { %v6349_v43 = vadd.f32 %v7594_v15, %v6348_v12 }
0x2870   :  { %v6359_v14 = vadd.f32 %v6349_v43, %v10161_v35 }
0x2872   :  { %v6383_v8 = vsel %vm377_vm0, %v6359_v14, 0.0 }
0x2873   :  { %6384 = vadd.xlane.f32.xlu1 %v6383_v8 }
0x2875   :  { %v6350_v3 = vpop.f32.mrf.mxu0 }
0x2876   :  { %v6351_v59 = vadd.f32 %v7594_v15, %v6350_v3  ;;  %v11096_v3 = vld [vmem:[#allocation27 + $0x1] ss:$0 sm:$0xff] }
0x2878   :  { %v6360_v35 = vadd.f32 %v6351_v59, %v10178_v9 }
0x287a   :  { %v6386_v32 = vsel %vm377_vm0, %v6360_v35, 0.0 }
0x2884   :  { %v6367_v22 = vpop.xlane.xlu0 %6366 }
0x2885   :  { %v6389_v0 = vmul.f32 %v6367_v22, %v9881_v30 }
0x2887   :  { %v11045_v49 = vsub.f32 %v6353_v1, %v6389_v0 }
0x2889   :  { %v6405_v41 = vmul.f32 %v11045_v49, %v11045_v49 }
0x288b   :  { %v6413_v28 = vsel %vm377_vm0, %v6405_v41, 0.0 }
0x288c   :  { %6414 = vadd.xlane.f32.xlu0 %v6413_v28  ;;  %v6370_v54 = vpop.xlane.xlu2 %6369 }
0x288d   :  { %v6390_v10 = vmul.f32 %v6370_v54, %v9881_v30  ;;  %v11099_v54 = vld [vmem:[#allocation28 + $0x1] ss:$0 sm:$0xff] }
0x288f   :  { %v11052_v5 = vsub.f32 %v6354_v56, %v6390_v10 }
0x2891   :  { %v6406_v31 = vmul.f32 %v11052_v5, %v11052_v5 }
0x2893   :  { %v6416_v39 = vsel %vm377_vm0, %v6406_v31, 0.0 }
0x2894   :  { %6387 = vadd.xlane.f32.xlu0 %v6386_v32  ;;  %6417 = vadd.xlane.f32.xlu2 %v6416_v39 }
0x28bd   :  { %v6373_v23 = vpop.xlane.xlu1 %6372 }
0x28be   :  { %v6391_v57 = vmul.f32 %v6373_v23, %v9881_v30 }
0x28c0   :  { %v11059_v42 = vsub.f32 %v6355_v17, %v6391_v57 }
0x28c2   :  { %v6407_v19 = vmul.f32 %v11059_v42, %v11059_v42 }
0x28c4   :  { %v6419_v9 = vsel %vm377_vm0, %v6407_v19, 0.0 }
0x28c5   :  { %v6376_v34 = vpop.xlane.xlu0 %6375  ;;  %6420 = vadd.xlane.f32.xlu2 %v6419_v9 }
0x28c6   :  { %v6392_v11 = vmul.f32 %v6376_v34, %v9881_v30 }
0x28c8   :  { %v11065_v38 = vsub.f32 %v6356_v62, %v6392_v11 }
0x28ca   :  { %v6408_v60 = vmul.f32 %v11065_v38, %v11065_v38 }
0x28cc   :  { %v6422_v33 = vsel %vm377_vm0, %v6408_v60, 0.0 }
0x28cd   :  { %6423 = vadd.xlane.f32.xlu1 %v6422_v33  ;;  %v6379_v29 = vpop.xlane.xlu2 %6378 }
0x28ce   :  { %v6393_v61 = vmul.f32 %v6379_v29, %v9881_v30 }
0x28d0   :  { %v11071_v4 = vsub.f32 %v6357_v36, %v6393_v61 }
0x28d2   :  { %v6409_v45 = vmul.f32 %v11071_v4, %v11071_v4 }
0x28d4   :  { %v6425_v40 = vsel %vm377_vm0, %v6409_v45, 0.0 }
0x28d5   :  { %v6382_v58 = vpop.xlane.xlu1 %6381  ;;  %6426 = vadd.xlane.f32.xlu0 %v6425_v40 }
0x28d6   :  { %v6394_v37 = vmul.f32 %v6382_v58, %v9881_v30 }
0x28d8   :  { %v11077_v52 = vsub.f32 %v6358_v26, %v6394_v37 }
0x28da   :  { %v6410_v24 = vmul.f32 %v11077_v52, %v11077_v52 }
0x28dc   :  { %v6428_v15 = vsel %vm377_vm0, %v6410_v24, 0.0 }
0x28dd   :  { %6429 = vadd.xlane.f32.xlu2 %v6428_v15 }
0x28e6   :  { %v6385_v55 = vpop.xlane.xlu1 %6384 }
0x28e7   :  { %v6395_v6 = vmul.f32 %v6385_v55, %v9881_v30 }
0x28e9   :  { %v11083_v1 = vsub.f32 %v6359_v14, %v6395_v6 }
0x28eb   :  { %v6411_v21 = vmul.f32 %v11083_v1, %v11083_v1 }
0x28ed   :  { %v6431_v27 = vsel %vm377_vm0, %v6411_v21, 0.0 }
0x28ee   :  { %6432 = vadd.xlane.f32.xlu1 %v6431_v27 }
0x28ff   :  { %v6415_v20 = vpop.xlane.xlu0 %6414 }
0x2900   :  { %v6437_v56 = vmul.f32 %v6415_v20, %v9881_v30 }
0x2902   :  { %v6445_v63 = vadd.f32 1e-05, %v6437_v56 }
0x2904   :  { %7956 = vrsqrt.f32 %v6445_v63  ;;  %vm6459_vm4 = vweird.f32 %v6445_v63 }
0x2907   :  { %v6388_v17 = vpop.xlane.xlu0 %6387  ;;  %v6418_v16 = vpop.xlane.xlu2 %6417 }
0x2908   :  { %v6396_v46 = vmul.f32 %v6388_v17, %v9881_v30  ;;  %v6438_v51 = vmul.f32 %v6418_v16, %v9881_v30 }
0x290a   :  { %v7957_v62 = vpop.eup %7956  ;;  %v11091_v44 = vsub.f32 %v6360_v35, %v6396_v46  ;;  %v6446_v18 = vadd.f32 1e-05, %v6438_v51 }
0x290b   :  { %v6454_v47 = vmul.f32 %v7957_v62, %v6445_v63  ;;  %vm6460_vm3 = vweird.f32 %v7957_v62 }
0x290c   :  { %7958 = vrsqrt.f32 %v6446_v18  ;;  %v6412_v36 = vmul.f32 %v11091_v44, %v11091_v44  ;;  %vm6461_vm5 = vmor %vm6459_vm4, %vm6460_vm3  ;;  %vm6469_vm8 = vweird.f32 %v6446_v18 }
0x290d   :  { %v6455_v13 = vmul.f32 %v7957_v62, %v6454_v47 }
0x290e   :  { %v6434_v25 = vsel %vm377_vm0, %v6412_v36, 0.0 }
0x290f   :  { %v6456_v48 = vmul.f32 0.5, %v6455_v13  ;;  %6435 = vadd.xlane.f32.xlu0 %v6434_v25 }
0x2911   :  { %v6457_v26 = vsub.f32 1.5, %v6456_v48 }
0x2912   :  { %v7959_v7 = vpop.eup %7958 }
0x2913   :  { %v6458_v12 = vmul.f32 %v7957_v62, %v6457_v26  ;;  %v6464_v43 = vmul.f32 %v7959_v7, %v6446_v18  ;;  %vm6470_vm7 = vweird.f32 %v7959_v7 }
0x2914   :  { %vm6471_vm9 = vmor %vm6469_vm8, %vm6470_vm7 }
0x2915   :  { %v6465_v14 = vmul.f32 %v7959_v7, %v6464_v43  ;;  %v6462_v8 = vsel %vm6461_vm5, %v7957_v62, %v6458_v12 }
0x2916   :  { %v6533_v41 = vmul.f32 %v6462_v8, %v11045_v49 }
0x2917   :  { %v6466_v22 = vmul.f32 0.5, %v6465_v14 }
0x2918   :  { %v6544_v10 = vmul.f32 %v11096_v3, %v6533_v41 }
0x2919   :  { %v6467_v0 = vsub.f32 1.5, %v6466_v22 }
0x291a   :  { %v11105_v32 = vadd.f32 %v11099_v54, %v6544_v10 }
0x291b   :  { %v6468_v59 = vmul.f32 %v7959_v7, %v6467_v0 }
0x291d   :  { %v6472_v28 = vsel %vm6471_vm9, %v7959_v7, %v6468_v59 }
0x291e   :  { %v6534_v35 = vmul.f32 %v6472_v28, %v11052_v5 }
0x2920   :  { %v6545_v31 = vmul.f32 %v11096_v3, %v6534_v35 }
0x2922   :  { %v11108_v39 = vadd.f32 %v11099_v54, %v6545_v31 }
0x2924   :  { %v6563_v49 = vpack.c.bf16 %v11108_v39, %v11105_v32 }
0x2926   :  { %7464 = vmatmul.msk.bf16.vlgmr.msrb.gmra.mxu1 %vm377_vm0, %v6563_v49 }
0x2938   :  { %v6421_v23 = vpop.xlane.xlu2 %6420 }
0x2939   :  { %v6439_v57 = vmul.f32 %v6421_v23, %v9881_v30 }
0x293b   :  { %v6447_v19 = vadd.f32 1e-05, %v6439_v57 }
0x293d   :  { %7960 = vrsqrt.f32 %v6447_v19  ;;  %vm6479_vm10 = vweird.f32 %v6447_v19 }
0x2940   :  { %v6424_v9 = vpop.xlane.xlu1 %6423 }
0x2941   :  { %v6440_v5 = vmul.f32 %v6424_v9, %v9881_v30 }
0x2943   :  { %v7961_v34 = vpop.eup %7960  ;;  %v6448_v11 = vadd.f32 1e-05, %v6440_v5 }
0x2944   :  { %v6474_v60 = vmul.f32 %v7961_v34, %v6447_v19  ;;  %vm6480_vm6 = vweird.f32 %v7961_v34 }
0x2945   :  { %7962 = vrsqrt.f32 %v6448_v11  ;;  %vm6481_vm11 = vmor %vm6479_vm10, %vm6480_vm6  ;;  %vm6489_vm13 = vweird.f32 %v6448_v11 }
0x2946   :  { %v6475_v33 = vmul.f32 %v7961_v34, %v6474_v60 }
0x2948   :  { %v6476_v29 = vmul.f32 0.5, %v6475_v33  ;;  %v6427_v61 = vpop.xlane.xlu0 %6426  ;;  %v7540_v33 = vld [vmem:[%s11354_s16 + $0x38] sm:$0xff] }
0x2949   :  { %v6441_v45 = vmul.f32 %v6427_v61, %v9881_v30  ;;  %6696 = vmatpush.bf16.msra.mxu2 %v7540_v33 }
0x294a   :  { %v6477_v40 = vsub.f32 1.5, %v6476_v29  ;;  %v7539_v29 = vld [vmem:[%s11354_s16 + $0x30] sm:$0xff] }
0x294b   :  { %v7963_v58 = vpop.eup %7962  ;;  %v6449_v37 = vadd.f32 1e-05, %v6441_v45 }
0x294c   :  { %v6478_v24 = vmul.f32 %v7961_v34, %v6477_v40  ;;  %v6484_v15 = vmul.f32 %v7963_v58, %v6448_v11  ;;  %vm6490_vm12 = vweird.f32 %v7963_v58 }
0x294d   :  { %7964 = vrsqrt.f32 %v6449_v37  ;;  %vm6491_vm14 = vmor %vm6489_vm13, %vm6490_vm12  ;;  %vm6499_vm1 = vweird.f32 %v6449_v37  ;;  %6697 = vmatpush.bf16.msra.mxu2 %v7539_v29 }
0x294e   :  { %v6485_v55 = vmul.f32 %v7963_v58, %v6484_v15  ;;  %v6482_v6 = vsel %vm6481_vm11, %v7961_v34, %v6478_v24  ;;  %v7537_v15 = vld [vmem:[%s11354_s16 + $0x20] sm:$0xff] }
0x294f   :  { %v6535_v50 = vmul.f32 %v6482_v6, %v11059_v42 }
0x2950   :  { %v6486_v21 = vmul.f32 0.5, %v6485_v55  ;;  %v6430_v27 = vpop.xlane.xlu2 %6429 }
0x2951   :  { %v6442_v20 = vmul.f32 %v6430_v27, %v9881_v30  ;;  %v6546_v18 = vmul.f32 %v11096_v3, %v6535_v50 }
0x2952   :  { %v6487_v56 = vsub.f32 1.5, %v6486_v21 }
0x2953   :  { %v7965_v63 = vpop.eup %7964  ;;  %v6450_v53 = vadd.f32 1e-05, %v6442_v20  ;;  %v11122_v48 = vadd.f32 %v11099_v54, %v6546_v18 }
0x2954   :  { %v6488_v17 = vmul.f32 %v7963_v58, %v6487_v56  ;;  %v6494_v16 = vmul.f32 %v7965_v63, %v6449_v37  ;;  %vm6500_vm15 = vweird.f32 %v7965_v63  ;;  %v7538_v37 = vld [vmem:[%s11354_s16 + $0x28] sm:$0xff]  ;;  %s11395_s16 = sld [smem:[#allocation61_spill]] }
0x2955   :  { %7966 = vrsqrt.f32 %v6450_v53  ;;  %vm6501_vm3 = vmor %vm6499_vm1, %vm6500_vm15  ;;  %vm6509_vm5 = vweird.f32 %v6450_v53  ;;  %6698 = vmatpush.bf16.msra.mxu2 %v7538_v37 }
0x2956   :  { %v6492_v46 = vsel %vm6491_vm14, %v7963_v58, %v6488_v17  ;;  %v6495_v51 = vmul.f32 %v7965_v63, %v6494_v16 }
0x2957   :  { %v6536_v62 = vmul.f32 %v6492_v46, %v11065_v38 }
0x2958   :  { %v6496_v47 = vmul.f32 0.5, %v6495_v51  ;;  %v7597_v51 = vld [vmem:[#allocation24 + $0x1] ss:$0 sm:$0xff] }
0x2959   :  { %v6547_v36 = vmul.f32 %v11096_v3, %v6536_v62  ;;  %6699 = vmatpush.bf16.msra.mxu2 %v7537_v15 }
0x295a   :  { %v6497_v13 = vsub.f32 1.5, %v6496_v47  ;;  %s7090_s7 = sshll.u32 %s11395_s16, 4  ;;  %s7091_s7 = int_to_ptr.hbm [resolvable:$true] %s7090_s7 }
0x295b   :  { %v7967_v25 = vpop.eup %7966  ;;  %v11125_v42 = vadd.f32 %v11099_v54, %v6547_v36 }
0x295c   :  { %v6498_v26 = vmul.f32 %v7965_v63, %v6497_v13  ;;  %v6504_v7 = vmul.f32 %v7967_v25, %v6450_v53  ;;  %vm6510_vm4 = vweird.f32 %v7967_v25 }
0x295d   :  { %v6564_v12 = vpack.c.bf16 %v11125_v42, %v11122_v48  ;;  %vm6511_vm7 = vmor %vm6509_vm5, %vm6510_vm4 }
0x295e   :  { %v6505_v38 = vmul.f32 %v7967_v25, %v6504_v7  ;;  %v6502_v43 = vsel %vm6501_vm3, %v7965_v63, %v6498_v26 }
0x295f   :  { %7465 = vmatmul.msk.bf16.gmra.mxu1 %vm377_vm0, %v6564_v12  ;;  %v6537_v22 = vmul.f32 %v6502_v43, %v11071_v4 }
0x2960   :  { %v6506_v14 = vmul.f32 0.5, %v6505_v38 }
0x2961   :  { %v6548_v28 = vmul.f32 %v11096_v3, %v6537_v22  ;;  %v6433_v35 = vpop.xlane.xlu1 %6432 }
0x2962   :  { %v6507_v8 = vsub.f32 1.5, %v6506_v14  ;;  %v6443_v23 = vmul.f32 %v6433_v35, %v9881_v30 }
0x2963   :  { %v11135_v31 = vadd.f32 %v11099_v54, %v6548_v28 }
0x2964   :  { %v6508_v0 = vmul.f32 %v7967_v25, %v6507_v8  ;;  %v6451_v57 = vadd.f32 1e-05, %v6443_v23 }
0x2966   :  { %v6512_v41 = vsel %vm6511_vm7, %v7967_v25, %v6508_v0  ;;  %7968 = vrsqrt.f32 %v6451_v57  ;;  %vm6519_vm9 = vweird.f32 %v6451_v57 }
0x2967   :  { %v6538_v59 = vmul.f32 %v6512_v41, %v11077_v52 }
0x2969   :  { %v6549_v10 = vmul.f32 %v11096_v3, %v6538_v59 }
0x296b   :  { %v11138_v49 = vadd.f32 %v11099_v54, %v6549_v10 }
0x296c   :  { %v7969_v52 = vpop.eup %7968 }
0x296d   :  { %v6565_v4 = vpack.c.bf16 %v11138_v49, %v11135_v31  ;;  %v6514_v19 = vmul.f32 %v7969_v52, %v6451_v57  ;;  %vm6520_vm8 = vweird.f32 %v7969_v52 }
0x296e   :  { %vm6521_vm6 = vmor %vm6519_vm9, %vm6520_vm8 }
0x296f   :  { %7466 = vmatmul.msk.bf16.gmra.mxu1 %vm377_vm0, %v6565_v4  ;;  %v6515_v9 = vmul.f32 %v7969_v52, %v6514_v19  ;;  %v7598_v19 = vld [vmem:[#allocation25 + $0x1] ss:$0 sm:$0xff] }
0x2971   :  { %v6516_v60 = vmul.f32 0.5, %v6515_v9 }
0x2973   :  { %v6517_v61 = vsub.f32 1.5, %v6516_v60 }
0x2975   :  { %v6518_v40 = vmul.f32 %v7969_v52, %v6517_v61 }
0x2977   :  { %v6522_v55 = vsel %vm6521_vm6, %v7969_v52, %v6518_v40 }
0x2978   :  { %v6539_v27 = vmul.f32 %v6522_v55, %v11083_v1 }
0x297a   :  { %v6550_v50 = vmul.f32 %v11096_v3, %v6539_v27 }
0x297c   :  { %v11162_v17 = vadd.f32 %v11099_v54, %v6550_v50 }
0x2982   :  { %v6436_v5 = vpop.xlane.xlu0 %6435 }
0x2983   :  { %v6444_v34 = vmul.f32 %v6436_v5, %v9881_v30 }
0x2985   :  { %v6452_v11 = vadd.f32 1e-05, %v6444_v34 }
0x2987   :  { %7970 = vrsqrt.f32 %v6452_v11  ;;  %vm6529_vm11 = vweird.f32 %v6452_v11 }
0x298d   :  { %v7971_v45 = vpop.eup %7970 }
0x298e   :  { %v6524_v58 = vmul.f32 %v7971_v45, %v6452_v11  ;;  %vm6530_vm10 = vweird.f32 %v7971_v45 }
0x298f   :  { %vm6531_vm12 = vmor %vm6529_vm11, %vm6530_vm10 }
0x2990   :  { %v6525_v24 = vmul.f32 %v7971_v45, %v6524_v58 }
0x2992   :  { %v6526_v6 = vmul.f32 0.5, %v6525_v24 }
0x2994   :  { %v6527_v21 = vsub.f32 1.5, %v6526_v6 }
0x2996   :  { %v6528_v20 = vmul.f32 %v7971_v45, %v6527_v21 }
0x2998   :  { %v6532_v56 = vsel %vm6531_vm12, %v7971_v45, %v6528_v20 }
0x2999   :  { %v6540_v63 = vmul.f32 %v6532_v56, %v11091_v44 }
0x299b   :  { %v6551_v53 = vmul.f32 %v11096_v3, %v6540_v63 }
0x299d   :  { %v11165_v16 = vadd.f32 %v11099_v54, %v6551_v53 }
0x299f   :  { %v6566_v46 = vpack.c.bf16 %v11165_v16, %v11162_v17 }
0x29a1   :  { %7467 = vmatmul.msk.bf16.gmra.mxu1 %vm377_vm0, %v6566_v46 }
0x29a3   :  { %v6610_v1 = vpop.f32.mrf.mxu1 }
0x29a4   :  { %v6611_v62 = vadd.f32 %v7597_v51, %v6610_v1 }
0x29a6   :  { %v6630_v47 = vmax.f32 %v6611_v62, 0.0 }
0x29ab   :  { %v6612_v18 = vpop.f32.mrf.mxu1 }
0x29ac   :  { %v6613_v44 = vadd.f32 %v7597_v51, %v6612_v18 }
0x29ae   :  { %v6631_v36 = vmax.f32 %v6613_v44, 0.0 }
0x29b0   :  { %v6638_v13 = vpack.c.bf16 %v6631_v36, %v6630_v47 }
0x29b2   :  { %7492 = vmatmul.msk.bf16.vlgmr.msra.gmra.mxu2 %vm3706_vm2, %v6638_v13 }
0x29dc   :  { %v6615_v3 = vpop.f32.mrf.mxu1 }
0x29dd   :  { %v6616_v25 = vadd.f32 %v7597_v51, %v6615_v3 }
0x29df   :  { %v6632_v7 = vmax.f32 %v6616_v25, 0.0 }
0x29e4   :  { %v6617_v26 = vpop.f32.mrf.mxu1 }
0x29e5   :  { %v6618_v54 = vadd.f32 %v7597_v51, %v6617_v26 }
0x29e7   :  { %v6633_v12 = vmax.f32 %v6618_v54, 0.0 }
0x29e9   :  { %v6639_v38 = vpack.c.bf16 %v6633_v12, %v6632_v7 }
0x29eb   :  { %7493 = vmatmul.msk.bf16.gmra.mxu2 %vm3706_vm2, %v6639_v38 }
0x29ec   :  { %v6620_v43 = vpop.f32.mrf.mxu1 }
0x29ed   :  { %v6621_v14 = vadd.f32 %v7597_v51, %v6620_v43 }
0x29ef   :  { %v6634_v0 = vmax.f32 %v6621_v14, 0.0 }
0x29f4   :  { %v6622_v8 = vpop.f32.mrf.mxu1 }
0x29f5   :  { %v6623_v22 = vadd.f32 %v7597_v51, %v6622_v8 }
0x29f7   :  { %v6635_v41 = vmax.f32 %v6623_v22, 0.0 }
0x29f9   :  { %v6640_v59 = vpack.c.bf16 %v6635_v41, %v6634_v0 }
0x29fb   :  { %7494 = vmatmul.msk.bf16.gmra.mxu2 %vm3706_vm2, %v6640_v59 }
0x2a1e   :  { %v6625_v28 = vpop.f32.mrf.mxu1 }
0x2a1f   :  { %v6626_v10 = vadd.f32 %v7597_v51, %v6625_v28 }
0x2a21   :  { %v6636_v4 = vmax.f32 %v6626_v10, 0.0 }
0x2a26   :  { %v6627_v35 = vpop.f32.mrf.mxu1 }
0x2a27   :  { %v6628_v23 = vadd.f32 %v7597_v51, %v6627_v35 }
0x2a29   :  { %v6637_v57 = vmax.f32 %v6628_v23, 0.0 }
0x2a2b   :  { %v6641_v52 = vpack.c.bf16 %v6637_v57, %v6636_v4 }
0x2a2d   :  { %7495 = vmatmul.msk.bf16.gmra.mxu2 %vm3706_vm2, %v6641_v52 }
0x2a35   :  { %v6701_v9 = vpop.f32.mrf.mxu2 }
0x2a36   :  { %v6702_v5 = vadd.f32 %v7598_v19, %v6701_v9 }
0x2a38   :  { %v6721_v34 = vadd.f32 %v6702_v5, %v11105_v32 }
0x2a3a   :  { %v6733_v11 = vsel %vm377_vm0, %v6721_v34, 0.0 }
0x2a3b   :  { %6734 = vadd.xlane.f32.xlu2 %v6733_v11 }
0x2a3d   :  { %v6703_v60 = vpop.f32.mrf.mxu2 }
0x2a3e   :  { %v6704_v33 = vadd.f32 %v7598_v19, %v6703_v60 }
0x2a40   :  { %v6722_v29 = vadd.f32 %v6704_v33, %v11108_v39 }
0x2a42   :  { %v6736_v61 = vsel %vm377_vm0, %v6722_v29, 0.0 }
0x2a43   :  { %6737 = vadd.xlane.f32.xlu1 %v6736_v61 }
0x2a6e   :  { %v6706_v45 = vpop.f32.mrf.mxu2 }
0x2a6f   :  { %v6707_v40 = vadd.f32 %v7598_v19, %v6706_v45  ;;  %v7541_v45 = vld [vmem:[%s11360_s22] sm:$0xff] }
0x2a71   :  { %v6723_v58 = vadd.f32 %v6707_v40, %v11122_v48 }
0x2a73   :  { %v6739_v37 = vsel %vm377_vm0, %v6723_v58, 0.0 }
0x2a74   :  { %6740 = vadd.xlane.f32.xlu0 %v6739_v37 }
0x2a76   :  { %v6708_v24 = vpop.f32.mrf.mxu2 }
0x2a77   :  { %v6709_v15 = vadd.f32 %v7598_v19, %v6708_v24 }
0x2a79   :  { %v6724_v32 = vadd.f32 %v6709_v15, %v11125_v42 }
0x2a7b   :  { %v6742_v55 = vsel %vm377_vm0, %v6724_v32, 0.0 }
0x2a7c   :  { %6743 = vadd.xlane.f32.xlu2 %v6742_v55 }
0x2a7e   :  { %v6711_v6 = vpop.f32.mrf.mxu2 }
0x2a7f   :  { %v6712_v21 = vadd.f32 %v7598_v19, %v6711_v6 }
0x2a81   :  { %v6725_v39 = vadd.f32 %v6712_v21, %v11135_v31 }
0x2a83   :  { %v6745_v27 = vsel %vm377_vm0, %v6725_v39, 0.0 }
0x2a84   :  { %6746 = vadd.xlane.f32.xlu1 %v6745_v27 }
0x2a86   :  { %v6713_v20 = vpop.f32.mrf.mxu2 }
0x2a87   :  { %v6714_v56 = vadd.f32 %v7598_v19, %v6713_v20 }
0x2a89   :  { %v6726_v48 = vadd.f32 %v6714_v56, %v11138_v49 }
0x2a8b   :  { %v6748_v63 = vsel %vm377_vm0, %v6726_v48, 0.0 }
0x2a8c   :  { %6749 = vadd.xlane.f32.xlu0 %v6748_v63 }
0x2aae   :  { %v6735_v50 = vpop.xlane.xlu2 %6734 }
0x2aaf   :  { %v6757_v42 = vmul.f32 %v6735_v50, %v9881_v30 }
0x2ab0   :  { %v6716_v53 = vpop.f32.mrf.mxu2 }
0x2ab1   :  { %v11187_v46 = vsub.f32 %v6721_v34, %v6757_v42  ;;  %v6717_v1 = vadd.f32 %v7598_v19, %v6716_v53 }
0x2ab3   :  { %v6727_v51 = vadd.f32 %v6717_v1, %v11162_v17  ;;  %v6773_v31 = vmul.f32 %v11187_v46, %v11187_v46 }
0x2ab5   :  { %v6751_v62 = vsel %vm377_vm0, %v6727_v51, 0.0  ;;  %v6781_v18 = vsel %vm377_vm0, %v6773_v31, 0.0 }
0x2ab6   :  { %v6738_v49 = vpop.xlane.xlu1 %6737  ;;  %6752 = vadd.xlane.f32.xlu0 %v6751_v62  ;;  %6782 = vadd.xlane.f32.xlu2 %v6781_v18  ;;  %v11249_v62 = vld [vmem:[%s11358_s20 + $0x1] ss:$0 sm:$0xff] }
0x2ab7   :  { %v6758_v44 = vmul.f32 %v6738_v49, %v9881_v30 }
0x2ab8   :  { %v6718_v47 = vpop.f32.mrf.mxu2 }
0x2ab9   :  { %v11195_v36 = vsub.f32 %v6722_v29, %v6758_v44  ;;  %v6719_v13 = vadd.f32 %v7598_v19, %v6718_v47  ;;  %v7542_v29 = vld [vmem:[%s11360_s22 + $0x8] sm:$0xff]  ;;  %v11252_v47 = vld [vmem:[#allocation30 + $0x1] ss:$0 sm:$0xff] }
0x2aba   :  { %6973 = vmatpush.bf16.msra.mxu3 %v7542_v29 }
0x2abb   :  { %v6728_v3 = vadd.f32 %v6719_v13, %v11165_v16  ;;  %v6774_v17 = vmul.f32 %v11195_v36, %v11195_v36 }
0x2abd   :  { %v6784_v25 = vsel %vm377_vm0, %v6774_v17, 0.0  ;;  %v6754_v26 = vsel %vm377_vm0, %v6728_v3, 0.0 }
0x2abe   :  { %6785 = vadd.xlane.f32.xlu1 %v6784_v25  ;;  %6755 = vadd.xlane.f32.xlu2 %v6754_v26 }
0x2abf   :  { %6974 = vmatpush.bf16.msra.mxu3 %v7541_v45 }
0x2ae7   :  { %v6741_v54 = vpop.xlane.xlu0 %6740 }
0x2ae8   :  { %v6759_v7 = vmul.f32 %v6741_v54, %v9881_v30 }
0x2aea   :  { %v11203_v12 = vsub.f32 %v6723_v58, %v6759_v7 }
0x2aec   :  { %v6775_v38 = vmul.f32 %v11203_v12, %v11203_v12 }
0x2aee   :  { %v6787_v43 = vsel %vm377_vm0, %v6775_v38, 0.0 }
0x2aef   :  { %6788 = vadd.xlane.f32.xlu1 %v6787_v43  ;;  %v6744_v16 = vpop.xlane.xlu2 %6743 }
0x2af0   :  { %v6760_v14 = vmul.f32 %v6744_v16, %v9881_v30 }
0x2af2   :  { %v11209_v8 = vsub.f32 %v6724_v32, %v6760_v14 }
0x2af4   :  { %v6776_v22 = vmul.f32 %v11209_v8, %v11209_v8 }
0x2af6   :  { %v6790_v0 = vsel %vm377_vm0, %v6776_v22, 0.0 }
0x2af7   :  { %v6747_v41 = vpop.xlane.xlu1 %6746  ;;  %6791 = vadd.xlane.f32.xlu0 %v6790_v0 }
0x2af8   :  { %v6761_v59 = vmul.f32 %v6747_v41, %v9881_v30 }
0x2afa   :  { %v11215_v28 = vsub.f32 %v6725_v39, %v6761_v59 }
0x2afc   :  { %v6777_v10 = vmul.f32 %v11215_v28, %v11215_v28 }
0x2afe   :  { %v6793_v35 = vsel %vm377_vm0, %v6777_v10, 0.0 }
0x2aff   :  { %v6750_v23 = vpop.xlane.xlu0 %6749  ;;  %6794 = vadd.xlane.f32.xlu2 %v6793_v35 }
0x2b00   :  { %v6762_v4 = vmul.f32 %v6750_v23, %v9881_v30 }
0x2b02   :  { %v11221_v57 = vsub.f32 %v6726_v48, %v6762_v4 }
0x2b04   :  { %v6778_v52 = vmul.f32 %v11221_v57, %v11221_v57 }
0x2b06   :  { %v6796_v19 = vsel %vm377_vm0, %v6778_v52, 0.0 }
0x2b07   :  { %6797 = vadd.xlane.f32.xlu1 %v6796_v19 }
0x2b29   :  { %v6753_v9 = vpop.xlane.xlu0 %6752  ;;  %v6783_v5 = vpop.xlane.xlu2 %6782 }
0x2b2a   :  { %v6763_v34 = vmul.f32 %v6753_v9, %v9881_v30  ;;  %v6805_v11 = vmul.f32 %v6783_v5, %v9881_v30 }
0x2b2c   :  { %v11228_v60 = vsub.f32 %v6727_v51, %v6763_v34  ;;  %v6813_v33 = vadd.f32 1e-05, %v6805_v11 }
0x2b2e   :  { %7972 = vrsqrt.f32 %v6813_v33  ;;  %v6779_v61 = vmul.f32 %v11228_v60, %v11228_v60  ;;  %vm6827_vm13 = vweird.f32 %v6813_v33 }
0x2b30   :  { %v6799_v40 = vsel %vm377_vm0, %v6779_v61, 0.0 }
0x2b31   :  { %v6786_v58 = vpop.xlane.xlu1 %6785  ;;  %6800 = vadd.xlane.f32.xlu0 %v6799_v40  ;;  %v6756_v37 = vpop.xlane.xlu2 %6755 }
0x2b32   :  { %v6806_v24 = vmul.f32 %v6786_v58, %v9881_v30  ;;  %v6764_v15 = vmul.f32 %v6756_v37, %v9881_v30 }
0x2b34   :  { %v7973_v32 = vpop.eup %7972  ;;  %v6814_v55 = vadd.f32 1e-05, %v6806_v24  ;;  %v11241_v6 = vsub.f32 %v6728_v3, %v6764_v15 }
0x2b35   :  { %v6822_v21 = vmul.f32 %v7973_v32, %v6813_v33  ;;  %vm6828_vm2 = vweird.f32 %v7973_v32 }
0x2b36   :  { %7974 = vrsqrt.f32 %v6814_v55  ;;  %v6780_v39 = vmul.f32 %v11241_v6, %v11241_v6  ;;  %vm6829_vm14 = vmor %vm6827_vm13, %vm6828_vm2  ;;  %vm6837_vm1 = vweird.f32 %v6814_v55 }
0x2b37   :  { %v6823_v27 = vmul.f32 %v7973_v32, %v6822_v21 }
0x2b38   :  { %v6802_v20 = vsel %vm377_vm0, %v6780_v39, 0.0 }
0x2b39   :  { %v6824_v56 = vmul.f32 0.5, %v6823_v27  ;;  %6803 = vadd.xlane.f32.xlu2 %v6802_v20 }
0x2b3b   :  { %v6825_v48 = vsub.f32 1.5, %v6824_v56 }
0x2b3c   :  { %v7975_v63 = vpop.eup %7974 }
0x2b3d   :  { %v6826_v50 = vmul.f32 %v7973_v32, %v6825_v48  ;;  %v6832_v42 = vmul.f32 %v7975_v63, %v6814_v55  ;;  %vm6838_vm15 = vweird.f32 %v7975_v63 }
0x2b3e   :  { %vm6839_vm3 = vmor %vm6837_vm1, %vm6838_vm15 }
0x2b3f   :  { %v6833_v53 = vmul.f32 %v7975_v63, %v6832_v42  ;;  %v6830_v1 = vsel %vm6829_vm14, %v7973_v32, %v6826_v50 }
0x2b40   :  { %v6901_v18 = vmul.f32 %v6830_v1, %v11187_v46 }
0x2b41   :  { %v6834_v51 = vmul.f32 0.5, %v6833_v53 }
0x2b42   :  { %v6912_v13 = vmul.f32 %v11249_v62, %v6901_v18 }
0x2b43   :  { %v6835_v31 = vsub.f32 1.5, %v6834_v51 }
0x2b44   :  { %v6923_v25 = vadd.f32 %v11252_v47, %v6912_v13 }
0x2b45   :  { %v6836_v49 = vmul.f32 %v7975_v63, %v6835_v31 }
0x2b47   :  { %v6840_v44 = vsel %vm6839_vm3, %v7975_v63, %v6836_v49 }
0x2b48   :  { %v6902_v3 = vmul.f32 %v6840_v44, %v11195_v36 }
0x2b4a   :  { %v6913_v17 = vmul.f32 %v11249_v62, %v6902_v3 }
0x2b4c   :  { %v6924_v26 = vadd.f32 %v11252_v47, %v6913_v17 }
0x2b4e   :  { %v6931_v54 = vpack.c.bf16 %v6924_v26, %v6923_v25 }
0x2b50   :  { %7505 = vmatmul.msk.bf16.vlgmr.msra.gmra.mxu3 %vm377_vm0, %v6931_v54 }
0x2b62   :  { %v6789_v46 = vpop.xlane.xlu1 %6788 }
0x2b63   :  { %v6807_v7 = vmul.f32 %v6789_v46, %v9881_v30 }
0x2b65   :  { %v6815_v38 = vadd.f32 1e-05, %v6807_v7 }
0x2b67   :  { %7976 = vrsqrt.f32 %v6815_v38  ;;  %vm6847_vm5 = vweird.f32 %v6815_v38 }
0x2b6a   :  { %v6792_v43 = vpop.xlane.xlu0 %6791 }
0x2b6b   :  { %v6808_v16 = vmul.f32 %v6792_v43, %v9881_v30 }
0x2b6d   :  { %v7977_v14 = vpop.eup %7976  ;;  %v6816_v22 = vadd.f32 1e-05, %v6808_v16 }
0x2b6e   :  { %v6842_v36 = vmul.f32 %v7977_v14, %v6815_v38  ;;  %vm6848_vm4 = vweird.f32 %v7977_v14 }
0x2b6f   :  { %7978 = vrsqrt.f32 %v6816_v22  ;;  %vm6849_vm7 = vmor %vm6847_vm5, %vm6848_vm4  ;;  %vm6857_vm9 = vweird.f32 %v6816_v22 }
0x2b70   :  { %v6843_v0 = vmul.f32 %v7977_v14, %v6842_v36 }
0x2b72   :  { %v6844_v41 = vmul.f32 0.5, %v6843_v0  ;;  %v6795_v59 = vpop.xlane.xlu2 %6794 }
0x2b73   :  { %v6809_v10 = vmul.f32 %v6795_v59, %v9881_v30 }
0x2b74   :  { %v6845_v35 = vsub.f32 1.5, %v6844_v41 }
0x2b75   :  { %v7979_v23 = vpop.eup %7978  ;;  %v6817_v4 = vadd.f32 1e-05, %v6809_v10 }
0x2b76   :  { %v6846_v52 = vmul.f32 %v7977_v14, %v6845_v35  ;;  %v6852_v19 = vmul.f32 %v7979_v23, %v6816_v22  ;;  %vm6858_vm8 = vweird.f32 %v7979_v23 }
0x2b77   :  { %7980 = vrsqrt.f32 %v6817_v4  ;;  %vm6859_vm6 = vmor %vm6857_vm9, %vm6858_vm8  ;;  %vm6867_vm11 = vweird.f32 %v6817_v4 }
0x2b78   :  { %v6853_v9 = vmul.f32 %v7979_v23, %v6852_v19  ;;  %v6850_v5 = vsel %vm6849_vm7, %v7977_v14, %v6846_v52 }
0x2b79   :  { %v6903_v45 = vmul.f32 %v6850_v5, %v11203_v12 }
0x2b7a   :  { %v6854_v34 = vmul.f32 0.5, %v6853_v9  ;;  %v6798_v11 = vpop.xlane.xlu1 %6797 }
0x2b7b   :  { %v6810_v33 = vmul.f32 %v6798_v11, %v9881_v30  ;;  %v6914_v55 = vmul.f32 %v11249_v62, %v6903_v45 }
0x2b7c   :  { %v6855_v29 = vsub.f32 1.5, %v6854_v34 }
0x2b7d   :  { %v7981_v61 = vpop.eup %7980  ;;  %v6818_v40 = vadd.f32 1e-05, %v6810_v33  ;;  %v6925_v56 = vadd.f32 %v11252_v47, %v6914_v55 }
0x2b7e   :  { %v6856_v58 = vmul.f32 %v7979_v23, %v6855_v29  ;;  %v6862_v37 = vmul.f32 %v7981_v61, %v6817_v4  ;;  %vm6868_vm10 = vweird.f32 %v7981_v61 }
0x2b7f   :  { %7982 = vrsqrt.f32 %v6818_v40  ;;  %vm6869_vm12 = vmor %vm6867_vm11, %vm6868_vm10  ;;  %vm6877_vm13 = vweird.f32 %v6818_v40 }
0x2b80   :  { %v6860_v24 = vsel %vm6859_vm6, %v7979_v23, %v6856_v58  ;;  %v6863_v15 = vmul.f32 %v7981_v61, %v6862_v37 }
0x2b81   :  { %v6904_v32 = vmul.f32 %v6860_v24, %v11209_v8 }
0x2b82   :  { %v6864_v21 = vmul.f32 0.5, %v6863_v15 }
0x2b83   :  { %v6915_v39 = vmul.f32 %v11249_v62, %v6904_v32 }
0x2b84   :  { %v6865_v27 = vsub.f32 1.5, %v6864_v21 }
0x2b85   :  { %v7983_v20 = vpop.eup %7982  ;;  %v6926_v12 = vadd.f32 %v11252_v47, %v6915_v39 }
0x2b86   :  { %v6866_v48 = vmul.f32 %v7981_v61, %v6865_v27  ;;  %v6872_v63 = vmul.f32 %v7983_v20, %v6818_v40  ;;  %vm6878_vm2 = vweird.f32 %v7983_v20 }
0x2b87   :  { %v6932_v50 = vpack.c.bf16 %v6926_v12, %v6925_v56  ;;  %vm6879_vm14 = vmor %vm6877_vm13, %vm6878_vm2 }
0x2b88   :  { %v6873_v42 = vmul.f32 %v7983_v20, %v6872_v63  ;;  %v6870_v8 = vsel %vm6869_vm12, %v7981_v61, %v6866_v48 }
0x2b89   :  { %7506 = vmatmul.msk.bf16.gmra.mxu3 %vm377_vm0, %v6932_v50  ;;  %v6905_v51 = vmul.f32 %v6870_v8, %v11215_v28 }
0x2b8a   :  { %v6874_v53 = vmul.f32 0.5, %v6873_v42 }
0x2b8b   :  { %v6916_v44 = vmul.f32 %v11249_v62, %v6905_v51 }
0x2b8c   :  { %v6875_v1 = vsub.f32 1.5, %v6874_v53 }
0x2b8d   :  { %v6927_v3 = vadd.f32 %v11252_v47, %v6916_v44 }
0x2b8e   :  { %v6876_v31 = vmul.f32 %v7983_v20, %v6875_v1 }
0x2b90   :  { %v6880_v18 = vsel %vm6879_vm14, %v7983_v20, %v6876_v31 }
0x2b91   :  { %v6906_v49 = vmul.f32 %v6880_v18, %v11221_v57 }
0x2b93   :  { %v6917_v13 = vmul.f32 %v11249_v62, %v6906_v49 }
0x2b95   :  { %v6928_v17 = vadd.f32 %v11252_v47, %v6917_v13 }
0x2b97   :  { %v6933_v25 = vpack.c.bf16 %v6928_v17, %v6927_v3 }
0x2b99   :  { %7507 = vmatmul.msk.bf16.gmra.mxu3 %vm377_vm0, %v6933_v25 }
0x2ba4   :  { %v6801_v26 = vpop.xlane.xlu0 %6800 }
0x2ba5   :  { %v6811_v28 = vmul.f32 %v6801_v26, %v9881_v30 }
0x2ba7   :  { %v6819_v54 = vadd.f32 1e-05, %v6811_v28 }
0x2ba9   :  { %7984 = vrsqrt.f32 %v6819_v54  ;;  %vm6887_vm1 = vweird.f32 %v6819_v54 }
0x2bac   :  { %v6804_v46 = vpop.xlane.xlu2 %6803 }
0x2bad   :  { %v6812_v7 = vmul.f32 %v6804_v46, %v9881_v30 }
0x2baf   :  { %v7985_v57 = vpop.eup %7984  ;;  %v6820_v38 = vadd.f32 1e-05, %v6812_v7 }
0x2bb0   :  { %v6882_v43 = vmul.f32 %v7985_v57, %v6819_v54  ;;  %vm6888_vm15 = vweird.f32 %v7985_v57 }
0x2bb1   :  { %7986 = vrsqrt.f32 %v6820_v38  ;;  %vm6889_vm3 = vmor %vm6887_vm1, %vm6888_vm15  ;;  %vm6897_vm5 = vweird.f32 %v6820_v38 }
0x2bb2   :  { %v6883_v16 = vmul.f32 %v7985_v57, %v6882_v43 }
0x2bb4   :  { %v6884_v14 = vmul.f32 0.5, %v6883_v16 }
0x2bb6   :  { %v6885_v22 = vsub.f32 1.5, %v6884_v14 }
0x2bb7   :  { %v7987_v36 = vpop.eup %7986 }
0x2bb8   :  { %v6886_v0 = vmul.f32 %v7985_v57, %v6885_v22  ;;  %v6892_v41 = vmul.f32 %v7987_v36, %v6820_v38  ;;  %vm6898_vm4 = vweird.f32 %v7987_v36 }
0x2bb9   :  { %vm6899_vm7 = vmor %vm6897_vm5, %vm6898_vm4 }
0x2bba   :  { %v6893_v59 = vmul.f32 %v7987_v36, %v6892_v41  ;;  %v6890_v10 = vsel %vm6889_vm3, %v7985_v57, %v6886_v0 }
0x2bbb   :  { %v6907_v30 = vmul.f32 %v6890_v10, %v11228_v60  ;;  %v7601_v60 = vld [vmem:[%s11361_s23] ss:$0 sm:$0xff]  ;;  %s8579_s23 = smov 96  }
0x2bbc   :  { %v6894_v35 = vmul.f32 0.5, %v6893_v59 }
0x2bbd   :  { %v6918_v9 = vmul.f32 %v11249_v62, %v6907_v30 }
0x2bbe   :  { %v6895_v23 = vsub.f32 1.5, %v6894_v35 }
0x2bbf   :  { %v6929_v34 = vadd.f32 %v11252_v47, %v6918_v9 }
0x2bc0   :  { %v6896_v4 = vmul.f32 %v7987_v36, %v6895_v23 }
0x2bc2   :  { %v6900_v52 = vsel %vm6899_vm7, %v7987_v36, %v6896_v4 }
0x2bc3   :  { %v6908_v19 = vmul.f32 %v6900_v52, %v11241_v6 }
0x2bc5   :  { %v6919_v5 = vmul.f32 %v11249_v62, %v6908_v19 }
0x2bc7   :  { %v6930_v11 = vadd.f32 %v11252_v47, %v6919_v5 }
0x2bc9   :  { %v6934_v33 = vpack.c.bf16 %v6930_v11, %v6929_v34 }
0x2bcb   :  { %7508 = vmatmul.msk.bf16.gmra.mxu3 %vm377_vm0, %v6934_v33 }
0x2bd3   :  { %v6976_v29 = vpop.f32.mrf.mxu3 }
0x2bd4   :  { %v6977_v61 = vadd.f32 %v7601_v60, %v6976_v29 }
0x2bd6   :  { %6996 = vmax.xlane.f32.xlu1 %v6977_v61 }
0x2bdb   :  { %v6978_v45 = vpop.f32.mrf.mxu3 }
0x2bdc   :  { %v6979_v6 = vadd.f32 %v7601_v60, %v6978_v45 }
0x2bde   :  { %6998 = vmax.xlane.f32.xlu0 %v6979_v6 }
0x2c0c   :  { %v6981_v40 = vpop.f32.mrf.mxu3 }
0x2c0d   :  { %v6982_v58 = vadd.f32 %v7601_v60, %v6981_v40 }
0x2c0f   :  { %7000 = vmax.xlane.f32.xlu2 %v6982_v58 }
0x2c14   :  { %v6983_v62 = vpop.f32.mrf.mxu3 }
0x2c15   :  { %v6984_v37 = vadd.f32 %v7601_v60, %v6983_v62 }
0x2c17   :  { %7002 = vmax.xlane.f32.xlu1 %v6984_v37 }
0x2c1c   :  { %v6986_v47 = vpop.f32.mrf.mxu3 }
0x2c1d   :  { %v6987_v24 = vadd.f32 %v7601_v60, %v6986_v47 }
0x2c1f   :  { %7004 = vmax.xlane.f32.xlu0 %v6987_v24 }
0x2c24   :  { %v6988_v15 = vpop.f32.mrf.mxu3 }
0x2c25   :  { %v6989_v32 = vadd.f32 %v7601_v60, %v6988_v15 }
0x2c27   :  { %7006 = vmax.xlane.f32.xlu2 %v6989_v32 }
0x2c49   :  { %v6997_v55 = vpop.xlane.xlu1 %6996 }
0x2c4a   :  { %v7012_v21 = vsub.f32 %v6977_v61, %v6997_v55 }
0x2c4c   :  { %v7020_v39 = vmul.f32 1.442695, %v7012_v21 }
0x2c4e   :  { %7988 = vpow2.f32 %v7020_v39  ;;  %v6991_v27 = vpop.f32.mrf.mxu3 }
0x2c4f   :  { %v6992_v20 = vadd.f32 %v7601_v60, %v6991_v27 }
0x2c51   :  { %v6999_v56 = vpop.xlane.xlu0 %6998  ;;  %7008 = vmax.xlane.f32.xlu1 %v6992_v20 }
0x2c52   :  { %v11290_v12 = vsub.f32 %v6979_v6, %v6999_v56 }
0x2c54   :  { %v7989_v48 = vpop.eup %7988  ;;  %v7022_v63 = vmul.f32 1.442695, %v11290_v12 }
0x2c55   :  { %7036 = vadd.xlane.f32.xlu2 %v7989_v48 }
0x2c56   :  { %7990 = vpow2.f32 %v7022_v63  ;;  %v6993_v50 = vpop.f32.mrf.mxu3 }
0x2c57   :  { %v6994_v42 = vadd.f32 %v7601_v60, %v6993_v50 }
0x2c59   :  { %7010 = vmax.xlane.f32.xlu0 %v6994_v42 }
0x2c5c   :  { %v7991_v8 = vpop.eup %7990 }
0x2c5d   :  { %7038 = vadd.xlane.f32.xlu1 %v7991_v8 }
0x2c82   :  { %v7001_v53 = vpop.xlane.xlu2 %7000 }
0x2c83   :  { %v11293_v1 = vsub.f32 %v6982_v58, %v7001_v53 }
0x2c85   :  { %v7024_v51 = vmul.f32 1.442695, %v11293_v1 }
0x2c87   :  { %7992 = vpow2.f32 %v7024_v51 }
0x2c8a   :  { %v7003_v31 = vpop.xlane.xlu1 %7002 }
0x2c8b   :  { %v11296_v18 = vsub.f32 %v6984_v37, %v7003_v31 }
0x2c8d   :  { %v7993_v49 = vpop.eup %7992  ;;  %v7026_v44 = vmul.f32 1.442695, %v11296_v18 }
0x2c8e   :  { %7040 = vadd.xlane.f32.xlu0 %v7993_v49 }
0x2c8f   :  { %7994 = vpow2.f32 %v7026_v44 }
0x2c92   :  { %v7005_v13 = vpop.xlane.xlu0 %7004 }
0x2c93   :  { %v11299_v3 = vsub.f32 %v6987_v24, %v7005_v13 }
0x2c95   :  { %v7995_v17 = vpop.eup %7994  ;;  %v7028_v25 = vmul.f32 1.442695, %v11299_v3 }
0x2c96   :  { %7042 = vadd.xlane.f32.xlu2 %v7995_v17 }
0x2c97   :  { %7996 = vpow2.f32 %v7028_v25 }
0x2c9a   :  { %v7007_v26 = vpop.xlane.xlu2 %7006 }
0x2c9b   :  { %v11302_v28 = vsub.f32 %v6989_v32, %v7007_v26 }
0x2c9d   :  { %v7997_v54 = vpop.eup %7996  ;;  %v7030_v46 = vmul.f32 1.442695, %v11302_v28 }
0x2c9e   :  { %7044 = vadd.xlane.f32.xlu1 %v7997_v54 }
0x2c9f   :  { %7998 = vpow2.f32 %v7030_v46 }
0x2ca5   :  { %v7999_v7 = vpop.eup %7998 }
0x2ca6   :  { %7046 = vadd.xlane.f32.xlu0 %v7999_v7 }
0x2cba   :  { %974 = vrot.lane.b32.xlu0 %v8956_v2, %s8579_s23 }
0x2cc4   :  { %v7009_v57 = vpop.xlane.xlu1 %7008 }
0x2cc5   :  { %v11306_v38 = vsub.f32 %v6992_v20, %v7009_v57 }
0x2cc7   :  { %v7032_v43 = vmul.f32 1.442695, %v11306_v38 }
0x2cc8   :  { %v7037_v16 = vpop.xlane.xlu2 %7036 }
0x2cc9   :  { %8000 = vpow2.f32 %v7032_v43 }
0x2cca   :  { %8002 = vlog2.f32 %v7037_v16 }
0x2ccc   :  { %v7011_v14 = vpop.xlane.xlu0 %7010 }
0x2ccd   :  { %v11309_v22 = vsub.f32 %v6994_v42, %v7011_v14 }
0x2ccf   :  { %v8001_v36 = vpop.eup %8000  ;;  %v7034_v0 = vmul.f32 1.442695, %v11309_v22 }
0x2cd0   :  { %v8003_v41 = vpop.eup %8002  ;;  %7048 = vadd.xlane.f32.xlu2 %v8001_v36  ;;  %v7039_v59 = vpop.xlane.xlu1 %7038 }
0x2cd1   :  { %v7053_v10 = vmul.f32 0.6931472, %v8003_v41  ;;  %8004 = vpow2.f32 %v7034_v0 }
0x2cd2   :  { %8006 = vlog2.f32 %v7039_v59 }
0x2cd3   :  { %v7068_v2 = vsub.f32 %v7012_v21, %v7053_v10 }
0x2cd5   :  { %7076 = vst [vmem:[#allocation31] sm:$0xff] %v7068_v2 }
0x2cd7   :  { %v8005_v35 = vpop.eup %8004 }
0x2cd8   :  { %v8007_v23 = vpop.eup %8006  ;;  %7050 = vadd.xlane.f32.xlu1 %v8005_v35 }
0x2cd9   :  { %v7055_v30 = vmul.f32 0.6931472, %v8007_v23 }
0x2cdb   :  { %v7069_v4 = vsub.f32 %v11290_v12, %v7055_v30 }
0x2cdd   :  { %7077 = vst [vmem:[#allocation31 + $0x8] sm:$0xff] %v7069_v4 }
0x2d01   :  { %v7041_v52 = vpop.xlane.xlu0 %7040 }
0x2d02   :  { %8008 = vlog2.f32 %v7041_v52 }
0x2d08   :  { %v8009_v19 = vpop.eup %8008 }
0x2d09   :  { %v7057_v9 = vmul.f32 0.6931472, %v8009_v19  ;;  %v7043_v5 = vpop.xlane.xlu2 %7042 }
0x2d0a   :  { %8010 = vlog2.f32 %v7043_v5 }
0x2d0b   :  { %v7070_v34 = vsub.f32 %v11293_v1, %v7057_v9 }
0x2d0d   :  { %7078 = vst [vmem:[#allocation31 + $0x10] sm:$0xff] %v7070_v34 }
0x2d10   :  { %v8011_v11 = vpop.eup %8010 }
0x2d11   :  { %v7059_v33 = vmul.f32 0.6931472, %v8011_v11  ;;  %v7045_v60 = vpop.xlane.xlu1 %7044 }
0x2d12   :  { %8012 = vlog2.f32 %v7045_v60 }
0x2d13   :  { %v7071_v29 = vsub.f32 %v11296_v18, %v7059_v33 }
0x2d15   :  { %7079 = vst [vmem:[#allocation31 + $0x18] sm:$0xff] %v7071_v29 }
0x2d18   :  { %v8013_v61 = vpop.eup %8012 }
0x2d19   :  { %v7061_v45 = vmul.f32 0.6931472, %v8013_v61  ;;  %v7047_v6 = vpop.xlane.xlu0 %7046 }
0x2d1a   :  { %8014 = vlog2.f32 %v7047_v6 }
0x2d1b   :  { %v7072_v40 = vsub.f32 %v11299_v3, %v7061_v45 }
0x2d1d   :  { %7080 = vst [vmem:[#allocation31 + $0x20] sm:$0xff] %v7072_v40 }
0x2d20   :  { %v8015_v58 = vpop.eup %8014 }
0x2d21   :  { %v7063_v62 = vmul.f32 0.6931472, %v8015_v58 }
0x2d23   :  { %v7073_v37 = vsub.f32 %v11302_v28, %v7063_v62 }
0x2d25   :  { %7081 = vst [vmem:[#allocation31 + $0x28] sm:$0xff] %v7073_v37 }
0x2d2c   :  { %v975_v47 = vpop.permute.xlu0 %974 }
0x2d2d   :  { %977 = vst.msk [vmem:[#allocation34] sm:$0xff] %vm377_vm0, %v975_v47 }
0x2d2e   :  { %7118 = dma.vmem_to_hbm [thread:$0]  %s7114_s3, 128, %s7116_s10, [#allocation33]  }
0x2d43   :  { %v7049_v24 = vpop.xlane.xlu2 %7048 }
0x2d44   :  { %8016 = vlog2.f32 %v7049_v24 }
0x2d4a   :  { %v8017_v15 = vpop.eup %8016 }
0x2d4b   :  { %v7065_v32 = vmul.f32 0.6931472, %v8017_v15  ;;  %v7051_v55 = vpop.xlane.xlu1 %7050 }
0x2d4c   :  { %8018 = vlog2.f32 %v7051_v55 }
0x2d4d   :  { %v7074_v21 = vsub.f32 %v11306_v38, %v7065_v32 }
0x2d4f   :  { %7082 = vst [vmem:[#allocation31 + $0x30] sm:$0xff] %v7074_v21 }
0x2d52   :  { %v8019_v39 = vpop.eup %8018 }
0x2d53   :  { %v7067_v27 = vmul.f32 0.6931472, %v8019_v39 }
0x2d55   :  { %v7075_v20 = vsub.f32 %v11309_v22, %v7067_v27 }
0x2d57   :  { %7083 = vst [vmem:[#allocation31 + $0x38] sm:$0xff] %v7075_v20 }
0x2d58   :  { %7096 = dma.vmem_to_hbm [thread:$0]  %s7089_s2, 1024, %s7091_s7, [#allocation6], %s8582_s25, %s8582_s25, %s8576_s5  }
0x2d59   :  { %8542 = dma.done.wait [#allocation6], 1024  }
0x2d5a   :  { %8543 = vsyncadd [#allocation6], 4294966272 }
0x2d5b   :  { %8544 = dma.done.wait [#allocation33], 256  }
0x2d5c   :  { %8545 = vsyncadd [#allocation33], 4294967040 }
0x2d5d   :  { %8546 = dma.done.wait [#allocation36], 2048  }
0x2d5e   :  { %8547 = vsyncadd [#allocation36], 4294965248 }
0x2d5f   :  { %7148 = vsyncpa [#allocation5], 1 }
0x2d60   :  { %7149 = vsyncpa [#allocation8], 1 }
0x2d61   :  { %7150 = vsyncpa [#allocation11], 1 }
0x2d62   :  { %7151 = vsyncpa [#allocation14], 1 }
0x2d63   :  { %7152 = vsyncpa [#allocation17], 1 }
0x2d64   :  { %7153 = vsyncpa [#allocation20], 1 }
0x2d65   :  { %7154 = vsyncpa [#allocation23], 1 }
0x2d66   :  { %7155 = vsyncpa [#allocation26], 1 }
0x2d67   :  { %7156 = vsyncpa [#allocation29], 1 }
0x2d68   :  { %7157 = vsyncpa [#allocation6], 1 }
0x2d69   :  { %7158 = vsyncpa [#allocation33], 1 }
0x2d6a   :  { %7159 = vsyncpa [#allocation36], 1 }

</bundles_post_ra>
